<compile_context>
chip_gen: v6e
topology: v6e:2x2x1
jax: 0.10.0
libtpu: 0.0.40
codegen_flags: <defaults>
</compile_context>

<pallas_src>
import functools

import numpy as np
import jax
import jax.numpy as jnp
from jax.experimental import pallas as pl
from jax.experimental.pallas import tpu as pltpu


_LANE = 128

# ----------------------------------------------------------------------------
# Network description (mirrors the PyTorch module).
# ----------------------------------------------------------------------------
_LAYERS = (
    dict(kind="conv",  name="e1", k=3, s=2, p=1, op=0, cin=1,  cout=20, act="relu",    emit_encoded=False),
    dict(kind="conv",  name="e2", k=3, s=2, p=1, op=0, cin=20, cout=32, act="relu",    emit_encoded=False),
    dict(kind="conv",  name="e3", k=7, s=1, p=0, op=0, cin=32, cout=64, act="none",    emit_encoded=True),
    dict(kind="convt", name="d1", k=7, s=1, p=0, op=0, cin=64, cout=32, act="relu",    emit_encoded=False),
    dict(kind="convt", name="d2", k=3, s=2, p=1, op=1, cin=32, cout=20, act="relu",    emit_encoded=False),
    dict(kind="convt", name="d3", k=3, s=2, p=1, op=1, cin=20, cout=1,  act="sigmoid", emit_encoded=False),
)


def _pad128(n):
    return ((n + _LANE - 1) // _LANE) * _LANE


def _out_size(kind, size, k, s, p, op):
    if kind == "conv":
        return (size + 2 * p - k) // s + 1
    return (size - 1) * s - 2 * p + k + op


def _src_index(kind, o, t, k, s, p, size_in):
    """Input coordinate feeding output coordinate `o` through tap `t` (or None)."""
    if kind == "conv":
        src = o * s + t - p
        return src if 0 <= src < size_in else None
    # Transposed conv == stride-1 conv over the zero-dilated, asymmetrically
    # padded input (lo = k-1-p leading pad), with the flipped kernel.
    lo = k - 1 - p
    q = o + t - lo
    if q < 0 or q % s != 0:
        return None
    src = q // s
    return src if src < size_in else None


# ----------------------------------------------------------------------------
# Host-side (numpy) precomputation of per-layer packed G / S / bias matrices.
# ----------------------------------------------------------------------------
def prepare_fused_params(params, image_hw=(28, 28), b_tile=8,
                         compute_dtype=jnp.bfloat16):
    h, w = image_hw
    plan, arrays = [], []
    for spec in _LAYERS:
        kind, k, s, p, op = spec["kind"], spec["k"], spec["s"], spec["p"], spec["op"]
        cin, cout = spec["cin"], spec["cout"]
        wgt = np.asarray(params[spec["name"] + "_w"], np.float32)
        bias = np.asarray(params[spec["name"] + "_b"], np.float32)
        ho = _out_size(kind, h, k, s, p, op)
        wo = _out_size(kind, w, k, s, p, op)
        kpad, npad = _pad128(w * cin), _pad128(wo * cout)   # lane-dense widths

        # wmat[ki, kj, ci, co]
        if kind == "conv":                      # torch weight: (Cout, Cin, k, k)
            wmat = np.transpose(wgt, (2, 3, 1, 0))
        else:                                   # torch weight: (Cin, Cout, k, k), flipped
            wmat = np.transpose(wgt[:, :, ::-1, ::-1], (2, 3, 0, 1))

        # Horizontal taps + channel contraction -> banded matrices (lane padded).
        g = np.zeros((k, kpad, npad), np.float32)
        for woi in range(wo):
            for kj in range(k):
                wi = _src_index(kind, woi, kj, k, s, p, w)
                if wi is None:
                    continue
                g[:, wi * cin:(wi + 1) * cin, woi * cout:(woi + 1) * cout] = wmat[:, kj]

        # Per-image vertical 0/1 selection per tap.
        sel = np.zeros((k, ho, h), np.float32)
        for hoi in range(ho):
            for ki in range(k):
                hi = _src_index(kind, hoi, ki, k, s, p, h)
                if hi is not None:
                    sel[ki, hoi, hi] = 1.0

        brow = np.zeros((1, npad), np.float32)
        brow[0, :wo * cout] = np.tile(bias, wo)

        if kind == "conv":
            # S-first (H_out <= H_in): k block-diag row selections, then one
            # K-packed weight matmul.
            gmain = np.concatenate(list(g), axis=0)            # (k*kpad, npad)
            eye = np.eye(b_tile, dtype=np.float32)
            smat = np.concatenate([np.kron(eye, sel[t]) for t in range(k)],
                                  axis=0)                      # (k*Bt*ho, Bt*h)
        else:
            # convT, G-first (H_in < H_out): one wide weight matmul on the small
            # input-row side, then one packed 0/1 assembly matmul.
            gmain = np.concatenate(list(g), axis=1)            # (kpad, k*npad)
            smat = np.zeros((b_tile * ho, k * b_tile * h), np.float32)
            for o in range(ho):
                for t in range(k):
                    i = _src_index(kind, o, t, k, s, p, h)
                    if i is None:
                        continue
                    for b in range(b_tile):
                        smat[b * ho + o, t * b_tile * h + b * h + i] = 1.0

        arrays += [jnp.asarray(gmain, compute_dtype),
                   jnp.asarray(brow, jnp.float32),
                   jnp.asarray(smat, compute_dtype)]           # 0/1 exact in bf16
        plan.append(dict(kind=kind, k=k, kpad=kpad, npad=npad,
                         h_in=h, w_in=w, h_out=ho, w_out=wo, cin=cin, cout=cout,
                         rows_in=b_tile * h, rows_out=b_tile * ho,
                         act=spec["act"], emit_encoded=spec["emit_encoded"]))
        h, w = ho, wo
    return tuple(plan), tuple(arrays)


# ----------------------------------------------------------------------------
# The fused Pallas kernel: one grid step = one batch tile, all 6 layers in VMEM.
# ----------------------------------------------------------------------------
def _fused_autoencoder_kernel(*refs, plan):
    """refs = (x, [G, bias, S] * n_layers, encoded_out, decoded_out)."""
    x_ref = refs[0]
    enc_ref, dec_ref = refs[-2], refs[-1]
    pr = refs[1:-2]

    act = x_ref[...]                                  # f32 (B_tile*H0, 128)
    for li, L in enumerate(plan):
        g_ref, b_ref, s_ref = pr[3 * li], pr[3 * li + 1], pr[3 * li + 2]
        k, npad = L["k"], L["npad"]
        a16 = act.astype(jnp.bfloat16)                # single cast per layer
        s16 = s_ref[...]                              # 0/1 selection, bf16 (exact)

        if L["kind"] == "conv":
            # Vertical taps: exact block-diag row selection, fused into one
            # K-packed MXU contraction.
            m = L["rows_out"]
            parts = [jnp.dot(s16[t * m:(t + 1) * m, :], a16,
                             preferred_element_type=jnp.float32)
                     for t in range(k)]
            lhs = (jnp.concatenate(parts, axis=1) if k > 1 else parts[0]
                   ).astype(jnp.bfloat16)             # exact: pure 0/1 selection
            y = jnp.dot(lhs, g_ref[...], preferred_element_type=jnp.float32)
        else:
            # Transposed conv: heavy contraction on the SMALLER (input-row)
            # side, then one packed 0/1 assembly matmul places the rows.
            xg = jnp.dot(a16, g_ref[...], preferred_element_type=jnp.float32)
            v = (jnp.concatenate([xg[:, t * npad:(t + 1) * npad]
                                  for t in range(k)], axis=0)
                 if k > 1 else xg).astype(jnp.bfloat16)
            y = jnp.dot(s16, v, preferred_element_type=jnp.float32)

        y = y + b_ref[...]                            # bias (1, Npad) broadcast
        if L["act"] == "relu":
            y = jnp.maximum(y, 0.0)
        elif L["act"] == "sigmoid":
            # exp on the EUP + approximate reciprocal (free slots under the MXU)
            y = pl.reciprocal(1.0 + jnp.exp(-y), approx=True)
        act = y
        if L["emit_encoded"]:
            enc_ref[...] = act.astype(enc_ref.dtype)
    dec_ref[...] = act.astype(dec_ref.dtype)


# ----------------------------------------------------------------------------
# Wrapper: builds the single pallas_call and the jitted forward function.
# ----------------------------------------------------------------------------
def build_forward(plan, b_tile):
    l0, llast = plan[0], plan[-1]
    enc_l = next(L for L in plan if L["emit_encoded"])

    h0, w0, c0 = l0["h_in"], l0["w_in"], l0["cin"]
    in_lanes = l0["kpad"]
    enc_h, enc_w, enc_c, enc_lanes = enc_l["h_out"], enc_l["w_out"], enc_l["cout"], enc_l["npad"]
    dec_h, dec_w, dec_c, dec_lanes = llast["h_out"], llast["w_out"], llast["cout"], llast["npad"]
    enc_rows = b_tile * enc_h
    dec_rows = b_tile * dec_h

    kernel = functools.partial(_fused_autoencoder_kernel, plan=plan)

    @jax.jit
    def forward(arrays, x):
        B = x.shape[0]
        n_tiles = -(-B // b_tile)
        b_pad = n_tiles * b_tile

        # NCHW -> (B, H, W*C); zero-pad batch to a multiple of b_tile and lanes
        # to 128; stack images along the row (M/sublane) axis.
        x2 = jnp.transpose(x, (0, 2, 3, 1)).reshape(B, h0, w0 * c0)
        x2 = jnp.pad(x2, ((0, b_pad - B), (0, 0), (0, in_lanes - w0 * c0)))
        x2 = x2.reshape(b_pad * h0, in_lanes)

        in_specs = [pl.BlockSpec((b_tile * h0, in_lanes), lambda g: (g, 0))]
        for a in arrays:
            # Constant index_map: fetched once, resident across all grid steps.
            in_specs.append(pl.BlockSpec(a.shape, lambda g: (0, 0)))
        out_specs = (
            pl.BlockSpec((enc_rows, enc_lanes), lambda g: (g, 0)),
            pl.BlockSpec((dec_rows, dec_lanes), lambda g: (g, 0)),
        )
        out_shape = (
            jax.ShapeDtypeStruct((n_tiles * enc_rows, enc_lanes), jnp.float32),
            jax.ShapeDtypeStruct((n_tiles * dec_rows, dec_lanes), jnp.float32),
        )

        # Advisory cost estimate for the whole fused call.
        flops_step = 0
        for L in plan:
            if L["kind"] == "conv":
                flops_step += 2 * L["k"] * L["rows_out"] * L["rows_in"] * L["kpad"]
                flops_step += 2 * L["rows_out"] * L["k"] * L["kpad"] * L["npad"]
            else:
                flops_step += 2 * L["rows_in"] * L["kpad"] * L["k"] * L["npad"]
                flops_step += 2 * L["rows_out"] * L["k"] * L["rows_in"] * L["npad"]
        param_bytes = sum(int(a.size) * a.dtype.itemsize for a in arrays)
        io_bytes = 4 * (int(x2.size)
                        + n_tiles * (enc_rows * enc_lanes + dec_rows * dec_lanes))
        cost = pl.CostEstimate(flops=int(flops_step * n_tiles),
                               transcendentals=int(n_tiles * dec_rows * dec_lanes),
                               bytes_accessed=int(param_bytes + io_bytes))

        enc2, dec2 = pl.pallas_call(
            kernel,
            out_shape=out_shape,
            grid=(n_tiles,),
            in_specs=in_specs,
            out_specs=out_specs,
            compiler_params=pltpu.CompilerParams(
                dimension_semantics=("parallel",)),   # shard batch tiles across TCs
            cost_estimate=cost,
        )(x2, *arrays)

        # Un-flatten, drop lane / batch padding, back to NCHW.
        encoded = (enc2.reshape(b_pad, enc_h, enc_lanes)[:B, :, :enc_w * enc_c]
                   .reshape(B, enc_h, enc_w, enc_c).transpose(0, 3, 1, 2))
        decoded = (dec2.reshape(b_pad, dec_h, dec_lanes)[:B, :, :dec_w * dec_c]
                   .reshape(B, dec_h, dec_w, dec_c).transpose(0, 3, 1, 2))
        return encoded, decoded

    return forward


# ----------------------------------------------------------------------------
# Parameter construction (deterministic, synthetic, PyTorch-style init).
# ----------------------------------------------------------------------------
def _uniform_wb(key, w_shape, bias_dim):
    kw, kb = jax.random.split(key)
    fan_in = w_shape[1] * w_shape[2] * w_shape[3]
    scale = 1.0 / float(np.sqrt(fan_in))
    w = jax.random.uniform(kw, w_shape, jnp.float32, -scale, scale)
    b = jax.random.uniform(kb, (bias_dim,), jnp.float32, -scale, scale)
    return w, b


def init_params(key):
    keys = jax.random.split(key, 6)
    params = {}
    # Encoder conv weights: (Cout, Cin, k, k)
    params["e1_w"], params["e1_b"] = _uniform_wb(keys[0], (20, 1, 3, 3), bias_dim=20)
    params["e2_w"], params["e2_b"] = _uniform_wb(keys[1], (32, 20, 3, 3), bias_dim=32)
    params["e3_w"], params["e3_b"] = _uniform_wb(keys[2], (64, 32, 7, 7), bias_dim=64)
    # Decoder conv-transpose weights: (Cin, Cout, k, k)  (PyTorch layout)
    params["d1_w"], params["d1_b"] = _uniform_wb(keys[3], (64, 32, 7, 7), bias_dim=32)
    params["d2_w"], params["d2_b"] = _uniform_wb(keys[4], (32, 20, 3, 3), bias_dim=20)
    params["d3_w"], params["d3_b"] = _uniform_wb(keys[5], (20, 1, 3, 3), bias_dim=1)
    return params


# ----------------------------------------------------------------------------
# Plain-JAX reference (f32) used only for a numerical sanity check.
# ----------------------------------------------------------------------------
def _reference_forward(params, x):
    dn = ("NCHW", "OIHW", "NCHW")

    def conv(h, w, b, s, p):
        y = jax.lax.conv_general_dilated(h, w, (s, s), [(p, p), (p, p)],
                                         dimension_numbers=dn)
        return y + b.reshape(1, -1, 1, 1)

    def convt(h, w, b, s, p, op):
        k = w.shape[-1]
        wf = jnp.flip(w, (-1, -2)).transpose(1, 0, 2, 3)   # (Cout, Cin, k, k)
        y = jax.lax.conv_general_dilated(
            h, wf, (1, 1), [(k - 1 - p, k - 1 - p + op)] * 2,
            lhs_dilation=(s, s), dimension_numbers=dn)
        return y + b.reshape(1, -1, 1, 1)

    h = jax.nn.relu(conv(x, params["e1_w"], params["e1_b"], 2, 1))
    h = jax.nn.relu(conv(h, params["e2_w"], params["e2_b"], 2, 1))
    encoded = conv(h, params["e3_w"], params["e3_b"], 1, 0)
    d = jax.nn.relu(convt(encoded, params["d1_w"], params["d1_b"], 1, 0, 0))
    d = jax.nn.relu(convt(d, params["d2_w"], params["d2_b"], 2, 1, 1))
    decoded = jax.nn.sigmoid(convt(d, params["d3_w"], params["d3_b"], 2, 1, 1))
    return encoded, decoded


if __name__ == "__main__":
    key = jax.random.PRNGKey(0)
    kp, kx = jax.random.split(key)
    params = init_params(kp)

    # MNIST-like input: batch=2, 1 channel, 28x28 (the 7x7 bottleneck conv
    # requires the 28 -> 14 -> 7 spatial reduction).
    B = 2
    B_TILE = 8          # images per grid step (raise to 16-32 for real batches;
                        # keep n_tiles >= number of TensorCores on v7x)
    x = jax.random.uniform(kx, (B, 1, 28, 28), jnp.float32)

    plan, arrays = prepare_fused_params(params, image_hw=(28, 28), b_tile=B_TILE)
    forward = build_forward(plan, b_tile=B_TILE)

    encoded, decoded = forward(arrays, x)
    jax.block_until_ready((encoded, decoded))

    assert encoded.shape == (B, 64, 1, 1), encoded.shape
    assert decoded.shape == (B, 1, 28, 28), decoded.shape
    # approx-reciprocal sigmoid may overshoot 1.0 by ~1e-3 in the extreme tail
    assert bool(jnp.all(decoded >= 0.0) & jnp.all(decoded <= 1.0 + 2e-3))
    assert bool(jnp.all(jnp.isfinite(encoded)) & jnp.all(jnp.isfinite(decoded)))

    # Numerical sanity check against the plain-JAX f32 reference
    # (bf16 MXU operands -> small, bounded deviation).
    ref_encoded, ref_decoded = jax.jit(_reference_forward)(params, x)
    jax.block_until_ready((ref_encoded, ref_decoded))
    assert float(jnp.max(jnp.abs(encoded - ref_encoded))) < 5e-2
    assert float(jnp.max(jnp.abs(decoded - ref_decoded))) < 5e-2

    print("KERNEL_OK")
</pallas_src>

<mosaic_0001>
module attributes {stable_mosaic.version = 11 : i64} {
  func.func @_fused_autoencoder_kernel(%arg0: i32, %arg1: memref<224x128xf32, #tpu.memory_space<vmem>>, %arg2: memref<384x384xbf16, #tpu.memory_space<vmem>>, %arg3: memref<1x384xf32, #tpu.memory_space<vmem>>, %arg4: memref<336x224xbf16, #tpu.memory_space<vmem>>, %arg5: memref<1152x256xbf16, #tpu.memory_space<vmem>>, %arg6: memref<1x256xf32, #tpu.memory_space<vmem>>, %arg7: memref<168x112xbf16, #tpu.memory_space<vmem>>, %arg8: memref<1792x128xbf16, #tpu.memory_space<vmem>>, %arg9: memref<1x128xf32, #tpu.memory_space<vmem>>, %arg10: memref<56x56xbf16, #tpu.memory_space<vmem>>, %arg11: memref<128x1792xbf16, #tpu.memory_space<vmem>>, %arg12: memref<1x256xf32, #tpu.memory_space<vmem>>, %arg13: memref<56x56xbf16, #tpu.memory_space<vmem>>, %arg14: memref<256x1152xbf16, #tpu.memory_space<vmem>>, %arg15: memref<1x384xf32, #tpu.memory_space<vmem>>, %arg16: memref<112x168xbf16, #tpu.memory_space<vmem>>, %arg17: memref<384x384xbf16, #tpu.memory_space<vmem>>, %arg18: memref<1x128xf32, #tpu.memory_space<vmem>>, %arg19: memref<224x336xbf16, #tpu.memory_space<vmem>>, %arg20: memref<8x128xf32, #tpu.memory_space<vmem>>, %arg21: memref<224x128xf32, #tpu.memory_space<vmem>>) attributes {dimension_semantics = [#tpu.dimension_semantics<parallel>], iteration_bounds = array<i64: 1>, scalar_prefetch = 0 : i64, scratch_operands = 0 : i64, tpu.core_type = #tpu.core_type<tc>, window_params = [{transform_indices = @transform_0, window_bounds = array<i64: 224, 128>}, {pipeline_mode = #tpu.pipeline_mode<synchronous>, transform_indices = @transform_1, window_bounds = array<i64: 384, 384>}, {pipeline_mode = #tpu.pipeline_mode<synchronous>, transform_indices = @transform_2, window_bounds = array<i64: 1, 384>}, {pipeline_mode = #tpu.pipeline_mode<synchronous>, transform_indices = @transform_3, window_bounds = array<i64: 336, 224>}, {pipeline_mode = #tpu.pipeline_mode<synchronous>, transform_indices = @transform_4, window_bounds = array<i64: 1152, 256>}, {pipeline_mode = #tpu.pipeline_mode<synchronous>, transform_indices = @transform_5, window_bounds = array<i64: 1, 256>}, {pipeline_mode = #tpu.pipeline_mode<synchronous>, transform_indices = @transform_6, window_bounds = array<i64: 168, 112>}, {pipeline_mode = #tpu.pipeline_mode<synchronous>, transform_indices = @transform_7, window_bounds = array<i64: 1792, 128>}, {pipeline_mode = #tpu.pipeline_mode<synchronous>, transform_indices = @transform_8, window_bounds = array<i64: 1, 128>}, {pipeline_mode = #tpu.pipeline_mode<synchronous>, transform_indices = @transform_9, window_bounds = array<i64: 56, 56>}, {pipeline_mode = #tpu.pipeline_mode<synchronous>, transform_indices = @transform_10, window_bounds = array<i64: 128, 1792>}, {pipeline_mode = #tpu.pipeline_mode<synchronous>, transform_indices = @transform_11, window_bounds = array<i64: 1, 256>}, {pipeline_mode = #tpu.pipeline_mode<synchronous>, transform_indices = @transform_12, window_bounds = array<i64: 56, 56>}, {pipeline_mode = #tpu.pipeline_mode<synchronous>, transform_indices = @transform_13, window_bounds = array<i64: 256, 1152>}, {pipeline_mode = #tpu.pipeline_mode<synchronous>, transform_indices = @transform_14, window_bounds = array<i64: 1, 384>}, {pipeline_mode = #tpu.pipeline_mode<synchronous>, transform_indices = @transform_15, window_bounds = array<i64: 112, 168>}, {pipeline_mode = #tpu.pipeline_mode<synchronous>, transform_indices = @transform_16, window_bounds = array<i64: 384, 384>}, {pipeline_mode = #tpu.pipeline_mode<synchronous>, transform_indices = @transform_17, window_bounds = array<i64: 1, 128>}, {pipeline_mode = #tpu.pipeline_mode<synchronous>, transform_indices = @transform_18, window_bounds = array<i64: 224, 336>}, {transform_indices = @transform_19, window_bounds = array<i64: 8, 128>}, {transform_indices = @transform_20, window_bounds = array<i64: 224, 128>}]} {
    %c0 = arith.constant 0 : index
    %c0_0 = arith.constant 0 : index
    %0 = vector.load %arg1[%c0, %c0_0] : memref<224x128xf32, #tpu.memory_space<vmem>>, vector<224x128xf32>
    %1 = arith.truncf %0 : vector<224x128xf32> to vector<224x128xbf16>
    %c0_1 = arith.constant 0 : index
    %c0_2 = arith.constant 0 : index
    %2 = vector.load %arg4[%c0_1, %c0_2] : memref<336x224xbf16, #tpu.memory_space<vmem>>, vector<336x224xbf16>
    %3 = vector.extract_strided_slice %2 {offsets = [0, 0], sizes = [112, 224], strides = [1, 1]} : vector<336x224xbf16> to vector<112x224xbf16>
    %cst = arith.constant dense<0.000000e+00> : vector<112x128xf32>
    %4 = tpu.matmul %3, %1, %cst {dimension_numbers = #tpu.dot_dimension_numbers<[1], [0], [0], [1], [0, 0, 1, 1], [], []>} : vector<112x224xbf16>, vector<224x128xbf16>, vector<112x128xf32> -> vector<112x128xf32>
    %5 = vector.extract_strided_slice %2 {offsets = [112, 0], sizes = [112, 224], strides = [1, 1]} : vector<336x224xbf16> to vector<112x224xbf16>
    %cst_3 = arith.constant dense<0.000000e+00> : vector<112x128xf32>
    %6 = tpu.matmul %5, %1, %cst_3 {dimension_numbers = #tpu.dot_dimension_numbers<[1], [0], [0], [1], [0, 0, 1, 1], [], []>} : vector<112x224xbf16>, vector<224x128xbf16>, vector<112x128xf32> -> vector<112x128xf32>
    %7 = vector.extract_strided_slice %2 {offsets = [224, 0], sizes = [112, 224], strides = [1, 1]} : vector<336x224xbf16> to vector<112x224xbf16>
    %cst_4 = arith.constant dense<0.000000e+00> : vector<112x128xf32>
    %8 = tpu.matmul %7, %1, %cst_4 {dimension_numbers = #tpu.dot_dimension_numbers<[1], [0], [0], [1], [0, 0, 1, 1], [], []>} : vector<112x224xbf16>, vector<224x128xbf16>, vector<112x128xf32> -> vector<112x128xf32>
    %9 = tpu.concatenate %4, %6, %8 in 1 : vector<112x128xf32>, vector<112x128xf32>, vector<112x128xf32> -> vector<112x384xf32>
    %10 = arith.truncf %9 : vector<112x384xf32> to vector<112x384xbf16>
    %c0_5 = arith.constant 0 : index
    %c0_6 = arith.constant 0 : index
    %11 = vector.load %arg2[%c0_5, %c0_6] : memref<384x384xbf16, #tpu.memory_space<vmem>>, vector<384x384xbf16>
    %cst_7 = arith.constant dense<0.000000e+00> : vector<112x384xf32>
    %12 = tpu.matmul %10, %11, %cst_7 {dimension_numbers = #tpu.dot_dimension_numbers<[1], [0], [0], [1], [0, 0, 1, 1], [], []>} : vector<112x384xbf16>, vector<384x384xbf16>, vector<112x384xf32> -> vector<112x384xf32>
    %c0_8 = arith.constant 0 : index
    %c0_9 = arith.constant 0 : index
    %13 = vector.load %arg3[%c0_8, %c0_9] : memref<1x384xf32, #tpu.memory_space<vmem>>, vector<1x384xf32>
    %14 = vector.broadcast %13 : vector<1x384xf32> to vector<112x384xf32>
    %15 = arith.addf %12, %14 : vector<112x384xf32>
    %cst_10 = arith.constant 0.000000e+00 : f32
    %16 = vector.broadcast %cst_10 : f32 to vector<112x384xf32>
    %17 = arith.maximumf %15, %16 : vector<112x384xf32>
    %18 = arith.truncf %17 : vector<112x384xf32> to vector<112x384xbf16>
    %c0_11 = arith.constant 0 : index
    %c0_12 = arith.constant 0 : index
    %19 = vector.load %arg7[%c0_11, %c0_12] : memref<168x112xbf16, #tpu.memory_space<vmem>>, vector<168x112xbf16>
    %20 = vector.extract_strided_slice %19 {offsets = [0, 0], sizes = [56, 112], strides = [1, 1]} : vector<168x112xbf16> to vector<56x112xbf16>
    %cst_13 = arith.constant dense<0.000000e+00> : vector<56x384xf32>
    %21 = tpu.matmul %20, %18, %cst_13 {dimension_numbers = #tpu.dot_dimension_numbers<[1], [0], [0], [1], [0, 0, 1, 1], [], []>} : vector<56x112xbf16>, vector<112x384xbf16>, vector<56x384xf32> -> vector<56x384xf32>
    %22 = vector.extract_strided_slice %19 {offsets = [56, 0], sizes = [56, 112], strides = [1, 1]} : vector<168x112xbf16> to vector<56x112xbf16>
    %cst_14 = arith.constant dense<0.000000e+00> : vector<56x384xf32>
    %23 = tpu.matmul %22, %18, %cst_14 {dimension_numbers = #tpu.dot_dimension_numbers<[1], [0], [0], [1], [0, 0, 1, 1], [], []>} : vector<56x112xbf16>, vector<112x384xbf16>, vector<56x384xf32> -> vector<56x384xf32>
    %24 = vector.extract_strided_slice %19 {offsets = [112, 0], sizes = [56, 112], strides = [1, 1]} : vector<168x112xbf16> to vector<56x112xbf16>
    %cst_15 = arith.constant dense<0.000000e+00> : vector<56x384xf32>
    %25 = tpu.matmul %24, %18, %cst_15 {dimension_numbers = #tpu.dot_dimension_numbers<[1], [0], [0], [1], [0, 0, 1, 1], [], []>} : vector<56x112xbf16>, vector<112x384xbf16>, vector<56x384xf32> -> vector<56x384xf32>
    %26 = tpu.concatenate %21, %23, %25 in 1 : vector<56x384xf32>, vector<56x384xf32>, vector<56x384xf32> -> vector<56x1152xf32>
    %27 = arith.truncf %26 : vector<56x1152xf32> to vector<56x1152xbf16>
    %c0_16 = arith.constant 0 : index
    %c0_17 = arith.constant 0 : index
    %28 = vector.load %arg5[%c0_16, %c0_17] : memref<1152x256xbf16, #tpu.memory_space<vmem>>, vector<1152x256xbf16>
    %cst_18 = arith.constant dense<0.000000e+00> : vector<56x256xf32>
    %29 = tpu.matmul %27, %28, %cst_18 {dimension_numbers = #tpu.dot_dimension_numbers<[1], [0], [0], [1], [0, 0, 1, 1], [], []>} : vector<56x1152xbf16>, vector<1152x256xbf16>, vector<56x256xf32> -> vector<56x256xf32>
    %c0_19 = arith.constant 0 : index
    %c0_20 = arith.constant 0 : index
    %30 = vector.load %arg6[%c0_19, %c0_20] : memref<1x256xf32, #tpu.memory_space<vmem>>, vector<1x256xf32>
    %31 = vector.broadcast %30 : vector<1x256xf32> to vector<56x256xf32>
    %32 = arith.addf %29, %31 : vector<56x256xf32>
    %cst_21 = arith.constant 0.000000e+00 : f32
    %33 = vector.broadcast %cst_21 : f32 to vector<56x256xf32>
    %34 = arith.maximumf %32, %33 : vector<56x256xf32>
    %35 = arith.truncf %34 : vector<56x256xf32> to vector<56x256xbf16>
    %c0_22 = arith.constant 0 : index
    %c0_23 = arith.constant 0 : index
    %36 = vector.load %arg10[%c0_22, %c0_23] : memref<56x56xbf16, #tpu.memory_space<vmem>>, vector<56x56xbf16>
    %37 = vector.extract_strided_slice %36 {offsets = [0, 0], sizes = [8, 56], strides = [1, 1]} : vector<56x56xbf16> to vector<8x56xbf16>
    %cst_24 = arith.constant dense<0.000000e+00> : vector<8x256xf32>
    %38 = tpu.matmul %37, %35, %cst_24 {dimension_numbers = #tpu.dot_dimension_numbers<[1], [0], [0], [1], [0, 0, 1, 1], [], []>} : vector<8x56xbf16>, vector<56x256xbf16>, vector<8x256xf32> -> vector<8x256xf32>
    %39 = vector.extract_strided_slice %36 {offsets = [8, 0], sizes = [8, 56], strides = [1, 1]} : vector<56x56xbf16> to vector<8x56xbf16>
    %cst_25 = arith.constant dense<0.000000e+00> : vector<8x256xf32>
    %40 = tpu.matmul %39, %35, %cst_25 {dimension_numbers = #tpu.dot_dimension_numbers<[1], [0], [0], [1], [0, 0, 1, 1], [], []>} : vector<8x56xbf16>, vector<56x256xbf16>, vector<8x256xf32> -> vector<8x256xf32>
    %41 = vector.extract_strided_slice %36 {offsets = [16, 0], sizes = [8, 56], strides = [1, 1]} : vector<56x56xbf16> to vector<8x56xbf16>
    %cst_26 = arith.constant dense<0.000000e+00> : vector<8x256xf32>
    %42 = tpu.matmul %41, %35, %cst_26 {dimension_numbers = #tpu.dot_dimension_numbers<[1], [0], [0], [1], [0, 0, 1, 1], [], []>} : vector<8x56xbf16>, vector<56x256xbf16>, vector<8x256xf32> -> vector<8x256xf32>
    %43 = vector.extract_strided_slice %36 {offsets = [24, 0], sizes = [8, 56], strides = [1, 1]} : vector<56x56xbf16> to vector<8x56xbf16>
    %cst_27 = arith.constant dense<0.000000e+00> : vector<8x256xf32>
    %44 = tpu.matmul %43, %35, %cst_27 {dimension_numbers = #tpu.dot_dimension_numbers<[1], [0], [0], [1], [0, 0, 1, 1], [], []>} : vector<8x56xbf16>, vector<56x256xbf16>, vector<8x256xf32> -> vector<8x256xf32>
    %45 = vector.extract_strided_slice %36 {offsets = [32, 0], sizes = [8, 56], strides = [1, 1]} : vector<56x56xbf16> to vector<8x56xbf16>
    %cst_28 = arith.constant dense<0.000000e+00> : vector<8x256xf32>
    %46 = tpu.matmul %45, %35, %cst_28 {dimension_numbers = #tpu.dot_dimension_numbers<[1], [0], [0], [1], [0, 0, 1, 1], [], []>} : vector<8x56xbf16>, vector<56x256xbf16>, vector<8x256xf32> -> vector<8x256xf32>
    %47 = vector.extract_strided_slice %36 {offsets = [40, 0], sizes = [8, 56], strides = [1, 1]} : vector<56x56xbf16> to vector<8x56xbf16>
    %cst_29 = arith.constant dense<0.000000e+00> : vector<8x256xf32>
    %48 = tpu.matmul %47, %35, %cst_29 {dimension_numbers = #tpu.dot_dimension_numbers<[1], [0], [0], [1], [0, 0, 1, 1], [], []>} : vector<8x56xbf16>, vector<56x256xbf16>, vector<8x256xf32> -> vector<8x256xf32>
    %49 = vector.extract_strided_slice %36 {offsets = [48, 0], sizes = [8, 56], strides = [1, 1]} : vector<56x56xbf16> to vector<8x56xbf16>
    %cst_30 = arith.constant dense<0.000000e+00> : vector<8x256xf32>
    %50 = tpu.matmul %49, %35, %cst_30 {dimension_numbers = #tpu.dot_dimension_numbers<[1], [0], [0], [1], [0, 0, 1, 1], [], []>} : vector<8x56xbf16>, vector<56x256xbf16>, vector<8x256xf32> -> vector<8x256xf32>
    %51 = tpu.concatenate %38, %40, %42, %44, %46, %48, %50 in 1 : vector<8x256xf32>, vector<8x256xf32>, vector<8x256xf32>, vector<8x256xf32>, vector<8x256xf32>, vector<8x256xf32>, vector<8x256xf32> -> vector<8x1792xf32>
    %52 = arith.truncf %51 : vector<8x1792xf32> to vector<8x1792xbf16>
    %c0_31 = arith.constant 0 : index
    %c0_32 = arith.constant 0 : index
    %53 = vector.load %arg8[%c0_31, %c0_32] : memref<1792x128xbf16, #tpu.memory_space<vmem>>, vector<1792x128xbf16>
    %cst_33 = arith.constant dense<0.000000e+00> : vector<8x128xf32>
    %54 = tpu.matmul %52, %53, %cst_33 {dimension_numbers = #tpu.dot_dimension_numbers<[1], [0], [0], [1], [0, 0, 1, 1], [], []>} : vector<8x1792xbf16>, vector<1792x128xbf16>, vector<8x128xf32> -> vector<8x128xf32>
    %c0_34 = arith.constant 0 : index
    %c0_35 = arith.constant 0 : index
    %55 = vector.load %arg9[%c0_34, %c0_35] : memref<1x128xf32, #tpu.memory_space<vmem>>, vector<1x128xf32>
    %56 = vector.broadcast %55 : vector<1x128xf32> to vector<8x128xf32>
    %57 = arith.addf %54, %56 : vector<8x128xf32>
    %c0_36 = arith.constant 0 : index
    %c0_37 = arith.constant 0 : index
    %58 = vector.load %arg20[%c0_36, %c0_37] : memref<8x128xf32, #tpu.memory_space<vmem>>, vector<8x128xf32>
    tpu.vector_store %arg20[%c0_36, %c0_37], %57 {strides = array<i32>} : memref<8x128xf32, #tpu.memory_space<vmem>>, vector<8x128xf32>,
    %59 = arith.truncf %57 : vector<8x128xf32> to vector<8x128xbf16>
    %c0_38 = arith.constant 0 : index
    %c0_39 = arith.constant 0 : index
    %60 = vector.load %arg13[%c0_38, %c0_39] : memref<56x56xbf16, #tpu.memory_space<vmem>>, vector<56x56xbf16>
    %c0_40 = arith.constant 0 : index
    %c0_41 = arith.constant 0 : index
    %61 = vector.load %arg11[%c0_40, %c0_41] : memref<128x1792xbf16, #tpu.memory_space<vmem>>, vector<128x1792xbf16>
    %cst_42 = arith.constant dense<0.000000e+00> : vector<8x1792xf32>
    %62 = tpu.matmul %59, %61, %cst_42 {dimension_numbers = #tpu.dot_dimension_numbers<[1], [0], [0], [1], [0, 0, 1, 1], [], []>} : vector<8x128xbf16>, vector<128x1792xbf16>, vector<8x1792xf32> -> vector<8x1792xf32>
    %63 = vector.extract_strided_slice %62 {offsets = [0, 0], sizes = [8, 256], strides = [1, 1]} : vector<8x1792xf32> to vector<8x256xf32>
    %64 = vector.extract_strided_slice %62 {offsets = [0, 256], sizes = [8, 256], strides = [1, 1]} : vector<8x1792xf32> to vector<8x256xf32>
    %65 = vector.extract_strided_slice %62 {offsets = [0, 512], sizes = [8, 256], strides = [1, 1]} : vector<8x1792xf32> to vector<8x256xf32>
    %66 = vector.extract_strided_slice %62 {offsets = [0, 768], sizes = [8, 256], strides = [1, 1]} : vector<8x1792xf32> to vector<8x256xf32>
    %67 = vector.extract_strided_slice %62 {offsets = [0, 1024], sizes = [8, 256], strides = [1, 1]} : vector<8x1792xf32> to vector<8x256xf32>
    %68 = vector.extract_strided_slice %62 {offsets = [0, 1280], sizes = [8, 256], strides = [1, 1]} : vector<8x1792xf32> to vector<8x256xf32>
    %69 = vector.extract_strided_slice %62 {offsets = [0, 1536], sizes = [8, 256], strides = [1, 1]} : vector<8x1792xf32> to vector<8x256xf32>
    %70 = tpu.concatenate %63, %64, %65, %66, %67, %68, %69 in 0 : vector<8x256xf32>, vector<8x256xf32>, vector<8x256xf32>, vector<8x256xf32>, vector<8x256xf32>, vector<8x256xf32>, vector<8x256xf32> -> vector<56x256xf32>
    %71 = arith.truncf %70 : vector<56x256xf32> to vector<56x256xbf16>
    %cst_43 = arith.constant dense<0.000000e+00> : vector<56x256xf32>
    %72 = tpu.matmul %60, %71, %cst_43 {dimension_numbers = #tpu.dot_dimension_numbers<[1], [0], [0], [1], [0, 0, 1, 1], [], []>} : vector<56x56xbf16>, vector<56x256xbf16>, vector<56x256xf32> -> vector<56x256xf32>
    %c0_44 = arith.constant 0 : index
    %c0_45 = arith.constant 0 : index
    %73 = vector.load %arg12[%c0_44, %c0_45] : memref<1x256xf32, #tpu.memory_space<vmem>>, vector<1x256xf32>
    %74 = vector.broadcast %73 : vector<1x256xf32> to vector<56x256xf32>
    %75 = arith.addf %72, %74 : vector<56x256xf32>
    %cst_46 = arith.constant 0.000000e+00 : f32
    %76 = vector.broadcast %cst_46 : f32 to vector<56x256xf32>
    %77 = arith.maximumf %75, %76 : vector<56x256xf32>
    %78 = arith.truncf %77 : vector<56x256xf32> to vector<56x256xbf16>
    %c0_47 = arith.constant 0 : index
    %c0_48 = arith.constant 0 : index
    %79 = vector.load %arg16[%c0_47, %c0_48] : memref<112x168xbf16, #tpu.memory_space<vmem>>, vector<112x168xbf16>
    %c0_49 = arith.constant 0 : index
    %c0_50 = arith.constant 0 : index
    %80 = vector.load %arg14[%c0_49, %c0_50] : memref<256x1152xbf16, #tpu.memory_space<vmem>>, vector<256x1152xbf16>
    %cst_51 = arith.constant dense<0.000000e+00> : vector<56x1152xf32>
    %81 = tpu.matmul %78, %80, %cst_51 {dimension_numbers = #tpu.dot_dimension_numbers<[1], [0], [0], [1], [0, 0, 1, 1], [], []>} : vector<56x256xbf16>, vector<256x1152xbf16>, vector<56x1152xf32> -> vector<56x1152xf32>
    %82 = vector.extract_strided_slice %81 {offsets = [0, 0], sizes = [56, 384], strides = [1, 1]} : vector<56x1152xf32> to vector<56x384xf32>
    %83 = vector.extract_strided_slice %81 {offsets = [0, 384], sizes = [56, 384], strides = [1, 1]} : vector<56x1152xf32> to vector<56x384xf32>
    %84 = vector.extract_strided_slice %81 {offsets = [0, 768], sizes = [56, 384], strides = [1, 1]} : vector<56x1152xf32> to vector<56x384xf32>
    %85 = tpu.concatenate %82, %83, %84 in 0 : vector<56x384xf32>, vector<56x384xf32>, vector<56x384xf32> -> vector<168x384xf32>
    %86 = arith.truncf %85 : vector<168x384xf32> to vector<168x384xbf16>
    %cst_52 = arith.constant dense<0.000000e+00> : vector<112x384xf32>
    %87 = tpu.matmul %79, %86, %cst_52 {dimension_numbers = #tpu.dot_dimension_numbers<[1], [0], [0], [1], [0, 0, 1, 1], [], []>} : vector<112x168xbf16>, vector<168x384xbf16>, vector<112x384xf32> -> vector<112x384xf32>
    %c0_53 = arith.constant 0 : index
    %c0_54 = arith.constant 0 : index
    %88 = vector.load %arg15[%c0_53, %c0_54] : memref<1x384xf32, #tpu.memory_space<vmem>>, vector<1x384xf32>
    %89 = vector.broadcast %88 : vector<1x384xf32> to vector<112x384xf32>
    %90 = arith.addf %87, %89 : vector<112x384xf32>
    %cst_55 = arith.constant 0.000000e+00 : f32
    %91 = vector.broadcast %cst_55 : f32 to vector<112x384xf32>
    %92 = arith.maximumf %90, %91 : vector<112x384xf32>
    %93 = arith.truncf %92 : vector<112x384xf32> to vector<112x384xbf16>
    %c0_56 = arith.constant 0 : index
    %c0_57 = arith.constant 0 : index
    %94 = vector.load %arg19[%c0_56, %c0_57] : memref<224x336xbf16, #tpu.memory_space<vmem>>, vector<224x336xbf16>
    %c0_58 = arith.constant 0 : index
    %c0_59 = arith.constant 0 : index
    %95 = vector.load %arg17[%c0_58, %c0_59] : memref<384x384xbf16, #tpu.memory_space<vmem>>, vector<384x384xbf16>
    %cst_60 = arith.constant dense<0.000000e+00> : vector<112x384xf32>
    %96 = tpu.matmul %93, %95, %cst_60 {dimension_numbers = #tpu.dot_dimension_numbers<[1], [0], [0], [1], [0, 0, 1, 1], [], []>} : vector<112x384xbf16>, vector<384x384xbf16>, vector<112x384xf32> -> vector<112x384xf32>
    %97 = vector.extract_strided_slice %96 {offsets = [0, 0], sizes = [112, 128], strides = [1, 1]} : vector<112x384xf32> to vector<112x128xf32>
    %98 = vector.extract_strided_slice %96 {offsets = [0, 128], sizes = [112, 128], strides = [1, 1]} : vector<112x384xf32> to vector<112x128xf32>
    %99 = vector.extract_strided_slice %96 {offsets = [0, 256], sizes = [112, 128], strides = [1, 1]} : vector<112x384xf32> to vector<112x128xf32>
    %100 = tpu.concatenate %97, %98, %99 in 0 : vector<112x128xf32>, vector<112x128xf32>, vector<112x128xf32> -> vector<336x128xf32>
    %101 = arith.truncf %100 : vector<336x128xf32> to vector<336x128xbf16>
    %cst_61 = arith.constant dense<0.000000e+00> : vector<224x128xf32>
    %102 = tpu.matmul %94, %101, %cst_61 {dimension_numbers = #tpu.dot_dimension_numbers<[1], [0], [0], [1], [0, 0, 1, 1], [], []>} : vector<224x336xbf16>, vector<336x128xbf16>, vector<224x128xf32> -> vector<224x128xf32>
    %c0_62 = arith.constant 0 : index
    %c0_63 = arith.constant 0 : index
    %103 = vector.load %arg18[%c0_62, %c0_63] : memref<1x128xf32, #tpu.memory_space<vmem>>, vector<1x128xf32>
    %104 = vector.broadcast %103 : vector<1x128xf32> to vector<224x128xf32>
    %105 = arith.addf %102, %104 : vector<224x128xf32>
    %cst_64 = arith.constant 0.000000e+00 : f32
    %106 = vector.broadcast %cst_64 : f32 to vector<224x128xf32>
    %107 = arith.subf %106, %105 : vector<224x128xf32>
    %108 = math.exp %107 : vector<224x128xf32>
    %cst_65 = arith.constant 1.000000e+00 : f32
    %109 = vector.broadcast %cst_65 : f32 to vector<224x128xf32>
    %110 = arith.addf %109, %108 : vector<224x128xf32>
    %111 = tpu.reciprocal %110 {approx = true} : vector<224x128xf32> -> vector<224x128xf32>
    %c0_66 = arith.constant 0 : index
    %c0_67 = arith.constant 0 : index
    %112 = vector.load %arg21[%c0_66, %c0_67] : memref<224x128xf32, #tpu.memory_space<vmem>>, vector<224x128xf32>
    tpu.vector_store %arg21[%c0_66, %c0_67], %111 {strides = array<i32>} : memref<224x128xf32, #tpu.memory_space<vmem>>, vector<224x128xf32>,
    return
  }
  func.func @transform_0(%arg0: i32) -> (i32, i32) {
    %c0_i32 = arith.constant 0 : i32
    %c0_i32_0 = arith.constant 0 : i32
    return %arg0, %c0_i32 : i32, i32
  }
  func.func @transform_1(%arg0: i32) -> (i32, i32) {
    %c0_i32 = arith.constant 0 : i32
    %c0_i32_0 = arith.constant 0 : i32
    %c0_i32_1 = arith.constant 0 : i32
    return %c0_i32, %c0_i32_0 : i32, i32
  }
  func.func @transform_2(%arg0: i32) -> (i32, i32) {
    %c0_i32 = arith.constant 0 : i32
    %c0_i32_0 = arith.constant 0 : i32
    %c0_i32_1 = arith.constant 0 : i32
    return %c0_i32, %c0_i32_0 : i32, i32
  }
  func.func @transform_3(%arg0: i32) -> (i32, i32) {
    %c0_i32 = arith.constant 0 : i32
    %c0_i32_0 = arith.constant 0 : i32
    %c0_i32_1 = arith.constant 0 : i32
    return %c0_i32, %c0_i32_0 : i32, i32
  }
  func.func @transform_4(%arg0: i32) -> (i32, i32) {
    %c0_i32 = arith.constant 0 : i32
    %c0_i32_0 = arith.constant 0 : i32
    %c0_i32_1 = arith.constant 0 : i32
    return %c0_i32, %c0_i32_0 : i32, i32
  }
  func.func @transform_5(%arg0: i32) -> (i32, i32) {
    %c0_i32 = arith.constant 0 : i32
    %c0_i32_0 = arith.constant 0 : i32
    %c0_i32_1 = arith.constant 0 : i32
    return %c0_i32, %c0_i32_0 : i32, i32
  }
  func.func @transform_6(%arg0: i32) -> (i32, i32) {
    %c0_i32 = arith.constant 0 : i32
    %c0_i32_0 = arith.constant 0 : i32
    %c0_i32_1 = arith.constant 0 : i32
    return %c0_i32, %c0_i32_0 : i32, i32
  }
  func.func @transform_7(%arg0: i32) -> (i32, i32) {
    %c0_i32 = arith.constant 0 : i32
    %c0_i32_0 = arith.constant 0 : i32
    %c0_i32_1 = arith.constant 0 : i32
    return %c0_i32, %c0_i32_0 : i32, i32
  }
  func.func @transform_8(%arg0: i32) -> (i32, i32) {
    %c0_i32 = arith.constant 0 : i32
    %c0_i32_0 = arith.constant 0 : i32
    %c0_i32_1 = arith.constant 0 : i32
    return %c0_i32, %c0_i32_0 : i32, i32
  }
  func.func @transform_9(%arg0: i32) -> (i32, i32) {
    %c0_i32 = arith.constant 0 : i32
    %c0_i32_0 = arith.constant 0 : i32
    %c0_i32_1 = arith.constant 0 : i32
    return %c0_i32, %c0_i32_0 : i32, i32
  }
  func.func @transform_10(%arg0: i32) -> (i32, i32) {
    %c0_i32 = arith.constant 0 : i32
    %c0_i32_0 = arith.constant 0 : i32
    %c0_i32_1 = arith.constant 0 : i32
    return %c0_i32, %c0_i32_0 : i32, i32
  }
  func.func @transform_11(%arg0: i32) -> (i32, i32) {
    %c0_i32 = arith.constant 0 : i32
    %c0_i32_0 = arith.constant 0 : i32
    %c0_i32_1 = arith.constant 0 : i32
    return %c0_i32, %c0_i32_0 : i32, i32
  }
  func.func @transform_12(%arg0: i32) -> (i32, i32) {
    %c0_i32 = arith.constant 0 : i32
    %c0_i32_0 = arith.constant 0 : i32
    %c0_i32_1 = arith.constant 0 : i32
    return %c0_i32, %c0_i32_0 : i32, i32
  }
  func.func @transform_13(%arg0: i32) -> (i32, i32) {
    %c0_i32 = arith.constant 0 : i32
    %c0_i32_0 = arith.constant 0 : i32
    %c0_i32_1 = arith.constant 0 : i32
    return %c0_i32, %c0_i32_0 : i32, i32
  }
  func.func @transform_14(%arg0: i32) -> (i32, i32) {
    %c0_i32 = arith.constant 0 : i32
    %c0_i32_0 = arith.constant 0 : i32
    %c0_i32_1 = arith.constant 0 : i32
    return %c0_i32, %c0_i32_0 : i32, i32
  }
  func.func @transform_15(%arg0: i32) -> (i32, i32) {
    %c0_i32 = arith.constant 0 : i32
    %c0_i32_0 = arith.constant 0 : i32
    %c0_i32_1 = arith.constant 0 : i32
    return %c0_i32, %c0_i32_0 : i32, i32
  }
  func.func @transform_16(%arg0: i32) -> (i32, i32) {
    %c0_i32 = arith.constant 0 : i32
    %c0_i32_0 = arith.constant 0 : i32
    %c0_i32_1 = arith.constant 0 : i32
    return %c0_i32, %c0_i32_0 : i32, i32
  }
  func.func @transform_17(%arg0: i32) -> (i32, i32) {
    %c0_i32 = arith.constant 0 : i32
    %c0_i32_0 = arith.constant 0 : i32
    %c0_i32_1 = arith.constant 0 : i32
    return %c0_i32, %c0_i32_0 : i32, i32
  }
  func.func @transform_18(%arg0: i32) -> (i32, i32) {
    %c0_i32 = arith.constant 0 : i32
    %c0_i32_0 = arith.constant 0 : i32
    %c0_i32_1 = arith.constant 0 : i32
    return %c0_i32, %c0_i32_0 : i32, i32
  }
  func.func @transform_19(%arg0: i32) -> (i32, i32) {
    %c0_i32 = arith.constant 0 : i32
    %c0_i32_0 = arith.constant 0 : i32
    return %arg0, %c0_i32 : i32, i32
  }
  func.func @transform_20(%arg0: i32) -> (i32, i32) {
    %c0_i32 = arith.constant 0 : i32
    %c0_i32_0 = arith.constant 0 : i32
    return %arg0, %c0_i32 : i32, i32
  }
}

</mosaic_0001>

<bundles_post_ra>
// kernel: forward.1
= control target key start
LH: loop header
LB: loop body
LE: loop exit
PB: predicated region body
PF: predicated region fallthrough
CT: control target
= control target key end

     0   :  { %s14969_s0 = inlined_call_operand.vmem [shape: f32[224,128], index: 0, kind: input, shape index: {}]   ;;  %s14970_s1 = inlined_call_operand.hbm [shape: bf16[384,384], index: 1, kind: input, shape index: {}]   ;;  %s14971_s2 = inlined_call_operand.vmem [shape: f32[1,384], index: 2, kind: input, shape index: {}]   ;;  %s14972_s3 = inlined_call_operand.hbm [shape: bf16[336,224], index: 3, kind: input, shape index: {}]   ;;  %s14973_s4 = inlined_call_operand.vmem [shape: bf16[1152,256], index: 4, kind: input, shape index: {}]   ;;  %s14974_s5 = inlined_call_operand.vmem [shape: f32[1,256], index: 5, kind: input, shape index: {}]   ;;  %s14975_s6 = inlined_call_operand.hbm [shape: bf16[168,112], index: 6, kind: input, shape index: {}]   ;;  %s14976_s7 = inlined_call_operand.hbm [shape: bf16[1792,128], index: 7, kind: input, shape index: {}]   ;;  %s14977_s8 = inlined_call_operand.vmem [shape: f32[1,128], index: 8, kind: input, shape index: {}]   ;;  %s14978_s9 = inlined_call_operand.hbm [shape: bf16[56,56], index: 9, kind: input, shape index: {}]   ;;  %s14979_s10 = inlined_call_operand.hbm [shape: bf16[128,1792], index: 10, kind: input, shape index: {}]   ;;  %s14980_s11 = inlined_call_operand.vmem [shape: f32[1,256], index: 11, kind: input, shape index: {}]   ;;  %s14981_s12 = inlined_call_operand.hbm [shape: bf16[56,56], index: 12, kind: input, shape index: {}]   ;;  %s14982_s13 = inlined_call_operand.hbm [shape: bf16[256,1152], index: 13, kind: input, shape index: {}]   ;;  %s14983_s14 = inlined_call_operand.vmem [shape: f32[1,384], index: 14, kind: input, shape index: {}]   ;;  %s14984_s15 = inlined_call_operand.vmem [shape: bf16[112,168], index: 15, kind: input, shape index: {}]   ;;  %s14985_s16 = inlined_call_operand.hbm [shape: bf16[384,384], index: 16, kind: input, shape index: {}]   ;;  %s14986_s17 = inlined_call_operand.vmem [shape: f32[1,128], index: 17, kind: input, shape index: {}]   ;;  %s14987_s18 = inlined_call_operand.hbm [shape: bf16[224,336], index: 18, kind: input, shape index: {}]   ;;  %s14988_s19 = inlined_call_operand.vmem [shape: f32[8,128], index: 19, kind: output, shape index: {0}]   ;;  %s14989_s20 = inlined_call_operand.vmem [shape: f32[224,128], index: 20, kind: output, shape index: {1}]  }
   0x1   :  { %15013 = sst [smem:[#allocation41_spill]] %s14969_s0 }
   0x2   :  { %15014 = sst [smem:[#allocation42_spill]] %s14970_s1 }
   0x3   :  { %15015 = sst [smem:[#allocation43_spill]] %s14971_s2 }
   0x4   :  { %15016 = sst [smem:[#allocation44_spill]] %s14972_s3 }
   0x5   :  { %15017 = sst [smem:[#allocation45_spill]] %s14973_s4 }
   0x6   :  { %26 = vsyncpa [#allocation3], 0 }
   0x7   :  { %27 = vsyncpa [#allocation5], 0 }
   0x8   :  { %28 = vsyncpa [#allocation8], 0 }
   0x9   :  { %29 = vsyncpa [#allocation11], 0 }
   0xa   :  { %30 = vsyncpa [#allocation14], 0 }
   0xb   :  { %31 = vsyncpa [#allocation17], 0  ;;  %s12491_s1 = smov [#allocation4]  }
   0xc   :  { %s53_s22 = sshll.u32 %s12491_s1, 4  ;;  %s54_s22 = int_to_ptr.vmem [resolvable:$true] %s53_s22 }
   0xd   :  { %s12287_s23 = scalar_lea.vmem %s54_s22, 5376  ;;  %p12292_p1 = scmp.lt.s32.totalorder %s54_s22, %s54_s22 }
   0xe   :  { %p12288_p0 = scmp.ne.s32.totalorder %s54_s22, %s12287_s23  ;;  %p12293_p2 = scmp.lt.s32.totalorder %s12287_s23, %s12287_s23 }
  0x10   :  { %p12294_p3 = por %p12293_p2, %p12292_p1 }
  0x12   :  { %p12295_p4 = pnand %p12294_p3, %p12288_p0 }
  0x14   :  { %12298 = shalt.err (!%p12295_p4)
}
  0x15   :  { %s12492_s24 = smov 128   ;;  %s12493_s2 = smov 8  }
  0x16   :  { %s15018_s26 = sld [smem:[#allocation44_spill]]  ;;  %s12494_s27 = smov [#allocation7]  }
  0x17   :  { %s81_s28 = sshll.u32 %s12494_s27, 4  ;;  %s12495_s4 = smov [#allocation10]   ;;  %s82_s28 = int_to_ptr.vmem [resolvable:$true] %s81_s28 }
  0x18   :  { %s107_s29 = sshll.u32 %s12495_s4, 4  ;;  %s12307_s30 = scalar_lea.vmem %s82_s28, 14336  ;;  %s108_s29 = int_to_ptr.vmem [resolvable:$true] %s107_s29 }
  0x19   :  { %p12308_p5 = scmp.ne.s32.totalorder %s82_s28, %s12307_s30  ;;  %p12312_p6 = scmp.lt.s32.totalorder %s82_s28, %s82_s28 }
  0x1a   :  { %p12313_p7 = scmp.lt.s32.totalorder %s12307_s30, %s12307_s30 }
  0x1c   :  { %59 = dma.hbm_to_vmem [thread:$0]  %s15018_s26, 5376, %s54_s22, [#allocation5], %s12492_s24, %s12492_s24, %s12493_s2  }
  0x1d   :  { %p12314_p8 = por %p12313_p7, %p12312_p6 }
  0x1f   :  { %p12315_p9 = pnand %p12314_p8, %p12308_p5 }
  0x21   :  { %12318 = shalt.err (!%p12315_p9)
}
  0x22   :  { %s12496_s0 = smov 64   ;;  %s12497_s21 = smov 4  }
  0x23   :  { %87 = dma.hbm_to_vmem [thread:$0]  %s14976_s7, 14336, %s82_s28, [#allocation8], %s12496_s0, %s12496_s0, %s12497_s21  }
  0x24   :  { %s12327_s22 = scalar_lea.vmem %s108_s29, 14336  ;;  %p12332_p11 = scmp.lt.s32.totalorder %s108_s29, %s108_s29 }
  0x25   :  { %p12328_p10 = scmp.ne.s32.totalorder %s108_s29, %s12327_s22  ;;  %p12333_p12 = scmp.lt.s32.totalorder %s12327_s22, %s12327_s22 }
  0x27   :  { %p12334_p13 = por %p12333_p12, %p12332_p11 }
  0x29   :  { %p12335_p0 = pnand %p12334_p13, %p12328_p10 }
  0x2b   :  { %12338 = shalt.err (!%p12335_p0)
}
  0x2c   :  { %s12498_s24 = smov 896   ;;  %s12499_s2 = smov 56  }
  0x2d   :  { %113 = dma.hbm_to_vmem [thread:$0]  %s14979_s10, 14336, %s108_s29, [#allocation11], %s12498_s24, %s12498_s24, %s12499_s2  }
  0x2e   :  { %s12500_s26 = smov [#allocation13]  }
  0x2f   :  { %s133_s27 = sshll.u32 %s12500_s26, 4  ;;  %s134_s27 = int_to_ptr.vmem [resolvable:$true] %s133_s27 }
  0x30   :  { %s12347_s4 = scalar_lea.vmem %s134_s27, 18432  ;;  %p12352_p2 = scmp.lt.s32.totalorder %s134_s27, %s134_s27 }
  0x31   :  { %p12348_p1 = scmp.ne.s32.totalorder %s134_s27, %s12347_s4  ;;  %p12353_p3 = scmp.lt.s32.totalorder %s12347_s4, %s12347_s4 }
  0x33   :  { %p12354_p4 = por %p12353_p3, %p12352_p2 }
  0x35   :  { %p12355_p5 = pnand %p12354_p4, %p12348_p1 }
  0x37   :  { %12358 = shalt.err (!%p12355_p5)
}
  0x38   :  { %s12501_s7 = smov 576   ;;  %s12502_s28 = smov 36  }
  0x39   :  { %139 = dma.hbm_to_vmem [thread:$0]  %s14982_s13, 18432, %s134_s27, [#allocation14], %s12501_s7, %s12501_s7, %s12502_s28  }
  0x3a   :  { %s12503_s23 = smov [#allocation2]  }
  0x3b   :  { %s39_s22 = sshll.u32 %s12503_s23, 4  ;;  %s40_s22 = int_to_ptr.vmem [resolvable:$true] %s39_s22 }
  0x3c   :  { %s12367_s10 = scalar_lea.vmem %s40_s22, 9216  ;;  %p12372_p7 = scmp.lt.s32.totalorder %s40_s22, %s40_s22 }
  0x3d   :  { %p12368_p6 = scmp.ne.s32.totalorder %s40_s22, %s12367_s10  ;;  %p12373_p8 = scmp.lt.s32.totalorder %s12367_s10, %s12367_s10 }
  0x3f   :  { %p12374_p9 = por %p12373_p8, %p12372_p7 }
  0x41   :  { %p12375_p10 = pnand %p12374_p9, %p12368_p6 }
  0x43   :  { %12378 = shalt.err (!%p12375_p10)
}
  0x44   :  { %s12504_s29 = smov 192   ;;  %s12505_s24 = smov 12  }
  0x45   :  { %s15019_s3 = sld [smem:[#allocation42_spill]]  ;;  %s12506_s13 = smov [#allocation6]  }
  0x46   :  { %s69_s26 = sshll.u32 %s12506_s13, 4  ;;  %s12507_s27 = smov [#allocation9]   ;;  %s70_s26 = int_to_ptr.vmem [resolvable:$true] %s69_s26 }
  0x47   :  { %s95_s4 = sshll.u32 %s12507_s27, 4  ;;  %s12387_s7 = scalar_lea.vmem %s70_s26, 1344  ;;  %s96_s4 = int_to_ptr.vmem [resolvable:$true] %s95_s4 }
  0x48   :  { %p12388_p11 = scmp.ne.s32.totalorder %s70_s26, %s12387_s7  ;;  %p12392_p12 = scmp.lt.s32.totalorder %s70_s26, %s70_s26 }
  0x49   :  { %p12393_p13 = scmp.lt.s32.totalorder %s12387_s7, %s12387_s7 }
  0x4b   :  { %45 = dma.hbm_to_vmem [thread:$0]  %s15019_s3, 9216, %s40_s22, [#allocation3], %s12504_s29, %s12504_s29, %s12505_s24  }
  0x4c   :  { %p12394_p0 = por %p12393_p13, %p12392_p12 }
  0x4e   :  { %p12395_p1 = pnand %p12394_p0, %p12388_p11 }
  0x50   :  { %12398 = shalt.err (!%p12395_p1)
}
  0x51   :  { %75 = dma.hbm_to_vmem [thread:$0]  %s14975_s6, 1344, %s70_s26, [#allocation5], %s12496_s0, %s12496_s0, %s12497_s21  }
  0x52   :  { %s12407_s1 = scalar_lea.vmem %s96_s4, 448  ;;  %p12412_p3 = scmp.lt.s32.totalorder %s96_s4, %s96_s4 }
  0x53   :  { %p12408_p2 = scmp.ne.s32.totalorder %s96_s4, %s12407_s1  ;;  %p12413_p4 = scmp.lt.s32.totalorder %s12407_s1, %s12407_s1 }
  0x55   :  { %p12414_p5 = por %p12413_p4, %p12412_p3 }
  0x57   :  { %p12415_p6 = pnand %p12414_p5, %p12408_p2 }
  0x59   :  { %12418 = shalt.err (!%p12415_p6)
}
  0x5a   :  { %101 = dma.hbm_to_vmem [thread:$0]  %s14978_s9, 448, %s96_s4, [#allocation8], %s12496_s0, %s12496_s0, %s12497_s21  }
  0x5b   :  { %s12508_s10 = smov [#allocation12]   ;;  %s12509_s25 = smov [#allocation15]  }
  0x5c   :  { %s121_s2 = sshll.u32 %s12508_s10, 4  ;;  %s149_s6 = sshll.u32 %s12509_s25, 4  ;;  %s122_s2 = int_to_ptr.vmem [resolvable:$true] %s121_s2  ;;  %s150_s6 = int_to_ptr.vmem [resolvable:$true] %s149_s6 }
  0x5d   :  { %s12427_s3 = scalar_lea.vmem %s122_s2, 448  ;;  %p12432_p8 = scmp.lt.s32.totalorder %s122_s2, %s122_s2 }
  0x5e   :  { %p12428_p7 = scmp.ne.s32.totalorder %s122_s2, %s12427_s3  ;;  %p12433_p9 = scmp.lt.s32.totalorder %s12427_s3, %s12427_s3 }
  0x60   :  { %p12434_p10 = por %p12433_p9, %p12432_p8 }
  0x62   :  { %p12435_p11 = pnand %p12434_p10, %p12428_p7 }
  0x64   :  { %12438 = shalt.err (!%p12435_p11)
}
  0x65   :  { %127 = dma.hbm_to_vmem [thread:$0]  %s14981_s12, 448, %s122_s2, [#allocation11], %s12496_s0, %s12496_s0, %s12497_s21  }
  0x66   :  { %s12447_s9 = scalar_lea.vmem %s150_s6, 9216  ;;  %p12452_p13 = scmp.lt.s32.totalorder %s150_s6, %s150_s6 }
  0x67   :  { %p12448_p12 = scmp.ne.s32.totalorder %s150_s6, %s12447_s9  ;;  %p12453_p0 = scmp.lt.s32.totalorder %s12447_s9, %s12447_s9 }
  0x69   :  { %p12454_p1 = por %p12453_p0, %p12452_p13 }
  0x6b   :  { %p12455_p2 = pnand %p12454_p1, %p12448_p12 }
  0x6d   :  { %12458 = shalt.err (!%p12455_p2)
}
  0x6e   :  { %155 = dma.hbm_to_vmem [thread:$0]  %s14985_s16, 9216, %s150_s6, [#allocation14], %s12504_s29, %s12504_s29, %s12505_s24  }
  0x6f   :  { %s12510_s7 = smov [#allocation16]  }
  0x70   :  { %s163_s28 = sshll.u32 %s12510_s7, 4  ;;  %s164_s28 = int_to_ptr.vmem [resolvable:$true] %s163_s28 }
  0x71   :  { %s12467_s30 = scalar_lea.vmem %s164_s28, 5376  ;;  %p12472_p4 = scmp.lt.s32.totalorder %s164_s28, %s164_s28 }
  0x72   :  { %p12468_p3 = scmp.ne.s32.totalorder %s164_s28, %s12467_s30  ;;  %p12473_p5 = scmp.lt.s32.totalorder %s12467_s30, %s12467_s30 }
  0x74   :  { %p12474_p6 = por %p12473_p5, %p12472_p4 }
  0x76   :  { %p12475_p7 = pnand %p12474_p6, %p12468_p3 }
  0x78   :  { %12478 = shalt.err (!%p12475_p7)
}
  0x79   :  { %169 = dma.hbm_to_vmem [thread:$0]  %s14987_s18, 5376, %s164_s28, [#allocation17], %s12504_s29, %s12504_s29, %s12505_s24  }
  0x7a   :  { %12479 = dma.done.wait [#allocation3], 9216  }
  0x7b   :  { %12480 = vsyncadd [#allocation3], 4294958080 }
  0x7c   :  { %12481 = dma.done.wait [#allocation5], 6720  }
  0x7d   :  { %12482 = vsyncadd [#allocation5], 4294960576 }
  0x7e   :  { %12483 = dma.done.wait [#allocation8], 14784  }
  0x7f   :  { %12484 = vsyncadd [#allocation8], 4294952512 }
  0x80   :  { %12485 = dma.done.wait [#allocation11], 14784  }
  0x81   :  { %12486 = vsyncadd [#allocation11], 4294952512 }
  0x82   :  { %12487 = dma.done.wait [#allocation14], 27648  }
  0x83   :  { %12488 = vsyncadd [#allocation14], 4294939648 }
  0x84   :  { %12489 = dma.done.wait [#allocation17], 5376  }
  0x85   :  { %12490 = vsyncadd [#allocation17], 4294961920  ;;  %v14994_v0 = vmov 0   ;;  %s15020_s18 = sld [smem:[#allocation41_spill]]  ;;  %v11117_v12 = vld [vmem:[#allocation4 + $0x4] ss:$8 sps:$4 sm:$0xff]  }
  0x86   :  { %370 = vmatprep.subr.bf16.mxu0 %v14994_v0  ;;  %543 = vmatprep.subr.bf16.mxu1 %v14994_v0  ;;  %vm348_vm0 = vcmask 785408   ;;  %v11120_v15 = vld [vmem:[#allocation4 + $0x74] ss:$8 sps:$4 sm:$0xff]   ;;  %v11180_v45 = vld [vmem:[#allocation2 + $0xac] ss:$12 sps:$4 sm:$0xff]   ;;  %vm12513_vm1 = vmmov 0  }
  0x87   :  { %9557 = vmatprep.mubr.msk.bf16.mxu0 %vm348_vm0, %v11117_v12  ;;  %9578 = vmatprep.mubr.msk.bf16.mxu1 %vm348_vm0, %v11120_v15  ;;  %v11115_v46 = vld [vmem:[#allocation4] ss:$8 sps:$4 sm:$0xff]   ;;  %v11118_v47 = vld [vmem:[#allocation4 + $0x70] ss:$8 sps:$4 sm:$0xff]   ;;  %v11121_v48 = vld [vmem:[#allocation4 + $0x14] ss:$8 sps:$4 sm:$0xff]  }
  0x88   :  { %v11123_v49 = vld [vmem:[#allocation4 + $0x84] ss:$8 sps:$4 sm:$0xff]   ;;  %v11178_v50 = vld [vmem:[#allocation2 + $0xa8] ss:$12 sps:$4 sm:$0xff]   ;;  %v11181_v52 = vld [vmem:[#allocation2 + $0x90] ss:$12 sps:$4 sm:$0xff]  }
  0x89   :  { %v11183_v51 = vld [vmem:[#allocation2 + $0x94] ss:$12 sps:$4 sm:$0xff]   ;;  %v11125_v53 = vld [vmem:[#allocation4 + $0x10] ss:$8 sps:$4 sm:$0xff]   ;;  %v11127_v55 = vld [vmem:[#allocation4 + $0x24] ss:$8 sps:$4 sm:$0xff]  }
  0x8a   :  { %v11126_v54 = vld [vmem:[#allocation4 + $0x80] ss:$8 sps:$4 sm:$0xff]   ;;  %v11129_v56 = vld [vmem:[#allocation4 + $0x94] ss:$8 sps:$4 sm:$0xff]   ;;  %v11184_v58 = vld [vmem:[#allocation2 + $0x78] ss:$12 sps:$4 sm:$0xff]  }
  0x8b   :  { %v215_v1 = vld [vmem:[%s15020_s18 + $0x70] sm:$0xff]  ;;  %v216_v2 = vld [vmem:[%s15020_s18 + $0x78] sm:$0xff]  ;;  %v213_v3 = vld [vmem:[%s15020_s18 + $0x60] sm:$0xff]  ;;  %s15023_s26 = sld [smem:[#allocation43_spill]]  ;;  %vm1809_vm2 = vcmask 916480   ;;  %vm3587_vm3 = vcmask 1043456  }
  0x8c   :  { %v12681_v4 = vpack.c.bf16 %v216_v2, %v215_v1  ;;  %v214_v5 = vld [vmem:[%s15020_s18 + $0x68] sm:$0xff]  ;;  %v211_v7 = vld [vmem:[%s15020_s18 + $0x50] sm:$0xff]  ;;  %v212_v8 = vld [vmem:[%s15020_s18 + $0x58] sm:$0xff]  ;;  %s15048_s4 = sld [smem:[#allocation45_spill]]  ;;  %vm3583_vm4 = vcmask 457728   ;;  %vm7584_vm5 = vcmask 326656  }
  0x8d   :  { %v12688_v6 = vpack.c.bf16 %v214_v5, %v213_v3  ;;  %v12700_v9 = vpack.c.bf16 %v212_v8, %v211_v7  ;;  %v209_v10 = vld [vmem:[%s15020_s18 + $0x40] sm:$0xff]  ;;  %v210_v11 = vld [vmem:[%s15020_s18 + $0x48] sm:$0xff]  ;;  %v207_v14 = vld [vmem:[%s15020_s18 + $0x30] sm:$0xff]  ;;  %vm9028_vm6 = vcmask 654336  }
  0x8e   :  { %371 = vmatpush1.bf16.msra.mxu0 %v12681_v4  ;;  %544 = vmatpush1.bf16.msra.mxu1 %v12681_v4  ;;  %v12712_v13 = vpack.c.bf16 %v210_v11, %v209_v10  ;;  %v208_v16 = vld [vmem:[%s15020_s18 + $0x38] sm:$0xff]  ;;  %v205_v18 = vld [vmem:[%s15020_s18 + $0x20] sm:$0xff]  ;;  %v206_v19 = vld [vmem:[%s15020_s18 + $0x28] sm:$0xff] }
  0x8f   :  { %372 = vmatprep.subr.bf16.mxu0 %v14994_v0  ;;  %545 = vmatprep.subr.bf16.mxu1 %v14994_v0  ;;  %v12726_v17 = vpack.c.bf16 %v208_v16, %v207_v14  ;;  %v12738_v20 = vpack.c.bf16 %v206_v19, %v205_v18  ;;  %v203_v21 = vld [vmem:[%s15020_s18 + $0x10] sm:$0xff]  ;;  %v204_v22 = vld [vmem:[%s15020_s18 + $0x18] sm:$0xff]  ;;  %v201_v24 = vld [vmem:[%s15020_s18] sm:$0xff] }
  0x90   :  { %v12750_v23 = vpack.c.bf16 %v204_v22, %v203_v21  ;;  %v202_v25 = vld [vmem:[%s15020_s18 + $0x8] sm:$0xff]  ;;  %v227_v27 = vld [vmem:[%s15020_s18 + $0xd0] sm:$0xff]  ;;  %v228_v28 = vld [vmem:[%s15020_s18 + $0xd8] sm:$0xff] }
  0x91   :  { %v12762_v26 = vpack.c.bf16 %v202_v25, %v201_v24  ;;  %v12774_v29 = vpack.c.bf16 %v228_v28, %v227_v27  ;;  %v225_v30 = vld [vmem:[%s15020_s18 + $0xc0] sm:$0xff]  ;;  %v226_v31 = vld [vmem:[%s15020_s18 + $0xc8] sm:$0xff]  ;;  %v223_v33 = vld [vmem:[%s15020_s18 + $0xb0] sm:$0xff] }
  0x92   :  { %373 = vmatpush1.bf16.msra.mxu0 %v12688_v6  ;;  %546 = vmatpush1.bf16.msra.mxu1 %v12688_v6  ;;  %v12786_v32 = vpack.c.bf16 %v226_v31, %v225_v30  ;;  %v224_v34 = vld [vmem:[%s15020_s18 + $0xb8] sm:$0xff]  ;;  %v221_v36 = vld [vmem:[%s15020_s18 + $0xa0] sm:$0xff]  ;;  %v222_v37 = vld [vmem:[%s15020_s18 + $0xa8] sm:$0xff] }
  0x93   :  { %374 = vmatprep.subr.bf16.mxu0 %v14994_v0  ;;  %547 = vmatprep.subr.bf16.mxu1 %v14994_v0  ;;  %v12798_v35 = vpack.c.bf16 %v224_v34, %v223_v33  ;;  %v12810_v38 = vpack.c.bf16 %v222_v37, %v221_v36  ;;  %v219_v39 = vld [vmem:[%s15020_s18 + $0x90] sm:$0xff]  ;;  %v220_v40 = vld [vmem:[%s15020_s18 + $0x98] sm:$0xff]  ;;  %v217_v42 = vld [vmem:[%s15020_s18 + $0x80] sm:$0xff] }
  0x94   :  { %v12822_v41 = vpack.c.bf16 %v220_v40, %v219_v39  ;;  %v218_v43 = vld [vmem:[%s15020_s18 + $0x88] sm:$0xff]  ;;  %v11189_v59 = vld [vmem:[#allocation2 + $0x64] ss:$12 sps:$4 sm:$0xff]   ;;  %v11133_v62 = vld [vmem:[#allocation4 + $0x34] ss:$8 sps:$4 sm:$0xff]  }
  0x95   :  { %v12834_v44 = vpack.c.bf16 %v218_v43, %v217_v42  ;;  %v11186_v57 = vld [vmem:[#allocation2 + $0x7c] ss:$12 sps:$4 sm:$0xff]   ;;  %v11132_v61 = vld [vmem:[#allocation4 + $0x90] ss:$8 sps:$4 sm:$0xff]   ;;  %v11135_v63 = vld [vmem:[#allocation4 + $0xa4] ss:$8 sps:$4 sm:$0xff]  }
  0x96   :  { %375 = vmatpush1.bf16.msra.mxu0 %v12700_v9  ;;  %548 = vmatpush1.bf16.msra.mxu1 %v12700_v9  ;;  %v11131_v60 = vld [vmem:[#allocation4 + $0x20] ss:$8 sps:$4 sm:$0xff]   ;;  %v11192_v2 = vld [vmem:[#allocation2 + $0x4c] ss:$12 sps:$4 sm:$0xff]   ;;  %v11141_v7 = vld [vmem:[#allocation4 + $0xb4] ss:$8 sps:$4 sm:$0xff]  }
  0x97   :  { %376 = vmatprep.subr.bf16.mxu0 %v14994_v0  ;;  %549 = vmatprep.subr.bf16.mxu1 %v14994_v0  ;;  %v11187_v1 = vld [vmem:[#allocation2 + $0x60] ss:$12 sps:$4 sm:$0xff]   ;;  %v11190_v3 = vld [vmem:[#allocation2 + $0x48] ss:$12 sps:$4 sm:$0xff]   ;;  %v11144_v12 = vld [vmem:[#allocation4 + $0xb0] ss:$8 sps:$4 sm:$0xff]  }
  0x98   :  { %v11138_v5 = vld [vmem:[#allocation4 + $0xa0] ss:$8 sps:$4 sm:$0xff]   ;;  %v11147_v14 = vld [vmem:[#allocation4 + $0xc4] ss:$8 sps:$4 sm:$0xff]   ;;  %v11149_v18 = vld [vmem:[#allocation4 + $0x50] ss:$8 sps:$4 sm:$0xff]  }
  0x99   :  { %v11195_v8 = vld [vmem:[#allocation2 + $0x34] ss:$12 sps:$4 sm:$0xff]   ;;  %v11198_v10 = vld [vmem:[#allocation2 + $0x1c] ss:$12 sps:$4 sm:$0xff]   ;;  %v11196_v15 = vld [vmem:[#allocation2 + $0x18] ss:$12 sps:$4 sm:$0xff]  }
  0x9a   :  { %377 = vmatpush1.bf16.msra.mxu0 %v12712_v13  ;;  %550 = vmatpush1.bf16.msra.mxu1 %v12712_v13  ;;  %v11143_v11 = vld [vmem:[#allocation4 + $0x40] ss:$8 sps:$4 sm:$0xff]   ;;  %v11201_v16 = vld [vmem:[#allocation2 + $0x4] ss:$12 sps:$4 sm:$0xff]   ;;  %v11153_v21 = vld [vmem:[#allocation4 + $0xd4] ss:$8 sps:$4 sm:$0xff]  }
  0x9b   :  { %378 = vmatprep.subr.bf16.mxu0 %v14994_v0  ;;  %551 = vmatprep.subr.bf16.mxu1 %v14994_v0  ;;  %v11150_v19 = vld [vmem:[#allocation4 + $0xc0] ss:$8 sps:$4 sm:$0xff]   ;;  %v11204_v22 = vld [vmem:[#allocation2 + $0x16c] ss:$12 sps:$4 sm:$0xff]   ;;  %v11205_v28 = vld [vmem:[#allocation2 + $0x150] ss:$12 sps:$4 sm:$0xff]  }
  0x9c   :  { %v11207_v24 = vld [vmem:[#allocation2 + $0x154] ss:$12 sps:$4 sm:$0xff]   ;;  %v11159_v27 = vld [vmem:[#allocation4 + $0xe4] ss:$8 sps:$4 sm:$0xff]   ;;  %v11217_v40 = vld [vmem:[#allocation2 + $0xf0] ss:$12 sps:$4 sm:$0xff]  }
  0x9d   :  { %v11155_v25 = vld [vmem:[#allocation4 + $0x60] ss:$8 sps:$4 sm:$0xff]   ;;  %v11208_v30 = vld [vmem:[#allocation2 + $0x138] ss:$12 sps:$4 sm:$0xff]   ;;  %v11160_v33 = vld [vmem:[#allocation4 + $0xf4] ss:$8 sps:$4 sm:$0xff]  }
  0x9e   :  { %379 = vmatpush1.bf16.msra.mxu0 %v12726_v17  ;;  %552 = vmatpush1.bf16.msra.mxu1 %v12726_v17  ;;  %v11213_v31 = vld [vmem:[#allocation2 + $0x124] ss:$12 sps:$4 sm:$0xff]   ;;  %v11211_v34 = vld [vmem:[#allocation2 + $0x120] ss:$12 sps:$4 sm:$0xff]   ;;  %v11214_v36 = vld [vmem:[#allocation2 + $0x108] ss:$12 sps:$4 sm:$0xff]  }
  0x9f   :  { %380 = vmatprep.subr.bf16.mxu0 %v14994_v0  ;;  %553 = vmatprep.subr.bf16.mxu1 %v14994_v0  ;;  %v11219_v37 = vld [vmem:[#allocation2 + $0xf4] ss:$12 sps:$4 sm:$0xff]   ;;  %v11163_v39 = vld [vmem:[#allocation4 + $0x104] ss:$8 sps:$4 sm:$0xff]  }
  0xa0   :  { %v11165_v42 = vld [vmem:[#allocation4 + $0x100] ss:$8 sps:$4 sm:$0xff]   ;;  %v11220_v43 = vld [vmem:[#allocation2 + $0xd8] ss:$12 sps:$4 sm:$0xff]  }
  0xa2   :  { %381 = vmatpush1.bf16.msra.mxu0 %v12738_v20  ;;  %554 = vmatpush1.bf16.msra.mxu1 %v12738_v20 }
  0xa3   :  { %382 = vmatprep.subr.bf16.mxu0 %v14994_v0  ;;  %555 = vmatprep.subr.bf16.mxu1 %v14994_v0 }
  0xa6   :  { %383 = vmatpush1.bf16.msra.mxu0 %v12750_v23  ;;  %556 = vmatpush1.bf16.msra.mxu1 %v12750_v23 }
  0xa7   :  { %384 = vmatprep.subr.bf16.mxu0 %v14994_v0  ;;  %557 = vmatprep.subr.bf16.mxu1 %v14994_v0 }
  0xaa   :  { %385 = vmatpush1.bf16.msra.mxu0 %v12762_v26  ;;  %558 = vmatpush1.bf16.msra.mxu1 %v12762_v26 }
  0xab   :  { %390 = vmatprep.subr.bf16.mxu0 %v14994_v0  ;;  %563 = vmatprep.subr.bf16.mxu1 %v14994_v0 }
  0xae   :  { %391 = vmatpush2.bf16.msra.mxu0 %v12774_v29  ;;  %564 = vmatpush2.bf16.msra.mxu1 %v12774_v29 }
  0xaf   :  { %392 = vmatprep.subr.bf16.mxu0 %v14994_v0  ;;  %565 = vmatprep.subr.bf16.mxu1 %v14994_v0 }
  0xb2   :  { %393 = vmatpush2.bf16.msra.mxu0 %v12786_v32  ;;  %566 = vmatpush2.bf16.msra.mxu1 %v12786_v32 }
  0xb3   :  { %394 = vmatprep.subr.bf16.mxu0 %v14994_v0  ;;  %567 = vmatprep.subr.bf16.mxu1 %v14994_v0 }
  0xb6   :  { %395 = vmatpush2.bf16.msra.mxu0 %v12798_v35  ;;  %568 = vmatpush2.bf16.msra.mxu1 %v12798_v35 }
  0xb7   :  { %396 = vmatprep.subr.bf16.mxu0 %v14994_v0  ;;  %569 = vmatprep.subr.bf16.mxu1 %v14994_v0 }
  0xba   :  { %397 = vmatpush2.bf16.msra.mxu0 %v12810_v38  ;;  %570 = vmatpush2.bf16.msra.mxu1 %v12810_v38 }
  0xbb   :  { %398 = vmatprep.subr.bf16.mxu0 %v14994_v0  ;;  %571 = vmatprep.subr.bf16.mxu1 %v14994_v0 }
  0xbe   :  { %399 = vmatpush2.bf16.msra.mxu0 %v12822_v41  ;;  %572 = vmatpush2.bf16.msra.mxu1 %v12822_v41 }
  0xbf   :  { %400 = vmatprep.subr.bf16.mxu0 %v14994_v0  ;;  %573 = vmatprep.subr.bf16.mxu1 %v14994_v0 }
  0xc2   :  { %401 = vmatpush2.bf16.msra.mxu0 %v12834_v44  ;;  %574 = vmatpush2.bf16.msra.mxu1 %v12834_v44 }
  0xc3   :  { %716 = vmatprep.subr.bf16.mxu0 %v14994_v0  ;;  %1323 = vmatprep.subr.bf16.mxu1 %v11180_v45  ;;  %v11225_v45 = vld [vmem:[#allocation2 + $0xc4] ss:$12 sps:$4 sm:$0xff]  }
  0xc5   :  { %403 = vmatmul.mubr.bf16.vlgmr.msra.gmra.mxu0 %v11115_v46  ;;  %576 = vmatmul.mubr.bf16.vlgmr.msra.gmra.mxu1 %v11118_v47  ;;  %v11223_v46 = vld [vmem:[#allocation2 + $0xc0] ss:$12 sps:$4 sm:$0xff]   ;;  %v11168_v47 = vld [vmem:[#allocation4 + $0x110] ss:$8 sps:$4 sm:$0xff]  }
  0xc6   :  { %717 = vmatpush1.bf16.msra.mxu0 %v12681_v4  ;;  %9558 = vmatprep.mubr.msk.bf16.mxu0 %vm348_vm0, %v11121_v48  ;;  %v11137_v4 = vld [vmem:[#allocation4 + $0x30] ss:$8 sps:$4 sm:$0xff]   ;;  %v11169_v48 = vld [vmem:[#allocation4 + $0x124] ss:$8 sps:$4 sm:$0xff]  }
  0xc7   :  { %718 = vmatprep.subr.bf16.mxu0 %v14994_v0  ;;  %9579 = vmatprep.mubr.msk.bf16.mxu1 %vm348_vm0, %v11123_v49  ;;  %v11171_v49 = vld [vmem:[#allocation4 + $0x120] ss:$8 sps:$4 sm:$0xff]  }
  0xc8   :  { %1324 = vmatpush1.bf16.msra.mxu1 %v11178_v50  ;;  %v11172_v50 = vld [vmem:[#allocation4 + $0x134] ss:$8 sps:$4 sm:$0xff]  }
  0xc9   :  { %1325 = vmatprep.subr.bf16.mxu1 %v11183_v51  ;;  %v11174_v51 = vld [vmem:[#allocation4 + $0x130] ss:$8 sps:$4 sm:$0xff]  }
  0xca   :  { %719 = vmatpush1.bf16.msra.mxu0 %v12688_v6  ;;  %v11139_v6 = vld [vmem:[#allocation4 + $0x44] ss:$8 sps:$4 sm:$0xff]  }
  0xcb   :  { %720 = vmatprep.subr.bf16.mxu0 %v14994_v0 }
  0xcc   :  { %1326 = vmatpush1.bf16.msra.mxu1 %v11181_v52  ;;  %v11175_v52 = vld [vmem:[#allocation4 + $0x144] ss:$8 sps:$4 sm:$0xff]  }
  0xcd   :  { %411 = vmatmul.mubr.bf16.gmra.mxu0 %v11125_v53  ;;  %584 = vmatmul.mubr.bf16.gmra.mxu1 %v11126_v54  ;;  %v11228_v53 = vld [vmem:[#allocation2 + $0x22c] ss:$12 sps:$4 sm:$0xff]   ;;  %v11226_v54 = vld [vmem:[#allocation2 + $0x228] ss:$12 sps:$4 sm:$0xff]  }
  0xce   :  { %721 = vmatpush1.bf16.msra.mxu0 %v12700_v9  ;;  %9559 = vmatprep.mubr.msk.bf16.mxu0 %vm348_vm0, %v11127_v55  ;;  %v11193_v9 = vld [vmem:[#allocation2 + $0x30] ss:$12 sps:$4 sm:$0xff]  }
  0xcf   :  { %722 = vmatprep.subr.bf16.mxu0 %v14994_v0  ;;  %9580 = vmatprep.mubr.msk.bf16.mxu1 %vm348_vm0, %v11129_v56  ;;  %v11229_v55 = vld [vmem:[#allocation2 + $0x170] ss:$12 sps:$4 sm:$0xff]   ;;  %v11233_v56 = vld [vmem:[#allocation2 + $0x214] ss:$12 sps:$4 sm:$0xff]  }
  0xd0   :  { %1327 = vmatprep.subr.bf16.mxu1 %v11186_v57  ;;  %v11231_v57 = vld [vmem:[#allocation2 + $0x210] ss:$12 sps:$4 sm:$0xff]  }
  0xd1   :  { %1328 = vmatpush1.bf16.msra.mxu1 %v11184_v58  ;;  %v11177_v58 = vld [vmem:[#allocation4 + $0x140] ss:$8 sps:$4 sm:$0xff]  }
  0xd2   :  { %723 = vmatpush1.bf16.msra.mxu0 %v12712_v13  ;;  %1329 = vmatprep.subr.bf16.mxu1 %v11189_v59  ;;  %v11145_v13 = vld [vmem:[#allocation4 + $0x54] ss:$8 sps:$4 sm:$0xff]  }
  0xd3   :  { %724 = vmatprep.subr.bf16.mxu0 %v14994_v0  ;;  %v11238_v59 = vld [vmem:[#allocation2 + $0x1fc] ss:$12 sps:$4 sm:$0xff]  }
  0xd5   :  { %419 = vmatmul.mubr.bf16.gmra.mxu0 %v11131_v60  ;;  %592 = vmatmul.mubr.bf16.gmra.mxu1 %v11132_v61  ;;  %v11236_v60 = vld [vmem:[#allocation2 + $0x1f8] ss:$12 sps:$4 sm:$0xff]  }
  0xd6   :  { %725 = vmatpush1.bf16.msra.mxu0 %v12726_v17  ;;  %9560 = vmatprep.mubr.msk.bf16.mxu0 %vm348_vm0, %v11133_v62  ;;  %v11199_v17 = vld [vmem:[#allocation2] ss:$12 sps:$4 sm:$0xff]   ;;  %v11243_v61 = vld [vmem:[#allocation2 + $0x1e4] ss:$12 sps:$4 sm:$0xff]  }
  0xd7   :  { %726 = vmatprep.subr.bf16.mxu0 %v14994_v0  ;;  %9581 = vmatprep.mubr.msk.bf16.mxu1 %vm348_vm0, %v11135_v63  ;;  %v11241_v62 = vld [vmem:[#allocation2 + $0x1e0] ss:$12 sps:$4 sm:$0xff]  }
  0xd8   :  { %1330 = vmatpush1.bf16.msra.mxu1 %v11187_v1  ;;  %v11248_v63 = vld [vmem:[#allocation2 + $0x1cc] ss:$12 sps:$4 sm:$0xff]   ;;  %v11246_v1 = vld [vmem:[#allocation2 + $0x1c8] ss:$12 sps:$4 sm:$0xff]  }
  0xd9   :  { %1331 = vmatprep.subr.bf16.mxu1 %v11192_v2  ;;  %v11253_v2 = vld [vmem:[#allocation2 + $0x1b4] ss:$12 sps:$4 sm:$0xff]  }
  0xda   :  { %727 = vmatpush1.bf16.msra.mxu0 %v12738_v20  ;;  %v11151_v20 = vld [vmem:[#allocation4 + $0x64] ss:$8 sps:$4 sm:$0xff]  }
  0xdb   :  { %728 = vmatprep.subr.bf16.mxu0 %v14994_v0 }
  0xdc   :  { %1332 = vmatpush1.bf16.msra.mxu1 %v11190_v3  ;;  %v11251_v3 = vld [vmem:[#allocation2 + $0x1b0] ss:$12 sps:$4 sm:$0xff]  }
  0xdd   :  { %427 = vmatmul.mubr.bf16.gmra.mxu0 %v11137_v4  ;;  %600 = vmatmul.mubr.bf16.gmra.mxu1 %v11138_v5  ;;  %v11258_v4 = vld [vmem:[#allocation2 + $0x19c] ss:$12 sps:$4 sm:$0xff]   ;;  %v11256_v5 = vld [vmem:[#allocation2 + $0x198] ss:$12 sps:$4 sm:$0xff]  }
  0xde   :  { %729 = vmatpush1.bf16.msra.mxu0 %v12750_v23  ;;  %9561 = vmatprep.mubr.msk.bf16.mxu0 %vm348_vm0, %v11139_v6  ;;  %v11202_v23 = vld [vmem:[#allocation2 + $0x168] ss:$12 sps:$4 sm:$0xff]   ;;  %v11263_v6 = vld [vmem:[#allocation2 + $0x184] ss:$12 sps:$4 sm:$0xff]  }
  0xdf   :  { %730 = vmatprep.subr.bf16.mxu0 %v14994_v0  ;;  %9582 = vmatprep.mubr.msk.bf16.mxu1 %vm348_vm0, %v11141_v7  ;;  %v11261_v7 = vld [vmem:[#allocation2 + $0x180] ss:$12 sps:$4 sm:$0xff]  }
  0xe0   :  { %1333 = vmatprep.subr.bf16.mxu1 %v11195_v8  ;;  %v14992_v8 = vmov 0.0  }
  0xe1   :  { %1334 = vmatpush1.bf16.msra.mxu1 %v11193_v9 }
  0xe2   :  { %731 = vmatpush1.bf16.msra.mxu0 %v12762_v26  ;;  %1335 = vmatprep.subr.bf16.mxu1 %v11198_v10  ;;  %v11156_v26 = vld [vmem:[#allocation4 + $0xd0] ss:$8 sps:$4 sm:$0xff]  }
  0xe3   :  { %736 = vmatprep.subr.bf16.mxu0 %v14994_v0 }
  0xe5   :  { %435 = vmatmul.mubr.bf16.gmra.mxu0 %v11143_v11  ;;  %608 = vmatmul.mubr.bf16.gmra.mxu1 %v11144_v12 }
  0xe6   :  { %737 = vmatpush2.bf16.msra.mxu0 %v12774_v29  ;;  %9562 = vmatprep.mubr.msk.bf16.mxu0 %vm348_vm0, %v11145_v13  ;;  %v11210_v29 = vld [vmem:[#allocation2 + $0x13c] ss:$12 sps:$4 sm:$0xff]  }
  0xe7   :  { %738 = vmatprep.subr.bf16.mxu0 %v14994_v0  ;;  %9583 = vmatprep.mubr.msk.bf16.mxu1 %vm348_vm0, %v11147_v14  ;;  %v11230_v13 = vld [vmem:[#allocation2 + $0xb0] ss:$12 sps:$4 sm:$0xff]  }
  0xe8   :  { %1336 = vmatpush1.bf16.msra.mxu1 %v11196_v15 }
  0xe9   :  { %1337 = vmatprep.subr.bf16.mxu1 %v11201_v16  ;;  %v11234_v16 = vld [vmem:[#allocation2 + $0x158] ss:$12 sps:$4 sm:$0xff]  }
  0xea   :  { %739 = vmatpush2.bf16.msra.mxu0 %v12786_v32  ;;  %v11157_v32 = vld [vmem:[#allocation4 + $0xe0] ss:$8 sps:$4 sm:$0xff]  }
  0xeb   :  { %740 = vmatprep.subr.bf16.mxu0 %v14994_v0 }
  0xec   :  { %1338 = vmatpush1.bf16.msra.mxu1 %v11199_v17 }
  0xed   :  { %443 = vmatmul.mubr.bf16.gmra.mxu0 %v11149_v18  ;;  %616 = vmatmul.mubr.bf16.gmra.mxu1 %v11150_v19 }
  0xee   :  { %741 = vmatpush2.bf16.msra.mxu0 %v12798_v35  ;;  %9563 = vmatprep.mubr.msk.bf16.mxu0 %vm348_vm0, %v11151_v20  ;;  %v11216_v35 = vld [vmem:[#allocation2 + $0x10c] ss:$12 sps:$4 sm:$0xff]  }
  0xef   :  { %742 = vmatprep.subr.bf16.mxu0 %v14994_v0  ;;  %9584 = vmatprep.mubr.msk.bf16.mxu1 %vm348_vm0, %v11153_v21  ;;  %v11235_v21 = vld [vmem:[#allocation2 + $0x98] ss:$12 sps:$4 sm:$0xff]  }
  0xf0   :  { %1339 = vmatprep.subr.bf16.mxu1 %v11204_v22 }
  0xf1   :  { %1340 = vmatpush2.bf16.msra.mxu1 %v11202_v23 }
  0xf2   :  { %743 = vmatpush2.bf16.msra.mxu0 %v12810_v38  ;;  %1341 = vmatprep.subr.bf16.mxu1 %v11207_v24  ;;  %v11162_v38 = vld [vmem:[#allocation4 + $0xf0] ss:$8 sps:$4 sm:$0xff]   ;;  %v11239_v24 = vld [vmem:[#allocation2 + $0x140] ss:$12 sps:$4 sm:$0xff]  }
  0xf3   :  { %744 = vmatprep.subr.bf16.mxu0 %v14994_v0 }
  0xf5   :  { %451 = vmatmul.mubr.bf16.gmra.mxu0 %v11155_v25  ;;  %624 = vmatmul.mubr.bf16.gmra.mxu1 %v11156_v26 }
  0xf6   :  { %745 = vmatpush2.bf16.msra.mxu0 %v12822_v41  ;;  %9599 = vmatprep.mubr.msk.bf16.mxu0 %vm348_vm0, %v11159_v27  ;;  %v11222_v41 = vld [vmem:[#allocation2 + $0xdc] ss:$12 sps:$4 sm:$0xff]   ;;  %v11240_v27 = vld [vmem:[#allocation2 + $0x80] ss:$12 sps:$4 sm:$0xff]  }
  0xf7   :  { %746 = vmatprep.subr.bf16.mxu0 %v14994_v0  ;;  %1342 = vmatpush2.bf16.msra.mxu1 %v11205_v28 }
  0xf8   :  { %1343 = vmatprep.subr.bf16.mxu1 %v11210_v29 }
  0xfa   :  { %747 = vmatpush2.bf16.msra.mxu0 %v12834_v44  ;;  %v11166_v44 = vld [vmem:[#allocation4 + $0x114] ss:$8 sps:$4 sm:$0xff]  }
  0xfb   :  { %1344 = vmatpush2.bf16.msra.mxu1 %v11208_v30  ;;  %1426 = vmatprep.subr.bf16.mxu0 %v11228_v53  ;;  %v11244_v30 = vld [vmem:[#allocation2 + $0x128] ss:$12 sps:$4 sm:$0xff]  }
  0xfc   :  { %1345 = vmatprep.subr.bf16.mxu1 %v11213_v31 }
  0xfd   :  { %749 = vmatmul.mubr.bf16.vlgmr.msra.gmra.mxu0 %v11157_v32 }
  0xfe   :  { %9600 = vmatprep.mubr.msk.bf16.mxu0 %vm348_vm0, %v11160_v33  ;;  %1427 = vmatpush1.bf16.msra.mxu0 %v11226_v54 }
  0xff   :  { %1346 = vmatpush2.bf16.msra.mxu1 %v11211_v34  ;;  %1428 = vmatprep.subr.bf16.mxu0 %v11233_v56 }
 0x100   :  { %1347 = vmatprep.subr.bf16.mxu1 %v11216_v35  ;;  %v11245_v35 = vld [vmem:[#allocation2 + $0x68] ss:$12 sps:$4 sm:$0xff]  }
 0x102   :  { %1429 = vmatpush1.bf16.msra.mxu0 %v11231_v57 }
 0x103   :  { %1348 = vmatpush2.bf16.msra.mxu1 %v11214_v36  ;;  %1430 = vmatprep.subr.bf16.mxu0 %v11238_v59 }
 0x104   :  { %1349 = vmatprep.subr.bf16.mxu1 %v11219_v37 }
 0x105   :  { %757 = vmatmul.mubr.bf16.gmra.mxu0 %v11162_v38  ;;  %v11249_v38 = vld [vmem:[#allocation2 + $0x110] ss:$12 sps:$4 sm:$0xff]  }
 0x106   :  { %9601 = vmatprep.mubr.msk.bf16.mxu0 %vm348_vm0, %v11163_v39  ;;  %1431 = vmatpush1.bf16.msra.mxu0 %v11236_v60 }
 0x107   :  { %1350 = vmatpush2.bf16.msra.mxu1 %v11217_v40  ;;  %1432 = vmatprep.subr.bf16.mxu0 %v11243_v61 }
 0x108   :  { %1351 = vmatprep.subr.bf16.mxu1 %v11222_v41  ;;  %v11250_v41 = vld [vmem:[#allocation2 + $0x50] ss:$12 sps:$4 sm:$0xff]  }
 0x10a   :  { %1433 = vmatpush1.bf16.msra.mxu0 %v11241_v62 }
 0x10b   :  { %1352 = vmatpush2.bf16.msra.mxu1 %v11220_v43  ;;  %1434 = vmatprep.subr.bf16.mxu0 %v11248_v63  ;;  %v11265_v63 = vld [vmem:[#allocation2 + $0x8] ss:$12 sps:$4 sm:$0xff]  }
 0x10c   :  { %1353 = vmatprep.subr.bf16.mxu1 %v11225_v45 }
 0x10d   :  { %765 = vmatmul.mubr.bf16.gmra.mxu0 %v11165_v42 }
 0x10e   :  { %9602 = vmatprep.mubr.msk.bf16.mxu0 %vm348_vm0, %v11166_v44  ;;  %1435 = vmatpush1.bf16.msra.mxu0 %v11246_v1  ;;  %v11254_v44 = vld [vmem:[#allocation2 + $0xf8] ss:$12 sps:$4 sm:$0xff]  }
 0x10f   :  { %1354 = vmatpush2.bf16.msra.mxu1 %v11223_v46  ;;  %1436 = vmatprep.subr.bf16.mxu0 %v11253_v2 }
 0x110   :  { %10408 = vmatprep.subr.bf16.mxu1 %v11229_v55  ;;  %v11260_v55 = vld [vmem:[#allocation2 + $0x20] ss:$12 sps:$4 sm:$0xff]  }
 0x112   :  { %1437 = vmatpush1.bf16.msra.mxu0 %v11251_v3 }
 0x113   :  { %1438 = vmatprep.subr.bf16.mxu0 %v11258_v4 }
 0x115   :  { %773 = vmatmul.mubr.bf16.gmra.mxu0 %v11168_v47 }
 0x116   :  { %9603 = vmatprep.mubr.msk.bf16.mxu0 %vm348_vm0, %v11169_v48  ;;  %1439 = vmatpush1.bf16.msra.mxu0 %v11256_v5 }
 0x117   :  { %1440 = vmatprep.subr.bf16.mxu0 %v11263_v6 }
 0x11a   :  { %1441 = vmatpush1.bf16.msra.mxu0 %v11261_v7 }
 0x11b   :  { %10900 = vmatprep.subr.bf16.mxu0 %v14992_v8 }
 0x11d   :  { %781 = vmatmul.mubr.bf16.gmra.mxu0 %v11171_v49  ;;  %v11255_v49 = vld [vmem:[#allocation2 + $0x38] ss:$12 sps:$4 sm:$0xff]  }
 0x11e   :  { %9604 = vmatprep.mubr.msk.bf16.mxu0 %vm348_vm0, %v11172_v50 }
 0x125   :  { %789 = vmatmul.mubr.bf16.gmra.mxu0 %v11174_v51 }
 0x126   :  { %9605 = vmatprep.mubr.msk.bf16.mxu0 %vm348_vm0, %v11175_v52  ;;  %v11259_v52 = vld [vmem:[#allocation2 + $0xe0] ss:$12 sps:$4 sm:$0xff]  }
 0x12d   :  { %797 = vmatmul.mubr.bf16.gmra.mxu0 %v11177_v58  ;;  %v11264_v58 = vld [vmem:[#allocation2 + $0xc8] ss:$12 sps:$4 sm:$0xff]  }
 0x12e   :  { %1458 = vmatprep.mubr.bf16.mxu0 %v14994_v0 }
 0x185   :  { %v404_v9 = vpop.f32.mrf.mxu0  ;;  %v577_v10 = vpop.f32.mrf.mxu1 }
 0x187   :  { %v406_v11 = vpop.f32.mrf.mxu0  ;;  %v579_v12 = vpop.f32.mrf.mxu1 }
 0x189   :  { %v407_v14 = vpop.f32.mrf.mxu0  ;;  %v580_v15 = vpop.f32.mrf.mxu1 }
 0x18a   :  { %v12889_v17 = vpack.c.bf16 %v407_v14, %v404_v9  ;;  %v12891_v18 = vpack.c.bf16 %v580_v15, %v577_v10 }
 0x18b   :  { %v409_v19 = vpop.f32.mrf.mxu0  ;;  %v582_v20 = vpop.f32.mrf.mxu1 }
 0x18c   :  { %1355 = vmatprep.mubr.bf16.mxu1 %v12891_v18 }
 0x18d   :  { %v412_v22 = vpop.f32.mrf.mxu0  ;;  %v585_v23 = vpop.f32.mrf.mxu1  ;;  %1356 = vmatmul.mubr.bf16.vlgmr.msra.gmra.mxu1 %v12889_v17 }
 0x18e   :  { %10409 = vmatpush3.bf16.msra.mxu1 %v11230_v13 }
 0x18f   :  { %v414_v25 = vpop.f32.mrf.mxu0  ;;  %v587_v26 = vpop.f32.mrf.mxu1  ;;  %10410 = vmatprep.subr.bf16.mxu1 %v11234_v16 }
 0x191   :  { %v415_v28 = vpop.f32.mrf.mxu0  ;;  %v588_v29 = vpop.f32.mrf.mxu1 }
 0x192   :  { %v12895_v31 = vpack.c.bf16 %v415_v28, %v412_v22  ;;  %v12897_v32 = vpack.c.bf16 %v588_v29, %v585_v23  ;;  %10411 = vmatpush3.bf16.msra.mxu1 %v11235_v21 }
 0x193   :  { %v417_v33 = vpop.f32.mrf.mxu0  ;;  %v590_v34 = vpop.f32.mrf.mxu1  ;;  %10412 = vmatprep.subr.bf16.mxu1 %v11239_v24 }
 0x194   :  { %1365 = vmatprep.mubr.bf16.mxu1 %v12897_v32 }
 0x195   :  { %v420_v36 = vpop.f32.mrf.mxu0  ;;  %v593_v37 = vpop.f32.mrf.mxu1  ;;  %1366 = vmatmul.mubr.bf16.gmra.mxu1 %v12895_v31 }
 0x196   :  { %10413 = vmatpush3.bf16.msra.mxu1 %v11240_v27 }
 0x197   :  { %v422_v39 = vpop.f32.mrf.mxu0  ;;  %v595_v40 = vpop.f32.mrf.mxu1  ;;  %10414 = vmatprep.subr.bf16.mxu1 %v11244_v30 }
 0x199   :  { %v423_v42 = vpop.f32.mrf.mxu0  ;;  %v596_v43 = vpop.f32.mrf.mxu1 }
 0x19a   :  { %v12901_v45 = vpack.c.bf16 %v423_v42, %v420_v36  ;;  %v12903_v46 = vpack.c.bf16 %v596_v43, %v593_v37  ;;  %10415 = vmatpush3.bf16.msra.mxu1 %v11245_v35  ;;  %v11267_v42 = vld [vmem:[#allocation2 + $0x218] ss:$12 sps:$4 sm:$0xff]  }
 0x19b   :  { %v425_v47 = vpop.f32.mrf.mxu0  ;;  %v598_v48 = vpop.f32.mrf.mxu1  ;;  %10416 = vmatprep.subr.bf16.mxu1 %v11249_v38  ;;  %v11266_v38 = vld [vmem:[#allocation2 + $0x230] ss:$12 sps:$4 sm:$0xff]  }
 0x19c   :  { %1375 = vmatprep.mubr.bf16.mxu1 %v12903_v46 }
 0x19d   :  { %v428_v50 = vpop.f32.mrf.mxu0  ;;  %v601_v51 = vpop.f32.mrf.mxu1  ;;  %1376 = vmatmul.mubr.bf16.gmra.mxu1 %v12901_v45 }
 0x19e   :  { %10417 = vmatpush3.bf16.msra.mxu1 %v11250_v41 }
 0x19f   :  { %v430_v53 = vpop.f32.mrf.mxu0  ;;  %v603_v54 = vpop.f32.mrf.mxu1  ;;  %10418 = vmatprep.subr.bf16.mxu1 %v11254_v44 }
 0x1a1   :  { %v431_v56 = vpop.f32.mrf.mxu0  ;;  %v604_v57 = vpop.f32.mrf.mxu1 }
 0x1a2   :  { %v12907_v59 = vpack.c.bf16 %v431_v56, %v428_v50  ;;  %v12909_v60 = vpack.c.bf16 %v604_v57, %v601_v51  ;;  %10419 = vmatpush3.bf16.msra.mxu1 %v11255_v49  ;;  %v11269_v50 = vld [vmem:[#allocation2 + $0x1e8] ss:$12 sps:$4 sm:$0xff]   ;;  %v11270_v51 = vld [vmem:[#allocation2 + $0x1d0] ss:$12 sps:$4 sm:$0xff]  }
 0x1a3   :  { %v433_v61 = vpop.f32.mrf.mxu0  ;;  %v606_v62 = vpop.f32.mrf.mxu1  ;;  %10420 = vmatprep.subr.bf16.mxu1 %v11259_v52 }
 0x1a4   :  { %1385 = vmatprep.mubr.bf16.mxu1 %v12909_v60  ;;  %v11273_v62 = vld [vmem:[#allocation2 + $0x188] ss:$12 sps:$4 sm:$0xff]  }
 0x1a5   :  { %v436_v1 = vpop.f32.mrf.mxu0  ;;  %v609_v2 = vpop.f32.mrf.mxu1  ;;  %1386 = vmatmul.mubr.bf16.gmra.mxu1 %v12907_v59 }
 0x1a6   :  { %10421 = vmatpush3.bf16.msra.mxu1 %v11260_v55  ;;  %v11271_v55 = vld [vmem:[#allocation2 + $0x1b8] ss:$12 sps:$4 sm:$0xff]  }
 0x1a7   :  { %v438_v3 = vpop.f32.mrf.mxu0  ;;  %v611_v4 = vpop.f32.mrf.mxu1  ;;  %10422 = vmatprep.subr.bf16.mxu1 %v11264_v58 }
 0x1a9   :  { %v439_v5 = vpop.f32.mrf.mxu0  ;;  %v612_v6 = vpop.f32.mrf.mxu1 }
 0x1aa   :  { %v12913_v7 = vpack.c.bf16 %v439_v5, %v436_v1  ;;  %v12915_v9 = vpack.c.bf16 %v612_v6, %v609_v2  ;;  %10423 = vmatpush3.bf16.msra.mxu1 %v11265_v63 }
 0x1ab   :  { %v441_v10 = vpop.f32.mrf.mxu0  ;;  %v614_v11 = vpop.f32.mrf.mxu1 }
 0x1ac   :  { %1395 = vmatprep.mubr.bf16.mxu1 %v12915_v9 }
 0x1ad   :  { %v444_v12 = vpop.f32.mrf.mxu0  ;;  %v617_v13 = vpop.f32.mrf.mxu1  ;;  %1396 = vmatmul.mubr.bf16.gmra.mxu1 %v12913_v7 }
 0x1af   :  { %v446_v14 = vpop.f32.mrf.mxu0  ;;  %v619_v15 = vpop.f32.mrf.mxu1 }
 0x1b1   :  { %v447_v16 = vpop.f32.mrf.mxu0  ;;  %v620_v19 = vpop.f32.mrf.mxu1 }
 0x1b2   :  { %v12919_v20 = vpack.c.bf16 %v447_v16, %v444_v12  ;;  %v12921_v21 = vpack.c.bf16 %v620_v19, %v617_v13 }
 0x1b3   :  { %v449_v22 = vpop.f32.mrf.mxu0  ;;  %v622_v23 = vpop.f32.mrf.mxu1 }
 0x1b4   :  { %1405 = vmatprep.mubr.bf16.mxu1 %v12921_v21 }
 0x1b5   :  { %v452_v24 = vpop.f32.mrf.mxu0  ;;  %v625_v25 = vpop.f32.mrf.mxu1  ;;  %1406 = vmatmul.mubr.bf16.gmra.mxu1 %v12919_v20 }
 0x1b7   :  { %v454_v26 = vpop.f32.mrf.mxu0  ;;  %v627_v27 = vpop.f32.mrf.mxu1 }
 0x1b9   :  { %v455_v28 = vpop.f32.mrf.mxu0  ;;  %v628_v29 = vpop.f32.mrf.mxu1 }
 0x1ba   :  { %v12925_v30 = vpack.c.bf16 %v455_v28, %v452_v24  ;;  %v12927_v33 = vpack.c.bf16 %v628_v29, %v625_v25 }
 0x1bb   :  { %v457_v34 = vpop.f32.mrf.mxu0  ;;  %v630_v35 = vpop.f32.mrf.mxu1 }
 0x1bc   :  { %1415 = vmatprep.mubr.bf16.mxu1 %v12927_v33 }
 0x1bd   :  { %v750_v36 = vpop.f32.mrf.mxu0  ;;  %1416 = vmatmul.mubr.bf16.gmra.mxu1 %v12925_v30 }
 0x1be   :  { %1561 = vmatprep.mubr.bf16.mxu1 %v12891_v18  ;;  %v11268_v18 = vld [vmem:[#allocation2 + $0x200] ss:$12 sps:$4 sm:$0xff]  }
 0x1bf   :  { %v752_v37 = vpop.f32.mrf.mxu0 }
 0x1c1   :  { %v753_v39 = vpop.f32.mrf.mxu0 }
 0x1c2   :  { %v12932_v40 = vpack.c.bf16 %v753_v39, %v750_v36  ;;  %v924_v36 = vlaneseq }
 0x1c3   :  { %v755_v41 = vpop.f32.mrf.mxu0 }
 0x1c4   :  { %1459 = vmatmul.mubr.bf16.vlgmr.msra.gmra.mxu0 %v12932_v40  ;;  %v13014_v39 = vshrl.u32 %v924_v36, 7 }
 0x1c5   :  { %v758_v43 = vpop.f32.mrf.mxu0  ;;  %1562 = vmatmul.mubr.bf16.vlgmr.msra.gmra.mxu1 %v12889_v17  ;;  %1468 = vmatprep.mubr.bf16.mxu0 %v14994_v0 }
 0x1c6   :  { %1569 = vmatprep.mubr.bf16.mxu1 %v12897_v32  ;;  %10901 = vmatpush3.bf16.msra.mxu0 %v11266_v38  ;;  %15021 = vst [vmem:[#allocation24_spill] sm:$0xff] %v13014_v39 }
 0x1c7   :  { %v760_v44 = vpop.f32.mrf.mxu0  ;;  %10902 = vmatprep.subr.bf16.mxu0 %v14992_v8 }
 0x1c8   :  { %v13028_v44 = vld [vmem:[%s15023_s26] sm:$0x7] }
 0x1c9   :  { %v761_v47 = vpop.f32.mrf.mxu0 }
 0x1ca   :  { %v12939_v48 = vpack.c.bf16 %v761_v47, %v758_v43  ;;  %10903 = vmatpush3.bf16.msra.mxu0 %v11267_v42  ;;  %v13021_v42 = vsub.s32 0, %v13014_v39 }
 0x1cb   :  { %v763_v49 = vpop.f32.mrf.mxu0  ;;  %10904 = vmatprep.subr.bf16.mxu0 %v14992_v8 }
 0x1cc   :  { %1469 = vmatmul.mubr.bf16.gmra.mxu0 %v12939_v48  ;;  %15022 = vst [vmem:[#allocation25_spill] sm:$0xff] %v13021_v42 }
 0x1cd   :  { %v766_v17 = vpop.f32.mrf.mxu0  ;;  %1570 = vmatmul.mubr.bf16.gmra.mxu1 %v12895_v31  ;;  %1478 = vmatprep.mubr.bf16.mxu0 %v14994_v0 }
 0x1ce   :  { %1577 = vmatprep.mubr.bf16.mxu1 %v12903_v46  ;;  %10905 = vmatpush3.bf16.msra.mxu0 %v11268_v18  ;;  %v11272_v46 = vld [vmem:[#allocation2 + $0x1a0] ss:$12 sps:$4 sm:$0xff]   ;;  %v13031_v18 = vsub.s32 1, %v13014_v39 }
 0x1cf   :  { %v768_v32 = vpop.f32.mrf.mxu0  ;;  %10906 = vmatprep.subr.bf16.mxu0 %v14992_v8 }
 0x1d0   :  { %15024 = vst [vmem:[#allocation26_spill] sm:$0xff] %v13031_v18 }
 0x1d1   :  { %v769_v52 = vpop.f32.mrf.mxu0 }
 0x1d2   :  { %v813_v53 = vpack.c.bf16 %v769_v52, %v766_v17  ;;  %10907 = vmatpush3.bf16.msra.mxu0 %v11269_v50  ;;  %v13043_v50 = vrot.slane %v13028_v44, %v13031_v18  ;;  %v15000_v18 = vsub.s32 2, %v13014_v39 }
 0x1d3   :  { %v771_v54 = vpop.f32.mrf.mxu0  ;;  %10908 = vmatprep.subr.bf16.mxu0 %v14992_v8 }
 0x1d4   :  { %1479 = vmatmul.mubr.bf16.gmra.mxu0 %v813_v53 }
 0x1d5   :  { %v774_v56 = vpop.f32.mrf.mxu0  ;;  %1578 = vmatmul.mubr.bf16.gmra.mxu1 %v12901_v45  ;;  %1488 = vmatprep.mubr.bf16.mxu0 %v14994_v0 }
 0x1d6   :  { %1585 = vmatprep.mubr.bf16.mxu1 %v12909_v60  ;;  %10909 = vmatpush3.bf16.msra.mxu0 %v11270_v51 }
 0x1d7   :  { %v776_v31 = vpop.f32.mrf.mxu0  ;;  %10910 = vmatprep.subr.bf16.mxu0 %v14992_v8 }
 0x1d9   :  { %v777_v57 = vpop.f32.mrf.mxu0 }
 0x1da   :  { %v816_v58 = vpack.c.bf16 %v777_v57, %v774_v56  ;;  %10911 = vmatpush3.bf16.msra.mxu0 %v11271_v55 }
 0x1db   :  { %v779_v61 = vpop.f32.mrf.mxu0  ;;  %10912 = vmatprep.subr.bf16.mxu0 %v14992_v8 }
 0x1dc   :  { %1489 = vmatmul.mubr.bf16.gmra.mxu0 %v816_v58 }
 0x1dd   :  { %v782_v63 = vpop.f32.mrf.mxu0  ;;  %1586 = vmatmul.mubr.bf16.gmra.mxu1 %v12907_v59  ;;  %1498 = vmatprep.mubr.bf16.mxu0 %v14994_v0 }
 0x1de   :  { %1593 = vmatprep.mubr.bf16.mxu1 %v12915_v9  ;;  %10913 = vmatpush3.bf16.msra.mxu0 %v11272_v46 }
 0x1df   :  { %v784_v45 = vpop.f32.mrf.mxu0  ;;  %10914 = vmatprep.subr.bf16.mxu0 %v14992_v8 }
 0x1e1   :  { %v785_v60 = vpop.f32.mrf.mxu0 }
 0x1e2   :  { %v819_v1 = vpack.c.bf16 %v785_v60, %v782_v63  ;;  %10915 = vmatpush3.bf16.msra.mxu0 %v11273_v62 }
 0x1e3   :  { %v787_v2 = vpop.f32.mrf.mxu0 }
 0x1e4   :  { %1499 = vmatmul.mubr.bf16.gmra.mxu0 %v819_v1 }
 0x1e5   :  { %v790_v3 = vpop.f32.mrf.mxu0  ;;  %1594 = vmatmul.mubr.bf16.gmra.mxu1 %v12913_v7  ;;  %1508 = vmatprep.mubr.bf16.mxu0 %v14994_v0 }
 0x1e6   :  { %1601 = vmatprep.mubr.bf16.mxu1 %v12921_v21 }
 0x1e7   :  { %v792_v59 = vpop.f32.mrf.mxu0 }
 0x1e9   :  { %v793_v4 = vpop.f32.mrf.mxu0 }
 0x1ea   :  { %v822_v5 = vpack.c.bf16 %v793_v4, %v790_v3 }
 0x1eb   :  { %v795_v6 = vpop.f32.mrf.mxu0 }
 0x1ec   :  { %1509 = vmatmul.mubr.bf16.gmra.mxu0 %v822_v5 }
 0x1ed   :  { %v798_v9 = vpop.f32.mrf.mxu0  ;;  %1602 = vmatmul.mubr.bf16.gmra.mxu1 %v12919_v20  ;;  %1518 = vmatprep.mubr.bf16.mxu0 %v14994_v0 }
 0x1ee   :  { %1609 = vmatprep.mubr.bf16.mxu1 %v12927_v33 }
 0x1ef   :  { %v800_v10 = vpop.f32.mrf.mxu0 }
 0x1f1   :  { %v801_v11 = vpop.f32.mrf.mxu0 }
 0x1f2   :  { %v825_v12 = vpack.c.bf16 %v801_v11, %v798_v9 }
 0x1f3   :  { %v803_v7 = vpop.f32.mrf.mxu0 }
 0x1f4   :  { %1519 = vmatmul.mubr.bf16.gmra.mxu0 %v825_v12 }
 0x1f5   :  { %1610 = vmatmul.mubr.bf16.gmra.mxu1 %v12925_v30  ;;  %10916 = vmatprep.mubr.msk.bf16.mxu0 %vm12513_vm1, %v14992_v8 }
 0x1f6   :  { %1854 = vmatprep.mubr.bf16.mxu1 %v14994_v0 }
 0x1fc   :  { %10917 = vmatmul.mubr.bf16.vlgmr.msra.gmra.mxu0 %v12932_v40 }
 0x1fd   :  { %10920 = vmatprep.mubr.msk.bf16.mxu0 %vm12513_vm1, %v14992_v8 }
 0x204   :  { %10921 = vmatmul.mubr.bf16.gmra.mxu0 %v12939_v48  ;;  %v13037_v48 = vrot.slane %v13028_v44, %v13021_v42 }
 0x205   :  { %10924 = vmatprep.mubr.msk.bf16.mxu0 %vm12513_vm1, %v14992_v8 }
 0x20c   :  { %10925 = vmatmul.mubr.bf16.gmra.mxu0 %v813_v53 }
 0x20d   :  { %10928 = vmatprep.mubr.msk.bf16.mxu0 %vm12513_vm1, %v14992_v8 }
 0x214   :  { %10929 = vmatmul.mubr.bf16.gmra.mxu0 %v816_v58 }
 0x215   :  { %10932 = vmatprep.mubr.msk.bf16.mxu0 %vm12513_vm1, %v14992_v8 }
 0x21c   :  { %10933 = vmatmul.mubr.bf16.gmra.mxu0 %v819_v1 }
 0x21d   :  { %10936 = vmatprep.mubr.msk.bf16.mxu0 %vm12513_vm1, %v14992_v8 }
 0x224   :  { %10937 = vmatmul.mubr.bf16.gmra.mxu0 %v822_v5 }
 0x225   :  { %10940 = vmatprep.mubr.msk.bf16.mxu0 %vm12513_vm1, %v14992_v8 }
 0x22c   :  { %10941 = vmatmul.mubr.bf16.gmra.mxu0 %v825_v12 }
 0x22d   :  { %2019 = vmatprep.mubr.bf16.mxu0 %v14994_v0 }
 0x24d   :  { %v1357_v13 = vpop.f32.mrf.mxu1 }
 0x24e   :  { %v1358_v32 = vadd.f32 %v1357_v13, %v13037_v48 }
 0x24f   :  { %v1359_v14 = vpop.f32.mrf.mxu1 }
 0x250   :  { %v1360_v53 = vadd.f32 %v1359_v14, %v13043_v50 }
 0x251   :  { %v1361_v15 = vpop.f32.mrf.mxu1 }
 0x252   :  { %v1362_v31 = vadd.f32 %v1361_v15, %v13037_v48 }
 0x253   :  { %v12982_v16 = vpop.f32.mrf.mxu1 }
 0x255   :  { %v1367_v19 = vpop.f32.mrf.mxu1 }
 0x256   :  { %v1368_v60 = vadd.f32 %v1367_v19, %v13037_v48 }
 0x257   :  { %v12984_v20 = vpop.f32.mrf.mxu1 }
 0x259   :  { %v1371_v21 = vpop.f32.mrf.mxu1 }
 0x25a   :  { %v1372_v10 = vadd.f32 %v1371_v21, %v13037_v48 }
 0x25b   :  { %v12986_v22 = vpop.f32.mrf.mxu1 }
 0x25d   :  { %v12988_v23 = vpop.f32.mrf.mxu1 }
 0x25f   :  { %v12990_v24 = vpop.f32.mrf.mxu1 }
 0x261   :  { %v12992_v25 = vpop.f32.mrf.mxu1 }
 0x263   :  { %v12994_v26 = vpop.f32.mrf.mxu1 }
 0x265   :  { %v12996_v27 = vpop.f32.mrf.mxu1 }
 0x267   :  { %v12998_v28 = vpop.f32.mrf.mxu1 }
 0x269   :  { %v13000_v29 = vpop.f32.mrf.mxu1 }
 0x26b   :  { %v13002_v30 = vpop.f32.mrf.mxu1 }
 0x26d   :  { %v13004_v33 = vpop.f32.mrf.mxu1 }
 0x26f   :  { %v13006_v34 = vpop.f32.mrf.mxu1 }
 0x271   :  { %v13008_v35 = vpop.f32.mrf.mxu1 }
 0x273   :  { %v13010_v37 = vpop.f32.mrf.mxu1 }
 0x275   :  { %v13012_v38 = vpop.f32.mrf.mxu1 }
 0x277   :  { %v13016_v40 = vpop.f32.mrf.mxu1 }
 0x279   :  { %v13018_v41 = vpop.f32.mrf.mxu1 }
 0x27b   :  { %v13023_v43 = vpop.f32.mrf.mxu1 }
 0x27d   :  { %v13033_v47 = vpop.f32.mrf.mxu1 }
 0x27f   :  { %v13039_v49 = vpop.f32.mrf.mxu1 }
 0x281   :  { %v13045_v17 = vpop.f32.mrf.mxu1 }
 0x283   :  { %v13048_v51 = vpop.f32.mrf.mxu1 }
 0x284   :  { %v1460_v52 = vpop.f32.mrf.mxu0 }
 0x285   :  { %v1461_v54 = vadd.f32 %v1460_v52, %v1358_v32  ;;  %v10424_v55 = vpop.f32.mrf.mxu1 }
 0x286   :  { %v1462_v56 = vpop.f32.mrf.mxu0 }
 0x287   :  { %v13052_v46 = vadd.f32 %v1462_v56, %v1360_v53  ;;  %v10425_v57 = vpop.f32.mrf.mxu1  ;;  %v1707_v1 = vmax.f32 %v1461_v54, 0.0 }
 0x288   :  { %v13054_v58 = vadd.f32 %v10425_v57, %v10424_v55  ;;  %v1464_v61 = vpop.f32.mrf.mxu0 }
 0x289   :  { %v1465_v62 = vadd.f32 %v1464_v61, %v1362_v31  ;;  %v13056_v63 = vpop.f32.mrf.mxu1 }
 0x28a   :  { %v13058_v45 = vpop.f32.mrf.mxu0 }
 0x28b   :  { %v1710_v2 = vmax.f32 %v1465_v62, 0.0  ;;  %v10428_v3 = vpop.f32.mrf.mxu1 }
 0x28c   :  { %v1470_v59 = vpop.f32.mrf.mxu0 }
 0x28d   :  { %v13061_v4 = vpack.c.bf16 %v1710_v2, %v1707_v1  ;;  %v1471_v5 = vadd.f32 %v1470_v59, %v1368_v60  ;;  %v13063_v6 = vpop.f32.mrf.mxu1 }
 0x28e   :  { %15026 = vst [vmem:[#allocation28_spill] sm:$0xff] %v13063_v6  ;;  %v13065_v9 = vpop.f32.mrf.mxu0 }
 0x28f   :  { %15025 = vst [vmem:[#allocation27_spill] sm:$0xff] %v13061_v4  ;;  %v13068_v11 = vpop.f32.mrf.mxu1  ;;  %v1713_v14 = vmax.f32 %v1471_v5, 0.0 }
 0x290   :  { %15027 = vst [vmem:[#allocation29_spill] sm:$0xff] %v13068_v11  ;;  %v1474_v12 = vpop.f32.mrf.mxu0 }
 0x291   :  { %v1475_v7 = vadd.f32 %v1474_v12, %v1372_v10  ;;  %v13072_v19 = vpop.f32.mrf.mxu1 }
 0x292   :  { %v13070_v13 = vpop.f32.mrf.mxu0  ;;  %15028 = vst [vmem:[#allocation30_spill] sm:$0xff] %v13072_v19  ;;  %v1420_v19 = vadd.f32 %v13039_v49, %v13043_v50  ;;  %v1418_v49 = vadd.f32 %v13033_v47, %v13037_v48 }
 0x293   :  { %v1716_v15 = vmax.f32 %v1475_v7, 0.0  ;;  %v13080_v53 = vpop.f32.mrf.mxu1 }
 0x294   :  { %v13074_v36 = vpop.f32.mrf.mxu0  ;;  %15030 = vst [vmem:[#allocation32_spill] sm:$0xff] %v13080_v53  ;;  %v1414_v53 = vadd.f32 %v13023_v43, %v13043_v50  ;;  %v1410_v43 = vadd.f32 %v13016_v40, %v13043_v50  ;;  %v1412_v40 = vadd.f32 %v13018_v41, %v13037_v48 }
 0x295   :  { %v13076_v32 = vpack.c.bf16 %v1716_v15, %v1713_v14  ;;  %v13086_v55 = vpop.f32.mrf.mxu1 }
 0x296   :  { %v13078_v52 = vpop.f32.mrf.mxu0  ;;  %15031 = vst [vmem:[#allocation33_spill] sm:$0xff] %v13086_v55  ;;  %v13120_v55 = vrot.slane %v13028_v44, %v15000_v18  ;;  %v1424_v44 = vadd.f32 %v13048_v51, %v13043_v50  ;;  %v1408_v51 = vadd.f32 %v13012_v38, %v13037_v48 }
 0x297   :  { %15029 = vst [vmem:[#allocation31_spill] sm:$0xff] %v13076_v32  ;;  %v13092_v57 = vpop.f32.mrf.mxu1 }
 0x298   :  { %v13082_v54 = vpop.f32.mrf.mxu0  ;;  %15032 = vst [vmem:[#allocation34_spill] sm:$0xff] %v13092_v57  ;;  %v1422_v57 = vadd.f32 %v13045_v17, %v13037_v48 }
 0x299   :  { %v13098_v60 = vpop.f32.mrf.mxu1 }
 0x29a   :  { %v13084_v21 = vpop.f32.mrf.mxu0  ;;  %15033 = vst [vmem:[#allocation35_spill] sm:$0xff] %v13098_v60  ;;  %v1390_v60 = vadd.f32 %v12998_v28, %v13043_v50  ;;  %v1404_v28 = vadd.f32 %v13010_v37, %v13043_v50 }
 0x29b   :  { %v13102_v59 = vpop.f32.mrf.mxu1 }
 0x29c   :  { %v13088_v56 = vpop.f32.mrf.mxu0  ;;  %15034 = vst [vmem:[#allocation36_spill] sm:$0xff] %v13102_v59  ;;  %v13124_v59 = vadd.f32 %v12990_v24, %v13043_v50  ;;  %v1400_v24 = vadd.f32 %v13006_v34, %v13043_v50 }
 0x29d   :  { %v13104_v12 = vpop.f32.mrf.mxu1 }
 0x29e   :  { %v13090_v31 = vpop.f32.mrf.mxu0  ;;  %15035 = vst [vmem:[#allocation37_spill] sm:$0xff] %v13104_v12 }
 0x29f   :  { %v13106_v15 = vpop.f32.mrf.mxu1 }
 0x2a0   :  { %v13094_v61 = vpop.f32.mrf.mxu0  ;;  %15036 = vst [vmem:[#allocation38_spill] sm:$0xff] %v13106_v15 }
 0x2a1   :  { %v13109_v42 = vpop.f32.mrf.mxu1 }
 0x2a2   :  { %v13096_v62 = vpop.f32.mrf.mxu0  ;;  %15037 = vst [vmem:[#allocation39_spill] sm:$0xff] %v13109_v42 }
 0x2a3   :  { %v13132_v15 = vpop.f32.mrf.mxu1 }
 0x2a4   :  { %v13100_v1 = vpop.f32.mrf.mxu0  ;;  %15038 = vst [vmem:[#allocation40_spill] sm:$0xff] %v13132_v15  ;;  %v10429_v15 = vadd.f32 %v10428_v3, %v13056_v63  ;;  %v1394_v63 = vadd.f32 %v13002_v30, %v13043_v50  ;;  %v1402_v3 = vadd.f32 %v13008_v35, %v13037_v48 }
 0x2a6   :  { %v1502_v2 = vpop.f32.mrf.mxu0  ;;  %v1497_v35 = vadd.f32 %v13096_v62, %v1394_v63  ;;  %v1493_v62 = vadd.f32 %v13090_v31, %v1390_v60 }
 0x2a7   :  { %v1503_v38 = vadd.f32 %v1502_v2, %v1400_v24  ;;  %v1392_v2 = vadd.f32 %v13000_v29, %v13037_v48 }
 0x2a8   :  { %v1504_v5 = vpop.f32.mrf.mxu0  ;;  %v1729_v60 = vmax.f32 %v1497_v35, 0.0 }
 0x2a9   :  { %v1495_v29 = vadd.f32 %v13094_v61, %v1392_v2  ;;  %v1708_v2 = vmax.f32 %v13052_v46, 0.0 }
 0x2aa   :  { %v1506_v10 = vpop.f32.mrf.mxu0 }
 0x2ab   :  { %v1507_v34 = vadd.f32 %v1506_v10, %v1404_v28  ;;  %v1567_v10 = vadd.f32 %v10429_v15, %v13120_v55  ;;  %v1732_v28 = vmax.f32 %v1503_v38, 0.0 }
 0x2ac   :  { %v1510_v7 = vpop.f32.mrf.mxu0 }
 0x2ae   :  { %v1512_v14 = vpop.f32.mrf.mxu0 }
 0x2af   :  { %v1513_v4 = vadd.f32 %v1512_v14, %v1410_v43 }
 0x2b0   :  { %v1514_v8 = vpop.f32.mrf.mxu0 }
 0x2b2   :  { %v1516_v0 = vpop.f32.mrf.mxu0 }
 0x2b3   :  { %v1517_v18 = vadd.f32 %v1516_v0, %v1414_v53  ;;  %v1564_v0 = vadd.f32 %v13054_v58, %v13120_v55  ;;  %v1511_v58 = vadd.f32 %v1510_v7, %v1408_v51 }
 0x2b4   :  { %v1520_v11 = vpop.f32.mrf.mxu0 }
 0x2b5   :  { %v1521_v42 = vadd.f32 %v1520_v11, %v1418_v49  ;;  %v1737_v15 = vmax.f32 %v1511_v58, 0.0 }
 0x2b6   :  { %v1522_v6 = vpop.f32.mrf.mxu0 }
 0x2b7   :  { %v1523_v39 = vadd.f32 %v1522_v6, %v1420_v19  ;;  %v13147_v6 = vpop.f32.mrf.mxu1  ;;  %v1515_v19 = vadd.f32 %v1514_v8, %v1412_v40  ;;  %v1743_v14 = vmax.f32 %v1521_v42, 0.0  ;;  %v1735_v42 = vmax.f32 %v1507_v34, 0.0 }
 0x2b8   :  { %v1524_v17 = vpop.f32.mrf.mxu0 }
 0x2b9   :  { %v1525_v12 = vadd.f32 %v1524_v17, %v1422_v57  ;;  %v1741_v57 = vmax.f32 %v1517_v18, 0.0  ;;  %v1744_v41 = vmax.f32 %v1523_v39, 0.0  ;;  %v1738_v17 = vmax.f32 %v1513_v4, 0.0  ;;  %v13158_v18 = vpop.f32.mrf.mxu1 }
 0x2ba   :  { %v1526_v47 = vpop.f32.mrf.mxu0  ;;  %v1398_v39 = vadd.f32 %v13004_v33, %v13037_v48  ;;  %v1384_v33 = vadd.f32 %v12994_v26, %v13043_v50  ;;  %v1388_v26 = vadd.f32 %v12996_v27, %v13037_v48 }
 0x2bb   :  { %v1527_v32 = vadd.f32 %v1526_v47, %v1424_v44  ;;  %v1746_v37 = vmax.f32 %v1525_v12, 0.0  ;;  %v1740_v12 = vmax.f32 %v1515_v19, 0.0  ;;  %v13165_v4 = vpack.c.bf16 %v1741_v57, %v1738_v17 }
 0x2bc   :  { %v1652_v53 = vpop.f32.mrf.mxu0  ;;  %v1487_v31 = vadd.f32 %v13084_v21, %v1384_v33  ;;  %v1491_v27 = vadd.f32 %v13088_v56, %v1388_v26  ;;  %v1483_v21 = vadd.f32 %v13078_v52, %v13124_v59  ;;  %v13260_v26 = vld [vmem:[#allocation6] sm:$0xff]  }
 0x2bd   :  { %v1747_v11 = vmax.f32 %v1527_v32, 0.0  ;;  %v1653_v49 = vadd.f32 %v1652_v53, %v1564_v0  ;;  %v1505_v32 = vadd.f32 %v1504_v5, %v1402_v3  ;;  %v13160_v30 = vpack.c.bf16 %v1746_v37, %v1743_v14  ;;  %v13180_v0 = vpop.f32.mrf.mxu1 }
 0x2be   :  { %v10918_v43 = vpop.f32.mrf.mxu0  ;;  %v1501_v5 = vadd.f32 %v13100_v1, %v1398_v39  ;;  %v13182_v51 = vpack.c.bf16 %v1740_v12, %v1737_v15  ;;  %v13189_v37 = vpack.c.bf16 %v1735_v42, %v1732_v28  ;;  %v1382_v53 = vadd.f32 %v12992_v25, %v13037_v48  ;;  %v15039_v28 = vld [vmem:[#allocation31_spill] sm:$0xff] }
 0x2bf   :  { %v13154_v8 = vpack.c.bf16 %v1747_v11, %v1744_v41  ;;  %v1709_v40 = vmax.f32 %v1653_v49, 0.0  ;;  %v1734_v1 = vmax.f32 %v1505_v32, 0.0  ;;  %v1374_v41 = vadd.f32 %v12986_v22, %v13043_v50  ;;  %v13207_v3 = vpop.f32.mrf.mxu1 }
 0x2c0   :  { %v1655_v44 = vpop.f32.mrf.mxu0  ;;  %v1731_v61 = vmax.f32 %v1501_v5, 0.0  ;;  %v1726_v11 = vmax.f32 %v1493_v62, 0.0  ;;  %v1378_v25 = vadd.f32 %v12988_v23, %v13037_v48  ;;  %v1485_v56 = vadd.f32 %v13082_v54, %v1382_v53 }
 0x2c1   :  { %v1656_v7 = vadd.f32 %v1655_v44, %v1567_v10  ;;  %1824 = vmatprep.subr.bf16.mxu1 %v13154_v8  ;;  %1989 = vmatprep.subr.bf16.mxu0 %v13154_v8  ;;  %v1728_v49 = vmax.f32 %v1495_v29, 0.0  ;;  %v1370_v22 = vadd.f32 %v12984_v20, %v13043_v50  ;;  %v1477_v52 = vadd.f32 %v13070_v13, %v1374_v41  ;;  %v13277_v41 = vld [vmem:[#allocation6 + $0x24] sm:$0xff]  }
 0x2c2   :  { %v10919_v24 = vpop.f32.mrf.mxu0  ;;  %1825 = vmatpush1.bf16.msra.mxu1 %v13160_v30  ;;  %1990 = vmatpush1.bf16.msra.mxu0 %v13160_v30  ;;  %v13205_v63 = vpack.c.bf16 %v1734_v1, %v1731_v61  ;;  %v1723_v59 = vmax.f32 %v1487_v31, 0.0  ;;  %v13214_v14 = vpack.c.bf16 %v1729_v60, %v1726_v11  ;;  %v1481_v43 = vadd.f32 %v13074_v36, %v1378_v25  ;;  %v13226_v36 = vpop.f32.mrf.mxu1  ;;  %v15040_v1 = vld [vmem:[#allocation27_spill] sm:$0xff] }
 0x2c3   :  { %v1712_v47 = vmax.f32 %v1656_v7, 0.0  ;;  %1826 = vmatprep.subr.bf16.mxu1 %v13165_v4  ;;  %1991 = vmatprep.subr.bf16.mxu0 %v13165_v4  ;;  %v1725_v23 = vmax.f32 %v1491_v27, 0.0  ;;  %v1364_v54 = vadd.f32 %v12982_v16, %v13043_v50  ;;  %v1473_v38 = vadd.f32 %v13065_v9, %v1370_v22  ;;  %v13291_v22 = vld [vmem:[#allocation6 + $0x2c] sm:$0xff]  }
 0x2c4   :  { %v13184_v34 = vpop.f32.mrf.mxu0  ;;  %v1720_v17 = vmax.f32 %v1483_v21, 0.0  ;;  %v1722_v20 = vmax.f32 %v1485_v56, 0.0  ;;  %v1717_v32 = vmax.f32 %v1477_v52, 0.0  ;;  %v1719_v16 = vmax.f32 %v1481_v43, 0.0  ;;  %v10455_v35 = vpop.f32.mrf.mxu1 }
 0x2c5   :  { %v13187_v19 = vpack.c.bf16 %v1712_v47, %v1709_v40  ;;  %v13224_v13 = vpack.c.bf16 %v1728_v49, %v1725_v23  ;;  %v1467_v39 = vadd.f32 %v13058_v45, %v1364_v54  ;;  %v1714_v9 = vmax.f32 %v1473_v38, 0.0  ;;  %v13258_v47 = vld [vmem:[#allocation6 + $0x1c] sm:$0xff]   ;;  %v13289_v49 = vld [vmem:[#allocation6 + $0x10] sm:$0xff]  }
 0x2c6   :  { %v10922_v57 = vpop.f32.mrf.mxu0  ;;  %1827 = vmatpush1.bf16.msra.mxu1 %v13182_v51  ;;  %1992 = vmatpush1.bf16.msra.mxu0 %v13182_v51  ;;  %v13231_v12 = vpack.c.bf16 %v1723_v59, %v1720_v17  ;;  %v13237_v44 = vpack.c.bf16 %v1722_v20, %v1719_v16  ;;  %v10457_v5 = vpop.f32.mrf.mxu1  ;;  %v15041_v27 = vmov 0   ;;  %v10456_v52 = vadd.f32 %v10455_v35, %v13226_v36  ;;  %v15042_v36 = vld [vmem:[#allocation39_spill] sm:$0xff] }
 0x2c7   :  { %1828 = vmatprep.subr.bf16.mxu1 %v13189_v37  ;;  %1993 = vmatprep.subr.bf16.mxu0 %v13189_v37  ;;  %v1711_v45 = vmax.f32 %v1467_v39, 0.0  ;;  %v13241_v7 = vpack.c.bf16 %v1717_v32, %v1714_v9  ;;  %v13275_v57 = vld [vmem:[#allocation6 + $0x8] sm:$0xff]   ;;  %v10450_v54 = vadd.f32 %v13158_v18, %v13147_v6  ;;  %v15043_v39 = vld [vmem:[#allocation40_spill] sm:$0xff]  ;;  %v13315_v16 = vld [vmem:[#allocation6 + $0x18] ss:$0 sps:$4 sm:$0xff]  }
 0x2c8   :  { %v13209_v58 = vpop.f32.mrf.mxu0  ;;  %v10458_v40 = vpop.f32.mrf.mxu1  ;;  %v1604_v38 = vadd.f32 %v10456_v52, %v13120_v55  ;;  %v10447_v32 = vadd.f32 %v15043_v39, %v15042_v36  ;;  %v15044_v9 = vld [vmem:[#allocation37_spill] sm:$0xff] }
 0x2c9   :  { %v13250_v24 = vpack.c.bf16 %v1711_v45, %v1708_v2  ;;  %v1596_v45 = vadd.f32 %v10450_v54, %v13120_v55 }
 0x2ca   :  { %v10923_v48 = vpop.f32.mrf.mxu0  ;;  %1829 = vmatpush1.bf16.msra.mxu1 %v13205_v63  ;;  %1994 = vmatpush1.bf16.msra.mxu0 %v13205_v63  ;;  %v10460_v31 = vpop.f32.mrf.mxu1 }
 0x2cb   :  { %1830 = vmatprep.subr.bf16.mxu1 %v13214_v14  ;;  %1995 = vmatprep.subr.bf16.mxu0 %v13214_v14 }
 0x2cc   :  { %v13228_v10 = vpop.f32.mrf.mxu0  ;;  %v10461_v61 = vpop.f32.mrf.mxu1 }
 0x2cd   :  { %v10462_v56 = vadd.f32 %v10461_v61, %v10460_v31  ;;  %v1591_v61 = vadd.f32 %v10447_v32, %v13120_v55 }
 0x2ce   :  { %v10926_v50 = vpop.f32.mrf.mxu0  ;;  %1831 = vmatpush1.bf16.msra.mxu1 %v13224_v13  ;;  %1996 = vmatpush1.bf16.msra.mxu0 %v13224_v13  ;;  %v10463_v11 = vpop.f32.mrf.mxu1 }
 0x2cf   :  { %1832 = vmatprep.subr.bf16.mxu1 %v13231_v12  ;;  %1997 = vmatprep.subr.bf16.mxu0 %v13231_v12  ;;  %v1612_v48 = vadd.f32 %v10462_v56, %v13120_v55  ;;  %v13317_v50 = vld [vmem:[#allocation6 + $0x34] ss:$0 sps:$4 sm:$0xff]   ;;  %v15052_v56 = vld [vmem:[#allocation32_spill] sm:$0xff] }
 0x2d0   :  { %v13239_v42 = vpop.f32.mrf.mxu0 }
 0x2d2   :  { %v10927_v33 = vpop.f32.mrf.mxu0  ;;  %1833 = vmatpush1.bf16.msra.mxu1 %v13237_v44  ;;  %1998 = vmatpush1.bf16.msra.mxu0 %v13237_v44 }
 0x2d3   :  { %1834 = vmatprep.subr.bf16.mxu1 %v13241_v7  ;;  %1999 = vmatprep.subr.bf16.mxu0 %v13241_v7 }
 0x2d4   :  { %v13248_v15 = vpop.f32.mrf.mxu0 }
 0x2d6   :  { %v10930_v62 = vpop.f32.mrf.mxu0  ;;  %1835 = vmatpush1.bf16.msra.mxu1 %v15039_v28  ;;  %2000 = vmatpush1.bf16.msra.mxu0 %v15039_v28 }
 0x2d7   :  { %1836 = vmatprep.subr.bf16.mxu1 %v13250_v24  ;;  %2001 = vmatprep.subr.bf16.mxu0 %v13250_v24 }
 0x2d8   :  { %v13256_v46 = vpop.f32.mrf.mxu0 }
 0x2da   :  { %v10931_v29 = vpop.f32.mrf.mxu0  ;;  %1837 = vmatpush1.bf16.msra.mxu1 %v15040_v1  ;;  %2002 = vmatpush1.bf16.msra.mxu0 %v15040_v1 }
 0x2db   :  { %2154 = vmatprep.subr.bf16.mxu0 %v13154_v8  ;;  %v15047_v29 = vld [vmem:[#allocation36_spill] sm:$0xff] }
 0x2dc   :  { %v13265_v60 = vpop.f32.mrf.mxu0 }
 0x2dd   :  { %9694 = vmatmul.mubr.msk.bf16.vlgmr.msra.gmra.mxu0 %vm1809_vm2, %v13258_v47  ;;  %9682 = vmatmul.mubr.msk.bf16.vlgmr.msra.gmra.mxu1 %vm1809_vm2, %v13260_v26 }
 0x2de   :  { %v10934_v53 = vpop.f32.mrf.mxu0  ;;  %2155 = vmatpush1.bf16.msra.mxu0 %v13160_v30  ;;  %1864 = vmatprep.mubr.bf16.mxu1 %v15041_v27 }
 0x2df   :  { %2156 = vmatprep.subr.bf16.mxu0 %v13165_v4  ;;  %2029 = vmatprep.mubr.bf16.mxu0 %v15041_v27  ;;  %v10464_v4 = vpop.f32.mrf.mxu1  ;;  %v11288_v53 = vld [vmem:[%s15048_s4 + $0x74] ss:$8 sps:$4 sm:$0xff]  }
 0x2e0   :  { %v1687_v8 = vpop.f32.mrf.mxu0 }
 0x2e2   :  { %v10935_v21 = vpop.f32.mrf.mxu0  ;;  %2157 = vmatpush1.bf16.msra.mxu0 %v13182_v51 }
 0x2e3   :  { %2158 = vmatprep.subr.bf16.mxu0 %v13189_v37  ;;  %v10459_v37 = vadd.f32 %v10458_v40, %v10457_v5  ;;  %v15046_v40 = vld [vmem:[#allocation35_spill] sm:$0xff]  ;;  %v1685_v21 = vadd.f32 %v13265_v60, %v1596_v45  ;;  %v1680_v60 = vadd.f32 %v13256_v46, %v1591_v61  ;;  %v11312_v61 = vld [vmem:[%s15048_s4 + $0xf4] ss:$8 sps:$4 sm:$0xff]  }
 0x2e4   :  { %v1692_v25 = vpop.f32.mrf.mxu0  ;;  %v10441_v31 = vadd.f32 %v15047_v29, %v15046_v40  ;;  %v13354_v46 = vld [vmem:[#allocation6 + $0x38] sm:$0xff]   ;;  %v11306_v40 = vld [vmem:[%s15048_s4 + $0x14] ss:$8 sps:$4 sm:$0xff]   ;;  %v11304_v29 = vld [vmem:[%s15048_s4 + $0x10] ss:$8 sps:$4 sm:$0xff]  }
 0x2e5   :  { %9683 = vmatmul.mubr.msk.bf16.gmra.mxu1 %vm1809_vm2, %v13275_v57  ;;  %9695 = vmatmul.mubr.msk.bf16.gmra.mxu0 %vm1809_vm2, %v13277_v41  ;;  %v1607_v23 = vadd.f32 %v10459_v37, %v13120_v55  ;;  %v1693_v18 = vadd.f32 %v1692_v25, %v1604_v38  ;;  %v15051_v37 = vld [vmem:[#allocation30_spill] sm:$0xff]  ;;  %v1730_v38 = vmax.f32 %v1680_v60, 0.0  ;;  %v11336_v60 = vld [vmem:[%s15048_s4 + $0xa4] ss:$8 sps:$4 sm:$0xff]  }
 0x2e6   :  { %v10938_v30 = vpop.f32.mrf.mxu0  ;;  %2159 = vmatpush1.bf16.msra.mxu0 %v13205_v63  ;;  %1874 = vmatprep.mubr.bf16.mxu1 %v15041_v27  ;;  %v10465_v63 = vadd.f32 %v10464_v4, %v10463_v11  ;;  %v1583_v52 = vadd.f32 %v10441_v31, %v13120_v55  ;;  %v13439_v31 = vld [vmem:[#allocation6 + $0x50] ss:$0 sps:$4 sm:$0xff]  }
 0x2e7   :  { %2160 = vmatprep.subr.bf16.mxu0 %v13214_v14  ;;  %2039 = vmatprep.mubr.bf16.mxu0 %v15041_v27  ;;  %v10453_v14 = vadd.f32 %v13207_v3, %v13180_v0  ;;  %v1739_v11 = vmax.f32 %v1693_v18, 0.0 }
 0x2e8   :  { %v1695_v51 = vpop.f32.mrf.mxu0  ;;  %v1615_v20 = vadd.f32 %v10465_v63, %v13120_v55  ;;  %v15053_v63 = vld [vmem:[#allocation28_spill] sm:$0xff]  ;;  %v1672_v54 = vadd.f32 %v13239_v42, %v1583_v52  ;;  %v11289_v42 = vld [vmem:[%s15048_s4 + $0x60] ss:$8 sps:$4 sm:$0xff]   ;;  %v11333_v52 = vld [vmem:[%s15048_s4 + $0x154] ss:$8 sps:$4 sm:$0xff]  }
 0x2e9   :  { %v1696_v0 = vadd.f32 %v1695_v51, %v1607_v23  ;;  %v1599_v6 = vadd.f32 %v10453_v14, %v13120_v55  ;;  %v11286_v23 = vld [vmem:[%s15048_s4 + $0x70] ss:$8 sps:$4 sm:$0xff]  }
 0x2ea   :  { %v10939_v59 = vpop.f32.mrf.mxu0  ;;  %2161 = vmatpush1.bf16.msra.mxu0 %v13224_v13  ;;  %v1724_v39 = vmax.f32 %v1672_v54, 0.0  ;;  %v11352_v54 = vld [vmem:[%s15048_s4 + $0x110] ss:$8 sps:$4 sm:$0xff]  }
 0x2eb   :  { %2162 = vmatprep.subr.bf16.mxu0 %v13231_v12  ;;  %v1688_v33 = vadd.f32 %v1687_v8, %v1599_v6  ;;  %v1742_v2 = vmax.f32 %v1696_v0, 0.0  ;;  %v1733_v59 = vmax.f32 %v1685_v21, 0.0  ;;  %v11315_v21 = vld [vmem:[%s15048_s4 + $0xe4] ss:$8 sps:$4 sm:$0xff]  }
 0x2ec   :  { %v1700_v43 = vpop.f32.mrf.mxu0 }
 0x2ed   :  { %9684 = vmatmul.mubr.msk.bf16.gmra.mxu1 %vm1809_vm2, %v13289_v49  ;;  %9696 = vmatmul.mubr.msk.bf16.gmra.mxu0 %vm1809_vm2, %v13291_v22  ;;  %v1701_v3 = vadd.f32 %v1700_v43, %v1612_v48  ;;  %v1736_v4 = vmax.f32 %v1688_v33, 0.0  ;;  %v13344_v51 = vpack.c.bf16 %v1742_v2, %v1739_v11  ;;  %v15054_v43 = vld [vmem:[#allocation29_spill] sm:$0xff]  ;;  %v11313_v11 = vld [vmem:[%s15048_s4 + $0xe0] ss:$8 sps:$4 sm:$0xff]  }
 0x2ee   :  { %v10942_v17 = vpop.f32.mrf.mxu0  ;;  %2163 = vmatpush1.bf16.msra.mxu0 %v13237_v44  ;;  %1884 = vmatprep.mubr.bf16.mxu1 %v15041_v27  ;;  %v15045_v44 = vld [vmem:[#allocation38_spill] sm:$0xff]  ;;  %v10432_v14 = vadd.f32 %v15054_v43, %v15053_v63  ;;  %v11298_v2 = vld [vmem:[%s15048_s4 + $0x30] ss:$8 sps:$4 sm:$0xff]  }
 0x2ef   :  { %2164 = vmatprep.subr.bf16.mxu0 %v13241_v7  ;;  %2049 = vmatprep.mubr.bf16.mxu0 %v15041_v27  ;;  %v10444_v35 = vadd.f32 %v15045_v44, %v15044_v9  ;;  %v1745_v5 = vmax.f32 %v1701_v3, 0.0  ;;  %v13363_v17 = vpack.c.bf16 %v1736_v4, %v1733_v59  ;;  %v13393_v9 = vld [vmem:[#allocation6 + $0x40] sm:$0xff]   ;;  %v11297_v44 = vld [vmem:[%s15048_s4 + $0x44] ss:$8 sps:$4 sm:$0xff]   ;;  %v13413_v33 = vld [vmem:[#allocation6 + $0x48] sm:$0xff]  }
 0x2f0   :  { %v1703_v13 = vpop.f32.mrf.mxu0  ;;  %v11334_v4 = vld [vmem:[%s15048_s4 + $0xa0] ss:$8 sps:$4 sm:$0xff]   ;;  %v11339_v59 = vld [vmem:[%s15048_s4 + $0x144] ss:$8 sps:$4 sm:$0xff]   ;;  %v11345_v63 = vld [vmem:[%s15048_s4 + $0x134] ss:$8 sps:$4 sm:$0xff]  }
 0x2f1   :  { %v1704_v12 = vadd.f32 %v1703_v13, %v1615_v20  ;;  %v1588_v30 = vadd.f32 %v10444_v35, %v13120_v55  ;;  %v1572_v13 = vadd.f32 %v10432_v14, %v13120_v55  ;;  %v11295_v35 = vld [vmem:[%s15048_s4 + $0x40] ss:$8 sps:$4 sm:$0xff]   ;;  %v11343_v43 = vld [vmem:[%s15048_s4 + $0x130] ss:$8 sps:$4 sm:$0xff]   ;;  %v11351_v14 = vld [vmem:[%s15048_s4 + $0x124] ss:$8 sps:$4 sm:$0xff]  }
 0x2f2   :  { %v10943_v7 = vpop.f32.mrf.mxu0  ;;  %2165 = vmatpush1.bf16.msra.mxu0 %v15039_v28  ;;  %v15050_v28 = vld [vmem:[#allocation34_spill] sm:$0xff] }
 0x2f3   :  { %v1748_v62 = vmax.f32 %v1704_v12, 0.0  ;;  %2166 = vmatprep.subr.bf16.mxu0 %v13250_v24  ;;  %v15049_v24 = vld [vmem:[#allocation33_spill] sm:$0xff]  ;;  %v1661_v6 = vadd.f32 %v13184_v34, %v1572_v13 }
 0x2f4   :  { %v10438_v8 = vadd.f32 %v15050_v28, %v15049_v24  ;;  %v11300_v7 = vld [vmem:[%s15048_s4 + $0x34] ss:$8 sps:$4 sm:$0xff]   ;;  %v11324_v24 = vld [vmem:[%s15048_s4 + $0xc4] ss:$8 sps:$4 sm:$0xff]   ;;  %v11322_v28 = vld [vmem:[%s15048_s4 + $0xc0] ss:$8 sps:$4 sm:$0xff]  }
 0x2f5   :  { %v13331_v25 = vpack.c.bf16 %v1748_v62, %v1745_v5  ;;  %9685 = vmatmul.mubr.msk.bf16.gmra.mxu1 %vm1809_vm2, %v13315_v16  ;;  %9697 = vmatmul.mubr.msk.bf16.gmra.mxu0 %vm1809_vm2, %v13317_v50  ;;  %v1715_v34 = vmax.f32 %v1661_v6, 0.0  ;;  %v11303_v5 = vld [vmem:[%s15048_s4 + $0x24] ss:$8 sps:$4 sm:$0xff]   ;;  %v11301_v62 = vld [vmem:[%s15048_s4 + $0x20] ss:$8 sps:$4 sm:$0xff]  }
 0x2f6   :  { %2167 = vmatpush1.bf16.msra.mxu0 %v15040_v1  ;;  %10958 = vmatprep.mubr.msk.bf16.mxu1 %vm1809_vm2, %v13260_v26  ;;  %v10435_v1 = vadd.f32 %v15052_v56, %v15051_v37  ;;  %v1677_v26 = vadd.f32 %v13248_v15, %v1588_v30  ;;  %v1580_v48 = vadd.f32 %v10438_v8, %v13120_v55  ;;  %v11291_v15 = vld [vmem:[%s15048_s4 + $0x64] ss:$8 sps:$4 sm:$0xff]   ;;  %v11330_v8 = vld [vmem:[%s15048_s4 + $0xb4] ss:$8 sps:$4 sm:$0xff]   ;;  %v11328_v30 = vld [vmem:[%s15048_s4 + $0xb0] ss:$8 sps:$4 sm:$0xff]  }
 0x2f7   :  { %10944 = vmatprep.subr.bf16.mxu1 %v13331_v25  ;;  %2184 = vmatprep.mubr.bf16.mxu0 %v15041_v27  ;;  %v11342_v37 = vld [vmem:[%s15048_s4 + $0x94] ss:$8 sps:$4 sm:$0xff]   ;;  %v11340_v56 = vld [vmem:[%s15048_s4 + $0x90] ss:$8 sps:$4 sm:$0xff]   ;;  %v11393_v6 = vld [vmem:[%s15048_s4 + $0x1a4] ss:$8 sps:$4 sm:$0xff]  }
 0x2f8   :  { %10945 = vmatpush3.bf16.msra.mxu1 %v13331_v25  ;;  %3199 = vmatprep.subr.bf16.mxu0 %v11288_v53  ;;  %v1575_v0 = vadd.f32 %v10435_v1, %v13120_v55  ;;  %v1669_v3 = vadd.f32 %v13228_v10, %v1580_v48  ;;  %v1727_v20 = vmax.f32 %v1677_v26, 0.0  ;;  %v11294_v10 = vld [vmem:[%s15048_s4 + $0x54] ss:$8 sps:$4 sm:$0xff]   ;;  %v11292_v55 = vld [vmem:[%s15048_s4 + $0x50] ss:$8 sps:$4 sm:$0xff]  }
 0x2f9   :  { %10946 = vmatprep.subr.bf16.mxu1 %v13344_v51  ;;  %v11309_v53 = vld [vmem:[%s15048_s4 + $0x4] ss:$8 sps:$4 sm:$0xff]   ;;  %v11331_v26 = vld [vmem:[%s15048_s4 + $0x150] ss:$8 sps:$4 sm:$0xff]   ;;  %v11354_v48 = vld [vmem:[%s15048_s4 + $0x114] ss:$8 sps:$4 sm:$0xff]  }
 0x2fa   :  { %v1664_v36 = vadd.f32 %v13209_v58, %v1575_v0  ;;  %v13380_v32 = vpack.c.bf16 %v1730_v38, %v1727_v20  ;;  %v1721_v18 = vmax.f32 %v1669_v3, 0.0  ;;  %v11327_v1 = vld [vmem:[%s15048_s4 + $0x164] ss:$8 sps:$4 sm:$0xff]   ;;  %v11361_v0 = vld [vmem:[%s15048_s4 + $0x1f0] ss:$8 sps:$4 sm:$0xff]  }
 0x2fb   :  { %v11357_v38 = vld [vmem:[%s15048_s4 + $0x104] ss:$8 sps:$4 sm:$0xff]   ;;  %v11367_v20 = vld [vmem:[%s15048_s4 + $0x1e0] ss:$8 sps:$4 sm:$0xff]   ;;  %v11373_v13 = vld [vmem:[%s15048_s4 + $0x1d0] ss:$8 sps:$4 sm:$0xff]  }
 0x2fc   :  { %10947 = vmatpush3.bf16.msra.mxu1 %v13344_v51  ;;  %v1718_v58 = vmax.f32 %v1664_v36, 0.0  ;;  %v13391_v12 = vpack.c.bf16 %v1724_v39, %v1721_v18  ;;  %v11369_v3 = vld [vmem:[%s15048_s4 + $0x1e4] ss:$8 sps:$4 sm:$0xff]   ;;  %v11379_v39 = vld [vmem:[%s15048_s4 + $0x1c0] ss:$8 sps:$4 sm:$0xff]  }
 0x2fd   :  { %10948 = vmatprep.subr.bf16.mxu1 %v13363_v17  ;;  %9706 = vmatmul.mubr.msk.bf16.vlgmr.msra.gmra.mxu0 %vm1809_vm2, %v13354_v46  ;;  %v11381_v36 = vld [vmem:[%s15048_s4 + $0x1c4] ss:$8 sps:$4 sm:$0xff]   ;;  %v11391_v18 = vld [vmem:[%s15048_s4 + $0x1a0] ss:$8 sps:$4 sm:$0xff]  }
 0x2fe   :  { %2194 = vmatprep.mubr.bf16.mxu0 %v15041_v27  ;;  %3200 = vmatpush1.bf16.msra.mxu0 %v11286_v23  ;;  %v13406_v45 = vpack.c.bf16 %v1718_v58, %v1715_v34  ;;  %v11349_v23 = vld [vmem:[%s15048_s4 + $0x120] ss:$8 sps:$4 sm:$0xff]   ;;  %v11397_v58 = vld [vmem:[%s15048_s4 + $0x190] ss:$8 sps:$4 sm:$0xff]  }
 0x2ff   :  { %3201 = vmatprep.subr.bf16.mxu0 %v11291_v15  ;;  %v11363_v15 = vld [vmem:[%s15048_s4 + $0x1f4] ss:$8 sps:$4 sm:$0xff]  }
 0x300   :  { %10949 = vmatpush3.bf16.msra.mxu1 %v13363_v17 }
 0x301   :  { %10950 = vmatprep.subr.bf16.mxu1 %v13380_v32 }
 0x302   :  { %3202 = vmatpush1.bf16.msra.mxu0 %v11289_v42  ;;  %v11375_v42 = vld [vmem:[%s15048_s4 + $0x1d4] ss:$8 sps:$4 sm:$0xff]  }
 0x303   :  { %3203 = vmatprep.subr.bf16.mxu0 %v11294_v10  ;;  %v11385_v10 = vld [vmem:[%s15048_s4 + $0x1b0] ss:$8 sps:$4 sm:$0xff]  }
 0x304   :  { %10951 = vmatpush3.bf16.msra.mxu1 %v13380_v32 }
 0x305   :  { %10952 = vmatprep.subr.bf16.mxu1 %v13391_v12  ;;  %9707 = vmatmul.mubr.msk.bf16.gmra.mxu0 %vm1809_vm2, %v13393_v9 }
 0x306   :  { %2204 = vmatprep.mubr.bf16.mxu0 %v15041_v27  ;;  %3204 = vmatpush1.bf16.msra.mxu0 %v11292_v55  ;;  %v11399_v55 = vld [vmem:[%s15048_s4 + $0x194] ss:$8 sps:$4 sm:$0xff]  }
 0x307   :  { %3205 = vmatprep.subr.bf16.mxu0 %v11297_v44  ;;  %v11411_v44 = vld [vmem:[%s15048_s4 + $0x374] ss:$8 sps:$4 sm:$0xff]  }
 0x308   :  { %10953 = vmatpush3.bf16.msra.mxu1 %v13391_v12 }
 0x309   :  { %10954 = vmatprep.subr.bf16.mxu1 %v13406_v45 }
 0x30a   :  { %3206 = vmatpush1.bf16.msra.mxu0 %v11295_v35 }
 0x30b   :  { %3207 = vmatprep.subr.bf16.mxu0 %v11300_v7 }
 0x30c   :  { %10955 = vmatpush3.bf16.msra.mxu1 %v13406_v45 }
 0x30d   :  { %10956 = vmatprep.subr.bf16.mxu1 %v13187_v19  ;;  %9708 = vmatmul.mubr.msk.bf16.gmra.mxu0 %vm1809_vm2, %v13413_v33 }
 0x30e   :  { %2214 = vmatprep.mubr.bf16.mxu0 %v15041_v27  ;;  %3208 = vmatpush1.bf16.msra.mxu0 %v11298_v2 }
 0x30f   :  { %3209 = vmatprep.subr.bf16.mxu0 %v11303_v5 }
 0x310   :  { %10957 = vmatpush3.bf16.msra.mxu1 %v13187_v19 }
 0x311   :  { %10966 = vmatprep.subr.bf16.mxu1 %v13331_v25 }
 0x312   :  { %3210 = vmatpush1.bf16.msra.mxu0 %v11301_v62 }
 0x313   :  { %10959 = vmatmul.mubr.msk.bf16.vlgmr.msra.gmra.mxu1 %vm1809_vm2, %v13275_v57  ;;  %3211 = vmatprep.subr.bf16.mxu0 %v11306_v40  ;;  %v11307_v57 = vld [vmem:[%s15048_s4] ss:$8 sps:$4 sm:$0xff]  }
 0x314   :  { %10967 = vmatpush3.bf16.msra.mxu1 %v13331_v25  ;;  %10962 = vmatprep.mubr.msk.bf16.mxu1 %vm1809_vm2, %v13289_v49  ;;  %v11310_v49 = vld [vmem:[%s15048_s4 + $0xf0] ss:$8 sps:$4 sm:$0xff]  }
 0x315   :  { %10968 = vmatprep.subr.bf16.mxu1 %v13344_v51  ;;  %9709 = vmatmul.mubr.msk.bf16.gmra.mxu0 %vm1809_vm2, %v13439_v31 }
 0x316   :  { %3212 = vmatpush1.bf16.msra.mxu0 %v11304_v29 }
 0x317   :  { %3213 = vmatprep.subr.bf16.mxu0 %v11309_v53  ;;  %v11358_v53 = vld [vmem:[%s15048_s4 + $0x270] ss:$8 sps:$4 sm:$0xff]  }
 0x318   :  { %10969 = vmatpush3.bf16.msra.mxu1 %v13344_v51 }
 0x319   :  { %10970 = vmatprep.subr.bf16.mxu1 %v13363_v17 }
 0x31a   :  { %3214 = vmatpush1.bf16.msra.mxu0 %v11307_v57 }
 0x31b   :  { %10963 = vmatmul.mubr.msk.bf16.gmra.mxu1 %vm1809_vm2, %v13315_v16  ;;  %3215 = vmatprep.subr.bf16.mxu0 %v11312_v61  ;;  %v11318_v16 = vld [vmem:[%s15048_s4 + $0xd4] ss:$8 sps:$4 sm:$0xff]   ;;  %v11366_v61 = vld [vmem:[%s15048_s4 + $0x264] ss:$8 sps:$4 sm:$0xff]  }
 0x31c   :  { %10971 = vmatpush3.bf16.msra.mxu1 %v13363_v17  ;;  %10980 = vmatprep.mubr.msk.bf16.mxu1 %vm1809_vm2, %v13258_v47  ;;  %v11316_v47 = vld [vmem:[%s15048_s4 + $0xd0] ss:$8 sps:$4 sm:$0xff]  }
 0x31d   :  { %10972 = vmatprep.subr.bf16.mxu1 %v13380_v32 }
 0x31e   :  { %3216 = vmatpush2.bf16.msra.mxu0 %v11310_v49 }
 0x31f   :  { %3217 = vmatprep.subr.bf16.mxu0 %v11315_v21 }
 0x320   :  { %10973 = vmatpush3.bf16.msra.mxu1 %v13380_v32 }
 0x321   :  { %10974 = vmatprep.subr.bf16.mxu1 %v13391_v12 }
 0x322   :  { %3218 = vmatpush2.bf16.msra.mxu0 %v11313_v11 }
 0x323   :  { %3219 = vmatprep.subr.bf16.mxu0 %v11318_v16  ;;  %v11364_v16 = vld [vmem:[%s15048_s4 + $0x260] ss:$8 sps:$4 sm:$0xff]  }
 0x324   :  { %10975 = vmatpush3.bf16.msra.mxu1 %v13391_v12 }
 0x325   :  { %10976 = vmatprep.subr.bf16.mxu1 %v13406_v45 }
 0x326   :  { %3220 = vmatpush2.bf16.msra.mxu0 %v11316_v47 }
 0x327   :  { %3221 = vmatprep.subr.bf16.mxu0 %v11324_v24  ;;  %v11372_v24 = vld [vmem:[%s15048_s4 + $0x254] ss:$8 sps:$4 sm:$0xff]  }
 0x328   :  { %10977 = vmatpush3.bf16.msra.mxu1 %v13406_v45 }
 0x329   :  { %10978 = vmatprep.subr.bf16.mxu1 %v13187_v19 }
 0x32a   :  { %3222 = vmatpush2.bf16.msra.mxu0 %v11322_v28 }
 0x32b   :  { %3223 = vmatprep.subr.bf16.mxu0 %v11330_v8 }
 0x32c   :  { %10979 = vmatpush3.bf16.msra.mxu1 %v13187_v19 }
 0x32d   :  { %10988 = vmatprep.subr.bf16.mxu1 %v13331_v25 }
 0x32e   :  { %3224 = vmatpush2.bf16.msra.mxu0 %v11328_v30 }
 0x32f   :  { %10981 = vmatmul.mubr.msk.bf16.vlgmr.msra.gmra.mxu1 %vm1809_vm2, %v13277_v41  ;;  %3225 = vmatprep.subr.bf16.mxu0 %v11336_v60  ;;  %v11348_v41 = vld [vmem:[%s15048_s4 + $0x84] ss:$8 sps:$4 sm:$0xff]  }
 0x330   :  { %10989 = vmatpush3.bf16.msra.mxu1 %v13331_v25  ;;  %10984 = vmatprep.mubr.msk.bf16.mxu1 %vm1809_vm2, %v13291_v22  ;;  %v11346_v22 = vld [vmem:[%s15048_s4 + $0x80] ss:$8 sps:$4 sm:$0xff]   ;;  %v11360_v25 = vld [vmem:[%s15048_s4 + $0x274] ss:$8 sps:$4 sm:$0xff]  }
 0x331   :  { %10990 = vmatprep.subr.bf16.mxu1 %v13344_v51 }
 0x332   :  { %3226 = vmatpush2.bf16.msra.mxu0 %v11334_v4 }
 0x333   :  { %3227 = vmatprep.subr.bf16.mxu0 %v11342_v37  ;;  %v11370_v37 = vld [vmem:[%s15048_s4 + $0x250] ss:$8 sps:$4 sm:$0xff]  }
 0x334   :  { %10991 = vmatpush3.bf16.msra.mxu1 %v13344_v51  ;;  %v11319_v51 = vld [vmem:[%s15048_s4 + $0x170] ss:$8 sps:$4 sm:$0xff]  }
 0x335   :  { %10992 = vmatprep.subr.bf16.mxu1 %v13363_v17 }
 0x336   :  { %3228 = vmatpush2.bf16.msra.mxu0 %v11340_v56 }
 0x337   :  { %10985 = vmatmul.mubr.msk.bf16.gmra.mxu1 %vm1809_vm2, %v13317_v50  ;;  %3229 = vmatprep.subr.bf16.mxu0 %v11348_v41  ;;  %v11321_v50 = vld [vmem:[%s15048_s4 + $0x174] ss:$8 sps:$4 sm:$0xff]   ;;  %v11378_v41 = vld [vmem:[%s15048_s4 + $0x244] ss:$8 sps:$4 sm:$0xff]  }
 0x338   :  { %10993 = vmatpush3.bf16.msra.mxu1 %v13363_v17  ;;  %11002 = vmatprep.mubr.msk.bf16.mxu1 %vm1809_vm2, %v13354_v46  ;;  %v11337_v46 = vld [vmem:[%s15048_s4 + $0x140] ss:$8 sps:$4 sm:$0xff]  }
 0x339   :  { %10994 = vmatprep.subr.bf16.mxu1 %v13380_v32  ;;  %v11355_v17 = vld [vmem:[%s15048_s4 + $0x100] ss:$8 sps:$4 sm:$0xff]  }
 0x33a   :  { %3230 = vmatpush2.bf16.msra.mxu0 %v11346_v22 }
 0x33b   :  { %3341 = vmatprep.subr.bf16.mxu0 %v11360_v25 }
 0x33c   :  { %10995 = vmatpush3.bf16.msra.mxu1 %v13380_v32  ;;  %v11387_v32 = vld [vmem:[%s15048_s4 + $0x1b4] ss:$8 sps:$4 sm:$0xff]  }
 0x33d   :  { %10996 = vmatprep.subr.bf16.mxu1 %v13391_v12 }
 0x340   :  { %10997 = vmatpush3.bf16.msra.mxu1 %v13391_v12  ;;  %v11405_v12 = vld [vmem:[%s15048_s4 + $0x184] ss:$8 sps:$4 sm:$0xff]  }
 0x341   :  { %10998 = vmatprep.subr.bf16.mxu1 %v13406_v45 }
 0x344   :  { %10999 = vmatpush3.bf16.msra.mxu1 %v13406_v45 }
 0x345   :  { %11000 = vmatprep.subr.bf16.mxu1 %v13187_v19 }
 0x348   :  { %11001 = vmatpush3.bf16.msra.mxu1 %v13187_v19  ;;  %v11325_v19 = vld [vmem:[%s15048_s4 + $0x160] ss:$8 sps:$4 sm:$0xff]  }
 0x349   :  { %3270 = vmatprep.subr.bf16.mxu1 %v11321_v50 }
 0x34b   :  { %11003 = vmatmul.mubr.msk.bf16.vlgmr.msra.gmra.mxu1 %vm1809_vm2, %v13393_v9  ;;  %v11403_v9 = vld [vmem:[%s15048_s4 + $0x180] ss:$8 sps:$4 sm:$0xff]  }
 0x34c   :  { %11006 = vmatprep.mubr.msk.bf16.mxu1 %vm1809_vm2, %v13413_v33  ;;  %3271 = vmatpush1.bf16.msra.mxu1 %v11319_v51  ;;  %v11376_v51 = vld [vmem:[%s15048_s4 + $0x240] ss:$8 sps:$4 sm:$0xff]  }
 0x34d   :  { %3272 = vmatprep.subr.bf16.mxu1 %v11327_v1 }
 0x350   :  { %3273 = vmatpush1.bf16.msra.mxu1 %v11325_v19  ;;  %v11384_v19 = vld [vmem:[%s15048_s4 + $0x234] ss:$8 sps:$4 sm:$0xff]  }
 0x351   :  { %3274 = vmatprep.subr.bf16.mxu1 %v11333_v52 }
 0x353   :  { %11007 = vmatmul.mubr.msk.bf16.gmra.mxu1 %vm1809_vm2, %v13439_v31 }
 0x354   :  { %3275 = vmatpush1.bf16.msra.mxu1 %v11331_v26 }
 0x355   :  { %3276 = vmatprep.subr.bf16.mxu1 %v11339_v59 }
 0x358   :  { %3277 = vmatpush1.bf16.msra.mxu1 %v11337_v46 }
 0x359   :  { %3278 = vmatprep.subr.bf16.mxu1 %v11345_v63 }
 0x35c   :  { %3279 = vmatpush1.bf16.msra.mxu1 %v11343_v43  ;;  %v11382_v43 = vld [vmem:[%s15048_s4 + $0x230] ss:$8 sps:$4 sm:$0xff]  }
 0x35d   :  { %3280 = vmatprep.subr.bf16.mxu1 %v11351_v14 }
 0x360   :  { %3281 = vmatpush1.bf16.msra.mxu1 %v11349_v23  ;;  %v11390_v23 = vld [vmem:[%s15048_s4 + $0x224] ss:$8 sps:$4 sm:$0xff]  }
 0x361   :  { %3282 = vmatprep.subr.bf16.mxu1 %v11354_v48 }
 0x364   :  { %3283 = vmatpush1.bf16.msra.mxu1 %v11352_v54 }
 0x365   :  { %3284 = vmatprep.subr.bf16.mxu1 %v11357_v38 }
 0x368   :  { %3285 = vmatpush1.bf16.msra.mxu1 %v11355_v17 }
 0x369   :  { %3286 = vmatprep.subr.bf16.mxu1 %v11363_v15  ;;  %v11388_v15 = vld [vmem:[%s15048_s4 + $0x220] ss:$8 sps:$4 sm:$0xff]  }
 0x36c   :  { %3287 = vmatpush2.bf16.msra.mxu1 %v11361_v0 }
 0x36d   :  { %3288 = vmatprep.subr.bf16.mxu1 %v11369_v3  ;;  %v11396_v3 = vld [vmem:[%s15048_s4 + $0x214] ss:$8 sps:$4 sm:$0xff]  }
 0x370   :  { %3289 = vmatpush2.bf16.msra.mxu1 %v11367_v20 }
 0x371   :  { %3290 = vmatprep.subr.bf16.mxu1 %v11375_v42 }
 0x374   :  { %3291 = vmatpush2.bf16.msra.mxu1 %v11373_v13 }
 0x375   :  { %3292 = vmatprep.subr.bf16.mxu1 %v11381_v36 }
 0x378   :  { %3293 = vmatpush2.bf16.msra.mxu1 %v11379_v39  ;;  %v11394_v39 = vld [vmem:[%s15048_s4 + $0x210] ss:$8 sps:$4 sm:$0xff]  }
 0x379   :  { %3294 = vmatprep.subr.bf16.mxu1 %v11387_v32  ;;  %v11402_v32 = vld [vmem:[%s15048_s4 + $0x204] ss:$8 sps:$4 sm:$0xff]  }
 0x37c   :  { %3295 = vmatpush2.bf16.msra.mxu1 %v11385_v10 }
 0x37d   :  { %3296 = vmatprep.subr.bf16.mxu1 %v11393_v6 }
 0x380   :  { %3297 = vmatpush2.bf16.msra.mxu1 %v11391_v18  ;;  %v11400_v18 = vld [vmem:[%s15048_s4 + $0x200] ss:$8 sps:$4 sm:$0xff]  }
 0x381   :  { %3298 = vmatprep.subr.bf16.mxu1 %v11399_v55  ;;  %v11408_v55 = vld [vmem:[%s15048_s4 + $0x2f4] ss:$8 sps:$4 sm:$0xff]  }
 0x384   :  { %3299 = vmatpush2.bf16.msra.mxu1 %v11397_v58 }
 0x385   :  { %3300 = vmatprep.subr.bf16.mxu1 %v11405_v12 }
 0x388   :  { %3301 = vmatpush2.bf16.msra.mxu1 %v11403_v9 }
 0x389   :  { %3412 = vmatprep.subr.bf16.mxu1 %v11411_v44  ;;  %v11406_v44 = vld [vmem:[%s15048_s4 + $0x2f0] ss:$8 sps:$4 sm:$0xff]  }
 0x39d   :  { %v1856_v34 = vpop.f32.mrf.mxu1  ;;  %v2021_v35 = vpop.f32.mrf.mxu0 }
 0x39f   :  { %v1858_v45 = vpop.f32.mrf.mxu1  ;;  %v13646_v7 = vpop.f32.mrf.mxu0 }
 0x3a1   :  { %v1860_v33 = vpop.f32.mrf.mxu1  ;;  %v2025_v2 = vpop.f32.mrf.mxu0 }
 0x3a2   :  { %v2290_v5 = vpack.c.bf16 %v2025_v2, %v2021_v35  ;;  %v2287_v62 = vpack.c.bf16 %v1860_v33, %v1856_v34  ;;  %v11414_v34 = vld [vmem:[%s15048_s4 + $0x2e4] ss:$8 sps:$4 sm:$0xff]   ;;  %v11412_v33 = vld [vmem:[%s15048_s4 + $0x2e0] ss:$8 sps:$4 sm:$0xff]   ;;  %v11420_v2 = vld [vmem:[%s15048_s4 + $0x2d4] ss:$8 sps:$4 sm:$0xff]  }
 0x3a3   :  { %v1862_v40 = vpop.f32.mrf.mxu1  ;;  %v13648_v29 = vpop.f32.mrf.mxu0 }
 0x3a4   :  { %v2288_v31 = vpack.c.bf16 %v1862_v40, %v1858_v45  ;;  %3302 = vmatprep.mubr.bf16.mxu1 %v2290_v5 }
 0x3a5   :  { %v1866_v57 = vpop.f32.mrf.mxu1  ;;  %v13656_v49 = vpop.f32.mrf.mxu0 }
 0x3a6   :  { %3231 = vmatprep.mubr.bf16.mxu0 %v2288_v31  ;;  %v11418_v31 = vld [vmem:[%s15048_s4 + $0x2d0] ss:$8 sps:$4 sm:$0xff]  }
 0x3a7   :  { %v1868_v21 = vpop.f32.mrf.mxu1  ;;  %3232 = vmatmul.mubr.bf16.vlgmr.msra.gmra.mxu0 %v2287_v62  ;;  %v13658_v11 = vpop.f32.mrf.mxu0 }
 0x3a8   :  { %3342 = vmatpush1.bf16.msra.mxu0 %v11358_v53  ;;  %v11426_v53 = vld [vmem:[%s15048_s4 + $0x2c4] ss:$8 sps:$4 sm:$0xff]  }
 0x3a9   :  { %v1870_v47 = vpop.f32.mrf.mxu1  ;;  %3343 = vmatprep.subr.bf16.mxu0 %v11366_v61  ;;  %v13666_v28 = vpop.f32.mrf.mxu0 }
 0x3aa   :  { %v2296_v8 = vpack.c.bf16 %v1870_v47, %v1866_v57 }
 0x3ab   :  { %v1872_v30 = vpop.f32.mrf.mxu1  ;;  %v13668_v60 = vpop.f32.mrf.mxu0 }
 0x3ac   :  { %v2297_v4 = vpack.c.bf16 %v1872_v30, %v1868_v21  ;;  %3344 = vmatpush1.bf16.msra.mxu0 %v11364_v16  ;;  %v11424_v21 = vld [vmem:[%s15048_s4 + $0x2c0] ss:$8 sps:$4 sm:$0xff]   ;;  %v11432_v16 = vld [vmem:[%s15048_s4 + $0x2b4] ss:$8 sps:$4 sm:$0xff]  }
 0x3ad   :  { %v1876_v56 = vpop.f32.mrf.mxu1  ;;  %3345 = vmatprep.subr.bf16.mxu0 %v11372_v24  ;;  %v13676_v22 = vpop.f32.mrf.mxu0 }
 0x3ae   :  { %3241 = vmatprep.mubr.bf16.mxu0 %v2297_v4  ;;  %v11430_v4 = vld [vmem:[%s15048_s4 + $0x2b0] ss:$8 sps:$4 sm:$0xff]  }
 0x3af   :  { %v1878_v25 = vpop.f32.mrf.mxu1  ;;  %3242 = vmatmul.mubr.bf16.gmra.mxu0 %v2296_v8  ;;  %v13678_v50 = vpop.f32.mrf.mxu0 }
 0x3b0   :  { %3346 = vmatpush1.bf16.msra.mxu0 %v11370_v37 }
 0x3b1   :  { %v1880_v1 = vpop.f32.mrf.mxu1  ;;  %3347 = vmatprep.subr.bf16.mxu0 %v11378_v41  ;;  %v13686_v52 = vpop.f32.mrf.mxu0 }
 0x3b2   :  { %v2305_v26 = vpack.c.bf16 %v1880_v1, %v1876_v56  ;;  %v11438_v56 = vld [vmem:[%s15048_s4 + $0x2a4] ss:$8 sps:$4 sm:$0xff]   ;;  %v11436_v1 = vld [vmem:[%s15048_s4 + $0x2a0] ss:$8 sps:$4 sm:$0xff]  }
 0x3b3   :  { %v1882_v59 = vpop.f32.mrf.mxu1  ;;  %v13688_v46 = vpop.f32.mrf.mxu0 }
 0x3b4   :  { %v2306_v63 = vpack.c.bf16 %v1882_v59, %v1878_v25  ;;  %3348 = vmatpush1.bf16.msra.mxu0 %v11376_v51  ;;  %v2299_v59 = vpack.c.bf16 %v13666_v28, %v13656_v49  ;;  %v11415_v49 = vld [vmem:[%s15048_s4 + $0x360] ss:$8 sps:$4 sm:$0xff]  }
 0x3b5   :  { %v1886_v14 = vpop.f32.mrf.mxu1  ;;  %3349 = vmatprep.subr.bf16.mxu0 %v11384_v19  ;;  %v13696_v48 = vpop.f32.mrf.mxu0 }
 0x3b6   :  { %3251 = vmatprep.mubr.bf16.mxu0 %v2306_v63  ;;  %v2314_v42 = vpack.c.bf16 %v1886_v14, %v1886_v14  ;;  %v11417_v14 = vld [vmem:[%s15048_s4 + $0x364] ss:$8 sps:$4 sm:$0xff]  }
 0x3b7   :  { %3252 = vmatmul.mubr.bf16.gmra.mxu0 %v2305_v26  ;;  %v1888_v54 = vpop.f32.mrf.mxu1  ;;  %v13698_v38 = vpop.f32.mrf.mxu0  ;;  %v11409_v26 = vld [vmem:[%s15048_s4 + $0x370] ss:$8 sps:$4 sm:$0xff]  }
 0x3b8   :  { %v2315_v17 = vpack.c.bf16 %v1888_v54, %v1888_v54  ;;  %3350 = vmatpush1.bf16.msra.mxu0 %v11382_v43 }
 0x3b9   :  { %v1890_v0 = vpop.f32.mrf.mxu1  ;;  %3351 = vmatprep.subr.bf16.mxu0 %v11390_v23  ;;  %v2055_v20 = vpop.f32.mrf.mxu0  ;;  %v11444_v23 = vld [vmem:[%s15048_s4 + $0x294] ss:$8 sps:$4 sm:$0xff]  }
 0x3ba   :  { %3261 = vmatprep.mubr.bf16.mxu0 %v2315_v17  ;;  %v11450_v0 = vld [vmem:[%s15048_s4 + $0x284] ss:$8 sps:$4 sm:$0xff]  }
 0x3bb   :  { %v1891_v13 = vpop.f32.mrf.mxu1  ;;  %v2056_v36 = vpop.f32.mrf.mxu0 }
 0x3bc   :  { %3352 = vmatpush1.bf16.msra.mxu0 %v11388_v15  ;;  %v11442_v15 = vld [vmem:[%s15048_s4 + $0x290] ss:$8 sps:$4 sm:$0xff]   ;;  %v2308_v36 = vpack.c.bf16 %v13686_v52, %v13676_v22  ;;  %v11435_v22 = vld [vmem:[%s15048_s4 + $0x334] ss:$8 sps:$4 sm:$0xff]  }
 0x3bd   :  { %3353 = vmatprep.subr.bf16.mxu0 %v11396_v3  ;;  %v13712_v10 = vpop.f32.mrf.mxu0  ;;  %v11423_v3 = vld [vmem:[%s15048_s4 + $0x354] ss:$8 sps:$4 sm:$0xff]   ;;  %v11421_v13 = vld [vmem:[%s15048_s4 + $0x350] ss:$8 sps:$4 sm:$0xff]  }
 0x3bf   :  { %3262 = vmatmul.mubr.bf16.gmra.mxu0 %v2314_v42  ;;  %v13714_v6 = vpop.f32.mrf.mxu0  ;;  %v11448_v42 = vld [vmem:[%s15048_s4 + $0x280] ss:$8 sps:$4 sm:$0xff]  }
 0x3c0   :  { %3354 = vmatpush1.bf16.msra.mxu0 %v11394_v39 }
 0x3c1   :  { %3355 = vmatprep.subr.bf16.mxu0 %v11402_v32  ;;  %v13722_v58 = vpop.f32.mrf.mxu0  ;;  %v11429_v32 = vld [vmem:[%s15048_s4 + $0x344] ss:$8 sps:$4 sm:$0xff]  }
 0x3c2   :  { %v2293_v12 = vpack.c.bf16 %v13722_v58, %v13712_v10 }
 0x3c3   :  { %v13726_v9 = vpop.f32.mrf.mxu0 }
 0x3c4   :  { %3356 = vmatpush1.bf16.msra.mxu0 %v11400_v18  ;;  %v11456_v18 = vld [vmem:[%s15048_s4 + $0x474] ss:$8 sps:$4 sm:$0xff]  }
 0x3c5   :  { %3357 = vmatprep.subr.bf16.mxu0 %v11408_v55  ;;  %v13734_v35 = vpop.f32.mrf.mxu0  ;;  %v11427_v55 = vld [vmem:[%s15048_s4 + $0x340] ss:$8 sps:$4 sm:$0xff]  }
 0x3c7   :  { %v13736_v45 = vpop.f32.mrf.mxu0 }
 0x3c8   :  { %3358 = vmatpush2.bf16.msra.mxu0 %v11406_v44 }
 0x3c9   :  { %3359 = vmatprep.subr.bf16.mxu0 %v11414_v34  ;;  %v13744_v5 = vpop.f32.mrf.mxu0  ;;  %v11433_v34 = vld [vmem:[%s15048_s4 + $0x330] ss:$8 sps:$4 sm:$0xff]  }
 0x3ca   :  { %v2302_v62 = vpack.c.bf16 %v13744_v5, %v13734_v35 }
 0x3cb   :  { %v13748_v40 = vpop.f32.mrf.mxu0 }
 0x3cc   :  { %3360 = vmatpush2.bf16.msra.mxu0 %v11412_v33  ;;  %v2317_v33 = vpack.c.bf16 %v13696_v48, %v13696_v48 }
 0x3cd   :  { %3361 = vmatprep.subr.bf16.mxu0 %v11420_v2  ;;  %v13756_v57 = vpop.f32.mrf.mxu0  ;;  %v11441_v2 = vld [vmem:[%s15048_s4 + $0x324] ss:$8 sps:$4 sm:$0xff]  }
 0x3cf   :  { %v13758_v61 = vpop.f32.mrf.mxu0 }
 0x3d0   :  { %3362 = vmatpush2.bf16.msra.mxu0 %v11418_v31  ;;  %v11439_v31 = vld [vmem:[%s15048_s4 + $0x320] ss:$8 sps:$4 sm:$0xff]  }
 0x3d1   :  { %3363 = vmatprep.subr.bf16.mxu0 %v11426_v53  ;;  %v13766_v47 = vpop.f32.mrf.mxu0  ;;  %v11447_v53 = vld [vmem:[%s15048_s4 + $0x314] ss:$8 sps:$4 sm:$0xff]  }
 0x3d2   :  { %v2311_v24 = vpack.c.bf16 %v13766_v47, %v13756_v57 }
 0x3d3   :  { %v10960_v8 = vpop.f32.mrf.mxu1  ;;  %v13770_v30 = vpop.f32.mrf.mxu0 }
 0x3d4   :  { %3364 = vmatpush2.bf16.msra.mxu0 %v11424_v21 }
 0x3d5   :  { %v1927_v37 = vpop.f32.mrf.mxu1  ;;  %3365 = vmatprep.subr.bf16.mxu0 %v11432_v16  ;;  %v13778_v41 = vpop.f32.mrf.mxu0  ;;  %v11445_v16 = vld [vmem:[%s15048_s4 + $0x310] ss:$8 sps:$4 sm:$0xff]  }
 0x3d6   :  { %v2320_v58 = vpack.c.bf16 %v13778_v41, %v13778_v41 }
 0x3d7   :  { %v10961_v25 = vpop.f32.mrf.mxu1  ;;  %v13780_v51 = vpop.f32.mrf.mxu0 }
 0x3d8   :  { %3366 = vmatpush2.bf16.msra.mxu0 %v11430_v4  ;;  %v2298_v39 = vpack.c.bf16 %v10961_v25, %v10960_v8  ;;  %v2294_v8 = vpack.c.bf16 %v13726_v9, %v13714_v6  ;;  %v11454_v6 = vld [vmem:[%s15048_s4 + $0x470] ss:$8 sps:$4 sm:$0xff]   ;;  %v2291_v9 = vpack.c.bf16 %v13648_v29, %v13646_v7  ;;  %v11460_v7 = vld [vmem:[%s15048_s4 + $0x460] ss:$8 sps:$4 sm:$0xff]   ;;  %v11465_v29 = vld [vmem:[%s15048_s4 + $0x3e4] ss:$8 sps:$4 sm:$0xff]  }
 0x3d9   :  { %v1930_v19 = vpop.f32.mrf.mxu1  ;;  %3367 = vmatprep.subr.bf16.mxu0 %v11438_v56  ;;  %v2220_v63 = vpop.f32.mrf.mxu0 }
 0x3da   :  { %v2289_v43 = vpack.c.bf16 %v1930_v19, %v1927_v37  ;;  %v11453_v37 = vld [vmem:[%s15048_s4 + $0x304] ss:$8 sps:$4 sm:$0xff]  }
 0x3db   :  { %v10964_v54 = vpop.f32.mrf.mxu1  ;;  %v2221_v17 = vpop.f32.mrf.mxu0  ;;  %v11462_v63 = vld [vmem:[%s15048_s4 + $0x464] ss:$8 sps:$4 sm:$0xff]  }
 0x3dc   :  { %3303 = vmatmul.mubr.bf16.vlgmr.msra.gmra.mxu1 %v2289_v43  ;;  %3368 = vmatpush2.bf16.msra.mxu0 %v11436_v1  ;;  %v2316_v4 = vpack.c.bf16 %v10964_v54, %v10964_v54  ;;  %v11451_v1 = vld [vmem:[%s15048_s4 + $0x300] ss:$8 sps:$4 sm:$0xff]   ;;  %v11468_v17 = vld [vmem:[%s15048_s4 + $0x454] ss:$8 sps:$4 sm:$0xff]  }
 0x3dd   :  { %3413 = vmatpush1.bf16.msra.mxu1 %v11409_v26  ;;  %3312 = vmatprep.mubr.bf16.mxu1 %v2299_v59  ;;  %v1943_v28 = vpop.f32.mrf.mxu1  ;;  %v11459_v26 = vld [vmem:[%s15048_s4 + $0x3f4] ss:$8 sps:$4 sm:$0xff]  }
 0x3de   :  { %3414 = vmatprep.subr.bf16.mxu1 %v11417_v14  ;;  %3369 = vmatprep.subr.bf16.mxu0 %v11444_v23  ;;  %v11457_v14 = vld [vmem:[%s15048_s4 + $0x3f0] ss:$8 sps:$4 sm:$0xff]  }
 0x3df   :  { %v10965_v20 = vpop.f32.mrf.mxu1 }
 0x3e0   :  { %3370 = vmatpush2.bf16.msra.mxu0 %v11442_v15  ;;  %v11463_v15 = vld [vmem:[%s15048_s4 + $0x3e0] ss:$8 sps:$4 sm:$0xff]  }
 0x3e1   :  { %3415 = vmatpush1.bf16.msra.mxu1 %v11415_v49  ;;  %3371 = vmatprep.subr.bf16.mxu0 %v11450_v0  ;;  %v1946_v44 = vpop.f32.mrf.mxu1  ;;  %v11471_v0 = vld [vmem:[%s15048_s4 + $0x3d4] ss:$8 sps:$4 sm:$0xff]  }
 0x3e2   :  { %3416 = vmatprep.subr.bf16.mxu1 %v11423_v3  ;;  %v2307_v52 = vpack.c.bf16 %v1946_v44, %v1943_v28  ;;  %v11466_v28 = vld [vmem:[%s15048_s4 + $0x450] ss:$8 sps:$4 sm:$0xff]   ;;  %v2300_v3 = vpack.c.bf16 %v13668_v60, %v13658_v11  ;;  %v11477_v11 = vld [vmem:[%s15048_s4 + $0x3c4] ss:$8 sps:$4 sm:$0xff]   ;;  %v11480_v60 = vld [vmem:[%s15048_s4 + $0x434] ss:$8 sps:$4 sm:$0xff]  }
 0x3e3   :  { %v11486_v44 = vld [vmem:[%s15048_s4 + $0x424] ss:$8 sps:$4 sm:$0xff]  }
 0x3e4   :  { %3313 = vmatmul.mubr.bf16.gmra.mxu1 %v2298_v39  ;;  %3372 = vmatpush2.bf16.msra.mxu0 %v11448_v42  ;;  %v11474_v42 = vld [vmem:[%s15048_s4 + $0x444] ss:$8 sps:$4 sm:$0xff]   ;;  %v11475_v39 = vld [vmem:[%s15048_s4 + $0x3c0] ss:$8 sps:$4 sm:$0xff]  }
 0x3e5   :  { %3417 = vmatpush1.bf16.msra.mxu1 %v11421_v13  ;;  %3322 = vmatprep.mubr.bf16.mxu1 %v2308_v36  ;;  %v11469_v13 = vld [vmem:[%s15048_s4 + $0x3d0] ss:$8 sps:$4 sm:$0xff]   ;;  %v11472_v36 = vld [vmem:[%s15048_s4 + $0x440] ss:$8 sps:$4 sm:$0xff]  }
 0x3e6   :  { %3418 = vmatprep.subr.bf16.mxu1 %v11429_v32  ;;  %3483 = vmatprep.subr.bf16.mxu0 %v11456_v18  ;;  %v11478_v32 = vld [vmem:[%s15048_s4 + $0x430] ss:$8 sps:$4 sm:$0xff]   ;;  %v2309_v18 = vpack.c.bf16 %v13688_v46, %v13678_v50  ;;  %v11484_v50 = vld [vmem:[%s15048_s4 + $0x420] ss:$8 sps:$4 sm:$0xff]   ;;  %v11489_v46 = vld [vmem:[%s15048_s4 + $0x3a4] ss:$8 sps:$4 sm:$0xff]  }
 0x3e9   :  { %3419 = vmatpush1.bf16.msra.mxu1 %v11427_v55  ;;  %v11483_v55 = vld [vmem:[%s15048_s4 + $0x3b4] ss:$8 sps:$4 sm:$0xff]  }
 0x3ea   :  { %3420 = vmatprep.subr.bf16.mxu1 %v11435_v22 }
 0x3ec   :  { %3323 = vmatmul.mubr.bf16.gmra.mxu1 %v2307_v52  ;;  %v11481_v52 = vld [vmem:[%s15048_s4 + $0x3b0] ss:$8 sps:$4 sm:$0xff]  }
 0x3ed   :  { %3421 = vmatpush1.bf16.msra.mxu1 %v11433_v34  ;;  %3332 = vmatprep.mubr.bf16.mxu1 %v2317_v33  ;;  %v11492_v33 = vld [vmem:[%s15048_s4 + $0x414] ss:$8 sps:$4 sm:$0xff]  }
 0x3ee   :  { %3422 = vmatprep.subr.bf16.mxu1 %v11441_v2  ;;  %v11487_v2 = vld [vmem:[%s15048_s4 + $0x3a0] ss:$8 sps:$4 sm:$0xff]  }
 0x3ef   :  { %v10982_v21 = vpop.f32.mrf.mxu1 }
 0x3f1   :  { %3423 = vmatpush1.bf16.msra.mxu1 %v11439_v31  ;;  %v2092_v48 = vpop.f32.mrf.mxu1 }
 0x3f2   :  { %3424 = vmatprep.subr.bf16.mxu1 %v11447_v53  ;;  %v11490_v53 = vld [vmem:[%s15048_s4 + $0x410] ss:$8 sps:$4 sm:$0xff]  }
 0x3f3   :  { %v10983_v56 = vpop.f32.mrf.mxu1 }
 0x3f4   :  { %3333 = vmatmul.mubr.bf16.gmra.mxu1 %v2316_v4  ;;  %v2301_v43 = vpack.c.bf16 %v10983_v56, %v10982_v21  ;;  %v11495_v21 = vld [vmem:[%s15048_s4 + $0x394] ss:$8 sps:$4 sm:$0xff]   ;;  %v11493_v4 = vld [vmem:[%s15048_s4 + $0x390] ss:$8 sps:$4 sm:$0xff]   ;;  %v11496_v56 = vld [vmem:[%s15048_s4 + $0x400] ss:$8 sps:$4 sm:$0xff]  }
 0x3f5   :  { %3425 = vmatpush1.bf16.msra.mxu1 %v11445_v16  ;;  %v2095_v25 = vpop.f32.mrf.mxu1  ;;  %3444 = vmatprep.mubr.bf16.mxu1 %v2294_v8  ;;  %v11498_v8 = vld [vmem:[%s15048_s4 + $0x404] ss:$8 sps:$4 sm:$0xff]  }
 0x3f6   :  { %v2292_v19 = vpack.c.bf16 %v2095_v25, %v2092_v48  ;;  %3426 = vmatprep.subr.bf16.mxu1 %v11453_v37  ;;  %v2318_v48 = vpack.c.bf16 %v13698_v38, %v13698_v38  ;;  %v11501_v38 = vld [vmem:[%s15048_s4 + $0x384] ss:$8 sps:$4 sm:$0xff]  }
 0x3f7   :  { %v10986_v59 = vpop.f32.mrf.mxu1 }
 0x3f8   :  { %3373 = vmatprep.mubr.bf16.mxu0 %v2292_v19  ;;  %v2319_v22 = vpack.c.bf16 %v10986_v59, %v10986_v59 }
 0x3f9   :  { %3427 = vmatpush1.bf16.msra.mxu1 %v11451_v1  ;;  %3374 = vmatmul.mubr.bf16.vlgmr.msra.gmra.mxu0 %v2291_v9  ;;  %v2108_v23 = vpop.f32.mrf.mxu1  ;;  %v11499_v1 = vld [vmem:[%s15048_s4 + $0x380] ss:$8 sps:$4 sm:$0xff]  }
 0x3fa   :  { %3383 = vmatprep.mubr.bf16.mxu0 %v2301_v43  ;;  %3484 = vmatpush1.bf16.msra.mxu0 %v11454_v6  ;;  %v2321_v43 = vpack.c.bf16 %v13780_v51, %v13780_v51 }
 0x3fb   :  { %3428 = vmatprep.subr.bf16.mxu1 %v11459_v26  ;;  %3485 = vmatprep.subr.bf16.mxu0 %v11462_v63  ;;  %v10987_v54 = vpop.f32.mrf.mxu1  ;;  %v2303_v26 = vpack.c.bf16 %v13748_v40, %v13736_v45  ;;  %v2312_v63 = vpack.c.bf16 %v13770_v30, %v13758_v61 }
 0x3fd   :  { %3429 = vmatpush2.bf16.msra.mxu1 %v11457_v14  ;;  %v2111_v49 = vpop.f32.mrf.mxu1 }
 0x3fe   :  { %3486 = vmatpush1.bf16.msra.mxu0 %v11460_v7  ;;  %3430 = vmatprep.subr.bf16.mxu1 %v11465_v29  ;;  %v2310_v20 = vpack.c.bf16 %v2111_v49, %v2108_v23 }
 0x3ff   :  { %3487 = vmatprep.subr.bf16.mxu0 %v11468_v17  ;;  %v2467_v17 = vld [vmem:[%s14974_s5] sm:$0x3] }
 0x401   :  { %3431 = vmatpush2.bf16.msra.mxu1 %v11463_v15  ;;  %3384 = vmatmul.mubr.bf16.gmra.mxu0 %v2300_v3  ;;  %v15055_v15 = vld [vmem:[#allocation25_spill] sm:$0xff] }
 0x402   :  { %3488 = vmatpush1.bf16.msra.mxu0 %v11466_v28  ;;  %3432 = vmatprep.subr.bf16.mxu1 %v11471_v0  ;;  %v13991_v49 = vrot.slane %v2467_v17, %v15055_v15  ;;  %v15056_v28 = vld [vmem:[#allocation26_spill] sm:$0xff] }
 0x403   :  { %3489 = vmatprep.subr.bf16.mxu0 %v11474_v42  ;;  %3393 = vmatprep.mubr.bf16.mxu0 %v2310_v20  ;;  %v13994_v0 = vrot.slane %v2467_v17, %v15056_v28 }
 0x405   :  { %3433 = vmatpush2.bf16.msra.mxu1 %v11469_v13 }
 0x406   :  { %3490 = vmatpush1.bf16.msra.mxu0 %v11472_v36  ;;  %3434 = vmatprep.subr.bf16.mxu1 %v11477_v11 }
 0x407   :  { %3491 = vmatprep.subr.bf16.mxu0 %v11480_v60 }
 0x409   :  { %3435 = vmatpush2.bf16.msra.mxu1 %v11475_v39  ;;  %3394 = vmatmul.mubr.bf16.gmra.mxu0 %v2309_v18 }
 0x40a   :  { %3403 = vmatprep.mubr.bf16.mxu0 %v2319_v22  ;;  %3492 = vmatpush1.bf16.msra.mxu0 %v11478_v32 }
 0x40b   :  { %3436 = vmatprep.subr.bf16.mxu1 %v11483_v55  ;;  %3493 = vmatprep.subr.bf16.mxu0 %v11486_v44  ;;  %v11004_v34 = vpop.f32.mrf.mxu1 }
 0x40d   :  { %3437 = vmatpush2.bf16.msra.mxu1 %v11481_v52  ;;  %v2257_v31 = vpop.f32.mrf.mxu1 }
 0x40e   :  { %3494 = vmatpush1.bf16.msra.mxu0 %v11484_v50  ;;  %3438 = vmatprep.subr.bf16.mxu1 %v11489_v46 }
 0x40f   :  { %3495 = vmatprep.subr.bf16.mxu0 %v11492_v33  ;;  %v11005_v16 = vpop.f32.mrf.mxu1 }
 0x410   :  { %v2304_v59 = vpack.c.bf16 %v11005_v16, %v11004_v34 }
 0x411   :  { %3439 = vmatpush2.bf16.msra.mxu1 %v11487_v2  ;;  %3404 = vmatmul.mubr.bf16.gmra.mxu0 %v2318_v48  ;;  %v2260_v37 = vpop.f32.mrf.mxu1 }
 0x412   :  { %3496 = vmatpush1.bf16.msra.mxu0 %v11490_v53  ;;  %3440 = vmatprep.subr.bf16.mxu1 %v11495_v21  ;;  %v2295_v6 = vpack.c.bf16 %v2260_v37, %v2257_v31 }
 0x413   :  { %3497 = vmatprep.subr.bf16.mxu0 %v11498_v8  ;;  %3515 = vmatprep.mubr.bf16.mxu0 %v15041_v27  ;;  %v11008_v25 = vpop.f32.mrf.mxu1 }
 0x414   :  { %v2322_v10 = vpack.c.bf16 %v11008_v25, %v11008_v25 }
 0x415   :  { %3441 = vmatpush2.bf16.msra.mxu1 %v11493_v4  ;;  %v2273_v19 = vpop.f32.mrf.mxu1 }
 0x416   :  { %3498 = vmatpush1.bf16.msra.mxu0 %v11496_v56  ;;  %3442 = vmatprep.subr.bf16.mxu1 %v11501_v38 }
 0x417   :  { %v11009_v9 = vpop.f32.mrf.mxu1 }
 0x419   :  { %3443 = vmatpush2.bf16.msra.mxu1 %v11499_v1  ;;  %3516 = vmatmul.mubr.bf16.vlgmr.msra.gmra.mxu0 %v2295_v6  ;;  %v2276_v45 = vpop.f32.mrf.mxu1 }
 0x41a   :  { %3525 = vmatprep.mubr.bf16.mxu0 %v15041_v27  ;;  %v2313_v40 = vpack.c.bf16 %v2276_v45, %v2273_v19 }
 0x41c   :  { %3445 = vmatmul.mubr.bf16.vlgmr.msra.gmra.mxu1 %v2293_v12 }
 0x41d   :  { %3454 = vmatprep.mubr.bf16.mxu1 %v2303_v26 }
 0x421   :  { %3526 = vmatmul.mubr.bf16.gmra.mxu0 %v2304_v59 }
 0x422   :  { %3535 = vmatprep.mubr.bf16.mxu0 %v15041_v27 }
 0x424   :  { %3455 = vmatmul.mubr.bf16.gmra.mxu1 %v2302_v62 }
 0x425   :  { %3464 = vmatprep.mubr.bf16.mxu1 %v2312_v63 }
 0x429   :  { %3536 = vmatmul.mubr.bf16.gmra.mxu0 %v2313_v40 }
 0x42a   :  { %3545 = vmatprep.mubr.bf16.mxu0 %v15041_v27 }
 0x42c   :  { %3465 = vmatmul.mubr.bf16.gmra.mxu1 %v2311_v24 }
 0x42d   :  { %3474 = vmatprep.mubr.bf16.mxu1 %v2321_v43 }
 0x431   :  { %3546 = vmatmul.mubr.bf16.gmra.mxu0 %v2322_v10 }
 0x432   :  { %3626 = vmatprep.mubr.bf16.mxu0 %v15041_v27 }
 0x434   :  { %3475 = vmatmul.mubr.bf16.gmra.mxu1 %v2320_v58 }
 0x435   :  { %3670 = vmatprep.mubr.bf16.mxu1 %v15041_v27 }
 0x467   :  { %v3233_v12 = vpop.f32.mrf.mxu0 }
 0x468   :  { %v3234_v3 = vadd.f32 %v3233_v12, %v13991_v49 }
 0x469   :  { %v3235_v35 = vpop.f32.mrf.mxu0 }
 0x46a   :  { %v3236_v42 = vadd.f32 %v3235_v35, %v13994_v0 }
 0x46b   :  { %v3237_v5 = vpop.f32.mrf.mxu0 }
 0x46c   :  { %v3238_v11 = vadd.f32 %v3237_v5, %v13991_v49 }
 0x46d   :  { %v13977_v62 = vpop.f32.mrf.mxu0 }
 0x46f   :  { %v3243_v61 = vpop.f32.mrf.mxu0 }
 0x470   :  { %v3244_v55 = vadd.f32 %v3243_v61, %v13991_v49 }
 0x471   :  { %v3245_v30 = vpop.f32.mrf.mxu0 }
 0x472   :  { %v3246_v22 = vadd.f32 %v3245_v30, %v13994_v0 }
 0x473   :  { %v3247_v57 = vpop.f32.mrf.mxu0 }
 0x474   :  { %v3248_v46 = vadd.f32 %v3247_v57, %v13991_v49 }
 0x475   :  { %v13979_v47 = vpop.f32.mrf.mxu0 }
 0x477   :  { %v3253_v24 = vpop.f32.mrf.mxu0 }
 0x478   :  { %v3254_v53 = vadd.f32 %v3253_v24, %v13991_v49 }
 0x479   :  { %v3255_v51 = vpop.f32.mrf.mxu0 }
 0x47a   :  { %v3256_v48 = vadd.f32 %v3255_v51, %v13994_v0 }
 0x47b   :  { %v3257_v14 = vpop.f32.mrf.mxu0 }
 0x47c   :  { %v3258_v4 = vadd.f32 %v3257_v14, %v13991_v49 }
 0x47d   :  { %v13981_v23 = vpop.f32.mrf.mxu0 }
 0x47f   :  { %v13983_v41 = vpop.f32.mrf.mxu0 }
 0x481   :  { %v13985_v7 = vpop.f32.mrf.mxu0 }
 0x483   :  { %v3267_v29 = vpop.f32.mrf.mxu0 }
 0x485   :  { %v3268_v54 = vpop.f32.mrf.mxu0 }
 0x49c   :  { %v3304_v20 = vpop.f32.mrf.mxu1 }
 0x49d   :  { %v3305_v13 = vadd.f32 %v3304_v20, %v3234_v3 }
 0x49e   :  { %v3306_v36 = vpop.f32.mrf.mxu1 }
 0x49f   :  { %v3307_v60 = vadd.f32 %v3306_v36, %v3236_v42 }
 0x4a0   :  { %v3308_v39 = vpop.f32.mrf.mxu1 }
 0x4a1   :  { %v3309_v32 = vadd.f32 %v3308_v39, %v3238_v11 }
 0x4a2   :  { %v13999_v18 = vpop.f32.mrf.mxu1 }
 0x4a4   :  { %v3314_v44 = vpop.f32.mrf.mxu1 }
 0x4a5   :  { %v3315_v52 = vadd.f32 %v3314_v44, %v3244_v55 }
 0x4a6   :  { %v3316_v50 = vpop.f32.mrf.mxu1 }
 0x4a7   :  { %v14004_v34 = vadd.f32 %v3316_v50, %v3246_v22 }
 0x4a8   :  { %v3318_v33 = vpop.f32.mrf.mxu1 }
 0x4a9   :  { %v3319_v2 = vadd.f32 %v3318_v33, %v3248_v46 }
 0x4aa   :  { %v14006_v31 = vpop.f32.mrf.mxu1 }
 0x4ac   :  { %v3324_v21 = vpop.f32.mrf.mxu1 }
 0x4ad   :  { %v3325_v16 = vadd.f32 %v3324_v21, %v3254_v53 }
 0x4ae   :  { %v3326_v8 = vpop.f32.mrf.mxu1 }
 0x4af   :  { %v14011_v37 = vadd.f32 %v3326_v8, %v3256_v48 }
 0x4b0   :  { %v3328_v56 = vpop.f32.mrf.mxu1 }
 0x4b1   :  { %v14013_v38 = vadd.f32 %v3328_v56, %v3258_v4 }
 0x4b2   :  { %v14015_v25 = vpop.f32.mrf.mxu1 }
 0x4b4   :  { %v14017_v1 = vpop.f32.mrf.mxu1 }
 0x4b6   :  { %v14019_v19 = vpop.f32.mrf.mxu1 }
 0x4b8   :  { %v3338_v6 = vpop.f32.mrf.mxu1 }
 0x4b9   :  { %v3375_v9 = vpop.f32.mrf.mxu0 }
 0x4ba   :  { %v3376_v26 = vadd.f32 %v3375_v9, %v3305_v13  ;;  %v3339_v59 = vpop.f32.mrf.mxu1 }
 0x4bb   :  { %v3377_v63 = vpop.f32.mrf.mxu0 }
 0x4bc   :  { %v14021_v45 = vadd.f32 %v3377_v63, %v3307_v60 }
 0x4bd   :  { %v3379_v40 = vpop.f32.mrf.mxu0 }
 0x4be   :  { %v3380_v43 = vadd.f32 %v3379_v40, %v3309_v32 }
 0x4bf   :  { %v14023_v10 = vpop.f32.mrf.mxu0 }
 0x4c1   :  { %v3385_v58 = vpop.f32.mrf.mxu0 }
 0x4c2   :  { %v3386_v22 = vadd.f32 %v3385_v58, %v3315_v52 }
 0x4c3   :  { %v14025_v12 = vpop.f32.mrf.mxu0 }
 0x4c5   :  { %v3389_v35 = vpop.f32.mrf.mxu0 }
 0x4c6   :  { %v3390_v56 = vadd.f32 %v3389_v35, %v3319_v2 }
 0x4c7   :  { %v14027_v5 = vpop.f32.mrf.mxu0 }
 0x4c9   :  { %v3395_v61 = vpop.f32.mrf.mxu0 }
 0x4ca   :  { %v3396_v52 = vadd.f32 %v3395_v61, %v3325_v16  ;;  %v3250_v61 = vadd.f32 %v13979_v47, %v13994_v0 }
 0x4cb   :  { %v3397_v30 = vpop.f32.mrf.mxu0 }
 0x4cd   :  { %v3399_v57 = vpop.f32.mrf.mxu0 }
 0x4cf   :  { %v3401_v24 = vpop.f32.mrf.mxu0 }
 0x4d1   :  { %v3405_v51 = vpop.f32.mrf.mxu0 }
 0x4d3   :  { %v14029_v14 = vpop.f32.mrf.mxu0 }
 0x4d5   :  { %v3409_v29 = vpop.f32.mrf.mxu0 }
 0x4d7   :  { %v3410_v54 = vpop.f32.mrf.mxu0 }
 0x4d9   :  { %v3517_v17 = vpop.f32.mrf.mxu0 }
 0x4db   :  { %v14031_v3 = vpop.f32.mrf.mxu0 }
 0x4dc   :  { %v3446_v20 = vpop.f32.mrf.mxu1 }
 0x4dd   :  { %v3447_v42 = vadd.f32 %v3446_v20, %v3376_v26  ;;  %v3521_v13 = vpop.f32.mrf.mxu0 }
 0x4de   :  { %v14033_v36 = vpop.f32.mrf.mxu1 }
 0x4df   :  { %v14035_v11 = vpop.f32.mrf.mxu0  ;;  %v3518_v39 = vadd.f32 %v3517_v17, %v3447_v42  ;;  %v3260_v17 = vadd.f32 %v13981_v23, %v13994_v0  ;;  %v3266_v23 = vadd.f32 %v13985_v7, %v13994_v0  ;;  %v3240_v7 = vadd.f32 %v13977_v62, %v13994_v0 }
 0x4e0   :  { %v3450_v60 = vpop.f32.mrf.mxu1 }
 0x4e1   :  { %v3451_v32 = vadd.f32 %v3450_v60, %v3380_v43  ;;  %v3527_v55 = vpop.f32.mrf.mxu0  ;;  %v3554_v53 = vmax.f32 %v3518_v39, 0.0  ;;  %v3264_v60 = vadd.f32 %v13983_v41, %v13991_v49  ;;  %v3331_v39 = vadd.f32 %v14015_v25, %v3260_v17 }
 0x4e2   :  { %v14037_v44 = vpop.f32.mrf.mxu1  ;;  %v3321_v49 = vadd.f32 %v14006_v31, %v3250_v61 }
 0x4e3   :  { %v3522_v50 = vadd.f32 %v3521_v13, %v3451_v32  ;;  %v14039_v46 = vpop.f32.mrf.mxu0  ;;  %v3400_v32 = vadd.f32 %v3399_v57, %v14013_v38  ;;  %v3337_v38 = vadd.f32 %v14019_v19, %v3266_v23  ;;  %v3398_v57 = vadd.f32 %v3397_v30, %v14011_v37 }
 0x4e4   :  { %v3456_v33 = vpop.f32.mrf.mxu1  ;;  %v3388_v37 = vadd.f32 %v14025_v12, %v14004_v34 }
 0x4e5   :  { %v3556_v21 = vmax.f32 %v3522_v50, 0.0  ;;  %v3457_v48 = vadd.f32 %v3456_v33, %v3386_v22  ;;  %v3531_v8 = vpop.f32.mrf.mxu0  ;;  %v3335_v50 = vadd.f32 %v14017_v1, %v3264_v60  ;;  %v3402_v33 = vadd.f32 %v3401_v24, %v3331_v39 }
 0x4e6   :  { %v3458_v4 = vpop.f32.mrf.mxu1  ;;  %v3392_v1 = vadd.f32 %v14027_v5, %v3321_v49  ;;  %v3408_v24 = vadd.f32 %v14029_v14, %v3337_v38  ;;  %v3449_v39 = vadd.f32 %v14033_v36, %v14021_v45  ;;  %v11503_v49 = vld [vmem:[#allocation7 + $0x38] sm:$0xff]   ;;  %v11506_v38 = vld [vmem:[#allocation7 + $0x70] sm:$0xff]  }
 0x4e7   :  { %v14041_v6 = vpack.c.bf16 %v3556_v21, %v3554_v53  ;;  %v14043_v9 = vpop.f32.mrf.mxu0  ;;  %v3528_v59 = vadd.f32 %v3527_v55, %v3457_v48  ;;  %v3406_v48 = vadd.f32 %v3405_v51, %v3335_v50  ;;  %v3578_v50 = vld [vmem:[#allocation9 + $0x8] sm:$0xf] }
 0x4e8   :  { %v3460_v26 = vpop.f32.mrf.mxu1  ;;  %v3520_v45 = vadd.f32 %v14031_v3, %v3449_v39  ;;  %v3576_v3 = vld [vmem:[#allocation9] sm:$0xf] }
 0x4e9   :  { %v3461_v63 = vadd.f32 %v3460_v26, %v3390_v56  ;;  %v3537_v40 = vpop.f32.mrf.mxu0  ;;  %v3558_v20 = vmax.f32 %v3528_v59, 0.0 }
 0x4ea   :  { %v3462_v43 = vpop.f32.mrf.mxu1 }
 0x4eb   :  { %v3532_v58 = vadd.f32 %v3531_v8, %v3461_v63  ;;  %v3539_v29 = vpop.f32.mrf.mxu0  ;;  %v3463_v30 = vadd.f32 %v3462_v43, %v3392_v1  ;;  %v3582_v1 = vld [vmem:[#allocation9 + $0x18] sm:$0xf] }
 0x4ec   :  { %v3466_v54 = vpop.f32.mrf.mxu1 }
 0x4ed   :  { %v3560_v42 = vmax.f32 %v3532_v58, 0.0  ;;  %v3467_v13 = vadd.f32 %v3466_v54, %v3396_v52  ;;  %v3541_v2 = vpop.f32.mrf.mxu0  ;;  %v3311_v52 = vadd.f32 %v13999_v18, %v3240_v7  ;;  %v3534_v34 = vadd.f32 %v14043_v9, %v3463_v30  ;;  %v11518_v7 = vld [vmem:[#allocation7 + $0x58] sm:$0xff]   ;;  %v11517_v30 = vld [vmem:[#allocation7 + $0xa0] sm:$0xff]  }
 0x4ee   :  { %v3468_v35 = vpop.f32.mrf.mxu1  ;;  %v3555_v9 = vmax.f32 %v3520_v45, 0.0 }
 0x4ef   :  { %v14051_v55 = vpack.c.bf16 %v3560_v42, %v3558_v20  ;;  %v3543_v16 = vpop.f32.mrf.mxu0  ;;  %v3538_v53 = vadd.f32 %v3537_v40, %v3467_v13  ;;  %v3469_v63 = vadd.f32 %v3468_v35, %v3398_v57  ;;  %v3382_v14 = vadd.f32 %v14023_v10, %v3311_v52  ;;  %v11510_v57 = vld [vmem:[#allocation7 + $0x68] sm:$0xff]   ;;  %v11516_v52 = vld [vmem:[#allocation7 + $0xe0] sm:$0xff]  }
 0x4f0   :  { %v3470_v22 = vpop.f32.mrf.mxu1  ;;  %v3459_v20 = vadd.f32 %v3458_v4, %v3388_v37  ;;  %v11527_v37 = vld [vmem:[#allocation7 + $0x8] sm:$0xff]  }
 0x4f1   :  { %v3471_v21 = vadd.f32 %v3470_v22, %v3400_v32  ;;  %v3547_v41 = vpop.f32.mrf.mxu0  ;;  %v3562_v59 = vmax.f32 %v3538_v53, 0.0  ;;  %v3540_v42 = vadd.f32 %v3539_v29, %v3469_v63  ;;  %v3453_v18 = vadd.f32 %v14037_v44, %v3382_v14  ;;  %v3577_v22 = vld [vmem:[#allocation9 + $0x4] sm:$0xf]  ;;  %v11502_v53 = vld [vmem:[#allocation7 + $0x78] sm:$0xff]   ;;  %v11522_v63 = vld [vmem:[#allocation7 + $0x50] sm:$0xff]  }
 0x4f2   :  { %v3472_v25 = vpop.f32.mrf.mxu1  ;;  %v3530_v32 = vadd.f32 %v14039_v46, %v3459_v20  ;;  %v3561_v29 = vmax.f32 %v3534_v34, 0.0  ;;  %v11528_v14 = vld [vmem:[#allocation7 + $0xc8] sm:$0xff]  }
 0x4f3   :  { %v3542_v8 = vadd.f32 %v3541_v2, %v3471_v21  ;;  %v3473_v47 = vadd.f32 %v3472_v25, %v3402_v33  ;;  %v3549_v56 = vpop.f32.mrf.mxu0  ;;  %v3563_v10 = vmax.f32 %v3540_v42, 0.0  ;;  %v3524_v4 = vadd.f32 %v14035_v11, %v3453_v18  ;;  %v3579_v33 = vld [vmem:[#allocation9 + $0xc] sm:$0xf]  ;;  %v3580_v21 = vld [vmem:[#allocation9 + $0x10] sm:$0xf]  ;;  %v11532_v42 = vld [vmem:[#allocation7 + $0xc0] sm:$0xff]  }
 0x4f4   :  { %v3476_v26 = vpop.f32.mrf.mxu1  ;;  %v3559_v36 = vmax.f32 %v3530_v32, 0.0  ;;  %v11507_v25 = vld [vmem:[#allocation7 + $0x30] sm:$0xff]   ;;  %v11529_v20 = vld [vmem:[#allocation7 + $0x88] sm:$0xff]   ;;  %v11535_v32 = vld [vmem:[#allocation7 + $0x138] sm:$0xff]  }
 0x4f5   :  { %v3564_v31 = vmax.f32 %v3542_v8, 0.0  ;;  %v3477_v40 = vadd.f32 %v3476_v26, %v3406_v48  ;;  %v3551_v19 = vpop.f32.mrf.mxu0  ;;  %v3544_v62 = vadd.f32 %v3543_v16, %v3473_v47  ;;  %v3557_v11 = vmax.f32 %v3524_v4, 0.0  ;;  %v11511_v48 = vld [vmem:[#allocation7 + $0x28] sm:$0xff]   ;;  %v11514_v8 = vld [vmem:[#allocation7 + $0x60] sm:$0xff]   ;;  %v11504_v47 = vld [vmem:[#allocation7 + $0xf8] sm:$0xff]  }
 0x4f6   :  { %v3478_v51 = vpop.f32.mrf.mxu1  ;;  %v14093_v46 = vpack.c.bf16 %v3561_v29, %v3559_v36  ;;  %v11508_v26 = vld [vmem:[#allocation7 + $0xf0] sm:$0xff]   ;;  %v11526_v19 = vld [vmem:[#allocation7 + $0x48] sm:$0xff]  }
 0x4f7   :  { %v14068_v58 = vpack.c.bf16 %v3564_v31, %v3562_v59  ;;  %v3548_v0 = vadd.f32 %v3547_v41, %v3477_v40  ;;  %v3479_v5 = vadd.f32 %v3478_v51, %v3408_v24  ;;  %v3552_v54 = vpop.f32.mrf.mxu0  ;;  %v3565_v12 = vmax.f32 %v3544_v62, 0.0  ;;  %v3581_v41 = vld [vmem:[#allocation9 + $0x14] sm:$0xf]  ;;  %v11505_v24 = vld [vmem:[#allocation7 + $0xb8] sm:$0xff]   ;;  %v11512_v31 = vld [vmem:[#allocation7 + $0xe8] sm:$0xff]  }
 0x4f8   :  { %v3480_v17 = vpop.f32.mrf.mxu1  ;;  %v14099_v23 = vpack.c.bf16 %v3557_v11, %v3555_v9  ;;  %v11519_v59 = vld [vmem:[#allocation7 + $0x18] sm:$0xff]   ;;  %v11523_v40 = vld [vmem:[#allocation7 + $0x10] sm:$0xff]   ;;  %v11542_v9 = vld [vmem:[#allocation7 + $0x168] sm:$0xff]  }
 0x4f9   :  { %v3566_v13 = vmax.f32 %v3548_v0, 0.0  ;;  %v3550_v2 = vadd.f32 %v3549_v56, %v3479_v5  ;;  %v14079_v61 = vpack.c.bf16 %v3565_v12, %v3563_v10  ;;  %v11515_v56 = vld [vmem:[#allocation7 + $0x20] sm:$0xff]   ;;  %v11520_v51 = vld [vmem:[#allocation7 + $0xd8] sm:$0xff]   ;;  %v11524_v62 = vld [vmem:[#allocation7 + $0xd0] sm:$0xff]  }
 0x4fa   :  { %v3481_v35 = vpop.f32.mrf.mxu1  ;;  %v11530_v0 = vld [vmem:[#allocation7 + $0x40] sm:$0xff]   ;;  %v11525_v54 = vld [vmem:[#allocation7 + $0x90] sm:$0xff]   ;;  %v11534_v17 = vld [vmem:[#allocation7 + $0x178] sm:$0xff]  }
 0x4fb   :  { %v3574_v43 = vpack.c.bf16 %v3566_v13, %v3566_v13  ;;  %v3567_v60 = vmax.f32 %v3550_v2, 0.0  ;;  %v11531_v5 = vld [vmem:[#allocation7] sm:$0xff]   ;;  %v11536_v2 = vld [vmem:[#allocation7 + $0x1f8] sm:$0xff]   ;;  %v11538_v29 = vld [vmem:[#allocation7 + $0x170] sm:$0xff]  }
 0x4fc   :  { %v11533_v13 = vld [vmem:[#allocation7 + $0x80] sm:$0xff]   ;;  %v11537_v10 = vld [vmem:[#allocation7 + $0x1b8] sm:$0xff]   ;;  %v11539_v11 = vld [vmem:[#allocation7 + $0x130] sm:$0xff]  }
 0x4fd   :  { %v14076_v16 = vpack.c.bf16 %v3567_v60, %v3567_v60  ;;  %v14082_v44 = vsel %vm3587_vm3, %v3574_v43, 0 }
 0x4ff   :  { %9858 = vmatprep.subr.msk.bf16.mxu0 %vm3587_vm3, %v14076_v16  ;;  %9860 = vmatprep.subr.msk.bf16.mxu1 %vm3587_vm3, %v14076_v16 }
 0x500   :  { %3603 = vmatpush1.bf16.msra.mxu0 %v14082_v44  ;;  %3647 = vmatpush1.bf16.msra.mxu1 %v14082_v44 }
 0x501   :  { %3604 = vmatprep.subr.bf16.mxu0 %v14079_v61  ;;  %3648 = vmatprep.subr.bf16.mxu1 %v14079_v61 }
 0x504   :  { %3605 = vmatpush1.bf16.msra.mxu0 %v14068_v58  ;;  %3649 = vmatpush1.bf16.msra.mxu1 %v14068_v58 }
 0x505   :  { %3606 = vmatprep.subr.bf16.mxu0 %v14093_v46  ;;  %3650 = vmatprep.subr.bf16.mxu1 %v14093_v46 }
 0x508   :  { %3607 = vmatpush1.bf16.msra.mxu0 %v14051_v55  ;;  %3651 = vmatpush1.bf16.msra.mxu1 %v14051_v55 }
 0x509   :  { %3608 = vmatprep.subr.bf16.mxu0 %v14099_v23  ;;  %3652 = vmatprep.subr.bf16.mxu1 %v14099_v23 }
 0x50c   :  { %3609 = vmatpush1.bf16.msra.mxu0 %v14041_v6  ;;  %3653 = vmatpush1.bf16.msra.mxu1 %v14041_v6 }
 0x50d   :  { %9862 = vmatprep.subr.msk.bf16.mxu0 %vm3587_vm3, %v14076_v16  ;;  %9864 = vmatprep.subr.msk.bf16.mxu1 %vm3587_vm3, %v14076_v16 }
 0x50f   :  { %9859 = vmatmul.mubr.msk.bf16.vlgmr.msra.gmra.mxu0 %vm3583_vm4, %v3576_v3  ;;  %9861 = vmatmul.mubr.msk.bf16.vlgmr.msra.gmra.mxu1 %vm3583_vm4, %v3577_v22  ;;  %v11543_v3 = vld [vmem:[#allocation7 + $0x128] sm:$0xff]  }
 0x510   :  { %3691 = vmatpush1.bf16.msra.mxu0 %v14082_v44  ;;  %3735 = vmatpush1.bf16.msra.mxu1 %v14082_v44  ;;  %v11545_v22 = vld [vmem:[#allocation7 + $0x1a8] sm:$0xff]  }
 0x511   :  { %3692 = vmatprep.subr.bf16.mxu0 %v14079_v61  ;;  %3736 = vmatprep.subr.bf16.mxu1 %v14079_v61 }
 0x512   :  { %3714 = vmatprep.mubr.bf16.mxu0 %v15041_v27  ;;  %3758 = vmatprep.mubr.bf16.mxu1 %v15041_v27 }
 0x514   :  { %3693 = vmatpush1.bf16.msra.mxu0 %v14068_v58  ;;  %3737 = vmatpush1.bf16.msra.mxu1 %v14068_v58 }
 0x515   :  { %3694 = vmatprep.subr.bf16.mxu0 %v14093_v46  ;;  %3738 = vmatprep.subr.bf16.mxu1 %v14093_v46 }
 0x518   :  { %3695 = vmatpush1.bf16.msra.mxu0 %v14051_v55  ;;  %3739 = vmatpush1.bf16.msra.mxu1 %v14051_v55 }
 0x519   :  { %3696 = vmatprep.subr.bf16.mxu0 %v14099_v23  ;;  %3740 = vmatprep.subr.bf16.mxu1 %v14099_v23 }
 0x51c   :  { %3697 = vmatpush1.bf16.msra.mxu0 %v14041_v6  ;;  %3741 = vmatpush1.bf16.msra.mxu1 %v14041_v6 }
 0x51d   :  { %9866 = vmatprep.subr.msk.bf16.mxu0 %vm3587_vm3, %v14076_v16  ;;  %9868 = vmatprep.subr.msk.bf16.mxu1 %vm3587_vm3, %v14076_v16 }
 0x51f   :  { %9863 = vmatmul.mubr.msk.bf16.vlgmr.msra.gmra.mxu0 %vm3583_vm4, %v3578_v50  ;;  %9865 = vmatmul.mubr.msk.bf16.vlgmr.msra.gmra.mxu1 %vm3583_vm4, %v3579_v33  ;;  %v11546_v50 = vld [vmem:[#allocation7 + $0x160] sm:$0xff]  }
 0x520   :  { %3779 = vmatpush1.bf16.msra.mxu0 %v14082_v44  ;;  %3823 = vmatpush1.bf16.msra.mxu1 %v14082_v44  ;;  %v11548_v33 = vld [vmem:[#allocation7 + $0x1e0] sm:$0xff]  }
 0x521   :  { %3780 = vmatprep.subr.bf16.mxu0 %v14079_v61  ;;  %3824 = vmatprep.subr.bf16.mxu1 %v14079_v61 }
 0x522   :  { %3802 = vmatprep.mubr.bf16.mxu0 %v15041_v27  ;;  %3846 = vmatprep.mubr.bf16.mxu1 %v15041_v27 }
 0x524   :  { %3781 = vmatpush1.bf16.msra.mxu0 %v14068_v58  ;;  %3825 = vmatpush1.bf16.msra.mxu1 %v14068_v58 }
 0x525   :  { %3782 = vmatprep.subr.bf16.mxu0 %v14093_v46  ;;  %3826 = vmatprep.subr.bf16.mxu1 %v14093_v46 }
 0x528   :  { %3783 = vmatpush1.bf16.msra.mxu0 %v14051_v55  ;;  %3827 = vmatpush1.bf16.msra.mxu1 %v14051_v55 }
 0x529   :  { %3784 = vmatprep.subr.bf16.mxu0 %v14099_v23  ;;  %3828 = vmatprep.subr.bf16.mxu1 %v14099_v23 }
 0x52c   :  { %3785 = vmatpush1.bf16.msra.mxu0 %v14041_v6  ;;  %3829 = vmatpush1.bf16.msra.mxu1 %v14041_v6 }
 0x52d   :  { %9870 = vmatprep.subr.msk.bf16.mxu0 %vm3587_vm3, %v14076_v16  ;;  %10514 = vmatprep.subr.bf16.mxu1 %v11502_v53  ;;  %v11547_v53 = vld [vmem:[#allocation7 + $0x120] sm:$0xff]  }
 0x52f   :  { %9867 = vmatmul.mubr.msk.bf16.vlgmr.msra.gmra.mxu0 %vm3583_vm4, %v3580_v21  ;;  %9869 = vmatmul.mubr.msk.bf16.vlgmr.msra.gmra.mxu1 %vm3583_vm4, %v3581_v41  ;;  %v11549_v21 = vld [vmem:[#allocation7 + $0x1a0] sm:$0xff]   ;;  %v11550_v41 = vld [vmem:[#allocation7 + $0x158] sm:$0xff]  }
 0x530   :  { %3867 = vmatpush1.bf16.msra.mxu0 %v14082_v44  ;;  %3890 = vmatprep.mubr.bf16.mxu0 %v15041_v27 }
 0x531   :  { %3868 = vmatprep.subr.bf16.mxu0 %v14079_v61  ;;  %10515 = vmatpush3.bf16.msra.mxu1 %v11503_v49  ;;  %v11540_v61 = vld [vmem:[#allocation7 + $0x1f0] sm:$0xff]   ;;  %v11552_v49 = vld [vmem:[#allocation7 + $0x1d8] sm:$0xff]  }
 0x532   :  { %10516 = vmatprep.subr.bf16.mxu1 %v11506_v38 }
 0x534   :  { %3869 = vmatpush1.bf16.msra.mxu0 %v14068_v58  ;;  %v11521_v58 = vld [vmem:[#allocation7 + $0x98] sm:$0xff]  }
 0x535   :  { %3870 = vmatprep.subr.bf16.mxu0 %v14093_v46  ;;  %10517 = vmatpush3.bf16.msra.mxu1 %v11507_v25  ;;  %v11541_v46 = vld [vmem:[#allocation7 + $0x1b0] sm:$0xff]  }
 0x536   :  { %10518 = vmatprep.subr.bf16.mxu1 %v11510_v57 }
 0x538   :  { %3871 = vmatpush1.bf16.msra.mxu0 %v14051_v55  ;;  %v11509_v55 = vld [vmem:[#allocation7 + $0xb0] sm:$0xff]  }
 0x539   :  { %3872 = vmatprep.subr.bf16.mxu0 %v14099_v23  ;;  %10519 = vmatpush3.bf16.msra.mxu1 %v11511_v48  ;;  %v11544_v23 = vld [vmem:[#allocation7 + $0x1e8] sm:$0xff]  }
 0x53a   :  { %10520 = vmatprep.subr.bf16.mxu1 %v11514_v8  ;;  %v11551_v8 = vld [vmem:[#allocation7 + $0x118] sm:$0xff]  }
 0x53c   :  { %3873 = vmatpush1.bf16.msra.mxu0 %v14041_v6  ;;  %v11513_v6 = vld [vmem:[#allocation7 + $0xa8] sm:$0xff]  }
 0x53d   :  { %10536 = vmatprep.subr.bf16.mxu0 %v11504_v47  ;;  %10521 = vmatpush3.bf16.msra.mxu1 %v11515_v56  ;;  %v11553_v47 = vld [vmem:[#allocation7 + $0x198] sm:$0xff]  }
 0x53e   :  { %10522 = vmatprep.subr.bf16.mxu1 %v11518_v7 }
 0x53f   :  { %9871 = vmatmul.mubr.msk.bf16.vlgmr.msra.gmra.mxu0 %vm3583_vm4, %v3582_v1  ;;  %v11554_v1 = vld [vmem:[#allocation7 + $0x150] sm:$0xff]  }
 0x540   :  { %10537 = vmatpush3.bf16.msra.mxu0 %v11505_v24  ;;  %v11556_v24 = vld [vmem:[#allocation7 + $0x1d0] sm:$0xff]  }
 0x541   :  { %10538 = vmatprep.subr.bf16.mxu0 %v11508_v26  ;;  %10523 = vmatpush3.bf16.msra.mxu1 %v11519_v59 }
 0x542   :  { %10524 = vmatprep.subr.bf16.mxu1 %v11522_v63 }
 0x544   :  { %10539 = vmatpush3.bf16.msra.mxu0 %v11509_v55 }
 0x545   :  { %10540 = vmatprep.subr.bf16.mxu0 %v11512_v31  ;;  %10525 = vmatpush3.bf16.msra.mxu1 %v11523_v40  ;;  %v11555_v31 = vld [vmem:[#allocation7 + $0x110] sm:$0xff]  }
 0x546   :  { %10526 = vmatprep.subr.bf16.mxu1 %v11526_v19  ;;  %v11557_v40 = vld [vmem:[#allocation7 + $0x190] sm:$0xff]   ;;  %v11558_v19 = vld [vmem:[#allocation7 + $0x148] sm:$0xff]  }
 0x548   :  { %10541 = vmatpush3.bf16.msra.mxu0 %v11513_v6  ;;  %v11560_v6 = vld [vmem:[#allocation7 + $0x1c8] sm:$0xff]  }
 0x549   :  { %10542 = vmatprep.subr.bf16.mxu0 %v11516_v52  ;;  %10527 = vmatpush3.bf16.msra.mxu1 %v11527_v37  ;;  %v11559_v52 = vld [vmem:[#allocation7 + $0x108] sm:$0xff]  }
 0x54a   :  { %10528 = vmatprep.subr.bf16.mxu1 %v11530_v0  ;;  %v11561_v37 = vld [vmem:[#allocation7 + $0x188] sm:$0xff]   ;;  %v11566_v0 = vld [vmem:[#allocation7 + $0x278] sm:$0xff]  }
 0x54c   :  { %10543 = vmatpush3.bf16.msra.mxu0 %v11517_v30  ;;  %v11562_v30 = vld [vmem:[#allocation7 + $0x140] sm:$0xff]  }
 0x54d   :  { %10544 = vmatprep.subr.bf16.mxu0 %v11520_v51  ;;  %10529 = vmatpush3.bf16.msra.mxu1 %v11531_v5  ;;  %v11564_v51 = vld [vmem:[#allocation7 + $0x1c0] sm:$0xff]   ;;  %v11568_v5 = vld [vmem:[#allocation7 + $0x2f8] sm:$0xff]  }
 0x54e   :  { %10558 = vmatprep.subr.bf16.mxu1 %v11534_v17 }
 0x550   :  { %10545 = vmatpush3.bf16.msra.mxu0 %v11521_v58  ;;  %v11563_v58 = vld [vmem:[#allocation7 + $0x100] sm:$0xff]  }
 0x551   :  { %10546 = vmatprep.subr.bf16.mxu0 %v11524_v62  ;;  %v11565_v62 = vld [vmem:[#allocation7 + $0x180] sm:$0xff]  }
 0x554   :  { %10547 = vmatpush3.bf16.msra.mxu0 %v11525_v54 }
 0x555   :  { %10548 = vmatprep.subr.bf16.mxu0 %v11528_v14 }
 0x558   :  { %10549 = vmatpush3.bf16.msra.mxu0 %v11529_v20 }
 0x559   :  { %10550 = vmatprep.subr.bf16.mxu0 %v11532_v42 }
 0x55c   :  { %10551 = vmatpush3.bf16.msra.mxu0 %v11533_v13  ;;  %v11567_v13 = vld [vmem:[#allocation7 + $0x238] sm:$0xff]  }
 0x55d   :  { %10580 = vmatprep.subr.bf16.mxu0 %v11536_v2  ;;  %v11569_v2 = vld [vmem:[#allocation7 + $0x2b8] sm:$0xff]  }
 0x5cf   :  { %v3628_v18 = vpop.f32.mrf.mxu0  ;;  %v3672_v35 = vpop.f32.mrf.mxu1 }
 0x5d0   :  { %v3901_v12 = vpack.c.bf16 %v3672_v35, %v3672_v35  ;;  %v3899_v16 = vpack.c.bf16 %v3628_v18, %v3628_v18  ;;  %v11570_v35 = vld [vmem:[#allocation7 + $0x270] sm:$0xff]  }
 0x5d1   :  { %v3630_v34 = vpop.f32.mrf.mxu0  ;;  %v3674_v43 = vpop.f32.mrf.mxu1 }
 0x5d2   :  { %v3900_v60 = vpack.c.bf16 %v3630_v34, %v3630_v34  ;;  %v3902_v39 = vpack.c.bf16 %v3674_v43, %v3674_v43  ;;  %v11572_v34 = vld [vmem:[#allocation7 + $0x2f0] sm:$0xff]  }
 0x5d3   :  { %v3632_v4 = vpop.f32.mrf.mxu0  ;;  %v3676_v44 = vpop.f32.mrf.mxu1 }
 0x5d4   :  { %4848 = vmatprep.mubr.bf16.mxu1 %v3900_v60  ;;  %4888 = vmatprep.mubr.bf16.mxu0 %v3902_v39  ;;  %v11573_v4 = vld [vmem:[#allocation7 + $0x2b0] sm:$0xff]   ;;  %v11575_v44 = vld [vmem:[#allocation7 + $0x228] sm:$0xff]  }
 0x5d5   :  { %v3633_v45 = vpop.f32.mrf.mxu0  ;;  %4849 = vmatmul.mubr.bf16.vlgmr.msra.gmra.mxu1 %v3899_v16  ;;  %4889 = vmatmul.mubr.bf16.vlgmr.msra.gmra.mxu0 %v3901_v12  ;;  %v3677_v36 = vpop.f32.mrf.mxu1  ;;  %v11571_v16 = vld [vmem:[#allocation7 + $0x230] sm:$0xff]  }
 0x5d6   :  { %10559 = vmatpush3.bf16.msra.mxu1 %v11535_v32  ;;  %10581 = vmatpush3.bf16.msra.mxu0 %v11537_v10  ;;  %v11577_v45 = vld [vmem:[#allocation7 + $0x2a8] sm:$0xff]   ;;  %v11578_v36 = vld [vmem:[#allocation7 + $0x260] sm:$0xff]  }
 0x5d7   :  { %10560 = vmatprep.subr.bf16.mxu1 %v11538_v29  ;;  %10582 = vmatprep.subr.bf16.mxu0 %v11540_v61  ;;  %v11574_v29 = vld [vmem:[#allocation7 + $0x268] sm:$0xff]  }
 0x5d8   :  { %v11576_v61 = vld [vmem:[#allocation7 + $0x2e8] sm:$0xff]  }
 0x5da   :  { %10561 = vmatpush3.bf16.msra.mxu1 %v11539_v11  ;;  %10583 = vmatpush3.bf16.msra.mxu0 %v11541_v46  ;;  %v11580_v11 = vld [vmem:[#allocation7 + $0x2e0] sm:$0xff]  }
 0x5db   :  { %10562 = vmatprep.subr.bf16.mxu1 %v11542_v9  ;;  %10584 = vmatprep.subr.bf16.mxu0 %v11544_v23  ;;  %v11579_v46 = vld [vmem:[#allocation7 + $0x220] sm:$0xff]   ;;  %v11582_v23 = vld [vmem:[#allocation7 + $0x258] sm:$0xff]  }
 0x5dc   :  { %v11581_v9 = vld [vmem:[#allocation7 + $0x2a0] sm:$0xff]  }
 0x5de   :  { %10563 = vmatpush3.bf16.msra.mxu1 %v11543_v3  ;;  %10585 = vmatpush3.bf16.msra.mxu0 %v11545_v22  ;;  %v11584_v3 = vld [vmem:[#allocation7 + $0x2d8] sm:$0xff]  }
 0x5df   :  { %10564 = vmatprep.subr.bf16.mxu1 %v11546_v50  ;;  %10586 = vmatprep.subr.bf16.mxu0 %v11548_v33  ;;  %v3716_v38 = vpop.f32.mrf.mxu0  ;;  %v3760_v25 = vpop.f32.mrf.mxu1  ;;  %v11583_v33 = vld [vmem:[#allocation7 + $0x218] sm:$0xff]  }
 0x5e0   :  { %v3905_v17 = vpack.c.bf16 %v3760_v25, %v3760_v25  ;;  %v3903_v18 = vpack.c.bf16 %v3716_v38, %v3716_v38  ;;  %v11587_v25 = vld [vmem:[#allocation7 + $0x210] sm:$0xff]  }
 0x5e1   :  { %v3718_v57 = vpop.f32.mrf.mxu0  ;;  %v3762_v48 = vpop.f32.mrf.mxu1 }
 0x5e2   :  { %10565 = vmatpush3.bf16.msra.mxu1 %v11547_v53  ;;  %10587 = vmatpush3.bf16.msra.mxu0 %v11549_v21  ;;  %v3904_v56 = vpack.c.bf16 %v3718_v57, %v3718_v57  ;;  %v3906_v7 = vpack.c.bf16 %v3762_v48, %v3762_v48  ;;  %v11585_v53 = vld [vmem:[#allocation7 + $0x298] sm:$0xff]   ;;  %v11586_v21 = vld [vmem:[#allocation7 + $0x250] sm:$0xff]   ;;  %v11590_v48 = vld [vmem:[#allocation7 + $0x248] sm:$0xff]  }
 0x5e3   :  { %10566 = vmatprep.subr.bf16.mxu1 %v11550_v41  ;;  %10588 = vmatprep.subr.bf16.mxu0 %v11552_v49  ;;  %v3720_v26 = vpop.f32.mrf.mxu0  ;;  %v3764_v59 = vpop.f32.mrf.mxu1  ;;  %v11588_v41 = vld [vmem:[#allocation7 + $0x2d0] sm:$0xff]  }
 0x5e4   :  { %4928 = vmatprep.mubr.bf16.mxu1 %v3904_v56  ;;  %4968 = vmatprep.mubr.bf16.mxu0 %v3906_v7  ;;  %v11589_v57 = vld [vmem:[#allocation7 + $0x290] sm:$0xff]   ;;  %v11593_v56 = vld [vmem:[#allocation7 + $0x288] sm:$0xff]   ;;  %v11594_v7 = vld [vmem:[#allocation7 + $0x240] sm:$0xff]  }
 0x5e5   :  { %v3721_v63 = vpop.f32.mrf.mxu0  ;;  %v3765_v55 = vpop.f32.mrf.mxu1  ;;  %v11597_v26 = vld [vmem:[#allocation7 + $0x280] sm:$0xff]   ;;  %v11598_v59 = vld [vmem:[#allocation7 + $0x378] sm:$0xff]  }
 0x5e6   :  { %10567 = vmatpush3.bf16.msra.mxu1 %v11551_v8  ;;  %10589 = vmatpush3.bf16.msra.mxu0 %v11553_v47  ;;  %v11592_v8 = vld [vmem:[#allocation7 + $0x2c8] sm:$0xff]   ;;  %v11599_v55 = vld [vmem:[#allocation7 + $0x338] sm:$0xff]  }
 0x5e7   :  { %10568 = vmatprep.subr.bf16.mxu1 %v11554_v1  ;;  %10590 = vmatprep.subr.bf16.mxu0 %v11556_v24  ;;  %v11591_v47 = vld [vmem:[#allocation7 + $0x208] sm:$0xff]   ;;  %v11596_v1 = vld [vmem:[#allocation7 + $0x2c0] sm:$0xff]  }
 0x5e8   :  { %v11595_v24 = vld [vmem:[#allocation7 + $0x200] sm:$0xff]  }
 0x5ea   :  { %10569 = vmatpush3.bf16.msra.mxu1 %v11555_v31  ;;  %10591 = vmatpush3.bf16.msra.mxu0 %v11557_v40 }
 0x5eb   :  { %10570 = vmatprep.subr.bf16.mxu1 %v11558_v19  ;;  %10592 = vmatprep.subr.bf16.mxu0 %v11560_v6  ;;  %v11600_v19 = vld [vmem:[#allocation7 + $0x370] sm:$0xff]  }
 0x5ec   :  { %v11601_v6 = vld [vmem:[#allocation7 + $0x330] sm:$0xff]  }
 0x5ee   :  { %10571 = vmatpush3.bf16.msra.mxu1 %v11559_v52  ;;  %10593 = vmatpush3.bf16.msra.mxu0 %v11561_v37  ;;  %v11602_v52 = vld [vmem:[#allocation7 + $0x368] sm:$0xff]  }
 0x5ef   :  { %10572 = vmatprep.subr.bf16.mxu1 %v11562_v30  ;;  %10594 = vmatprep.subr.bf16.mxu0 %v11564_v51  ;;  %v14164_v54 = vpop.f32.mrf.mxu0  ;;  %v14166_v14 = vpop.f32.mrf.mxu1  ;;  %v11603_v37 = vld [vmem:[#allocation7 + $0x328] sm:$0xff]   ;;  %v11604_v30 = vld [vmem:[#allocation7 + $0x360] sm:$0xff]  }
 0x5f0   :  { %v3909_v63 = vpack.c.bf16 %v14166_v14, %v14166_v14  ;;  %v3907_v40 = vpack.c.bf16 %v14164_v54, %v14164_v54  ;;  %v11605_v51 = vld [vmem:[#allocation7 + $0x320] sm:$0xff]   ;;  %v11610_v54 = vld [vmem:[#allocation7 + $0x348] sm:$0xff]  }
 0x5f1   :  { %v3806_v20 = vpop.f32.mrf.mxu0  ;;  %v3850_v42 = vpop.f32.mrf.mxu1  ;;  %v11611_v14 = vld [vmem:[#allocation7 + $0x308] sm:$0xff]  }
 0x5f2   :  { %10573 = vmatpush3.bf16.msra.mxu1 %v11563_v58  ;;  %10595 = vmatpush3.bf16.msra.mxu0 %v11565_v62  ;;  %v3908_v60 = vpack.c.bf16 %v3806_v20, %v3806_v20  ;;  %v3910_v39 = vpack.c.bf16 %v3850_v42, %v3850_v42  ;;  %v11606_v58 = vld [vmem:[#allocation7 + $0x358] sm:$0xff]   ;;  %v11613_v20 = vld [vmem:[#allocation7 + $0x300] sm:$0xff]  }
 0x5f3   :  { %10602 = vmatprep.subr.bf16.mxu1 %v11566_v0  ;;  %10624 = vmatprep.subr.bf16.mxu0 %v11568_v5  ;;  %v3808_v12 = vpop.f32.mrf.mxu0  ;;  %v3852_v43 = vpop.f32.mrf.mxu1  ;;  %v11607_v62 = vld [vmem:[#allocation7 + $0x318] sm:$0xff]   ;;  %v11608_v0 = vld [vmem:[#allocation7 + $0x350] sm:$0xff]  }
 0x5f4   :  { %v11609_v5 = vld [vmem:[#allocation7 + $0x310] sm:$0xff]   ;;  %v11625_v12 = vld [vmem:[#allocation10 + $0x2ac] ss:$56 sps:$4 sm:$0xff]  }
 0x5f5   :  { %4929 = vmatmul.mubr.bf16.vlgmr.msra.gmra.mxu1 %v3903_v18  ;;  %4969 = vmatmul.mubr.bf16.vlgmr.msra.gmra.mxu0 %v3905_v17  ;;  %v3809_v32 = vpop.f32.mrf.mxu0  ;;  %v3853_v10 = vpop.f32.mrf.mxu1  ;;  %v11612_v17 = vld [vmem:[#allocation7 + $0x340] sm:$0xff]   ;;  %v11620_v43 = vld [vmem:[#allocation10 + $0x2a0] ss:$56 sps:$4 sm:$0xff]  }
 0x5f6   :  { %10603 = vmatpush3.bf16.msra.mxu1 %v11567_v13  ;;  %10625 = vmatpush3.bf16.msra.mxu0 %v11569_v2  ;;  %v11616_v13 = vld [vmem:[#allocation10 + $0x314] ss:$56 sps:$4 sm:$0xff]   ;;  %v11614_v18 = vld [vmem:[#allocation10 + $0x310] ss:$56 sps:$4 sm:$0xff]  }
 0x5f7   :  { %10604 = vmatprep.subr.bf16.mxu1 %v11570_v35  ;;  %10626 = vmatprep.subr.bf16.mxu0 %v11572_v34  ;;  %v11619_v2 = vld [vmem:[#allocation10 + $0x31c] ss:$56 sps:$4 sm:$0xff]   ;;  %v11617_v35 = vld [vmem:[#allocation10 + $0x318] ss:$56 sps:$4 sm:$0xff]  }
 0x5f8   :  { %5008 = vmatprep.mubr.bf16.mxu1 %v3908_v60  ;;  %5048 = vmatprep.mubr.bf16.mxu0 %v3910_v39  ;;  %v11622_v34 = vld [vmem:[#allocation10 + $0x2a4] ss:$56 sps:$4 sm:$0xff]   ;;  %v11623_v60 = vld [vmem:[#allocation10 + $0x2a8] ss:$56 sps:$4 sm:$0xff]   ;;  %v11628_v39 = vld [vmem:[#allocation10 + $0x234] ss:$56 sps:$4 sm:$0xff]  }
 0x5f9   :  { %v11631_v32 = vld [vmem:[#allocation10 + $0x23c] ss:$56 sps:$4 sm:$0xff]   ;;  %v11626_v10 = vld [vmem:[#allocation10 + $0x230] ss:$56 sps:$4 sm:$0xff]  }
 0x5fa   :  { %10605 = vmatpush3.bf16.msra.mxu1 %v11571_v16  ;;  %10627 = vmatpush3.bf16.msra.mxu0 %v11573_v4  ;;  %v11629_v16 = vld [vmem:[#allocation10 + $0x238] ss:$56 sps:$4 sm:$0xff]   ;;  %v11634_v4 = vld [vmem:[#allocation10 + $0x1c4] ss:$56 sps:$4 sm:$0xff]  }
 0x5fb   :  { %10606 = vmatprep.subr.bf16.mxu1 %v11574_v29  ;;  %10628 = vmatprep.subr.bf16.mxu0 %v11576_v61  ;;  %v11637_v29 = vld [vmem:[#allocation10 + $0x1cc] ss:$56 sps:$4 sm:$0xff]   ;;  %v11632_v61 = vld [vmem:[#allocation10 + $0x1c0] ss:$56 sps:$4 sm:$0xff]  }
 0x5fe   :  { %10607 = vmatpush3.bf16.msra.mxu1 %v11575_v44  ;;  %10629 = vmatpush3.bf16.msra.mxu0 %v11577_v45  ;;  %v11635_v44 = vld [vmem:[#allocation10 + $0x1c8] ss:$56 sps:$4 sm:$0xff]   ;;  %v11640_v45 = vld [vmem:[#allocation10 + $0x154] ss:$56 sps:$4 sm:$0xff]  }
 0x5ff   :  { %10608 = vmatprep.subr.bf16.mxu1 %v11578_v36  ;;  %10630 = vmatprep.subr.bf16.mxu0 %v11580_v11  ;;  %v14168_v22 = vpop.f32.mrf.mxu0  ;;  %v11643_v36 = vld [vmem:[#allocation10 + $0x15c] ss:$56 sps:$4 sm:$0xff]   ;;  %v11638_v11 = vld [vmem:[#allocation10 + $0x150] ss:$56 sps:$4 sm:$0xff]  }
 0x600   :  { %v3911_v42 = vpack.c.bf16 %v14168_v22, %v14168_v22  ;;  %v11647_v22 = vld [vmem:[#allocation10 + $0xe8] ss:$56 sps:$4 sm:$0xff]  }
 0x601   :  { %v3894_v50 = vpop.f32.mrf.mxu0 }
 0x602   :  { %10609 = vmatpush3.bf16.msra.mxu1 %v11579_v46  ;;  %10631 = vmatpush3.bf16.msra.mxu0 %v11581_v9  ;;  %v3912_v31 = vpack.c.bf16 %v3894_v50, %v3894_v50  ;;  %v11641_v46 = vld [vmem:[#allocation10 + $0x158] ss:$56 sps:$4 sm:$0xff]   ;;  %v11646_v9 = vld [vmem:[#allocation10 + $0xe4] ss:$56 sps:$4 sm:$0xff]   ;;  %v11652_v50 = vld [vmem:[#allocation10 + $0x74] ss:$56 sps:$4 sm:$0xff]  }
 0x603   :  { %10610 = vmatprep.subr.bf16.mxu1 %v11582_v23  ;;  %10632 = vmatprep.subr.bf16.mxu0 %v11584_v3  ;;  %v3896_v49 = vpop.f32.mrf.mxu0  ;;  %v11649_v23 = vld [vmem:[#allocation10 + $0xec] ss:$56 sps:$4 sm:$0xff]   ;;  %v11644_v3 = vld [vmem:[#allocation10 + $0xe0] ss:$56 sps:$4 sm:$0xff]  }
 0x604   :  { %v11661_v49 = vld [vmem:[#allocation10 + $0xc] ss:$56 sps:$4 sm:$0xff]  }
 0x605   :  { %v3897_v38 = vpop.f32.mrf.mxu0 }
 0x606   :  { %10611 = vmatpush3.bf16.msra.mxu1 %v11583_v33  ;;  %10633 = vmatpush3.bf16.msra.mxu0 %v11585_v53  ;;  %v11655_v33 = vld [vmem:[#allocation10 + $0x7c] ss:$56 sps:$4 sm:$0xff]   ;;  %v11650_v53 = vld [vmem:[#allocation10 + $0x70] ss:$56 sps:$4 sm:$0xff]   ;;  %v11656_v38 = vld [vmem:[#allocation10] ss:$56 sps:$4 sm:$0xff]  }
 0x607   :  { %10612 = vmatprep.subr.bf16.mxu1 %v11586_v21  ;;  %10634 = vmatprep.subr.bf16.mxu0 %v11588_v41  ;;  %v11653_v21 = vld [vmem:[#allocation10 + $0x78] ss:$56 sps:$4 sm:$0xff]   ;;  %v11658_v41 = vld [vmem:[#allocation10 + $0x4] ss:$56 sps:$4 sm:$0xff]  }
 0x60a   :  { %10613 = vmatpush3.bf16.msra.mxu1 %v11587_v25  ;;  %10635 = vmatpush3.bf16.msra.mxu0 %v11589_v57  ;;  %v11659_v25 = vld [vmem:[#allocation10 + $0x8] ss:$56 sps:$4 sm:$0xff]   ;;  %v11664_v57 = vld [vmem:[#allocation10 + $0x324] ss:$56 sps:$4 sm:$0xff]  }
 0x60b   :  { %10614 = vmatprep.subr.bf16.mxu1 %v11590_v48  ;;  %10636 = vmatprep.subr.bf16.mxu0 %v11592_v8  ;;  %v11667_v48 = vld [vmem:[#allocation10 + $0x32c] ss:$56 sps:$4 sm:$0xff]  }
 0x60e   :  { %10615 = vmatpush3.bf16.msra.mxu1 %v11591_v47  ;;  %10637 = vmatpush3.bf16.msra.mxu0 %v11593_v56  ;;  %v9872_v56 = vld [vmem:[%s14977_s8] ss:$0 sm:$0xff] }
 0x60f   :  { %10616 = vmatprep.subr.bf16.mxu1 %v11594_v7  ;;  %10638 = vmatprep.subr.bf16.mxu0 %v11596_v1 }
 0x612   :  { %10617 = vmatpush3.bf16.msra.mxu1 %v11595_v24  ;;  %10639 = vmatpush3.bf16.msra.mxu0 %v11597_v26 }
 0x613   :  { %10646 = vmatprep.subr.bf16.mxu1 %v11598_v59  ;;  %5777 = vmatprep.subr.bf16.mxu0 %v11616_v13 }
 0x615   :  { %5009 = vmatmul.mubr.bf16.vlgmr.msra.gmra.mxu1 %v3907_v40  ;;  %5049 = vmatmul.mubr.bf16.vlgmr.msra.gmra.mxu0 %v3909_v63 }
 0x616   :  { %10647 = vmatpush3.bf16.msra.mxu1 %v11599_v55  ;;  %5088 = vmatprep.mubr.bf16.mxu1 %v3912_v31 }
 0x617   :  { %10648 = vmatprep.subr.bf16.mxu1 %v11600_v19  ;;  %5809 = vmatprep.mubr.bf16.mxu0 %v15041_v27 }
 0x618   :  { %5778 = vmatpush1.bf16.msra.mxu0 %v11614_v18 }
 0x619   :  { %5779 = vmatprep.subr.bf16.mxu0 %v11622_v34 }
 0x61a   :  { %10649 = vmatpush3.bf16.msra.mxu1 %v11601_v6 }
 0x61b   :  { %10650 = vmatprep.subr.bf16.mxu1 %v11602_v52 }
 0x61c   :  { %5780 = vmatpush1.bf16.msra.mxu0 %v11620_v43 }
 0x61d   :  { %5781 = vmatprep.subr.bf16.mxu0 %v11628_v39 }
 0x61e   :  { %10651 = vmatpush3.bf16.msra.mxu1 %v11603_v37 }
 0x61f   :  { %10652 = vmatprep.subr.bf16.mxu1 %v11604_v30 }
 0x620   :  { %5782 = vmatpush1.bf16.msra.mxu0 %v11626_v10 }
 0x621   :  { %5783 = vmatprep.subr.bf16.mxu0 %v11634_v4 }
 0x622   :  { %10653 = vmatpush3.bf16.msra.mxu1 %v11605_v51 }
 0x623   :  { %10654 = vmatprep.subr.bf16.mxu1 %v11606_v58 }
 0x624   :  { %5784 = vmatpush1.bf16.msra.mxu0 %v11632_v61 }
 0x625   :  { %5785 = vmatprep.subr.bf16.mxu0 %v11640_v45  ;;  %v11662_v45 = vld [vmem:[#allocation10 + $0x320] ss:$56 sps:$4 sm:$0xff]  }
 0x626   :  { %10655 = vmatpush3.bf16.msra.mxu1 %v11607_v62 }
 0x627   :  { %10656 = vmatprep.subr.bf16.mxu1 %v11608_v0 }
 0x628   :  { %5786 = vmatpush1.bf16.msra.mxu0 %v11638_v11 }
 0x629   :  { %5787 = vmatprep.subr.bf16.mxu0 %v11646_v9  ;;  %v11673_v9 = vld [vmem:[#allocation10 + $0x2bc] ss:$56 sps:$4 sm:$0xff]  }
 0x62a   :  { %10657 = vmatpush3.bf16.msra.mxu1 %v11609_v5 }
 0x62b   :  { %10658 = vmatprep.subr.bf16.mxu1 %v11610_v54 }
 0x62c   :  { %5788 = vmatpush1.bf16.msra.mxu0 %v11644_v3  ;;  %v11671_v3 = vld [vmem:[#allocation10 + $0x2b8] ss:$56 sps:$4 sm:$0xff]  }
 0x62d   :  { %5789 = vmatprep.subr.bf16.mxu0 %v11652_v50  ;;  %v11679_v50 = vld [vmem:[#allocation10 + $0x24c] ss:$56 sps:$4 sm:$0xff]  }
 0x62e   :  { %10659 = vmatpush3.bf16.msra.mxu1 %v11611_v14 }
 0x62f   :  { %10660 = vmatprep.subr.bf16.mxu1 %v11612_v17 }
 0x630   :  { %5790 = vmatpush1.bf16.msra.mxu0 %v11650_v53  ;;  %v11677_v53 = vld [vmem:[#allocation10 + $0x248] ss:$56 sps:$4 sm:$0xff]  }
 0x631   :  { %5791 = vmatprep.subr.bf16.mxu0 %v11658_v41  ;;  %v11685_v41 = vld [vmem:[#allocation10 + $0x1dc] ss:$56 sps:$4 sm:$0xff]  }
 0x632   :  { %10661 = vmatpush3.bf16.msra.mxu1 %v11613_v20 }
 0x633   :  { %5818 = vmatprep.subr.bf16.mxu1 %v11619_v2 }
 0x634   :  { %5792 = vmatpush1.bf16.msra.mxu0 %v11656_v38  ;;  %v11683_v38 = vld [vmem:[#allocation10 + $0x1d8] ss:$56 sps:$4 sm:$0xff]  }
 0x635   :  { %5089 = vmatmul.mubr.bf16.vlgmr.msra.gmra.mxu1 %v3911_v42  ;;  %5859 = vmatprep.subr.bf16.mxu0 %v11664_v57  ;;  %v11691_v57 = vld [vmem:[#allocation10 + $0x16c] ss:$56 sps:$4 sm:$0xff]  }
 0x636   :  { %5850 = vmatprep.mubr.bf16.mxu1 %v15041_v27  ;;  %5819 = vmatpush1.bf16.msra.mxu1 %v11617_v35 }
 0x637   :  { %5820 = vmatprep.subr.bf16.mxu1 %v11625_v12 }
 0x63a   :  { %5821 = vmatpush1.bf16.msra.mxu1 %v11623_v60 }
 0x63b   :  { %5822 = vmatprep.subr.bf16.mxu1 %v11631_v32 }
 0x63e   :  { %5823 = vmatpush1.bf16.msra.mxu1 %v11629_v16 }
 0x63f   :  { %5824 = vmatprep.subr.bf16.mxu1 %v11637_v29 }
 0x642   :  { %5825 = vmatpush1.bf16.msra.mxu1 %v11635_v44 }
 0x643   :  { %5826 = vmatprep.subr.bf16.mxu1 %v11643_v36  ;;  %v11665_v36 = vld [vmem:[#allocation10 + $0x328] ss:$56 sps:$4 sm:$0xff]  }
 0x646   :  { %5827 = vmatpush1.bf16.msra.mxu1 %v11641_v46  ;;  %v11670_v46 = vld [vmem:[#allocation10 + $0x2b4] ss:$56 sps:$4 sm:$0xff]  }
 0x647   :  { %5828 = vmatprep.subr.bf16.mxu1 %v11649_v23  ;;  %v11668_v23 = vld [vmem:[#allocation10 + $0x2b0] ss:$56 sps:$4 sm:$0xff]  }
 0x64a   :  { %5829 = vmatpush1.bf16.msra.mxu1 %v11647_v22  ;;  %v11676_v22 = vld [vmem:[#allocation10 + $0x244] ss:$56 sps:$4 sm:$0xff]  }
 0x64b   :  { %5830 = vmatprep.subr.bf16.mxu1 %v11655_v33  ;;  %v11674_v33 = vld [vmem:[#allocation10 + $0x240] ss:$56 sps:$4 sm:$0xff]  }
 0x64e   :  { %5831 = vmatpush1.bf16.msra.mxu1 %v11653_v21  ;;  %v11682_v21 = vld [vmem:[#allocation10 + $0x1d4] ss:$56 sps:$4 sm:$0xff]  }
 0x64f   :  { %5832 = vmatprep.subr.bf16.mxu1 %v11661_v49  ;;  %v11680_v49 = vld [vmem:[#allocation10 + $0x1d0] ss:$56 sps:$4 sm:$0xff]  }
 0x652   :  { %5833 = vmatpush1.bf16.msra.mxu1 %v11659_v25  ;;  %v11688_v25 = vld [vmem:[#allocation10 + $0x164] ss:$56 sps:$4 sm:$0xff]  }
 0x653   :  { %5900 = vmatprep.subr.bf16.mxu1 %v11667_v48  ;;  %v11686_v48 = vld [vmem:[#allocation10 + $0x160] ss:$56 sps:$4 sm:$0xff]  }
 0x695   :  { %v10530_v8 = vpop.f32.mrf.mxu1  ;;  %v10552_v47 = vpop.f32.mrf.mxu0 }
 0x697   :  { %v10531_v7 = vpop.f32.mrf.mxu1  ;;  %v10553_v1 = vpop.f32.mrf.mxu0 }
 0x698   :  { %v10532_v24 = vadd.f32 %v10531_v7, %v10530_v8  ;;  %v10554_v26 = vadd.f32 %v10553_v1, %v10552_v47  ;;  %v11689_v8 = vld [vmem:[#allocation10 + $0x168] ss:$56 sps:$4 sm:$0xff]   ;;  %v11694_v47 = vld [vmem:[#allocation10 + $0xf4] ss:$56 sps:$4 sm:$0xff]   ;;  %v11695_v1 = vld [vmem:[#allocation10 + $0xf8] ss:$56 sps:$4 sm:$0xff]  }
 0x699   :  { %v10533_v59 = vpop.f32.mrf.mxu1  ;;  %v10555_v63 = vpop.f32.mrf.mxu0  ;;  %v11692_v7 = vld [vmem:[#allocation10 + $0xf0] ss:$56 sps:$4 sm:$0xff]  }
 0x69a   :  { %v4851_v55 = vadd.f32 %v10532_v24, %v9872_v56  ;;  %v11697_v56 = vld [vmem:[#allocation10 + $0xfc] ss:$56 sps:$4 sm:$0xff]   ;;  %v11698_v59 = vld [vmem:[#allocation10 + $0x80] ss:$56 sps:$4 sm:$0xff]  }
 0x69b   :  { %v10534_v31 = vpop.f32.mrf.mxu1  ;;  %v10556_v40 = vpop.f32.mrf.mxu0  ;;  %v11700_v24 = vld [vmem:[#allocation10 + $0x84] ss:$56 sps:$4 sm:$0xff]   ;;  %v11701_v63 = vld [vmem:[#allocation10 + $0x88] ss:$56 sps:$4 sm:$0xff]  }
 0x69c   :  { %v4891_v19 = vadd.f32 %v10554_v26, %v4851_v55  ;;  %v11703_v26 = vld [vmem:[#allocation10 + $0x8c] ss:$56 sps:$4 sm:$0xff]   ;;  %v11709_v31 = vld [vmem:[#allocation10 + $0x1c] ss:$56 sps:$4 sm:$0xff]   ;;  %v11704_v40 = vld [vmem:[#allocation10 + $0x10] ss:$56 sps:$4 sm:$0xff]  }
 0x69d   :  { %v11706_v55 = vld [vmem:[#allocation10 + $0x14] ss:$56 sps:$4 sm:$0xff]  }
 0x6b5   :  { %v10574_v6 = vpop.f32.mrf.mxu1  ;;  %v10596_v52 = vpop.f32.mrf.mxu0 }
 0x6b7   :  { %v10575_v37 = vpop.f32.mrf.mxu1  ;;  %v10597_v30 = vpop.f32.mrf.mxu0 }
 0x6b8   :  { %v10576_v18 = vadd.f32 %v10575_v37, %v10574_v6  ;;  %v10598_v34 = vadd.f32 %v10597_v30, %v10596_v52  ;;  %v11712_v6 = vld [vmem:[#allocation10 + $0x334] ss:$56 sps:$4 sm:$0xff]   ;;  %v11710_v37 = vld [vmem:[#allocation10 + $0x330] ss:$56 sps:$4 sm:$0xff]  }
 0x6b9   :  { %v10577_v51 = vpop.f32.mrf.mxu1  ;;  %v10599_v58 = vpop.f32.mrf.mxu0  ;;  %v11715_v52 = vld [vmem:[#allocation10 + $0x33c] ss:$56 sps:$4 sm:$0xff]   ;;  %v11713_v30 = vld [vmem:[#allocation10 + $0x338] ss:$56 sps:$4 sm:$0xff]  }
 0x6ba   :  { %v4931_v35 = vadd.f32 %v10576_v18, %v4891_v19  ;;  %v11707_v19 = vld [vmem:[#allocation10 + $0x18] ss:$56 sps:$4 sm:$0xff]   ;;  %v11718_v51 = vld [vmem:[#allocation10 + $0x2c4] ss:$56 sps:$4 sm:$0xff]   ;;  %v11736_v18 = vld [vmem:[#allocation10 + $0x174] ss:$56 sps:$4 sm:$0xff]  }
 0x6bb   :  { %v10578_v62 = vpop.f32.mrf.mxu1  ;;  %v10600_v0 = vpop.f32.mrf.mxu0  ;;  %v11721_v58 = vld [vmem:[#allocation10 + $0x2cc] ss:$56 sps:$4 sm:$0xff]  }
 0x6bc   :  { %v4971_v43 = vadd.f32 %v10598_v34, %v4931_v35  ;;  %v11716_v62 = vld [vmem:[#allocation10 + $0x2c0] ss:$56 sps:$4 sm:$0xff]   ;;  %v11739_v35 = vld [vmem:[#allocation10 + $0x17c] ss:$56 sps:$4 sm:$0xff]   ;;  %v11734_v34 = vld [vmem:[#allocation10 + $0x170] ss:$56 sps:$4 sm:$0xff]  }
 0x6bd   :  { %v11719_v0 = vld [vmem:[#allocation10 + $0x2c8] ss:$56 sps:$4 sm:$0xff]  }
 0x6d5   :  { %v10618_v5 = vpop.f32.mrf.mxu1  ;;  %v10640_v54 = vpop.f32.mrf.mxu0 }
 0x6d7   :  { %v10619_v14 = vpop.f32.mrf.mxu1  ;;  %v10641_v17 = vpop.f32.mrf.mxu0 }
 0x6d8   :  { %v10620_v12 = vadd.f32 %v10619_v14, %v10618_v5  ;;  %v10642_v39 = vadd.f32 %v10641_v17, %v10640_v54  ;;  %v11724_v5 = vld [vmem:[#allocation10 + $0x254] ss:$56 sps:$4 sm:$0xff]   ;;  %v11722_v14 = vld [vmem:[#allocation10 + $0x250] ss:$56 sps:$4 sm:$0xff]  }
 0x6d9   :  { %v10621_v20 = vpop.f32.mrf.mxu1  ;;  %v10643_v42 = vpop.f32.mrf.mxu0  ;;  %v11727_v54 = vld [vmem:[#allocation10 + $0x25c] ss:$56 sps:$4 sm:$0xff]   ;;  %v11725_v17 = vld [vmem:[#allocation10 + $0x258] ss:$56 sps:$4 sm:$0xff]  }
 0x6da   :  { %v5011_v60 = vadd.f32 %v10620_v12, %v4971_v43  ;;  %v11730_v20 = vld [vmem:[#allocation10 + $0x1e4] ss:$56 sps:$4 sm:$0xff]   ;;  %v11737_v12 = vld [vmem:[#allocation10 + $0x178] ss:$56 sps:$4 sm:$0xff]  }
 0x6db   :  { %v10622_v13 = vpop.f32.mrf.mxu1  ;;  %v10644_v2 = vpop.f32.mrf.mxu0  ;;  %v11733_v42 = vld [vmem:[#allocation10 + $0x1ec] ss:$56 sps:$4 sm:$0xff]  }
 0x6dc   :  { %v5051_v16 = vadd.f32 %v10642_v39, %v5011_v60  ;;  %v11728_v13 = vld [vmem:[#allocation10 + $0x1e0] ss:$56 sps:$4 sm:$0xff]   ;;  %v11742_v43 = vld [vmem:[#allocation10 + $0x104] ss:$56 sps:$4 sm:$0xff]  }
 0x6dd   :  { %v11731_v2 = vld [vmem:[#allocation10 + $0x1e8] ss:$56 sps:$4 sm:$0xff]   ;;  %v11745_v60 = vld [vmem:[#allocation10 + $0x10c] ss:$56 sps:$4 sm:$0xff]  }
 0x6de   :  { %v11740_v39 = vld [vmem:[#allocation10 + $0x100] ss:$56 sps:$4 sm:$0xff]  }
 0x6f5   :  { %v10662_v32 = vpop.f32.mrf.mxu1 }
 0x6f7   :  { %v10663_v10 = vpop.f32.mrf.mxu1 }
 0x6f8   :  { %v10664_v4 = vadd.f32 %v10663_v10, %v10662_v32  ;;  %v11743_v32 = vld [vmem:[#allocation10 + $0x108] ss:$56 sps:$4 sm:$0xff]   ;;  %v11748_v10 = vld [vmem:[#allocation10 + $0x94] ss:$56 sps:$4 sm:$0xff]  }
 0x6f9   :  { %v10665_v29 = vpop.f32.mrf.mxu1 }
 0x6fa   :  { %v5091_v61 = vadd.f32 %v10664_v4, %v5051_v16  ;;  %v11751_v16 = vld [vmem:[#allocation10 + $0x9c] ss:$56 sps:$4 sm:$0xff]   ;;  %v11746_v4 = vld [vmem:[#allocation10 + $0x90] ss:$56 sps:$4 sm:$0xff]  }
 0x6fb   :  { %v10666_v44 = vpop.f32.mrf.mxu1  ;;  %v11749_v29 = vld [vmem:[#allocation10 + $0x98] ss:$56 sps:$4 sm:$0xff]  }
 0x6fc   :  { %5096 = vst [vmem:[%s14988_s19] sm:$0xff] %v5091_v61  ;;  %v14184_v11 = vpack.c.bf16 %v5091_v61, %v5091_v61  ;;  %v11754_v61 = vld [vmem:[#allocation10 + $0x24] ss:$56 sps:$4 sm:$0xff]  }
 0x6fd   :  { %v11757_v44 = vld [vmem:[#allocation10 + $0x2c] ss:$56 sps:$4 sm:$0xff]  }
 0x6fe   :  { %5810 = vmatmul.mubr.bf16.vlgmr.msra.gmra.mxu0 %v14184_v11  ;;  %5851 = vmatmul.mubr.bf16.vlgmr.msra.gmra.mxu1 %v14184_v11 }
 0x6ff   :  { %5860 = vmatpush1.bf16.msra.mxu0 %v11662_v45  ;;  %5901 = vmatpush1.bf16.msra.mxu1 %v11665_v36  ;;  %v11752_v45 = vld [vmem:[#allocation10 + $0x20] ss:$56 sps:$4 sm:$0xff]  }
 0x700   :  { %5861 = vmatprep.subr.bf16.mxu0 %v11670_v46  ;;  %5902 = vmatprep.subr.bf16.mxu1 %v11673_v9  ;;  %v11755_v36 = vld [vmem:[#allocation10 + $0x28] ss:$56 sps:$4 sm:$0xff]   ;;  %v11760_v46 = vld [vmem:[#allocation10 + $0x344] ss:$56 sps:$4 sm:$0xff]  }
 0x701   :  { %5891 = vmatprep.mubr.bf16.mxu0 %v15041_v27  ;;  %5932 = vmatprep.mubr.bf16.mxu1 %v15041_v27  ;;  %v11758_v9 = vld [vmem:[#allocation10 + $0x340] ss:$56 sps:$4 sm:$0xff]  }
 0x703   :  { %5862 = vmatpush1.bf16.msra.mxu0 %v11668_v23  ;;  %5903 = vmatpush1.bf16.msra.mxu1 %v11671_v3  ;;  %v11763_v23 = vld [vmem:[#allocation10 + $0x2d4] ss:$56 sps:$4 sm:$0xff]   ;;  %v11761_v3 = vld [vmem:[#allocation10 + $0x2d0] ss:$56 sps:$4 sm:$0xff]  }
 0x704   :  { %5863 = vmatprep.subr.bf16.mxu0 %v11676_v22  ;;  %5904 = vmatprep.subr.bf16.mxu1 %v11679_v50  ;;  %v11766_v22 = vld [vmem:[#allocation10 + $0x264] ss:$56 sps:$4 sm:$0xff]   ;;  %v11764_v50 = vld [vmem:[#allocation10 + $0x260] ss:$56 sps:$4 sm:$0xff]  }
 0x707   :  { %5864 = vmatpush1.bf16.msra.mxu0 %v11674_v33  ;;  %5905 = vmatpush1.bf16.msra.mxu1 %v11677_v53  ;;  %v11769_v33 = vld [vmem:[#allocation10 + $0x1f4] ss:$56 sps:$4 sm:$0xff]   ;;  %v11767_v53 = vld [vmem:[#allocation10 + $0x1f0] ss:$56 sps:$4 sm:$0xff]  }
 0x708   :  { %5865 = vmatprep.subr.bf16.mxu0 %v11682_v21  ;;  %5906 = vmatprep.subr.bf16.mxu1 %v11685_v41  ;;  %v11772_v21 = vld [vmem:[#allocation10 + $0x184] ss:$56 sps:$4 sm:$0xff]   ;;  %v11770_v41 = vld [vmem:[#allocation10 + $0x180] ss:$56 sps:$4 sm:$0xff]  }
 0x70b   :  { %5866 = vmatpush1.bf16.msra.mxu0 %v11680_v49  ;;  %5907 = vmatpush1.bf16.msra.mxu1 %v11683_v38  ;;  %v11775_v49 = vld [vmem:[#allocation10 + $0x114] ss:$56 sps:$4 sm:$0xff]   ;;  %v11773_v38 = vld [vmem:[#allocation10 + $0x110] ss:$56 sps:$4 sm:$0xff]  }
 0x70c   :  { %5867 = vmatprep.subr.bf16.mxu0 %v11688_v25  ;;  %5908 = vmatprep.subr.bf16.mxu1 %v11691_v57  ;;  %v11778_v25 = vld [vmem:[#allocation10 + $0xa4] ss:$56 sps:$4 sm:$0xff]   ;;  %v11776_v57 = vld [vmem:[#allocation10 + $0xa0] ss:$56 sps:$4 sm:$0xff]  }
 0x70f   :  { %5868 = vmatpush1.bf16.msra.mxu0 %v11686_v48  ;;  %5909 = vmatpush1.bf16.msra.mxu1 %v11689_v8  ;;  %v11781_v48 = vld [vmem:[#allocation10 + $0x34] ss:$56 sps:$4 sm:$0xff]   ;;  %v11779_v8 = vld [vmem:[#allocation10 + $0x30] ss:$56 sps:$4 sm:$0xff]  }
 0x710   :  { %5869 = vmatprep.subr.bf16.mxu0 %v11694_v47  ;;  %5910 = vmatprep.subr.bf16.mxu1 %v11697_v56 }
 0x713   :  { %5870 = vmatpush1.bf16.msra.mxu0 %v11692_v7  ;;  %5911 = vmatpush1.bf16.msra.mxu1 %v11695_v1 }
 0x714   :  { %5871 = vmatprep.subr.bf16.mxu0 %v11700_v24  ;;  %5912 = vmatprep.subr.bf16.mxu1 %v11703_v26 }
 0x717   :  { %5872 = vmatpush1.bf16.msra.mxu0 %v11698_v59  ;;  %5913 = vmatpush1.bf16.msra.mxu1 %v11701_v63 }
 0x718   :  { %5873 = vmatprep.subr.bf16.mxu0 %v11706_v55  ;;  %5914 = vmatprep.subr.bf16.mxu1 %v11709_v31 }
 0x71b   :  { %5874 = vmatpush1.bf16.msra.mxu0 %v11704_v40  ;;  %5915 = vmatpush1.bf16.msra.mxu1 %v11707_v19  ;;  %v11786_v40 = vld [vmem:[#allocation13 + $0x1f8] ss:$36 sps:$4 sm:$0xff]  }
 0x71c   :  { %5941 = vmatprep.subr.bf16.mxu0 %v11712_v6  ;;  %5982 = vmatprep.subr.bf16.mxu1 %v11715_v52  ;;  %v11794_v19 = vld [vmem:[#allocation13 + $0x1b4] ss:$36 sps:$4 sm:$0xff]   ;;  %v11800_v52 = vld [vmem:[#allocation13 + $0x16c] ss:$36 sps:$4 sm:$0xff]  }
 0x71d   :  { %v11792_v6 = vld [vmem:[#allocation13 + $0x1b0] ss:$36 sps:$4 sm:$0xff]  }
 0x71e   :  { %5892 = vmatmul.mubr.bf16.vlgmr.msra.gmra.mxu0 %v14184_v11  ;;  %5933 = vmatmul.mubr.bf16.vlgmr.msra.gmra.mxu1 %v14184_v11 }
 0x71f   :  { %5942 = vmatpush1.bf16.msra.mxu0 %v11710_v37  ;;  %5983 = vmatpush1.bf16.msra.mxu1 %v11713_v30  ;;  %v11798_v37 = vld [vmem:[#allocation13 + $0x168] ss:$36 sps:$4 sm:$0xff]  }
 0x720   :  { %5943 = vmatprep.subr.bf16.mxu0 %v11718_v51  ;;  %5984 = vmatprep.subr.bf16.mxu1 %v11721_v58  ;;  %v11806_v30 = vld [vmem:[#allocation13 + $0x124] ss:$36 sps:$4 sm:$0xff]   ;;  %v11812_v58 = vld [vmem:[#allocation13 + $0xdc] ss:$36 sps:$4 sm:$0xff]  }
 0x721   :  { %5973 = vmatprep.mubr.bf16.mxu0 %v15041_v27  ;;  %6014 = vmatprep.mubr.bf16.mxu1 %v15041_v27  ;;  %v11804_v51 = vld [vmem:[#allocation13 + $0x120] ss:$36 sps:$4 sm:$0xff]  }
 0x723   :  { %5944 = vmatpush1.bf16.msra.mxu0 %v11716_v62  ;;  %5985 = vmatpush1.bf16.msra.mxu1 %v11719_v0  ;;  %v11810_v62 = vld [vmem:[#allocation13 + $0xd8] ss:$36 sps:$4 sm:$0xff]  }
 0x724   :  { %5945 = vmatprep.subr.bf16.mxu0 %v11724_v5  ;;  %5986 = vmatprep.subr.bf16.mxu1 %v11727_v54  ;;  %v11818_v0 = vld [vmem:[#allocation13 + $0x94] ss:$36 sps:$4 sm:$0xff]  }
 0x727   :  { %5946 = vmatpush1.bf16.msra.mxu0 %v11722_v14  ;;  %5987 = vmatpush1.bf16.msra.mxu1 %v11725_v17  ;;  %v11816_v14 = vld [vmem:[#allocation13 + $0x90] ss:$36 sps:$4 sm:$0xff]  }
 0x728   :  { %5947 = vmatprep.subr.bf16.mxu0 %v11730_v20  ;;  %5988 = vmatprep.subr.bf16.mxu1 %v11733_v42  ;;  %v11824_v20 = vld [vmem:[#allocation13 + $0x4c] ss:$36 sps:$4 sm:$0xff]  }
 0x72b   :  { %5948 = vmatpush1.bf16.msra.mxu0 %v11728_v13  ;;  %5989 = vmatpush1.bf16.msra.mxu1 %v11731_v2 }
 0x72c   :  { %5949 = vmatprep.subr.bf16.mxu0 %v11736_v18  ;;  %5990 = vmatprep.subr.bf16.mxu1 %v11739_v35 }
 0x72f   :  { %5950 = vmatpush1.bf16.msra.mxu0 %v11734_v34  ;;  %5991 = vmatpush1.bf16.msra.mxu1 %v11737_v12  ;;  %v11822_v34 = vld [vmem:[#allocation13 + $0x48] ss:$36 sps:$4 sm:$0xff]  }
 0x730   :  { %5951 = vmatprep.subr.bf16.mxu0 %v11742_v43  ;;  %5992 = vmatprep.subr.bf16.mxu1 %v11745_v60  ;;  %v11830_v12 = vld [vmem:[#allocation13 + $0x4] ss:$36 sps:$4 sm:$0xff]  }
 0x733   :  { %5952 = vmatpush1.bf16.msra.mxu0 %v11740_v39  ;;  %5993 = vmatpush1.bf16.msra.mxu1 %v11743_v32  ;;  %v11828_v39 = vld [vmem:[#allocation13] ss:$36 sps:$4 sm:$0xff]  }
 0x734   :  { %5953 = vmatprep.subr.bf16.mxu0 %v11748_v10  ;;  %5994 = vmatprep.subr.bf16.mxu1 %v11751_v16  ;;  %v11836_v32 = vld [vmem:[#allocation13 + $0x43c] ss:$36 sps:$4 sm:$0xff]   ;;  %v11842_v16 = vld [vmem:[#allocation13 + $0x3f4] ss:$36 sps:$4 sm:$0xff]  }
 0x735   :  { %v11834_v10 = vld [vmem:[#allocation13 + $0x438] ss:$36 sps:$4 sm:$0xff]  }
 0x737   :  { %5954 = vmatpush1.bf16.msra.mxu0 %v11746_v4  ;;  %5995 = vmatpush1.bf16.msra.mxu1 %v11749_v29  ;;  %v11840_v4 = vld [vmem:[#allocation13 + $0x3f0] ss:$36 sps:$4 sm:$0xff]  }
 0x738   :  { %5955 = vmatprep.subr.bf16.mxu0 %v11754_v61  ;;  %5996 = vmatprep.subr.bf16.mxu1 %v11757_v44  ;;  %v11848_v29 = vld [vmem:[#allocation13 + $0x3ac] ss:$36 sps:$4 sm:$0xff]   ;;  %v11854_v44 = vld [vmem:[#allocation13 + $0x364] ss:$36 sps:$4 sm:$0xff]  }
 0x739   :  { %v11846_v61 = vld [vmem:[#allocation13 + $0x3a8] ss:$36 sps:$4 sm:$0xff]  }
 0x73b   :  { %5956 = vmatpush1.bf16.msra.mxu0 %v11752_v45  ;;  %5997 = vmatpush1.bf16.msra.mxu1 %v11755_v36  ;;  %v11852_v45 = vld [vmem:[#allocation13 + $0x360] ss:$36 sps:$4 sm:$0xff]  }
 0x73c   :  { %6023 = vmatprep.subr.bf16.mxu0 %v11760_v46  ;;  %v11860_v36 = vld [vmem:[#allocation13 + $0x31c] ss:$36 sps:$4 sm:$0xff]  }
 0x73d   :  { %v11858_v46 = vld [vmem:[#allocation13 + $0x318] ss:$36 sps:$4 sm:$0xff]  }
 0x73e   :  { %5974 = vmatmul.mubr.bf16.vlgmr.msra.gmra.mxu0 %v14184_v11  ;;  %6015 = vmatmul.mubr.bf16.vlgmr.msra.gmra.mxu1 %v14184_v11 }
 0x73f   :  { %6024 = vmatpush1.bf16.msra.mxu0 %v11758_v9  ;;  %6055 = vmatprep.mubr.bf16.mxu0 %v15041_v27 }
 0x740   :  { %6025 = vmatprep.subr.bf16.mxu0 %v11763_v23  ;;  %6152 = vmatprep.mubr.bf16.mxu1 %v15041_v27 }
 0x743   :  { %6026 = vmatpush1.bf16.msra.mxu0 %v11761_v3 }
 0x744   :  { %6027 = vmatprep.subr.bf16.mxu0 %v11766_v22 }
 0x747   :  { %6028 = vmatpush1.bf16.msra.mxu0 %v11764_v50 }
 0x748   :  { %6029 = vmatprep.subr.bf16.mxu0 %v11769_v33 }
 0x74b   :  { %6030 = vmatpush1.bf16.msra.mxu0 %v11767_v53 }
 0x74c   :  { %6031 = vmatprep.subr.bf16.mxu0 %v11772_v21 }
 0x74f   :  { %6032 = vmatpush1.bf16.msra.mxu0 %v11770_v41 }
 0x750   :  { %6033 = vmatprep.subr.bf16.mxu0 %v11775_v49 }
 0x753   :  { %6034 = vmatpush1.bf16.msra.mxu0 %v11773_v38 }
 0x754   :  { %6035 = vmatprep.subr.bf16.mxu0 %v11778_v25 }
 0x757   :  { %6036 = vmatpush1.bf16.msra.mxu0 %v11776_v57 }
 0x758   :  { %6037 = vmatprep.subr.bf16.mxu0 %v11781_v48 }
 0x75b   :  { %6038 = vmatpush1.bf16.msra.mxu0 %v11779_v8 }
 0x75e   :  { %6056 = vmatmul.mubr.bf16.vlgmr.msra.gmra.mxu0 %v14184_v11  ;;  %v11788_v11 = vld [vmem:[#allocation13 + $0x1fc] ss:$36 sps:$4 sm:$0xff]  }
 0x75f   :  { %7123 = vmatprep.subr.bf16.mxu0 %v11788_v11  ;;  %v11797_v11 = vld [vmem:[#allocation13 + $0x1bc] ss:$36 sps:$4 sm:$0xff]  }
 0x760   :  { %7124 = vmatpush1.bf16.msra.mxu0 %v11786_v40  ;;  %v11789_v40 = vld [vmem:[#allocation13 + $0x200] ss:$36 sps:$4 sm:$0xff]  }
 0x761   :  { %7125 = vmatprep.subr.bf16.mxu0 %v11794_v19  ;;  %v11795_v19 = vld [vmem:[#allocation13 + $0x1b8] ss:$36 sps:$4 sm:$0xff]  }
 0x764   :  { %7126 = vmatpush1.bf16.msra.mxu0 %v11792_v6  ;;  %v11803_v6 = vld [vmem:[#allocation13 + $0x174] ss:$36 sps:$4 sm:$0xff]  }
 0x765   :  { %7127 = vmatprep.subr.bf16.mxu0 %v11800_v52  ;;  %v11783_v52 = vld [vmem:[#allocation12 + $0x8] sm:$0xff]  }
 0x768   :  { %7128 = vmatpush1.bf16.msra.mxu0 %v11798_v37  ;;  %v11821_v37 = vld [vmem:[#allocation13 + $0x9c] ss:$36 sps:$4 sm:$0xff]  }
 0x769   :  { %7129 = vmatprep.subr.bf16.mxu0 %v11806_v30  ;;  %v11819_v30 = vld [vmem:[#allocation13 + $0x98] ss:$36 sps:$4 sm:$0xff]  }
 0x76c   :  { %7130 = vmatpush1.bf16.msra.mxu0 %v11804_v51  ;;  %v11827_v51 = vld [vmem:[#allocation13 + $0x54] ss:$36 sps:$4 sm:$0xff]  }
 0x76d   :  { %7131 = vmatprep.subr.bf16.mxu0 %v11812_v58  ;;  %v11785_v58 = vld [vmem:[#allocation12 + $0x18] ss:$0 sps:$4 sm:$0xff]  }
 0x770   :  { %7132 = vmatpush1.bf16.msra.mxu0 %v11810_v62  ;;  %v11825_v62 = vld [vmem:[#allocation13 + $0x50] ss:$36 sps:$4 sm:$0xff]  }
 0x771   :  { %7133 = vmatprep.subr.bf16.mxu0 %v11818_v0  ;;  %v11833_v0 = vld [vmem:[#allocation13 + $0xc] ss:$36 sps:$4 sm:$0xff]  }
 0x774   :  { %7134 = vmatpush1.bf16.msra.mxu0 %v11816_v14  ;;  %v11837_v14 = vld [vmem:[#allocation13 + $0x440] ss:$36 sps:$4 sm:$0xff]  }
 0x775   :  { %7135 = vmatprep.subr.bf16.mxu0 %v11824_v20  ;;  %v11843_v20 = vld [vmem:[#allocation13 + $0x3f8] ss:$36 sps:$4 sm:$0xff]  }
 0x778   :  { %7136 = vmatpush1.bf16.msra.mxu0 %v11822_v34  ;;  %v11861_v34 = vld [vmem:[#allocation13 + $0x320] ss:$36 sps:$4 sm:$0xff]  }
 0x779   :  { %7137 = vmatprep.subr.bf16.mxu0 %v11830_v12  ;;  %v11866_v12 = vld [vmem:[#allocation13 + $0x2d4] ss:$36 sps:$4 sm:$0xff]  }
 0x77c   :  { %7138 = vmatpush1.bf16.msra.mxu0 %v11828_v39  ;;  %v11867_v39 = vld [vmem:[#allocation13 + $0x2d8] ss:$36 sps:$4 sm:$0xff]  }
 0x77d   :  { %7139 = vmatprep.subr.bf16.mxu0 %v11836_v32  ;;  %v11872_v32 = vld [vmem:[#allocation13 + $0x28c] ss:$36 sps:$4 sm:$0xff]  }
 0x780   :  { %7140 = vmatpush2.bf16.msra.mxu0 %v11834_v10  ;;  %v11875_v10 = vld [vmem:[#allocation13 + $0x294] ss:$36 sps:$4 sm:$0xff]  }
 0x781   :  { %7141 = vmatprep.subr.bf16.mxu0 %v11842_v16  ;;  %v11870_v16 = vld [vmem:[#allocation13 + $0x288] ss:$36 sps:$4 sm:$0xff]  }
 0x784   :  { %7142 = vmatpush2.bf16.msra.mxu0 %v11840_v4  ;;  %v11873_v4 = vld [vmem:[#allocation13 + $0x290] ss:$36 sps:$4 sm:$0xff]  }
 0x785   :  { %7143 = vmatprep.subr.bf16.mxu0 %v11848_v29  ;;  %v11878_v29 = vld [vmem:[#allocation13 + $0x244] ss:$36 sps:$4 sm:$0xff]  }
 0x788   :  { %7144 = vmatpush2.bf16.msra.mxu0 %v11846_v61  ;;  %v11881_v61 = vld [vmem:[#allocation13 + $0x24c] ss:$36 sps:$4 sm:$0xff]  }
 0x789   :  { %7145 = vmatprep.subr.bf16.mxu0 %v11854_v44  ;;  %v11876_v44 = vld [vmem:[#allocation13 + $0x240] ss:$36 sps:$4 sm:$0xff]  }
 0x78c   :  { %7146 = vmatpush2.bf16.msra.mxu0 %v11852_v45  ;;  %v11879_v45 = vld [vmem:[#allocation13 + $0x248] ss:$36 sps:$4 sm:$0xff]  }
 0x78d   :  { %7147 = vmatprep.subr.bf16.mxu0 %v11860_v36  ;;  %v11884_v36 = vld [vmem:[#allocation13 + $0x20c] ss:$36 sps:$4 sm:$0xff]  }
 0x790   :  { %7148 = vmatpush2.bf16.msra.mxu0 %v11858_v46  ;;  %v11887_v46 = vld [vmem:[#allocation13 + $0x214] ss:$36 sps:$4 sm:$0xff]  }
 0x791   :  { %7149 = vmatprep.subr.bf16.mxu0 %v11866_v12  ;;  %v11905_v12 = vld [vmem:[#allocation13 + $0x13c] ss:$36 sps:$4 sm:$0xff]  }
 0x7be   :  { %v14199_v47 = vpop.f32.mrf.mxu0  ;;  %v14201_v56 = vpop.f32.mrf.mxu1 }
 0x7bf   :  { %v6064_v7 = vpack.c.bf16 %v14201_v56, %v14199_v47  ;;  %v11807_v47 = vld [vmem:[#allocation13 + $0x128] ss:$36 sps:$4 sm:$0xff]  }
 0x7c0   :  { %v14205_v1 = vpop.f32.mrf.mxu0  ;;  %v14207_v24 = vpop.f32.mrf.mxu1  ;;  %v11815_v56 = vld [vmem:[#allocation13 + $0xe4] ss:$36 sps:$4 sm:$0xff]  }
 0x7c1   :  { %v6065_v26 = vpack.c.bf16 %v14207_v24, %v14205_v1  ;;  %v11801_v1 = vld [vmem:[#allocation13 + $0x170] ss:$36 sps:$4 sm:$0xff]  }
 0x7c2   :  { %v5815_v59 = vpop.f32.mrf.mxu0  ;;  %v5856_v63 = vpop.f32.mrf.mxu1  ;;  %v11809_v24 = vld [vmem:[#allocation13 + $0x12c] ss:$36 sps:$4 sm:$0xff]  }
 0x7c4   :  { %v5816_v55 = vpop.f32.mrf.mxu0  ;;  %v5857_v31 = vpop.f32.mrf.mxu1 }
 0x7c5   :  { %v11791_v55 = vld [vmem:[#allocation13 + $0x204] ss:$36 sps:$4 sm:$0xff]  }
 0x7c6   :  { %v11782_v31 = vld [vmem:[#allocation12] sm:$0xff]  }
 0x7de   :  { %v14211_v5 = vpop.f32.mrf.mxu0  ;;  %v14213_v54 = vpop.f32.mrf.mxu1 }
 0x7df   :  { %v6066_v17 = vpack.c.bf16 %v14213_v54, %v14211_v5  ;;  %v11831_v5 = vld [vmem:[#allocation13 + $0x8] ss:$36 sps:$4 sm:$0xff]  }
 0x7e0   :  { %v5895_v42 = vpop.f32.mrf.mxu0  ;;  %v5936_v13 = vpop.f32.mrf.mxu1  ;;  %v11839_v54 = vld [vmem:[#allocation13 + $0x444] ss:$36 sps:$4 sm:$0xff]  }
 0x7e1   :  { %v6067_v2 = vpack.c.bf16 %v5936_v13, %v5895_v42  ;;  %v11851_v42 = vld [vmem:[#allocation13 + $0x3b4] ss:$36 sps:$4 sm:$0xff]  }
 0x7e2   :  { %v5897_v18 = vpop.f32.mrf.mxu0  ;;  %v5938_v35 = vpop.f32.mrf.mxu1  ;;  %v11849_v13 = vld [vmem:[#allocation13 + $0x3b0] ss:$36 sps:$4 sm:$0xff]  }
 0x7e3   :  { %v11855_v18 = vld [vmem:[#allocation13 + $0x368] ss:$36 sps:$4 sm:$0xff]  }
 0x7e4   :  { %v5898_v43 = vpop.f32.mrf.mxu0  ;;  %v5939_v60 = vpop.f32.mrf.mxu1  ;;  %v11863_v35 = vld [vmem:[#allocation13 + $0x324] ss:$36 sps:$4 sm:$0xff]  }
 0x7e5   :  { %v11869_v43 = vld [vmem:[#allocation13 + $0x2dc] ss:$36 sps:$4 sm:$0xff]   ;;  %v11864_v60 = vld [vmem:[#allocation13 + $0x2d0] ss:$36 sps:$4 sm:$0xff]  }
 0x7e6   :  { %7150 = vmatpush2.bf16.msra.mxu0 %v11864_v60 }
 0x7e7   :  { %7151 = vmatprep.subr.bf16.mxu0 %v11872_v32 }
 0x7ea   :  { %7152 = vmatpush2.bf16.msra.mxu0 %v11870_v16 }
 0x7eb   :  { %7153 = vmatprep.subr.bf16.mxu0 %v11878_v29  ;;  %v11903_v29 = vld [vmem:[#allocation13 + $0x138] ss:$36 sps:$4 sm:$0xff]  }
 0x7ee   :  { %7154 = vmatpush2.bf16.msra.mxu0 %v11876_v44  ;;  %v11908_v44 = vld [vmem:[#allocation13 + $0xec] ss:$36 sps:$4 sm:$0xff]  }
 0x7ef   :  { %7265 = vmatprep.subr.bf16.mxu0 %v11884_v36 }
 0x7fe   :  { %v5975_v9 = vpop.f32.mrf.mxu0  ;;  %v6016_v23 = vpop.f32.mrf.mxu1 }
 0x7ff   :  { %v6068_v63 = vpack.c.bf16 %v6016_v23, %v5975_v9  ;;  %v6072_v9 = vld [vmem:[%s14980_s11] sm:$0x3] }
 0x800   :  { %v5977_v3 = vpop.f32.mrf.mxu0  ;;  %v6018_v22 = vpop.f32.mrf.mxu1 }
 0x801   :  { %v6069_v48 = vpack.c.bf16 %v6018_v22, %v5977_v3  ;;  %v14236_v3 = vrot.slane %v6072_v9, %v15056_v28  ;;  %v14239_v22 = vrot.slane %v6072_v9, %v15055_v15 }
 0x802   :  { %v5979_v50 = vpop.f32.mrf.mxu0  ;;  %v6020_v33 = vpop.f32.mrf.mxu1 }
 0x804   :  { %v5980_v53 = vpop.f32.mrf.mxu0  ;;  %v6021_v21 = vpop.f32.mrf.mxu1 }
 0x81e   :  { %v6057_v41 = vpop.f32.mrf.mxu0 }
 0x81f   :  { %v6070_v49 = vpack.c.bf16 %v6057_v41, %v6057_v41 }
 0x820   :  { %v6059_v38 = vpop.f32.mrf.mxu0 }
 0x821   :  { %v6071_v25 = vpack.c.bf16 %v6059_v38, %v6059_v38  ;;  %v6115_v8 = vsel %vm3587_vm3, %v6070_v49, 0 }
 0x822   :  { %v6061_v57 = vpop.f32.mrf.mxu0 }
 0x823   :  { %10101 = vmatprep.subr.msk.bf16.mxu1 %vm3587_vm3, %v6071_v25 }
 0x824   :  { %v6062_v59 = vpop.f32.mrf.mxu0  ;;  %6129 = vmatpush1.bf16.msra.mxu1 %v6115_v8 }
 0x825   :  { %6130 = vmatprep.subr.bf16.mxu1 %v6069_v48 }
 0x828   :  { %6131 = vmatpush1.bf16.msra.mxu1 %v6068_v63 }
 0x829   :  { %6132 = vmatprep.subr.bf16.mxu1 %v6067_v2  ;;  %v11857_v2 = vld [vmem:[#allocation13 + $0x36c] ss:$36 sps:$4 sm:$0xff]  }
 0x82c   :  { %6133 = vmatpush1.bf16.msra.mxu1 %v6066_v17  ;;  %v11845_v17 = vld [vmem:[#allocation13 + $0x3fc] ss:$36 sps:$4 sm:$0xff]  }
 0x82d   :  { %6134 = vmatprep.subr.bf16.mxu1 %v6065_v26  ;;  %v11813_v26 = vld [vmem:[#allocation13 + $0xe0] ss:$36 sps:$4 sm:$0xff]  }
 0x830   :  { %6135 = vmatpush1.bf16.msra.mxu1 %v6064_v7  ;;  %v11784_v7 = vld [vmem:[#allocation12 + $0x10] sm:$0xff]  }
 0x831   :  { %7194 = vmatprep.subr.bf16.mxu1 %v11791_v55 }
 0x833   :  { %10102 = vmatmul.mubr.msk.bf16.vlgmr.msra.gmra.mxu1 %vm3583_vm4, %v11782_v31 }
 0x834   :  { %6162 = vmatprep.mubr.bf16.mxu1 %v15041_v27  ;;  %7195 = vmatpush1.bf16.msra.mxu1 %v11789_v40 }
 0x835   :  { %7196 = vmatprep.subr.bf16.mxu1 %v11797_v11  ;;  %v11882_v11 = vld [vmem:[#allocation13 + $0x208] ss:$36 sps:$4 sm:$0xff]  }
 0x838   :  { %7197 = vmatpush1.bf16.msra.mxu1 %v11795_v19  ;;  %v11885_v19 = vld [vmem:[#allocation13 + $0x210] ss:$36 sps:$4 sm:$0xff]  }
 0x839   :  { %7198 = vmatprep.subr.bf16.mxu1 %v11803_v6 }
 0x83b   :  { %10103 = vmatmul.mubr.msk.bf16.gmra.mxu1 %vm3583_vm4, %v11783_v52 }
 0x83c   :  { %6172 = vmatprep.mubr.bf16.mxu1 %v15041_v27  ;;  %7199 = vmatpush1.bf16.msra.mxu1 %v11801_v1  ;;  %v11890_v1 = vld [vmem:[#allocation13 + $0x1c4] ss:$36 sps:$4 sm:$0xff]  }
 0x83d   :  { %7200 = vmatprep.subr.bf16.mxu1 %v11809_v24  ;;  %v11893_v24 = vld [vmem:[#allocation13 + $0x1cc] ss:$36 sps:$4 sm:$0xff]  }
 0x840   :  { %7201 = vmatpush1.bf16.msra.mxu1 %v11807_v47 }
 0x841   :  { %7202 = vmatprep.subr.bf16.mxu1 %v11815_v56 }
 0x843   :  { %10104 = vmatmul.mubr.msk.bf16.gmra.mxu1 %vm3583_vm4, %v11784_v7 }
 0x844   :  { %6182 = vmatprep.mubr.bf16.mxu1 %v15041_v27  ;;  %7203 = vmatpush1.bf16.msra.mxu1 %v11813_v26 }
 0x845   :  { %7204 = vmatprep.subr.bf16.mxu1 %v11821_v37 }
 0x848   :  { %7205 = vmatpush1.bf16.msra.mxu1 %v11819_v30 }
 0x849   :  { %7206 = vmatprep.subr.bf16.mxu1 %v11827_v51  ;;  %v11888_v51 = vld [vmem:[#allocation13 + $0x1c0] ss:$36 sps:$4 sm:$0xff]  }
 0x84b   :  { %10105 = vmatmul.mubr.msk.bf16.gmra.mxu1 %vm3583_vm4, %v11785_v58  ;;  %v11891_v58 = vld [vmem:[#allocation13 + $0x1c8] ss:$36 sps:$4 sm:$0xff]  }
 0x84c   :  { %7207 = vmatpush1.bf16.msra.mxu1 %v11825_v62 }
 0x84d   :  { %7208 = vmatprep.subr.bf16.mxu1 %v11833_v0  ;;  %v11896_v0 = vld [vmem:[#allocation13 + $0x17c] ss:$36 sps:$4 sm:$0xff]  }
 0x850   :  { %7209 = vmatpush1.bf16.msra.mxu1 %v11831_v5  ;;  %v11899_v5 = vld [vmem:[#allocation13 + $0x184] ss:$36 sps:$4 sm:$0xff]  }
 0x851   :  { %7210 = vmatprep.subr.bf16.mxu1 %v11839_v54 }
 0x854   :  { %7211 = vmatpush2.bf16.msra.mxu1 %v11837_v14 }
 0x855   :  { %7212 = vmatprep.subr.bf16.mxu1 %v11845_v17 }
 0x858   :  { %7213 = vmatpush2.bf16.msra.mxu1 %v11843_v20 }
 0x859   :  { %7214 = vmatprep.subr.bf16.mxu1 %v11851_v42 }
 0x85c   :  { %7215 = vmatpush2.bf16.msra.mxu1 %v11849_v13 }
 0x85d   :  { %7216 = vmatprep.subr.bf16.mxu1 %v11857_v2  ;;  %v11894_v2 = vld [vmem:[#allocation13 + $0x178] ss:$36 sps:$4 sm:$0xff]  }
 0x860   :  { %7217 = vmatpush2.bf16.msra.mxu1 %v11855_v18  ;;  %v11897_v18 = vld [vmem:[#allocation13 + $0x180] ss:$36 sps:$4 sm:$0xff]  }
 0x861   :  { %7218 = vmatprep.subr.bf16.mxu1 %v11863_v35 }
 0x864   :  { %7219 = vmatpush2.bf16.msra.mxu1 %v11861_v34  ;;  %v11902_v34 = vld [vmem:[#allocation13 + $0x134] ss:$36 sps:$4 sm:$0xff]  }
 0x865   :  { %7220 = vmatprep.subr.bf16.mxu1 %v11869_v43 }
 0x868   :  { %7221 = vmatpush2.bf16.msra.mxu1 %v11867_v39 }
 0x869   :  { %7222 = vmatprep.subr.bf16.mxu1 %v11875_v10 }
 0x86c   :  { %7223 = vmatpush2.bf16.msra.mxu1 %v11873_v4  ;;  %v11900_v4 = vld [vmem:[#allocation13 + $0x130] ss:$36 sps:$4 sm:$0xff]  }
 0x86d   :  { %7224 = vmatprep.subr.bf16.mxu1 %v11881_v61 }
 0x870   :  { %7225 = vmatpush2.bf16.msra.mxu1 %v11879_v45  ;;  %v11911_v45 = vld [vmem:[#allocation13 + $0xf4] ss:$36 sps:$4 sm:$0xff]  }
 0x871   :  { %7336 = vmatprep.subr.bf16.mxu1 %v11887_v46 }
 0x8f3   :  { %v6154_v23 = vpop.f32.mrf.mxu1 }
 0x8f4   :  { %v6155_v41 = vadd.f32 %v6154_v23, %v14239_v22 }
 0x8f5   :  { %v6156_v50 = vpop.f32.mrf.mxu1 }
 0x8f6   :  { %v6157_v53 = vadd.f32 %v6156_v50, %v14236_v3  ;;  %v6191_v59 = vmax.f32 %v6155_v41, 0.0  ;;  %v11914_v41 = vld [vmem:[#allocation13 + $0xa4] ss:$36 sps:$4 sm:$0xff]  }
 0x8f7   :  { %v6158_v33 = vpop.f32.mrf.mxu1 }
 0x8f8   :  { %v6159_v21 = vadd.f32 %v6158_v33, %v14239_v22  ;;  %v6192_v48 = vmax.f32 %v6157_v53, 0.0  ;;  %v11906_v33 = vld [vmem:[#allocation13 + $0xe8] ss:$36 sps:$4 sm:$0xff]   ;;  %v11909_v53 = vld [vmem:[#allocation13 + $0xf0] ss:$36 sps:$4 sm:$0xff]  }
 0x8f9   :  { %v6160_v49 = vpop.f32.mrf.mxu1 }
 0x8fa   :  { %v6161_v38 = vadd.f32 %v6160_v49, %v14236_v3  ;;  %v6193_v25 = vmax.f32 %v6159_v21, 0.0  ;;  %v11917_v49 = vld [vmem:[#allocation13 + $0xac] ss:$36 sps:$4 sm:$0xff]  }
 0x8fb   :  { %v6164_v57 = vpop.f32.mrf.mxu1 }
 0x8fc   :  { %v6194_v8 = vmax.f32 %v6161_v38, 0.0  ;;  %v6165_v63 = vadd.f32 %v6164_v57, %v14239_v22  ;;  %v14249_v6 = vpack.c.bf16 %v6193_v25, %v6191_v59  ;;  %v11920_v59 = vld [vmem:[#allocation13 + $0x5c] ss:$36 sps:$4 sm:$0xff]  }
 0x8fd   :  { %v6166_v55 = vpop.f32.mrf.mxu1 }
 0x8fe   :  { %v14246_v31 = vpack.c.bf16 %v6194_v8, %v6192_v48  ;;  %v6167_v40 = vadd.f32 %v6166_v55, %v14236_v3  ;;  %v6195_v56 = vmax.f32 %v6165_v63, 0.0  ;;  %v11915_v8 = vld [vmem:[#allocation13 + $0xa8] ss:$36 sps:$4 sm:$0xff]  }
 0x8ff   :  { %v6168_v52 = vpop.f32.mrf.mxu1  ;;  %v11923_v63 = vld [vmem:[#allocation13 + $0x64] ss:$36 sps:$4 sm:$0xff]  }
 0x900   :  { %v6169_v47 = vadd.f32 %v6168_v52, %v14239_v22  ;;  %7155 = vmatprep.mubr.bf16.mxu0 %v14246_v31  ;;  %7226 = vmatprep.mubr.bf16.mxu1 %v14246_v31  ;;  %v6196_v26 = vmax.f32 %v6167_v40, 0.0  ;;  %v11918_v40 = vld [vmem:[#allocation13 + $0x58] ss:$36 sps:$4 sm:$0xff]  }
 0x901   :  { %v6170_v7 = vpop.f32.mrf.mxu1  ;;  %7156 = vmatmul.mubr.bf16.vlgmr.msra.gmra.mxu0 %v14249_v6  ;;  %7227 = vmatmul.mubr.bf16.vlgmr.msra.gmra.mxu1 %v14249_v6  ;;  %v11929_v52 = vld [vmem:[#allocation13 + $0x1c] ss:$36 sps:$4 sm:$0xff]  }
 0x902   :  { %v6197_v37 = vmax.f32 %v6169_v47, 0.0  ;;  %v6171_v30 = vadd.f32 %v6170_v7, %v14236_v3  ;;  %7266 = vmatpush1.bf16.msra.mxu0 %v11882_v11  ;;  %7337 = vmatpush1.bf16.msra.mxu1 %v11885_v19  ;;  %v11921_v11 = vld [vmem:[#allocation13 + $0x60] ss:$36 sps:$4 sm:$0xff]   ;;  %v11926_v19 = vld [vmem:[#allocation13 + $0x14] ss:$36 sps:$4 sm:$0xff]  }
 0x903   :  { %v6174_v62 = vpop.f32.mrf.mxu1  ;;  %7267 = vmatprep.subr.bf16.mxu0 %v11890_v1  ;;  %7338 = vmatprep.subr.bf16.mxu1 %v11893_v24  ;;  %v11924_v1 = vld [vmem:[#allocation13 + $0x10] ss:$36 sps:$4 sm:$0xff]   ;;  %v11927_v24 = vld [vmem:[#allocation13 + $0x18] ss:$36 sps:$4 sm:$0xff]   ;;  %v11930_v7 = vld [vmem:[#allocation13 + $0x448] ss:$36 sps:$4 sm:$0xff]  }
 0x904   :  { %v6198_v54 = vmax.f32 %v6171_v30, 0.0  ;;  %v14257_v14 = vpack.c.bf16 %v6197_v37, %v6195_v56  ;;  %v6175_v17 = vadd.f32 %v6174_v62, %v14239_v22  ;;  %v11932_v47 = vld [vmem:[#allocation13 + $0x44c] ss:$36 sps:$4 sm:$0xff]   ;;  %v11935_v56 = vld [vmem:[#allocation13 + $0x454] ss:$36 sps:$4 sm:$0xff]  }
 0x905   :  { %v6176_v20 = vpop.f32.mrf.mxu1  ;;  %v11938_v37 = vld [vmem:[#allocation13 + $0x404] ss:$36 sps:$4 sm:$0xff]   ;;  %v11941_v30 = vld [vmem:[#allocation13 + $0x40c] ss:$36 sps:$4 sm:$0xff]   ;;  %v11944_v62 = vld [vmem:[#allocation13 + $0x3bc] ss:$36 sps:$4 sm:$0xff]  }
 0x906   :  { %v14260_v42 = vpack.c.bf16 %v6198_v54, %v6196_v26  ;;  %v6177_v13 = vadd.f32 %v6176_v20, %v14236_v3  ;;  %7268 = vmatpush1.bf16.msra.mxu0 %v11888_v51  ;;  %7339 = vmatpush1.bf16.msra.mxu1 %v11891_v58  ;;  %v6199_v60 = vmax.f32 %v6175_v17, 0.0  ;;  %v11933_v26 = vld [vmem:[#allocation13 + $0x450] ss:$36 sps:$4 sm:$0xff]   ;;  %v11936_v51 = vld [vmem:[#allocation13 + $0x400] ss:$36 sps:$4 sm:$0xff]  }
 0x907   :  { %v6178_v35 = vpop.f32.mrf.mxu1  ;;  %7269 = vmatprep.subr.bf16.mxu0 %v11896_v0  ;;  %7340 = vmatprep.subr.bf16.mxu1 %v11899_v5  ;;  %v11939_v58 = vld [vmem:[#allocation13 + $0x408] ss:$36 sps:$4 sm:$0xff]   ;;  %v11942_v5 = vld [vmem:[#allocation13 + $0x3b8] ss:$36 sps:$4 sm:$0xff]   ;;  %v11945_v54 = vld [vmem:[#allocation13 + $0x3c0] ss:$36 sps:$4 sm:$0xff]  }
 0x908   :  { %v6179_v43 = vadd.f32 %v6178_v35, %v14239_v22  ;;  %7165 = vmatprep.mubr.bf16.mxu0 %v14260_v42  ;;  %7236 = vmatprep.mubr.bf16.mxu1 %v14260_v42  ;;  %v6200_v32 = vmax.f32 %v6177_v13, 0.0  ;;  %v11947_v0 = vld [vmem:[#allocation13 + $0x3c4] ss:$36 sps:$4 sm:$0xff]   ;;  %v11950_v17 = vld [vmem:[#allocation13 + $0x374] ss:$36 sps:$4 sm:$0xff]  }
 0x909   :  { %v6180_v39 = vpop.f32.mrf.mxu1  ;;  %7166 = vmatmul.mubr.bf16.gmra.mxu0 %v14257_v14  ;;  %7237 = vmatmul.mubr.bf16.gmra.mxu1 %v14257_v14  ;;  %v11953_v20 = vld [vmem:[#allocation13 + $0x37c] ss:$36 sps:$4 sm:$0xff]   ;;  %v11948_v13 = vld [vmem:[#allocation13 + $0x370] ss:$36 sps:$4 sm:$0xff]  }
 0x90a   :  { %v6201_v10 = vmax.f32 %v6179_v43, 0.0  ;;  %v6181_v16 = vadd.f32 %v6180_v39, %v14236_v3  ;;  %7270 = vmatpush1.bf16.msra.mxu0 %v11894_v2  ;;  %7341 = vmatpush1.bf16.msra.mxu1 %v11897_v18  ;;  %v11951_v2 = vld [vmem:[#allocation13 + $0x378] ss:$36 sps:$4 sm:$0xff]   ;;  %v11956_v18 = vld [vmem:[#allocation13 + $0x32c] ss:$36 sps:$4 sm:$0xff]  }
 0x90b   :  { %7271 = vmatprep.subr.bf16.mxu0 %v11902_v34  ;;  %7342 = vmatprep.subr.bf16.mxu1 %v11905_v12  ;;  %v6184_v61 = vpop.f32.mrf.mxu1  ;;  %v11959_v35 = vld [vmem:[#allocation13 + $0x334] ss:$36 sps:$4 sm:$0xff]   ;;  %v11954_v34 = vld [vmem:[#allocation13 + $0x328] ss:$36 sps:$4 sm:$0xff]   ;;  %v11960_v39 = vld [vmem:[#allocation13 + $0x2e0] ss:$36 sps:$4 sm:$0xff]  }
 0x90c   :  { %v6202_v36 = vmax.f32 %v6181_v16, 0.0  ;;  %v14269_v46 = vpack.c.bf16 %v6201_v10, %v6199_v60  ;;  %v6185_v9 = vadd.f32 %v6184_v61, %v14239_v22  ;;  %v11957_v12 = vld [vmem:[#allocation13 + $0x330] ss:$36 sps:$4 sm:$0xff]   ;;  %v11962_v43 = vld [vmem:[#allocation13 + $0x2e4] ss:$36 sps:$4 sm:$0xff]  }
 0x90d   :  { %v6186_v23 = vpop.f32.mrf.mxu1  ;;  %v11965_v60 = vld [vmem:[#allocation13 + $0x2ec] ss:$36 sps:$4 sm:$0xff]   ;;  %v11968_v10 = vld [vmem:[#allocation13 + $0x29c] ss:$36 sps:$4 sm:$0xff]   ;;  %v11971_v16 = vld [vmem:[#allocation13 + $0x2a4] ss:$36 sps:$4 sm:$0xff]  }
 0x90e   :  { %v14272_v50 = vpack.c.bf16 %v6202_v36, %v6200_v32  ;;  %7272 = vmatpush1.bf16.msra.mxu0 %v11900_v4  ;;  %7343 = vmatpush1.bf16.msra.mxu1 %v11903_v29  ;;  %v6187_v21 = vadd.f32 %v6186_v23, %v14236_v3  ;;  %v6203_v22 = vmax.f32 %v6185_v9, 0.0  ;;  %v11912_v3 = vld [vmem:[#allocation13 + $0xa0] ss:$36 sps:$4 sm:$0xff]   ;;  %v11963_v32 = vld [vmem:[#allocation13 + $0x2e8] ss:$36 sps:$4 sm:$0xff]  }
 0x90f   :  { %7273 = vmatprep.subr.bf16.mxu0 %v11908_v44  ;;  %7344 = vmatprep.subr.bf16.mxu1 %v11911_v45  ;;  %v6188_v38 = vpop.f32.mrf.mxu1  ;;  %v11966_v4 = vld [vmem:[#allocation13 + $0x298] ss:$36 sps:$4 sm:$0xff]   ;;  %v11969_v29 = vld [vmem:[#allocation13 + $0x2a0] ss:$36 sps:$4 sm:$0xff]   ;;  %v11972_v45 = vld [vmem:[#allocation13 + $0x250] ss:$36 sps:$4 sm:$0xff]  }
 0x910   :  { %7175 = vmatprep.mubr.bf16.mxu0 %v14272_v50  ;;  %7246 = vmatprep.mubr.bf16.mxu1 %v14272_v50  ;;  %v6204_v25 = vmax.f32 %v6187_v21, 0.0  ;;  %v14283_v55 = vpack.c.bf16 %v6203_v22, %v6203_v22  ;;  %v11974_v61 = vld [vmem:[#allocation13 + $0x254] ss:$36 sps:$4 sm:$0xff]   ;;  %v11977_v44 = vld [vmem:[#allocation13 + $0x25c] ss:$36 sps:$4 sm:$0xff]  }
 0x911   :  { %7176 = vmatmul.mubr.bf16.gmra.mxu0 %v14269_v46  ;;  %7247 = vmatmul.mubr.bf16.gmra.mxu1 %v14269_v46  ;;  %v6189_v57 = vpop.f32.mrf.mxu1  ;;  %v11975_v36 = vld [vmem:[#allocation13 + $0x258] ss:$36 sps:$4 sm:$0xff]   ;;  %v11982_v21 = vld [vmem:[#allocation13 + $0x3c8] ss:$36 sps:$4 sm:$0xff]   ;;  %v11985_v38 = vld [vmem:[#allocation13 + $0x140] ss:$36 sps:$4 sm:$0xff]  }
 0x912   :  { %v14279_v48 = vpack.c.bf16 %v6204_v25, %v6204_v25  ;;  %7274 = vmatpush1.bf16.msra.mxu0 %v11906_v33  ;;  %7345 = vmatpush1.bf16.msra.mxu1 %v11909_v53  ;;  %v11978_v9 = vld [vmem:[#allocation13 + $0x458] ss:$36 sps:$4 sm:$0xff]   ;;  %v11980_v33 = vld [vmem:[#allocation13 + $0x410] ss:$36 sps:$4 sm:$0xff]  }
 0x913   :  { %7275 = vmatprep.subr.bf16.mxu0 %v11914_v41  ;;  %7346 = vmatprep.subr.bf16.mxu1 %v11917_v49  ;;  %v11979_v23 = vld [vmem:[#allocation13 + $0x218] ss:$36 sps:$4 sm:$0xff]   ;;  %v11981_v53 = vld [vmem:[#allocation13 + $0x1d0] ss:$36 sps:$4 sm:$0xff]   ;;  %v11983_v41 = vld [vmem:[#allocation13 + $0x188] ss:$36 sps:$4 sm:$0xff]  }
 0x914   :  { %7185 = vmatprep.mubr.bf16.mxu0 %v14279_v48  ;;  %7256 = vmatprep.mubr.bf16.mxu1 %v14279_v48  ;;  %v11984_v49 = vld [vmem:[#allocation13 + $0x380] ss:$36 sps:$4 sm:$0xff]   ;;  %v11986_v25 = vld [vmem:[#allocation13 + $0x338] ss:$36 sps:$4 sm:$0xff]   ;;  %v11988_v57 = vld [vmem:[#allocation13 + $0x2f0] ss:$36 sps:$4 sm:$0xff]  }
 0x915   :  { %v11987_v22 = vld [vmem:[#allocation13 + $0xf8] ss:$36 sps:$4 sm:$0xff]  }
 0x916   :  { %7276 = vmatpush1.bf16.msra.mxu0 %v11912_v3  ;;  %7347 = vmatpush1.bf16.msra.mxu1 %v11915_v8  ;;  %v11989_v3 = vld [vmem:[#allocation13 + $0xb0] ss:$36 sps:$4 sm:$0xff]   ;;  %v11990_v8 = vld [vmem:[#allocation13 + $0x2a8] ss:$36 sps:$4 sm:$0xff]  }
 0x917   :  { %7277 = vmatprep.subr.bf16.mxu0 %v11920_v59  ;;  %7348 = vmatprep.subr.bf16.mxu1 %v11923_v63  ;;  %v11991_v59 = vld [vmem:[#allocation13 + $0x68] ss:$36 sps:$4 sm:$0xff]   ;;  %v11992_v63 = vld [vmem:[#allocation13 + $0x260] ss:$36 sps:$4 sm:$0xff]  }
 0x919   :  { %7186 = vmatmul.mubr.bf16.gmra.mxu0 %v14283_v55  ;;  %7257 = vmatmul.mubr.bf16.gmra.mxu1 %v14283_v55 }
 0x91a   :  { %7278 = vmatpush1.bf16.msra.mxu0 %v11918_v40  ;;  %7349 = vmatpush1.bf16.msra.mxu1 %v11921_v11  ;;  %v11993_v40 = vld [vmem:[#allocation13 + $0x20] ss:$36 sps:$4 sm:$0xff]  }
 0x91b   :  { %7297 = vmatprep.mubr.bf16.mxu0 %v14246_v31  ;;  %7368 = vmatprep.mubr.bf16.mxu1 %v14246_v31 }
 0x91c   :  { %7279 = vmatprep.subr.bf16.mxu0 %v11926_v19  ;;  %7350 = vmatprep.subr.bf16.mxu1 %v11929_v52 }
 0x91e   :  { %7280 = vmatpush1.bf16.msra.mxu0 %v11924_v1  ;;  %7351 = vmatpush1.bf16.msra.mxu1 %v11927_v24 }
 0x91f   :  { %7281 = vmatprep.subr.bf16.mxu0 %v11932_v47  ;;  %7352 = vmatprep.subr.bf16.mxu1 %v11935_v56 }
 0x922   :  { %7282 = vmatpush2.bf16.msra.mxu0 %v11930_v7  ;;  %7353 = vmatpush2.bf16.msra.mxu1 %v11933_v26 }
 0x923   :  { %7283 = vmatprep.subr.bf16.mxu0 %v11938_v37  ;;  %7354 = vmatprep.subr.bf16.mxu1 %v11941_v30 }
 0x926   :  { %7284 = vmatpush2.bf16.msra.mxu0 %v11936_v51  ;;  %7355 = vmatpush2.bf16.msra.mxu1 %v11939_v58 }
 0x927   :  { %7285 = vmatprep.subr.bf16.mxu0 %v11944_v62  ;;  %7356 = vmatprep.subr.bf16.mxu1 %v11947_v0 }
 0x92a   :  { %7286 = vmatpush2.bf16.msra.mxu0 %v11942_v5  ;;  %7357 = vmatpush2.bf16.msra.mxu1 %v11945_v54 }
 0x92b   :  { %7287 = vmatprep.subr.bf16.mxu0 %v11950_v17  ;;  %7358 = vmatprep.subr.bf16.mxu1 %v11953_v20 }
 0x92e   :  { %7288 = vmatpush2.bf16.msra.mxu0 %v11948_v13  ;;  %7359 = vmatpush2.bf16.msra.mxu1 %v11951_v2 }
 0x92f   :  { %7289 = vmatprep.subr.bf16.mxu0 %v11956_v18  ;;  %7360 = vmatprep.subr.bf16.mxu1 %v11959_v35 }
 0x932   :  { %7290 = vmatpush2.bf16.msra.mxu0 %v11954_v34  ;;  %7361 = vmatpush2.bf16.msra.mxu1 %v11957_v12 }
 0x933   :  { %7291 = vmatprep.subr.bf16.mxu0 %v11962_v43  ;;  %7362 = vmatprep.subr.bf16.mxu1 %v11965_v60 }
 0x936   :  { %7292 = vmatpush2.bf16.msra.mxu0 %v11960_v39  ;;  %7363 = vmatpush2.bf16.msra.mxu1 %v11963_v32 }
 0x937   :  { %7293 = vmatprep.subr.bf16.mxu0 %v11968_v10  ;;  %7364 = vmatprep.subr.bf16.mxu1 %v11971_v16 }
 0x93a   :  { %7294 = vmatpush2.bf16.msra.mxu0 %v11966_v4  ;;  %7365 = vmatpush2.bf16.msra.mxu1 %v11969_v29 }
 0x93b   :  { %7295 = vmatprep.subr.bf16.mxu0 %v11974_v61  ;;  %7366 = vmatprep.subr.bf16.mxu1 %v11977_v44 }
 0x93e   :  { %7296 = vmatpush2.bf16.msra.mxu0 %v11972_v45  ;;  %7367 = vmatpush2.bf16.msra.mxu1 %v11975_v36 }
 0x93f   :  { %10668 = vmatprep.subr.bf16.mxu0 %v11978_v9 }
 0x941   :  { %7298 = vmatmul.mubr.bf16.vlgmr.msra.gmra.mxu0 %v14249_v6  ;;  %7369 = vmatmul.mubr.bf16.vlgmr.msra.gmra.mxu1 %v14249_v6 }
 0x942   :  { %7307 = vmatprep.mubr.bf16.mxu0 %v14260_v42  ;;  %7378 = vmatprep.mubr.bf16.mxu1 %v14260_v42 }
 0x943   :  { %10669 = vmatpush3.bf16.msra.mxu0 %v11979_v23 }
 0x944   :  { %10670 = vmatprep.subr.bf16.mxu0 %v11980_v33 }
 0x947   :  { %10671 = vmatpush3.bf16.msra.mxu0 %v11981_v53 }
 0x948   :  { %10672 = vmatprep.subr.bf16.mxu0 %v11982_v21 }
 0x949   :  { %7308 = vmatmul.mubr.bf16.gmra.mxu0 %v14257_v14  ;;  %7379 = vmatmul.mubr.bf16.gmra.mxu1 %v14257_v14 }
 0x94a   :  { %7317 = vmatprep.mubr.bf16.mxu0 %v14272_v50  ;;  %7388 = vmatprep.mubr.bf16.mxu1 %v14272_v50 }
 0x94b   :  { %10673 = vmatpush3.bf16.msra.mxu0 %v11983_v41 }
 0x94c   :  { %10674 = vmatprep.subr.bf16.mxu0 %v11984_v49 }
 0x94f   :  { %10675 = vmatpush3.bf16.msra.mxu0 %v11985_v38 }
 0x950   :  { %10676 = vmatprep.subr.bf16.mxu0 %v11986_v25 }
 0x951   :  { %7318 = vmatmul.mubr.bf16.gmra.mxu0 %v14269_v46  ;;  %7389 = vmatmul.mubr.bf16.gmra.mxu1 %v14269_v46 }
 0x952   :  { %7327 = vmatprep.mubr.bf16.mxu0 %v14279_v48  ;;  %7398 = vmatprep.mubr.bf16.mxu1 %v14279_v48 }
 0x953   :  { %10677 = vmatpush3.bf16.msra.mxu0 %v11987_v22 }
 0x954   :  { %10678 = vmatprep.subr.bf16.mxu0 %v11988_v57 }
 0x957   :  { %10679 = vmatpush3.bf16.msra.mxu0 %v11989_v3 }
 0x958   :  { %10680 = vmatprep.subr.bf16.mxu0 %v11990_v8 }
 0x959   :  { %7328 = vmatmul.mubr.bf16.gmra.mxu0 %v14283_v55  ;;  %7399 = vmatmul.mubr.bf16.gmra.mxu1 %v14283_v55 }
 0x95a   :  { %7439 = vmatprep.mubr.bf16.mxu0 %v14246_v31 }
 0x95b   :  { %10681 = vmatpush3.bf16.msra.mxu0 %v11991_v59 }
 0x95c   :  { %10682 = vmatprep.subr.bf16.mxu0 %v11992_v63 }
 0x95f   :  { %10683 = vmatpush3.bf16.msra.mxu0 %v11993_v40 }
 0x960   :  { %7718 = vmatprep.subr.bf16.mxu0 %v15041_v27 }
 0x962   :  { %7440 = vmatmul.mubr.bf16.vlgmr.msra.gmra.mxu0 %v14249_v6  ;;  %v11996_v6 = vld [vmem:[%s14984_s15 + $0x4] ss:$8 sps:$4 sm:$0xff]  }
 0x963   :  { %7447 = vmatprep.mubr.bf16.mxu0 %v14260_v42  ;;  %10265 = vmatprep.mubr.msk.bf16.mxu1 %vm7584_vm5, %v11996_v6 }
 0x96a   :  { %7448 = vmatmul.mubr.bf16.gmra.mxu0 %v14257_v14 }
 0x96b   :  { %7455 = vmatprep.mubr.bf16.mxu0 %v14272_v50 }
 0x972   :  { %7456 = vmatmul.mubr.bf16.gmra.mxu0 %v14269_v46 }
 0x973   :  { %7463 = vmatprep.mubr.bf16.mxu0 %v14279_v48 }
 0x97a   :  { %7464 = vmatmul.mubr.bf16.gmra.mxu0 %v14283_v55 }
 0x97b   :  { %10272 = vmatprep.mubr.msk.bf16.mxu0 %vm7584_vm5, %v11996_v6 }
 0x9c1   :  { %v14312_v31 = vpop.f32.mrf.mxu0  ;;  %v14314_v11 = vpop.f32.mrf.mxu1 }
 0x9c3   :  { %v14319_v42 = vpop.f32.mrf.mxu0  ;;  %v14321_v14 = vpop.f32.mrf.mxu1 }
 0x9c5   :  { %v14325_v46 = vpop.f32.mrf.mxu0  ;;  %v14327_v50 = vpop.f32.mrf.mxu1 }
 0x9c7   :  { %v14333_v19 = vpop.f32.mrf.mxu0  ;;  %v14335_v52 = vpop.f32.mrf.mxu1 }
 0x9c9   :  { %v14337_v1 = vpop.f32.mrf.mxu0  ;;  %v14339_v24 = vpop.f32.mrf.mxu1 }
 0x9cb   :  { %v14341_v47 = vpop.f32.mrf.mxu0  ;;  %v14343_v56 = vpop.f32.mrf.mxu1 }
 0x9cd   :  { %v14345_v7 = vpop.f32.mrf.mxu0  ;;  %v14347_v26 = vpop.f32.mrf.mxu1 }
 0x9cf   :  { %v14353_v51 = vpop.f32.mrf.mxu0  ;;  %v14355_v58 = vpop.f32.mrf.mxu1 }
 0x9d1   :  { %v14357_v62 = vpop.f32.mrf.mxu0  ;;  %v14359_v0 = vpop.f32.mrf.mxu1 }
 0x9d3   :  { %v14361_v5 = vpop.f32.mrf.mxu0  ;;  %v7250_v54 = vpop.f32.mrf.mxu1 }
 0x9d4   :  { %v7486_v48 = vpack.c.bf16 %v7250_v54, %v14355_v58 }
 0x9d5   :  { %v14363_v17 = vpop.f32.mrf.mxu0  ;;  %v14365_v20 = vpop.f32.mrf.mxu1 }
 0x9d7   :  { %v14371_v18 = vpop.f32.mrf.mxu0  ;;  %v7254_v35 = vpop.f32.mrf.mxu1 }
 0x9d9   :  { %v14373_v34 = vpop.f32.mrf.mxu0  ;;  %v14375_v12 = vpop.f32.mrf.mxu1 }
 0x9db   :  { %v7260_v60 = vpop.f32.mrf.mxu1  ;;  %v7189_v39 = vpop.f32.mrf.mxu0 }
 0x9dd   :  { %v7191_v32 = vpop.f32.mrf.mxu0  ;;  %v7262_v10 = vpop.f32.mrf.mxu1 }
 0x9df   :  { %v7192_v16 = vpop.f32.mrf.mxu0  ;;  %v7263_v4 = vpop.f32.mrf.mxu1 }
 0xa01   :  { %v7299_v29 = vpop.f32.mrf.mxu0  ;;  %v7370_v61 = vpop.f32.mrf.mxu1 }
 0xa03   :  { %v14379_v44 = vpop.f32.mrf.mxu0  ;;  %v7372_v45 = vpop.f32.mrf.mxu1 }
 0xa05   :  { %v7303_v36 = vpop.f32.mrf.mxu0  ;;  %v7374_v9 = vpop.f32.mrf.mxu1 }
 0xa06   :  { %v7492_v21 = vpack.c.bf16 %v7374_v9, %v7370_v61 }
 0xa07   :  { %v14381_v23 = vpop.f32.mrf.mxu0  ;;  %v7376_v33 = vpop.f32.mrf.mxu1 }
 0xa08   :  { %v7493_v53 = vpack.c.bf16 %v7376_v33, %v7372_v45  ;;  %v7489_v33 = vpack.c.bf16 %v7260_v60, %v7254_v35  ;;  %v7481_v35 = vpack.c.bf16 %v7299_v29, %v7189_v39  ;;  %v15060_v39 = vpack.c.bf16 %v14325_v46, %v14312_v31 }
 0xa09   :  { %v7309_v41 = vpop.f32.mrf.mxu0  ;;  %v14383_v49 = vpop.f32.mrf.mxu1  ;;  %v7482_v31 = vpack.c.bf16 %v14379_v44, %v14375_v12  ;;  %v11994_v12 = vld [vmem:[%s14984_s15] ss:$8 sps:$4 sm:$0xff]   ;;  %v15061_v44 = vpack.c.bf16 %v14365_v20, %v14359_v0  ;;  %v12018_v0 = vld [vmem:[#allocation15 + $0x90] ss:$12 sps:$4 sm:$0xff]  }
 0xa0a   :  { %7615 = vmatprep.subr.bf16.mxu1 %v7493_v53  ;;  %v7484_v43 = vpack.c.bf16 %v7309_v41, %v7303_v36  ;;  %v12023_v20 = vld [vmem:[#allocation15 + $0x7c] ss:$12 sps:$4 sm:$0xff]  }
 0xa0b   :  { %v14385_v38 = vpop.f32.mrf.mxu0  ;;  %v14387_v25 = vpop.f32.mrf.mxu1  ;;  %7616 = vmatpush1.bf16.msra.mxu1 %v7492_v21 }
 0xa0d   :  { %v7313_v22 = vpop.f32.mrf.mxu0  ;;  %v14389_v57 = vpop.f32.mrf.mxu1 }
 0xa0f   :  { %v7315_v3 = vpop.f32.mrf.mxu0  ;;  %v14391_v8 = vpop.f32.mrf.mxu1 }
 0xa11   :  { %v7319_v59 = vpop.f32.mrf.mxu0  ;;  %v14393_v63 = vpop.f32.mrf.mxu1 }
 0xa12   :  { %v7487_v55 = vpack.c.bf16 %v7319_v59, %v7313_v22  ;;  %v7495_v59 = vpack.c.bf16 %v14389_v57, %v14383_v49  ;;  %v15062_v57 = vpack.c.bf16 %v14347_v26, %v14339_v24  ;;  %v12000_v24 = vld [vmem:[%s14984_s15 + $0x24] ss:$8 sps:$4 sm:$0xff]   ;;  %v12021_v26 = vld [vmem:[#allocation15 + $0x78] ss:$12 sps:$4 sm:$0xff]  }
 0xa13   :  { %v7321_v40 = vpop.f32.mrf.mxu0  ;;  %v14395_v6 = vpop.f32.mrf.mxu1 }
 0xa15   :  { %v7323_v32 = vpop.f32.mrf.mxu0  ;;  %v14397_v10 = vpop.f32.mrf.mxu1 }
 0xa16   :  { %v7498_v46 = vpack.c.bf16 %v14397_v10, %v14393_v63  ;;  %v12020_v63 = vld [vmem:[#allocation15 + $0x94] ss:$12 sps:$4 sm:$0xff]  }
 0xa17   :  { %v7325_v16 = vpop.f32.mrf.mxu0  ;;  %v14399_v4 = vpop.f32.mrf.mxu1  ;;  %v11999_v10 = vld [vmem:[%s14984_s15 + $0x10] ss:$8 sps:$4 sm:$0xff]  }
 0xa19   :  { %v7329_v61 = vpop.f32.mrf.mxu0  ;;  %v7400_v45 = vpop.f32.mrf.mxu1 }
 0xa1a   :  { %v7490_v9 = vpack.c.bf16 %v7329_v61, %v7323_v32  ;;  %v7483_v32 = vpack.c.bf16 %v14343_v56, %v14335_v52  ;;  %v7475_v52 = vpack.c.bf16 %v14353_v51, %v14341_v47  ;;  %v15059_v47 = vpack.c.bf16 %v14345_v7, %v14337_v1  ;;  %v12026_v61 = vld [vmem:[#allocation15 + $0x64] ss:$12 sps:$4 sm:$0xff]  }
 0xa1b   :  { %v7331_v53 = vpop.f32.mrf.mxu0  ;;  %v7402_v21 = vpop.f32.mrf.mxu1  ;;  %v7499_v1 = vpack.c.bf16 %v14399_v4, %v14395_v6 }
 0xa1c   :  { %7617 = vmatprep.subr.bf16.mxu1 %v7490_v9 }
 0xa1d   :  { %v7333_v30 = vpop.f32.mrf.mxu0  ;;  %v7404_v2 = vpop.f32.mrf.mxu1  ;;  %7618 = vmatpush1.bf16.msra.mxu1 %v7489_v33 }
 0xa1e   :  { %7619 = vmatprep.subr.bf16.mxu1 %v7487_v55  ;;  %v7478_v30 = vpack.c.bf16 %v14371_v18, %v14361_v5  ;;  %v15058_v5 = vpack.c.bf16 %v14363_v17, %v14357_v62  ;;  %v7488_v62 = vpack.c.bf16 %v7321_v40, %v7315_v3  ;;  %v7501_v17 = vpack.c.bf16 %v7400_v45, %v7400_v45  ;;  %v12017_v3 = vld [vmem:[#allocation15 + $0xac] ss:$12 sps:$4 sm:$0xff]  }
 0xa1f   :  { %v7334_v37 = vpop.f32.mrf.mxu0  ;;  %v7405_v13 = vpop.f32.mrf.mxu1 }
 0xa20   :  { %v15057_v37 = vpack.c.bf16 %v14321_v14, %v14373_v34  ;;  %v7491_v14 = vpack.c.bf16 %v7331_v53, %v7325_v16  ;;  %v7472_v13 = vpack.c.bf16 %v14333_v19, %v14319_v42  ;;  %v7502_v34 = vpack.c.bf16 %v7402_v21, %v7402_v21  ;;  %v12029_v53 = vld [vmem:[#allocation15 + $0x4c] ss:$12 sps:$4 sm:$0xff]  }
 0xa21   :  { %7620 = vmatpush1.bf16.msra.mxu1 %v7486_v48  ;;  %v7485_v19 = vpack.c.bf16 %v14385_v38, %v14381_v23  ;;  %v7607_v7 = vsel %vm3587_vm3, %v7501_v17, 0  ;;  %v7496_v23 = vpack.c.bf16 %v14391_v8, %v14387_v25  ;;  %v11997_v25 = vld [vmem:[%s14984_s15 + $0x14] ss:$8 sps:$4 sm:$0xff]   ;;  %v12015_v8 = vld [vmem:[#allocation15 + $0xa8] ss:$12 sps:$4 sm:$0xff]   ;;  %v15063_v16 = vpack.c.bf16 %v14327_v50, %v14314_v11 }
 0xa22   :  { %v10684_v28 = vpop.f32.mrf.mxu0  ;;  %7621 = vmatprep.subr.bf16.mxu1 %v7484_v43  ;;  %v12024_v11 = vld [vmem:[#allocation15 + $0x60] ss:$12 sps:$4 sm:$0xff]   ;;  %v12011_v17 = vld [vmem:[%s14984_s15 + $0x50] ss:$8 sps:$4 sm:$0xff]  }
 0xa23   :  { %v12002_v21 = vld [vmem:[%s14984_s15 + $0x20] ss:$8 sps:$4 sm:$0xff]  }
 0xa24   :  { %v10685_v60 = vpop.f32.mrf.mxu0 }
 0xa25   :  { %7622 = vmatpush1.bf16.msra.mxu1 %v7483_v32  ;;  %v10686_v2 = vadd.f32 %v10685_v60, %v10684_v28  ;;  %v12027_v60 = vld [vmem:[#allocation15 + $0x48] ss:$12 sps:$4 sm:$0xff]  }
 0xa26   :  { %v10687_v22 = vpop.f32.mrf.mxu0  ;;  %7623 = vmatprep.subr.bf16.mxu1 %v7481_v35  ;;  %v12003_v35 = vld [vmem:[%s14984_s15 + $0x34] ss:$8 sps:$4 sm:$0xff]  }
 0xa28   :  { %v10688_v55 = vpop.f32.mrf.mxu0 }
 0xa29   :  { %v10689_v58 = vadd.f32 %v10688_v55, %v10687_v22  ;;  %7624 = vmatpush1.bf16.msra.mxu1 %v15057_v37  ;;  %v12056_v22 = vld [vmem:[#allocation15 + $0x22c] ss:$12 sps:$4 sm:$0xff]   ;;  %v12032_v55 = vld [vmem:[#allocation15 + $0x34] ss:$12 sps:$4 sm:$0xff]   ;;  %v12035_v37 = vld [vmem:[#allocation15 + $0x1c] ss:$12 sps:$4 sm:$0xff]  }
 0xa2a   :  { %v14409_v48 = vpop.f32.mrf.mxu0  ;;  %7625 = vmatprep.subr.bf16.mxu1 %v7478_v30 }
 0xa2b   :  { %v7494_v54 = vpack.c.bf16 %v10689_v58, %v10686_v2  ;;  %v12054_v2 = vld [vmem:[#allocation15 + $0x228] ss:$12 sps:$4 sm:$0xff]   ;;  %v12030_v58 = vld [vmem:[#allocation15 + $0x30] ss:$12 sps:$4 sm:$0xff]  }
 0xa2c   :  { %v14413_v56 = vpop.f32.mrf.mxu0 }
 0xa2d   :  { %7719 = vmatpush1.bf16.msra.mxu0 %v7494_v54  ;;  %7626 = vmatpush1.bf16.msra.mxu1 %v15058_v5  ;;  %v10692_v32 = vadd.f32 %v14413_v56, %v14409_v48  ;;  %v12005_v48 = vld [vmem:[%s14984_s15 + $0x30] ss:$8 sps:$4 sm:$0xff]   ;;  %v12006_v54 = vld [vmem:[%s14984_s15 + $0x44] ss:$8 sps:$4 sm:$0xff]   ;;  %v12036_v5 = vld [vmem:[#allocation15] ss:$12 sps:$4 sm:$0xff]  }
 0xa2e   :  { %v14418_v28 = vpop.f32.mrf.mxu0  ;;  %7627 = vmatprep.subr.bf16.mxu1 %v7475_v52  ;;  %7720 = vmatprep.subr.bf16.mxu0 %v15041_v27  ;;  %v12033_v52 = vld [vmem:[#allocation15 + $0x18] ss:$12 sps:$4 sm:$0xff]  }
 0xa2f   :  { %v12038_v56 = vld [vmem:[#allocation15 + $0x4] ss:$12 sps:$4 sm:$0xff]  }
 0xa30   :  { %v14423_v18 = vpop.f32.mrf.mxu0 }
 0xa31   :  { %7721 = vmatpush1.bf16.msra.mxu0 %v7491_v14  ;;  %7628 = vmatpush1.bf16.msra.mxu1 %v15059_v47  ;;  %v10695_v50 = vadd.f32 %v14423_v18, %v14418_v28  ;;  %v12041_v28 = vld [vmem:[#allocation15 + $0x16c] ss:$12 sps:$4 sm:$0xff]   ;;  %v12039_v18 = vld [vmem:[#allocation15 + $0x168] ss:$12 sps:$4 sm:$0xff]  }
 0xa32   :  { %v10696_v51 = vpop.f32.mrf.mxu0  ;;  %7629 = vmatprep.subr.bf16.mxu1 %v7472_v13  ;;  %7722 = vmatprep.subr.bf16.mxu0 %v15041_v27  ;;  %v12008_v14 = vld [vmem:[%s14984_s15 + $0x40] ss:$8 sps:$4 sm:$0xff]   ;;  %v12009_v13 = vld [vmem:[%s14984_s15 + $0x54] ss:$8 sps:$4 sm:$0xff]  }
 0xa33   :  { %v7497_v30 = vpack.c.bf16 %v10695_v50, %v10692_v32  ;;  %v12044_v47 = vld [vmem:[#allocation15 + $0x154] ss:$12 sps:$4 sm:$0xff]  }
 0xa34   :  { %v10697_v43 = vpop.f32.mrf.mxu0 }
 0xa35   :  { %7723 = vmatpush1.bf16.msra.mxu0 %v7488_v62  ;;  %7630 = vmatpush1.bf16.msra.mxu1 %v15060_v39  ;;  %v10698_v9 = vadd.f32 %v10697_v43, %v10696_v51  ;;  %v12042_v51 = vld [vmem:[#allocation15 + $0x150] ss:$12 sps:$4 sm:$0xff]   ;;  %v12045_v43 = vld [vmem:[#allocation15 + $0x138] ss:$12 sps:$4 sm:$0xff]  }
 0xa36   :  { %v10699_v42 = vpop.f32.mrf.mxu0  ;;  %10264 = vmatprep.subr.msk.bf16.mxu1 %vm3587_vm3, %v7502_v34  ;;  %7724 = vmatprep.subr.bf16.mxu0 %v15041_v27  ;;  %v12047_v62 = vld [vmem:[#allocation15 + $0x13c] ss:$12 sps:$4 sm:$0xff]   ;;  %v12050_v39 = vld [vmem:[#allocation15 + $0x124] ss:$12 sps:$4 sm:$0xff]  }
 0xa37   :  { %v12012_v34 = vld [vmem:[%s14984_s15 + $0x64] ss:$8 sps:$4 sm:$0xff]  }
 0xa38   :  { %v10700_v29 = vpop.f32.mrf.mxu0 }
 0xa39   :  { %7725 = vmatpush1.bf16.msra.mxu0 %v7485_v19  ;;  %7642 = vmatpush2.bf16.msra.mxu1 %v7607_v7  ;;  %v10701_v4 = vadd.f32 %v10700_v29, %v10699_v42  ;;  %v12048_v42 = vld [vmem:[#allocation15 + $0x120] ss:$12 sps:$4 sm:$0xff]   ;;  %v12051_v7 = vld [vmem:[#allocation15 + $0x108] ss:$12 sps:$4 sm:$0xff]  }
 0xa3a   :  { %v10702_v36 = vpop.f32.mrf.mxu0  ;;  %7643 = vmatprep.subr.bf16.mxu1 %v7499_v1  ;;  %7726 = vmatprep.subr.bf16.mxu0 %v15041_v27  ;;  %v12053_v19 = vld [vmem:[#allocation15 + $0x10c] ss:$12 sps:$4 sm:$0xff]   ;;  %v12059_v29 = vld [vmem:[#allocation15 + $0xf4] ss:$12 sps:$4 sm:$0xff]  }
 0xa3b   :  { %v7500_v33 = vpack.c.bf16 %v10701_v4, %v10698_v9  ;;  %v12014_v1 = vld [vmem:[%s14984_s15 + $0x60] ss:$8 sps:$4 sm:$0xff]  }
 0xa3c   :  { %v10703_v41 = vpop.f32.mrf.mxu0  ;;  %v15065_v4 = vld [vmem:[#allocation26_spill] sm:$0xff] }
 0xa3d   :  { %7727 = vmatpush1.bf16.msra.mxu0 %v7482_v31  ;;  %7644 = vmatpush2.bf16.msra.mxu1 %v7498_v46  ;;  %v10704_v49 = vadd.f32 %v10703_v41, %v10702_v36  ;;  %v12062_v36 = vld [vmem:[#allocation15 + $0x214] ss:$12 sps:$4 sm:$0xff]   ;;  %v12057_v31 = vld [vmem:[#allocation15 + $0xf0] ss:$12 sps:$4 sm:$0xff]  }
 0xa3e   :  { %v10705_v38 = vpop.f32.mrf.mxu0  ;;  %7645 = vmatprep.subr.bf16.mxu1 %v7496_v23  ;;  %7728 = vmatprep.subr.bf16.mxu0 %v15041_v27  ;;  %v12060_v46 = vld [vmem:[#allocation15 + $0x210] ss:$12 sps:$4 sm:$0xff]  }
 0xa3f   :  { %v7503_v6 = vpack.c.bf16 %v10704_v49, %v10704_v49  ;;  %v12065_v23 = vld [vmem:[#allocation15 + $0xdc] ss:$12 sps:$4 sm:$0xff]   ;;  %v12063_v38 = vld [vmem:[#allocation15 + $0xd8] ss:$12 sps:$4 sm:$0xff]  }
 0xa40   :  { %v10706_v40 = vpop.f32.mrf.mxu0  ;;  %v12068_v41 = vld [vmem:[#allocation15 + $0x1fc] ss:$12 sps:$4 sm:$0xff]  }
 0xa41   :  { %7729 = vmatpush1.bf16.msra.mxu0 %v15061_v44  ;;  %7646 = vmatpush2.bf16.msra.mxu1 %v7495_v59  ;;  %v7613_v45 = vsel %vm3587_vm3, %v7503_v6, 0  ;;  %v12071_v59 = vld [vmem:[#allocation15 + $0xc4] ss:$12 sps:$4 sm:$0xff]   ;;  %v12072_v44 = vld [vmem:[#allocation15 + $0x1e0] ss:$12 sps:$4 sm:$0xff]  }
 0xa42   :  { %7730 = vmatprep.subr.bf16.mxu0 %v15041_v27  ;;  %8406 = vmatprep.subr.bf16.mxu1 %v12017_v3  ;;  %v12066_v3 = vld [vmem:[#allocation15 + $0x1f8] ss:$12 sps:$4 sm:$0xff]   ;;  %v12078_v49 = vld [vmem:[#allocation15 + $0x1b0] ss:$12 sps:$4 sm:$0xff]   ;;  %v12084_v6 = vld [vmem:[#allocation15 + $0x180] ss:$12 sps:$4 sm:$0xff]  }
 0xa43   :  { %v12074_v40 = vld [vmem:[#allocation15 + $0x1e4] ss:$12 sps:$4 sm:$0xff]  }
 0xa44   :  { %7648 = vmatmul.mubr.bf16.vlgmr.msra.gmra.mxu1 %v11994_v12 }
 0xa45   :  { %7731 = vmatpush1.bf16.msra.mxu0 %v15062_v57  ;;  %10266 = vmatprep.mubr.msk.bf16.mxu1 %vm7584_vm5, %v11997_v25  ;;  %v12083_v57 = vld [vmem:[#allocation15 + $0x19c] ss:$12 sps:$4 sm:$0xff]  }
 0xa46   :  { %7732 = vmatprep.subr.bf16.mxu0 %v15041_v27  ;;  %8407 = vmatpush1.bf16.msra.mxu1 %v12015_v8  ;;  %v12075_v8 = vld [vmem:[#allocation15 + $0x1c8] ss:$12 sps:$4 sm:$0xff]  }
 0xa47   :  { %8408 = vmatprep.subr.bf16.mxu1 %v12020_v63  ;;  %v12080_v63 = vld [vmem:[#allocation15 + $0x1b4] ss:$12 sps:$4 sm:$0xff]  }
 0xa49   :  { %7733 = vmatpush1.bf16.msra.mxu0 %v15063_v16  ;;  %v12087_v16 = vld [vmem:[#allocation15 + $0x170] ss:$12 sps:$4 sm:$0xff]  }
 0xa4a   :  { %7744 = vmatprep.subr.bf16.mxu0 %v15041_v27  ;;  %8409 = vmatpush1.bf16.msra.mxu1 %v12018_v0  ;;  %v12081_v0 = vld [vmem:[#allocation15 + $0x198] ss:$12 sps:$4 sm:$0xff]  }
 0xa4b   :  { %8410 = vmatprep.subr.bf16.mxu1 %v12023_v20  ;;  %v12086_v20 = vld [vmem:[#allocation15 + $0x184] ss:$12 sps:$4 sm:$0xff]  }
 0xa4c   :  { %7658 = vmatmul.mubr.bf16.gmra.mxu1 %v11999_v10 }
 0xa4d   :  { %7745 = vmatpush2.bf16.msra.mxu0 %v7613_v45  ;;  %10267 = vmatprep.mubr.msk.bf16.mxu1 %vm7584_vm5, %v12000_v24 }
 0xa4e   :  { %7746 = vmatprep.subr.bf16.mxu0 %v15041_v27  ;;  %8411 = vmatpush1.bf16.msra.mxu1 %v12021_v26 }
 0xa4f   :  { %8412 = vmatprep.subr.bf16.mxu1 %v12026_v61 }
 0xa51   :  { %7747 = vmatpush2.bf16.msra.mxu0 %v7500_v33 }
 0xa52   :  { %7748 = vmatprep.subr.bf16.mxu0 %v15041_v27  ;;  %8413 = vmatpush1.bf16.msra.mxu1 %v12024_v11 }
 0xa53   :  { %8414 = vmatprep.subr.bf16.mxu1 %v12029_v53 }
 0xa54   :  { %7668 = vmatmul.mubr.bf16.gmra.mxu1 %v12002_v21 }
 0xa55   :  { %7749 = vmatpush2.bf16.msra.mxu0 %v7497_v30  ;;  %10268 = vmatprep.mubr.msk.bf16.mxu1 %vm7584_vm5, %v12003_v35 }
 0xa56   :  { %8415 = vmatpush1.bf16.msra.mxu1 %v12027_v60  ;;  %8509 = vmatprep.subr.bf16.mxu0 %v12056_v22 }
 0xa57   :  { %8416 = vmatprep.subr.bf16.mxu1 %v12032_v55 }
 0xa58   :  { %7751 = vmatmul.mubr.bf16.vlgmr.msra.gmra.mxu0 %v11994_v12  ;;  %v12069_v12 = vld [vmem:[#allocation15 + $0xc0] ss:$12 sps:$4 sm:$0xff]  }
 0xa59   :  { %10273 = vmatprep.mubr.msk.bf16.mxu0 %vm7584_vm5, %v11997_v25  ;;  %8510 = vmatpush1.bf16.msra.mxu0 %v12054_v2  ;;  %v12077_v25 = vld [vmem:[#allocation15 + $0x1cc] ss:$12 sps:$4 sm:$0xff]  }
 0xa5a   :  { %8417 = vmatpush1.bf16.msra.mxu1 %v12030_v58  ;;  %8511 = vmatprep.subr.bf16.mxu0 %v12062_v36 }
 0xa5b   :  { %8418 = vmatprep.subr.bf16.mxu1 %v12035_v37 }
 0xa5c   :  { %7678 = vmatmul.mubr.bf16.gmra.mxu1 %v12005_v48 }
 0xa5d   :  { %10269 = vmatprep.mubr.msk.bf16.mxu1 %vm7584_vm5, %v12006_v54  ;;  %8512 = vmatpush1.bf16.msra.mxu0 %v12060_v46 }
 0xa5e   :  { %8419 = vmatpush1.bf16.msra.mxu1 %v12033_v52  ;;  %8513 = vmatprep.subr.bf16.mxu0 %v12068_v41  ;;  %v12093_v41 = vld [vmem:[#allocation15 + $0x128] ss:$12 sps:$4 sm:$0xff]  }
 0xa5f   :  { %8420 = vmatprep.subr.bf16.mxu1 %v12038_v56  ;;  %v12089_v56 = vld [vmem:[#allocation15 + $0x158] ss:$12 sps:$4 sm:$0xff]  }
 0xa60   :  { %7759 = vmatmul.mubr.bf16.gmra.mxu0 %v11999_v10  ;;  %v15064_v10 = vmov 0.0  }
 0xa61   :  { %10274 = vmatprep.mubr.msk.bf16.mxu0 %vm7584_vm5, %v12000_v24  ;;  %8514 = vmatpush1.bf16.msra.mxu0 %v12066_v3  ;;  %v7504_v24 = vld [vmem:[%s14983_s14] sm:$0x7] }
 0xa62   :  { %8421 = vmatpush1.bf16.msra.mxu1 %v12036_v5  ;;  %8515 = vmatprep.subr.bf16.mxu0 %v12074_v40  ;;  %v14525_v26 = vrot.slane %v7504_v24, %v15055_v15  ;;  %v14528_v61 = vrot.slane %v7504_v24, %v15065_v4 }
 0xa63   :  { %8422 = vmatprep.subr.bf16.mxu1 %v12041_v28 }
 0xa64   :  { %7688 = vmatmul.mubr.bf16.gmra.mxu1 %v12008_v14 }
 0xa65   :  { %10270 = vmatprep.mubr.msk.bf16.mxu1 %vm7584_vm5, %v12009_v13  ;;  %8516 = vmatpush1.bf16.msra.mxu0 %v12072_v44 }
 0xa66   :  { %8423 = vmatpush2.bf16.msra.mxu1 %v12039_v18  ;;  %8517 = vmatprep.subr.bf16.mxu0 %v12077_v25 }
 0xa67   :  { %8424 = vmatprep.subr.bf16.mxu1 %v12044_v47 }
 0xa68   :  { %7767 = vmatmul.mubr.bf16.gmra.mxu0 %v12002_v21 }
 0xa69   :  { %10275 = vmatprep.mubr.msk.bf16.mxu0 %vm7584_vm5, %v12003_v35  ;;  %8518 = vmatpush1.bf16.msra.mxu0 %v12075_v8 }
 0xa6a   :  { %8425 = vmatpush2.bf16.msra.mxu1 %v12042_v51  ;;  %8519 = vmatprep.subr.bf16.mxu0 %v12080_v63  ;;  %v12090_v51 = vld [vmem:[#allocation15 + $0x98] ss:$12 sps:$4 sm:$0xff]   ;;  %v12094_v63 = vld [vmem:[#allocation15 + $0x68] ss:$12 sps:$4 sm:$0xff]  }
 0xa6b   :  { %8426 = vmatprep.subr.bf16.mxu1 %v12047_v62 }
 0xa6c   :  { %7698 = vmatmul.mubr.bf16.gmra.mxu1 %v12011_v17 }
 0xa6d   :  { %10271 = vmatprep.mubr.msk.bf16.mxu1 %vm7584_vm5, %v12012_v34  ;;  %8520 = vmatpush1.bf16.msra.mxu0 %v12078_v49 }
 0xa6e   :  { %8427 = vmatpush2.bf16.msra.mxu1 %v12045_v43  ;;  %8521 = vmatprep.subr.bf16.mxu0 %v12083_v57 }
 0xa6f   :  { %8428 = vmatprep.subr.bf16.mxu1 %v12050_v39 }
 0xa70   :  { %7775 = vmatmul.mubr.bf16.gmra.mxu0 %v12005_v48 }
 0xa71   :  { %10276 = vmatprep.mubr.msk.bf16.mxu0 %vm7584_vm5, %v12006_v54  ;;  %8522 = vmatpush1.bf16.msra.mxu0 %v12081_v0  ;;  %v12088_v54 = vld [vmem:[#allocation15 + $0xb0] ss:$12 sps:$4 sm:$0xff]  }
 0xa72   :  { %8429 = vmatpush2.bf16.msra.mxu1 %v12048_v42  ;;  %8523 = vmatprep.subr.bf16.mxu0 %v12086_v20  ;;  %v12095_v0 = vld [vmem:[#allocation15 + $0x110] ss:$12 sps:$4 sm:$0xff]  }
 0xa73   :  { %8430 = vmatprep.subr.bf16.mxu1 %v12053_v19 }
 0xa74   :  { %7708 = vmatmul.mubr.bf16.gmra.mxu1 %v12014_v1 }
 0xa75   :  { %8524 = vmatpush1.bf16.msra.mxu0 %v12084_v6 }
 0xa76   :  { %8431 = vmatpush2.bf16.msra.mxu1 %v12051_v7  ;;  %11010 = vmatprep.subr.bf16.mxu0 %v15064_v10 }
 0xa77   :  { %8432 = vmatprep.subr.bf16.mxu1 %v12059_v29 }
 0xa78   :  { %7783 = vmatmul.mubr.bf16.gmra.mxu0 %v12008_v14 }
 0xa79   :  { %10277 = vmatprep.mubr.msk.bf16.mxu0 %vm7584_vm5, %v12009_v13 }
 0xa7a   :  { %8433 = vmatpush2.bf16.msra.mxu1 %v12057_v31  ;;  %v12092_v31 = vld [vmem:[#allocation15 + $0x80] ss:$12 sps:$4 sm:$0xff]  }
 0xa7b   :  { %8434 = vmatprep.subr.bf16.mxu1 %v12065_v23 }
 0xa7e   :  { %8435 = vmatpush2.bf16.msra.mxu1 %v12063_v38 }
 0xa7f   :  { %8436 = vmatprep.subr.bf16.mxu1 %v12071_v59 }
 0xa80   :  { %7791 = vmatmul.mubr.bf16.gmra.mxu0 %v12011_v17  ;;  %v12091_v17 = vld [vmem:[#allocation15 + $0x140] ss:$12 sps:$4 sm:$0xff]  }
 0xa81   :  { %10278 = vmatprep.mubr.msk.bf16.mxu0 %vm7584_vm5, %v12012_v34 }
 0xa82   :  { %8437 = vmatpush2.bf16.msra.mxu1 %v12069_v12 }
 0xa83   :  { %10708 = vmatprep.subr.bf16.mxu1 %v12087_v16 }
 0xa88   :  { %7799 = vmatmul.mubr.bf16.gmra.mxu0 %v12014_v1  ;;  %v15066_v1 = vld [vmem:[#allocation24_spill] sm:$0xff] }
 0xa89   :  { %8541 = vmatprep.mubr.bf16.mxu0 %v15041_v27  ;;  %v15067_v7 = vsub.s32 2, %v15066_v1 }
 0xa8b   :  { %v14550_v29 = vrot.slane %v7504_v24, %v15067_v7 }
 0xb04   :  { %v7649_v45 = vpop.f32.mrf.mxu1 }
 0xb05   :  { %v7650_v9 = vadd.f32 %v7649_v45, %v14525_v26 }
 0xb06   :  { %v7651_v11 = vpop.f32.mrf.mxu1 }
 0xb07   :  { %v7652_v50 = vadd.f32 %v7651_v11, %v14528_v61  ;;  %v7807_v21 = vmax.f32 %v7650_v9, 0.0 }
 0xb08   :  { %v7653_v33 = vpop.f32.mrf.mxu1 }
 0xb09   :  { %v7654_v53 = vadd.f32 %v7653_v33, %v14525_v26  ;;  %v7808_v35 = vmax.f32 %v7652_v50, 0.0 }
 0xb0a   :  { %v7655_v32 = vpop.f32.mrf.mxu1 }
 0xb0b   :  { %v7810_v60 = vmax.f32 %v7654_v53, 0.0  ;;  %v7656_v22 = vadd.f32 %v7655_v32, %v14528_v61  ;;  %v12096_v53 = vld [vmem:[#allocation15 + $0x50] ss:$12 sps:$4 sm:$0xff]  }
 0xb0c   :  { %v7659_v15 = vpop.f32.mrf.mxu1 }
 0xb0d   :  { %v7811_v30 = vmax.f32 %v7656_v22, 0.0  ;;  %v14534_v55 = vpack.c.bf16 %v7810_v60, %v7807_v21  ;;  %v7660_v2 = vadd.f32 %v7659_v15, %v14525_v26  ;;  %v12098_v15 = vld [vmem:[#allocation15 + $0xf8] ss:$12 sps:$4 sm:$0xff]  }
 0xb0e   :  { %v7661_v58 = vpop.f32.mrf.mxu1 }
 0xb0f   :  { %v7662_v37 = vadd.f32 %v7661_v58, %v14528_v61  ;;  %v14538_v48 = vpack.c.bf16 %v7811_v30, %v7808_v35  ;;  %v7813_v28 = vmax.f32 %v7660_v2, 0.0  ;;  %v12097_v35 = vld [vmem:[#allocation15 + $0x230] ss:$12 sps:$4 sm:$0xff]  }
 0xb10   :  { %v7663_v52 = vpop.f32.mrf.mxu1 }
 0xb11   :  { %v7664_v5 = vadd.f32 %v7663_v52, %v14525_v26  ;;  %8438 = vmatprep.mubr.bf16.mxu1 %v14538_v48  ;;  %v7814_v13 = vmax.f32 %v7662_v37, 0.0 }
 0xb12   :  { %v7665_v14 = vpop.f32.mrf.mxu1  ;;  %8439 = vmatmul.mubr.bf16.vlgmr.msra.gmra.mxu1 %v14534_v55 }
 0xb13   :  { %v7816_v18 = vmax.f32 %v7664_v5, 0.0  ;;  %v7666_v47 = vadd.f32 %v7665_v14, %v14528_v61  ;;  %10709 = vmatpush3.bf16.msra.mxu1 %v12088_v54  ;;  %v12099_v5 = vld [vmem:[#allocation15 + $0x38] ss:$12 sps:$4 sm:$0xff]  }
 0xb14   :  { %v7669_v62 = vpop.f32.mrf.mxu1  ;;  %10710 = vmatprep.subr.bf16.mxu1 %v12089_v56 }
 0xb15   :  { %v7817_v34 = vmax.f32 %v7666_v47, 0.0  ;;  %v14544_v43 = vpack.c.bf16 %v7816_v18, %v7813_v28  ;;  %v7670_v39 = vadd.f32 %v7669_v62, %v14525_v26  ;;  %v12101_v18 = vld [vmem:[#allocation15 + $0xe0] ss:$12 sps:$4 sm:$0xff]  }
 0xb16   :  { %v7671_v42 = vpop.f32.mrf.mxu1 }
 0xb17   :  { %v7672_v19 = vadd.f32 %v7671_v42, %v14528_v61  ;;  %v14552_v36 = vpack.c.bf16 %v7817_v34, %v7814_v13  ;;  %10711 = vmatpush3.bf16.msra.mxu1 %v12090_v51  ;;  %v7819_v3 = vmax.f32 %v7670_v39, 0.0  ;;  %v12100_v13 = vld [vmem:[#allocation15 + $0x218] ss:$12 sps:$4 sm:$0xff]  }
 0xb18   :  { %v7752_v46 = vpop.f32.mrf.mxu0  ;;  %v7673_v23 = vpop.f32.mrf.mxu1  ;;  %10712 = vmatprep.subr.bf16.mxu1 %v12091_v17 }
 0xb19   :  { %v7674_v38 = vadd.f32 %v7673_v23, %v14525_v26  ;;  %8448 = vmatprep.mubr.bf16.mxu1 %v14552_v36  ;;  %v7820_v12 = vmax.f32 %v7672_v19, 0.0  ;;  %v7753_v44 = vadd.f32 %v7752_v46, %v14550_v29 }
 0xb1a   :  { %v7754_v59 = vpop.f32.mrf.mxu0  ;;  %v7675_v40 = vpop.f32.mrf.mxu1  ;;  %8449 = vmatmul.mubr.bf16.gmra.mxu1 %v14544_v43 }
 0xb1b   :  { %v7822_v25 = vmax.f32 %v7674_v38, 0.0  ;;  %v7676_v8 = vadd.f32 %v7675_v40, %v14528_v61  ;;  %10713 = vmatpush3.bf16.msra.mxu1 %v12092_v31  ;;  %v7809_v9 = vmax.f32 %v7753_v44, 0.0  ;;  %v12102_v31 = vld [vmem:[#allocation15 + $0x20] ss:$12 sps:$4 sm:$0xff]   ;;  %v12104_v59 = vld [vmem:[#allocation15 + $0xc8] ss:$12 sps:$4 sm:$0xff]  }
 0xb1c   :  { %v7755_v49 = vpop.f32.mrf.mxu0  ;;  %v7679_v57 = vpop.f32.mrf.mxu1  ;;  %10714 = vmatprep.subr.bf16.mxu1 %v12093_v41  ;;  %v12103_v41 = vld [vmem:[#allocation15 + $0x200] ss:$12 sps:$4 sm:$0xff]  }
 0xb1d   :  { %v7823_v20 = vmax.f32 %v7676_v8, 0.0  ;;  %v7756_v6 = vadd.f32 %v7755_v49, %v14550_v29  ;;  %v14560_v16 = vpack.c.bf16 %v7822_v25, %v7819_v3  ;;  %v7680_v24 = vadd.f32 %v7679_v57, %v14525_v26  ;;  %v12105_v57 = vld [vmem:[#allocation15 + $0x8] ss:$12 sps:$4 sm:$0xff]  }
 0xb1e   :  { %v7757_v4 = vpop.f32.mrf.mxu0  ;;  %v7681_v45 = vpop.f32.mrf.mxu1 }
 0xb1f   :  { %v7812_v11 = vmax.f32 %v7756_v6, 0.0  ;;  %v7682_v50 = vadd.f32 %v7681_v45, %v14528_v61  ;;  %v14564_v33 = vpack.c.bf16 %v7823_v20, %v7820_v12  ;;  %10715 = vmatpush3.bf16.msra.mxu1 %v12094_v63  ;;  %v7825_v30 = vmax.f32 %v7680_v24, 0.0  ;;  %v12106_v6 = vld [vmem:[#allocation15 + $0x1e8] ss:$12 sps:$4 sm:$0xff]  }
 0xb20   :  { %v7760_v21 = vpop.f32.mrf.mxu0  ;;  %v7683_v32 = vpop.f32.mrf.mxu1  ;;  %10716 = vmatprep.subr.bf16.mxu1 %v12095_v0 }
 0xb21   :  { %v14566_v60 = vpack.c.bf16 %v7812_v11, %v7809_v9  ;;  %v7684_v22 = vadd.f32 %v7683_v32, %v14525_v26  ;;  %8458 = vmatprep.mubr.bf16.mxu1 %v14564_v33  ;;  %v7826_v37 = vmax.f32 %v7682_v50, 0.0  ;;  %v7761_v54 = vadd.f32 %v7760_v21, %v14550_v29 }
 0xb22   :  { %v7762_v2 = vpop.f32.mrf.mxu0  ;;  %v7685_v58 = vpop.f32.mrf.mxu1  ;;  %8459 = vmatmul.mubr.bf16.gmra.mxu1 %v14560_v16 }
 0xb23   :  { %v7828_v52 = vmax.f32 %v7684_v22, 0.0  ;;  %v7686_v56 = vadd.f32 %v7685_v58, %v14528_v61  ;;  %8542 = vmatmul.mubr.bf16.vlgmr.msra.gmra.mxu0 %v14566_v60  ;;  %10717 = vmatpush3.bf16.msra.mxu1 %v12096_v53  ;;  %v7815_v42 = vmax.f32 %v7761_v54, 0.0 }
 0xb24   :  { %v7763_v28 = vpop.f32.mrf.mxu0  ;;  %v7689_v14 = vpop.f32.mrf.mxu1  ;;  %8551 = vmatprep.mubr.bf16.mxu0 %v15041_v27  ;;  %11011 = vmatpush3.bf16.msra.mxu0 %v12097_v35 }
 0xb25   :  { %v7829_v47 = vmax.f32 %v7686_v56, 0.0  ;;  %v7764_v51 = vadd.f32 %v7763_v28, %v14550_v29  ;;  %10718 = vmatprep.subr.bf16.mxu1 %v12098_v15  ;;  %11012 = vmatprep.subr.bf16.mxu0 %v15064_v10  ;;  %v14577_v62 = vpack.c.bf16 %v7828_v52, %v7825_v30  ;;  %v7690_v17 = vadd.f32 %v7689_v14, %v14525_v26  ;;  %v12107_v30 = vld [vmem:[#allocation15 + $0x1d0] ss:$12 sps:$4 sm:$0xff]  }
 0xb26   :  { %v7765_v34 = vpop.f32.mrf.mxu0  ;;  %v7691_v39 = vpop.f32.mrf.mxu1 }
 0xb27   :  { %v7818_v19 = vmax.f32 %v7764_v51, 0.0  ;;  %v7692_v1 = vadd.f32 %v7691_v39, %v14528_v61  ;;  %v14581_v7 = vpack.c.bf16 %v7829_v47, %v7826_v37  ;;  %10719 = vmatpush3.bf16.msra.mxu1 %v12099_v5  ;;  %v7831_v40 = vmax.f32 %v7690_v17, 0.0  ;;  %v12108_v47 = vld [vmem:[#allocation15 + $0x1b8] ss:$12 sps:$4 sm:$0xff]  }
 0xb28   :  { %v7768_v46 = vpop.f32.mrf.mxu0  ;;  %v7693_v23 = vpop.f32.mrf.mxu1  ;;  %11013 = vmatpush3.bf16.msra.mxu0 %v12100_v13  ;;  %10720 = vmatprep.subr.bf16.mxu1 %v12101_v18 }
 0xb29   :  { %v14583_v38 = vpack.c.bf16 %v7818_v19, %v7815_v42  ;;  %v7694_v3 = vadd.f32 %v7693_v23, %v14525_v26  ;;  %8468 = vmatprep.mubr.bf16.mxu1 %v14581_v7  ;;  %11014 = vmatprep.subr.bf16.mxu0 %v15064_v10  ;;  %v7832_v25 = vmax.f32 %v7692_v1, 0.0  ;;  %v7769_v8 = vadd.f32 %v7768_v46, %v14550_v29 }
 0xb2a   :  { %v7770_v12 = vpop.f32.mrf.mxu0  ;;  %v7695_v44 = vpop.f32.mrf.mxu1  ;;  %8469 = vmatmul.mubr.bf16.gmra.mxu1 %v14577_v62 }
 0xb2b   :  { %v7834_v63 = vmax.f32 %v7694_v3, 0.0  ;;  %v7696_v49 = vadd.f32 %v7695_v44, %v14528_v61  ;;  %8552 = vmatmul.mubr.bf16.gmra.mxu0 %v14583_v38  ;;  %10721 = vmatpush3.bf16.msra.mxu1 %v12102_v31  ;;  %v7821_v53 = vmax.f32 %v7769_v8, 0.0 }
 0xb2c   :  { %v7771_v0 = vpop.f32.mrf.mxu0  ;;  %v7699_v20 = vpop.f32.mrf.mxu1  ;;  %8561 = vmatprep.mubr.bf16.mxu0 %v15041_v27  ;;  %11015 = vmatpush3.bf16.msra.mxu0 %v12103_v41 }
 0xb2d   :  { %v7835_v24 = vmax.f32 %v7696_v49, 0.0  ;;  %v7772_v4 = vadd.f32 %v7771_v0, %v14550_v29  ;;  %10722 = vmatprep.subr.bf16.mxu1 %v12104_v59  ;;  %11016 = vmatprep.subr.bf16.mxu0 %v15064_v10  ;;  %v14595_v45 = vpack.c.bf16 %v7834_v63, %v7831_v40  ;;  %v7700_v9 = vadd.f32 %v7699_v20, %v14525_v26  ;;  %v12109_v59 = vld [vmem:[#allocation15 + $0x1a0] ss:$12 sps:$4 sm:$0xff]  }
 0xb2e   :  { %v7773_v11 = vpop.f32.mrf.mxu0  ;;  %v7701_v50 = vpop.f32.mrf.mxu1 }
 0xb2f   :  { %v7824_v21 = vmax.f32 %v7772_v4, 0.0  ;;  %v7702_v32 = vadd.f32 %v7701_v50, %v14528_v61  ;;  %v14599_v35 = vpack.c.bf16 %v7835_v24, %v7832_v25  ;;  %10723 = vmatpush3.bf16.msra.mxu1 %v12105_v57  ;;  %v7837_v37 = vmax.f32 %v7700_v9, 0.0 }
 0xb30   :  { %v7776_v22 = vpop.f32.mrf.mxu0  ;;  %v7703_v15 = vpop.f32.mrf.mxu1  ;;  %11017 = vmatpush3.bf16.msra.mxu0 %v12106_v6 }
 0xb31   :  { %v14601_v2 = vpack.c.bf16 %v7824_v21, %v7821_v53  ;;  %v7704_v58 = vadd.f32 %v7703_v15, %v14525_v26  ;;  %8478 = vmatprep.mubr.bf16.mxu1 %v14599_v35  ;;  %11018 = vmatprep.subr.bf16.mxu0 %v15064_v10  ;;  %v7838_v56 = vmax.f32 %v7702_v32, 0.0  ;;  %v7777_v5 = vadd.f32 %v7776_v22, %v14550_v29 }
 0xb32   :  { %v7778_v54 = vpop.f32.mrf.mxu0  ;;  %v7705_v52 = vpop.f32.mrf.mxu1  ;;  %8479 = vmatmul.mubr.bf16.gmra.mxu1 %v14595_v45 }
 0xb33   :  { %v7840_v28 = vmax.f32 %v7704_v58, 0.0  ;;  %v7706_v14 = vadd.f32 %v7705_v52, %v14528_v61  ;;  %8562 = vmatmul.mubr.bf16.gmra.mxu0 %v14601_v2  ;;  %v7827_v1 = vmax.f32 %v7777_v5, 0.0 }
 0xb34   :  { %v7779_v13 = vpop.f32.mrf.mxu0  ;;  %v7709_v18 = vpop.f32.mrf.mxu1  ;;  %8571 = vmatprep.mubr.bf16.mxu0 %v15041_v27  ;;  %11019 = vmatpush3.bf16.msra.mxu0 %v12107_v30 }
 0xb35   :  { %v7841_v51 = vmax.f32 %v7706_v14, 0.0  ;;  %v7780_v17 = vadd.f32 %v7779_v13, %v14550_v29  ;;  %11020 = vmatprep.subr.bf16.mxu0 %v15064_v10  ;;  %v14613_v34 = vpack.c.bf16 %v7840_v28, %v7837_v37  ;;  %v7710_v39 = vadd.f32 %v7709_v18, %v14525_v26 }
 0xb36   :  { %v7781_v42 = vpop.f32.mrf.mxu0  ;;  %v7711_v19 = vpop.f32.mrf.mxu1 }
 0xb37   :  { %v7830_v31 = vmax.f32 %v7780_v17, 0.0  ;;  %v7712_v46 = vadd.f32 %v7711_v19, %v14528_v61  ;;  %v14617_v23 = vpack.c.bf16 %v7841_v51, %v7838_v56  ;;  %v7843_v44 = vmax.f32 %v7710_v39, 0.0  ;;  %v12117_v17 = vld [vmem:[#allocation16 + $0x8] ss:$12 sps:$4 sm:$0xff]  }
 0xb38   :  { %v7784_v41 = vpop.f32.mrf.mxu0  ;;  %v7713_v3 = vpop.f32.mrf.mxu1  ;;  %11021 = vmatpush3.bf16.msra.mxu0 %v12108_v47 }
 0xb39   :  { %v14619_v40 = vpack.c.bf16 %v7830_v31, %v7827_v1  ;;  %v7714_v12 = vadd.f32 %v7713_v3, %v14525_v26  ;;  %8488 = vmatprep.mubr.bf16.mxu1 %v14617_v23  ;;  %11022 = vmatprep.subr.bf16.mxu0 %v15064_v10  ;;  %v7844_v63 = vmax.f32 %v7712_v46, 0.0  ;;  %v7785_v49 = vadd.f32 %v7784_v41, %v14550_v29  ;;  %v12110_v26 = vld [vmem:[#allocation15 + $0x188] ss:$12 sps:$4 sm:$0xff]  }
 0xb3a   :  { %v7786_v25 = vpop.f32.mrf.mxu0  ;;  %v7715_v8 = vpop.f32.mrf.mxu1  ;;  %8489 = vmatmul.mubr.bf16.gmra.mxu1 %v14613_v34 }
 0xb3b   :  { %v7846_v57 = vmax.f32 %v7714_v12, 0.0  ;;  %v7716_v0 = vadd.f32 %v7715_v8, %v14528_v61  ;;  %8572 = vmatmul.mubr.bf16.gmra.mxu0 %v14619_v40  ;;  %v7833_v11 = vmax.f32 %v7785_v49, 0.0 }
 0xb3c   :  { %v7787_v20 = vpop.f32.mrf.mxu0  ;;  %8581 = vmatprep.mubr.bf16.mxu0 %v15041_v27  ;;  %11023 = vmatpush3.bf16.msra.mxu0 %v12109_v59 }
 0xb3d   :  { %v7847_v6 = vmax.f32 %v7716_v0, 0.0  ;;  %v7788_v24 = vadd.f32 %v7787_v20, %v14550_v29  ;;  %11024 = vmatprep.subr.bf16.mxu0 %v15064_v10  ;;  %v7867_v4 = vpack.c.bf16 %v7846_v57, %v7843_v44 }
 0xb3e   :  { %v7789_v9 = vpop.f32.mrf.mxu0 }
 0xb3f   :  { %v7836_v50 = vmax.f32 %v7788_v24, 0.0  ;;  %v7868_v53 = vpack.c.bf16 %v7847_v6, %v7844_v63 }
 0xb40   :  { %v7792_v21 = vpop.f32.mrf.mxu0  ;;  %11025 = vmatpush3.bf16.msra.mxu0 %v12110_v26 }
 0xb41   :  { %v7863_v61 = vpack.c.bf16 %v7836_v50, %v7833_v11  ;;  %8498 = vmatprep.mubr.bf16.mxu1 %v7868_v53  ;;  %v7793_v22 = vadd.f32 %v7792_v21, %v14550_v29 }
 0xb42   :  { %v7794_v32 = vpop.f32.mrf.mxu0  ;;  %8499 = vmatmul.mubr.bf16.gmra.mxu1 %v7867_v4 }
 0xb43   :  { %8582 = vmatmul.mubr.bf16.gmra.mxu0 %v7863_v61  ;;  %8644 = vmatprep.mubr.bf16.mxu1 %v14538_v48  ;;  %v7839_v37 = vmax.f32 %v7793_v22, 0.0 }
 0xb44   :  { %v7795_v15 = vpop.f32.mrf.mxu0  ;;  %8591 = vmatprep.mubr.bf16.mxu0 %v15041_v27 }
 0xb45   :  { %v7796_v30 = vadd.f32 %v7795_v15, %v14550_v29 }
 0xb46   :  { %v7797_v58 = vpop.f32.mrf.mxu0 }
 0xb47   :  { %v7842_v54 = vmax.f32 %v7796_v30, 0.0 }
 0xb48   :  { %v7800_v52 = vpop.f32.mrf.mxu0 }
 0xb49   :  { %v7866_v56 = vpack.c.bf16 %v7842_v54, %v7839_v37  ;;  %v7801_v28 = vadd.f32 %v7800_v52, %v14550_v29 }
 0xb4a   :  { %v7802_v5 = vpop.f32.mrf.mxu0  ;;  %8645 = vmatmul.mubr.bf16.vlgmr.msra.gmra.mxu1 %v14534_v55 }
 0xb4b   :  { %8592 = vmatmul.mubr.bf16.gmra.mxu0 %v7866_v56  ;;  %8652 = vmatprep.mubr.bf16.mxu1 %v14552_v36  ;;  %v7845_v18 = vmax.f32 %v7801_v28, 0.0 }
 0xb4c   :  { %v7803_v14 = vpop.f32.mrf.mxu0  ;;  %8601 = vmatprep.mubr.bf16.mxu0 %v15041_v27  ;;  %v12113_v27 = vld [vmem:[#allocation16 + $0x4] ss:$12 sps:$4 sm:$0xff]  }
 0xb4d   :  { %v7804_v48 = vadd.f32 %v7803_v14, %v14550_v29 }
 0xb4e   :  { %v7805_v13 = vpop.f32.mrf.mxu0 }
 0xb4f   :  { %v7848_v47 = vmax.f32 %v7804_v48, 0.0 }
 0xb51   :  { %v7869_v51 = vpack.c.bf16 %v7848_v47, %v7845_v18 }
 0xb52   :  { %8653 = vmatmul.mubr.bf16.gmra.mxu1 %v14544_v43 }
 0xb53   :  { %8602 = vmatmul.mubr.bf16.gmra.mxu0 %v7869_v51  ;;  %8660 = vmatprep.mubr.bf16.mxu1 %v14564_v33 }
 0xb54   :  { %11026 = vmatprep.mubr.msk.bf16.mxu0 %vm12513_vm1, %v15064_v10 }
 0xb5a   :  { %8661 = vmatmul.mubr.bf16.gmra.mxu1 %v14560_v16 }
 0xb5b   :  { %11027 = vmatmul.mubr.bf16.vlgmr.msra.gmra.mxu0 %v14566_v60  ;;  %8668 = vmatprep.mubr.bf16.mxu1 %v14581_v7 }
 0xb5c   :  { %11030 = vmatprep.mubr.msk.bf16.mxu0 %vm12513_vm1, %v15064_v10 }
 0xb62   :  { %8669 = vmatmul.mubr.bf16.gmra.mxu1 %v14577_v62 }
 0xb63   :  { %11031 = vmatmul.mubr.bf16.gmra.mxu0 %v14583_v38  ;;  %8676 = vmatprep.mubr.bf16.mxu1 %v14599_v35 }
 0xb64   :  { %11034 = vmatprep.mubr.msk.bf16.mxu0 %vm12513_vm1, %v15064_v10 }
 0xb6a   :  { %8677 = vmatmul.mubr.bf16.gmra.mxu1 %v14595_v45 }
 0xb6b   :  { %11035 = vmatmul.mubr.bf16.gmra.mxu0 %v14601_v2  ;;  %8684 = vmatprep.mubr.bf16.mxu1 %v14617_v23 }
 0xb6c   :  { %11038 = vmatprep.mubr.msk.bf16.mxu0 %vm12513_vm1, %v15064_v10 }
 0xb72   :  { %8685 = vmatmul.mubr.bf16.gmra.mxu1 %v14613_v34 }
 0xb73   :  { %11039 = vmatmul.mubr.bf16.gmra.mxu0 %v14619_v40  ;;  %8692 = vmatprep.mubr.bf16.mxu1 %v7868_v53 }
 0xb74   :  { %11042 = vmatprep.mubr.msk.bf16.mxu0 %vm12513_vm1, %v15064_v10 }
 0xb7a   :  { %8693 = vmatmul.mubr.bf16.gmra.mxu1 %v7867_v4 }
 0xb7b   :  { %11043 = vmatmul.mubr.bf16.gmra.mxu0 %v7863_v61  ;;  %9103 = vmatprep.mubr.bf16.mxu1 %v12113_v27 }
 0xb7c   :  { %11046 = vmatprep.mubr.msk.bf16.mxu0 %vm12513_vm1, %v15064_v10 }
 0xb83   :  { %11047 = vmatmul.mubr.bf16.gmra.mxu0 %v7866_v56 }
 0xb84   :  { %11050 = vmatprep.mubr.msk.bf16.mxu0 %vm12513_vm1, %v15064_v10 }
 0xb8b   :  { %11051 = vmatmul.mubr.bf16.gmra.mxu0 %v7869_v51 }
 0xb8c   :  { %11064 = vmatprep.mubr.msk.bf16.mxu0 %vm9028_vm6, %v12117_v17 }
 0xbd2   :  { %v8440_v55 = vpop.f32.mrf.mxu1 }
 0xbd4   :  { %v8442_v43 = vpop.f32.mrf.mxu1 }
 0xbd6   :  { %v8444_v29 = vpop.f32.mrf.mxu1 }
 0xbd8   :  { %v8446_v36 = vpop.f32.mrf.mxu1 }
 0xbda   :  { %v8450_v16 = vpop.f32.mrf.mxu1 }
 0xbdc   :  { %v8452_v33 = vpop.f32.mrf.mxu1 }
 0xbde   :  { %v8454_v60 = vpop.f32.mrf.mxu1 }
 0xbe0   :  { %v8456_v62 = vpop.f32.mrf.mxu1 }
 0xbe2   :  { %v8460_v7 = vpop.f32.mrf.mxu1 }
 0xbe3   :  { %v8543_v38 = vpop.f32.mrf.mxu0 }
 0xbe4   :  { %v14667_v45 = vadd.f32 %v8543_v38, %v8440_v55  ;;  %v8462_v35 = vpop.f32.mrf.mxu1 }
 0xbe5   :  { %v8545_v2 = vpop.f32.mrf.mxu0 }
 0xbe6   :  { %15068 = vst [vmem:[#allocation31_spill] sm:$0xff] %v14667_v45  ;;  %v14669_v10 = vadd.f32 %v8545_v2, %v8442_v43  ;;  %v8464_v34 = vpop.f32.mrf.mxu1 }
 0xbe7   :  { %v8547_v39 = vpop.f32.mrf.mxu0 }
 0xbe8   :  { %v14672_v42 = vadd.f32 %v8547_v39, %v8444_v29  ;;  %v8466_v19 = vpop.f32.mrf.mxu1 }
 0xbe9   :  { %v8549_v1 = vpop.f32.mrf.mxu0 }
 0xbea   :  { %15069 = vst [vmem:[#allocation27_spill] sm:$0xff] %v14672_v42  ;;  %v14676_v46 = vadd.f32 %v8549_v1, %v8446_v36  ;;  %v14678_v23 = vpop.f32.mrf.mxu1 }
 0xbeb   :  { %v8553_v41 = vpop.f32.mrf.mxu0 }
 0xbec   :  { %v14682_v59 = vadd.f32 %v8553_v41, %v8450_v16  ;;  %v14684_v40 = vpop.f32.mrf.mxu1 }
 0xbed   :  { %v8555_v12 = vpop.f32.mrf.mxu0 }
 0xbee   :  { %15070 = vst [vmem:[#allocation39_spill] sm:$0xff] %v14682_v59  ;;  %v14686_v44 = vadd.f32 %v8555_v12, %v8452_v33  ;;  %v14688_v25 = vpop.f32.mrf.mxu1 }
 0xbef   :  { %v8557_v8 = vpop.f32.mrf.mxu0 }
 0xbf0   :  { %15071 = vst [vmem:[#allocation40_spill] sm:$0xff] %v14686_v44  ;;  %v14690_v63 = vadd.f32 %v8557_v8, %v8454_v60  ;;  %v14692_v49 = vpop.f32.mrf.mxu1 }
 0xbf1   :  { %v8559_v57 = vpop.f32.mrf.mxu0 }
 0xbf2   :  { %15072 = vst [vmem:[#allocation37_spill] sm:$0xff] %v14690_v63  ;;  %v14696_v20 = vadd.f32 %v8559_v57, %v8456_v62  ;;  %v14698_v26 = vpop.f32.mrf.mxu1 }
 0xbf3   :  { %v8563_v6 = vpop.f32.mrf.mxu0 }
 0xbf4   :  { %15073 = vst [vmem:[#allocation38_spill] sm:$0xff] %v14696_v20  ;;  %v14702_v4 = vadd.f32 %v8563_v6, %v8460_v7  ;;  %v14704_v9 = vpop.f32.mrf.mxu1 }
 0xbf5   :  { %v8565_v11 = vpop.f32.mrf.mxu0 }
 0xbf6   :  { %v14706_v50 = vadd.f32 %v8565_v11, %v8462_v35  ;;  %v14708_v53 = vpop.f32.mrf.mxu1 }
 0xbf7   :  { %v8567_v21 = vpop.f32.mrf.mxu0 }
 0xbf8   :  { %15074 = vst [vmem:[#allocation35_spill] sm:$0xff] %v14706_v50  ;;  %v14710_v61 = vadd.f32 %v8567_v21, %v8464_v34  ;;  %v14712_v32 = vpop.f32.mrf.mxu1 }
 0xbf9   :  { %v8569_v22 = vpop.f32.mrf.mxu0 }
 0xbfa   :  { %v14716_v30 = vadd.f32 %v8569_v22, %v8466_v19  ;;  %v14718_v58 = vpop.f32.mrf.mxu1 }
 0xbfb   :  { %v14720_v37 = vpop.f32.mrf.mxu0 }
 0xbfc   :  { %15075 = vst [vmem:[#allocation36_spill] sm:$0xff] %v14716_v30  ;;  %v14724_v52 = vpop.f32.mrf.mxu1 }
 0xbfd   :  { %v14726_v56 = vpop.f32.mrf.mxu0 }
 0xbfe   :  { %v14728_v5 = vpop.f32.mrf.mxu1 }
 0xbff   :  { %v14730_v28 = vpop.f32.mrf.mxu0 }
 0xc00   :  { %v14732_v14 = vpop.f32.mrf.mxu1 }
 0xc01   :  { %v14734_v48 = vpop.f32.mrf.mxu0 }
 0xc02   :  { %v8500_v13 = vpop.f32.mrf.mxu1 }
 0xc03   :  { %v14736_v18 = vpop.f32.mrf.mxu0 }
 0xc04   :  { %v8502_v47 = vpop.f32.mrf.mxu1 }
 0xc05   :  { %v14738_v51 = vpop.f32.mrf.mxu0 }
 0xc06   :  { %v8504_v27 = vpop.f32.mrf.mxu1 }
 0xc07   :  { %v14740_v55 = vpop.f32.mrf.mxu0 }
 0xc08   :  { %v8506_v43 = vpop.f32.mrf.mxu1 }
 0xc09   :  { %v14742_v29 = vpop.f32.mrf.mxu0 }
 0xc0a   :  { %v10724_v36 = vpop.f32.mrf.mxu1 }
 0xc0b   :  { %v8593_v16 = vpop.f32.mrf.mxu0 }
 0xc0c   :  { %v10725_v33 = vpop.f32.mrf.mxu1 }
 0xc0d   :  { %v8595_v60 = vpop.f32.mrf.mxu0 }
 0xc0e   :  { %v10727_v62 = vpop.f32.mrf.mxu1 }
 0xc0f   :  { %v8597_v7 = vpop.f32.mrf.mxu0 }
 0xc10   :  { %v10728_v38 = vpop.f32.mrf.mxu1 }
 0xc11   :  { %v8599_v35 = vpop.f32.mrf.mxu0  ;;  %v10729_v45 = vadd.f32 %v10728_v38, %v10727_v62 }
 0xc12   :  { %v10730_v2 = vpop.f32.mrf.mxu1 }
 0xc13   :  { %v8603_v17 = vpop.f32.mrf.mxu0 }
 0xc14   :  { %v10731_v34 = vpop.f32.mrf.mxu1 }
 0xc15   :  { %v8605_v39 = vpop.f32.mrf.mxu0  ;;  %v10732_v42 = vadd.f32 %v10731_v34, %v10730_v2  ;;  %v8604_v2 = vadd.f32 %v8603_v17, %v8500_v13  ;;  %v8594_v13 = vadd.f32 %v8593_v16, %v14718_v58  ;;  %v8584_v58 = vadd.f32 %v14736_v18, %v14698_v26 }
 0xc16   :  { %v10733_v19 = vpop.f32.mrf.mxu1  ;;  %v8574_v17 = vadd.f32 %v14720_v37, %v14678_v23  ;;  %v8576_v18 = vadd.f32 %v14726_v56, %v14684_v40  ;;  %v15084_v23 = vld [vmem:[#allocation36_spill] sm:$0xff]  ;;  %v15085_v37 = vld [vmem:[#allocation35_spill] sm:$0xff] }
 0xc17   :  { %v8607_v1 = vpop.f32.mrf.mxu0 }
 0xc18   :  { %v10734_v41 = vpop.f32.mrf.mxu1  ;;  %v8608_v30 = vadd.f32 %v8607_v1, %v8504_v27  ;;  %v15086_v1 = vpack.c.bf16 %v15084_v23, %v15085_v37  ;;  %v12129_v23 = vld [vmem:[#allocation16 + $0x64] ss:$12 sps:$4 sm:$0xff]   ;;  %v12118_v37 = vld [vmem:[#allocation16 + $0x20] ss:$12 sps:$4 sm:$0xff]  }
 0xc19   :  { %v8609_v12 = vpop.f32.mrf.mxu0  ;;  %v10735_v44 = vadd.f32 %v10734_v41, %v10733_v19 }
 0xc1a   :  { %v14744_v8 = vpop.f32.mrf.mxu1 }
 0xc1b   :  { %15076 = vst [vmem:[#allocation33_spill] sm:$0xff] %v14744_v8  ;;  %v8735_v57 = vpop.f32.mrf.mxu0 }
 0xc1c   :  { %v14746_v6 = vpop.f32.mrf.mxu1 }
 0xc1d   :  { %15077 = vst [vmem:[#allocation34_spill] sm:$0xff] %v14746_v6  ;;  %v11028_v11 = vpop.f32.mrf.mxu0  ;;  %v10726_v6 = vadd.f32 %v10725_v33, %v10724_v36 }
 0xc1e   :  { %v14748_v21 = vpop.f32.mrf.mxu1 }
 0xc1f   :  { %15078 = vst [vmem:[#allocation30_spill] sm:$0xff] %v14748_v21  ;;  %v8738_v22 = vpop.f32.mrf.mxu0 }
 0xc20   :  { %v14750_v31 = vpop.f32.mrf.mxu1  ;;  %v8739_v11 = vadd.f32 %v10729_v45, %v8738_v22  ;;  %v15082_v45 = vpack.c.bf16 %v14676_v46, %v14669_v10  ;;  %v8596_v10 = vadd.f32 %v8595_v60, %v14724_v52  ;;  %v8586_v52 = vadd.f32 %v14738_v51, %v14704_v9  ;;  %v15091_v22 = vld [vmem:[#allocation40_spill] sm:$0xff] }
 0xc21   :  { %15079 = vst [vmem:[#allocation32_spill] sm:$0xff] %v14750_v31  ;;  %v11029_v24 = vpop.f32.mrf.mxu0 }
 0xc22   :  { %v14752_v0 = vpop.f32.mrf.mxu1  ;;  %v8736_v24 = vadd.f32 %v10726_v6, %v8735_v57  ;;  %v15088_v57 = vld [vmem:[#allocation39_spill] sm:$0xff] }
 0xc23   :  { %15080 = vst [vmem:[#allocation28_spill] sm:$0xff] %v14752_v0  ;;  %v8743_v54 = vpop.f32.mrf.mxu0 }
 0xc24   :  { %v14754_v15 = vpop.f32.mrf.mxu1  ;;  %v8744_v59 = vadd.f32 %v10732_v42, %v8743_v54  ;;  %v8804_v62 = vpack.c.bf16 %v8739_v11, %v8736_v24  ;;  %v8606_v42 = vadd.f32 %v8605_v39, %v8502_v47  ;;  %v8600_v54 = vadd.f32 %v8599_v35, %v14732_v14 }
 0xc25   :  { %15081 = vst [vmem:[#allocation29_spill] sm:$0xff] %v14754_v15  ;;  %v11032_v3 = vpop.f32.mrf.mxu0  ;;  %v8588_v47 = vadd.f32 %v14740_v55, %v14708_v53  ;;  %v8590_v14 = vadd.f32 %v14742_v29, %v14712_v32  ;;  %v8578_v53 = vadd.f32 %v14730_v28, %v14688_v25  ;;  %v8580_v32 = vadd.f32 %v14734_v48, %v14692_v49 }
 0xc26   :  { %v14756_v8 = vpop.f32.mrf.mxu1  ;;  %v8610_v3 = vadd.f32 %v8609_v12, %v8506_v43  ;;  %v8802_v33 = vpack.c.bf16 %v8600_v54, %v8596_v10  ;;  %v15083_v48 = vpack.c.bf16 %v14710_v61, %v14702_v4  ;;  %v15087_v12 = vld [vmem:[#allocation37_spill] sm:$0xff]  ;;  %v15093_v61 = vld [vmem:[#allocation27_spill] sm:$0xff] }
 0xc27   :  { %v8746_v20 = vpop.f32.mrf.mxu0  ;;  %v8794_v55 = vpack.c.bf16 %v8588_v47, %v8584_v58  ;;  %v8801_v29 = vpack.c.bf16 %v8590_v14, %v8586_v52  ;;  %v8793_v9 = vpack.c.bf16 %v8578_v53, %v8574_v17  ;;  %v8800_v25 = vpack.c.bf16 %v8580_v32, %v8576_v18 }
 0xc28   :  { %v8747_v21 = vadd.f32 %v10735_v44, %v8746_v20  ;;  %v14758_v63 = vpop.f32.mrf.mxu1  ;;  %v8796_v44 = vpack.c.bf16 %v8608_v30, %v8604_v2  ;;  %v15089_v6 = vpack.c.bf16 %v15087_v12, %v15088_v57  ;;  %v15094_v2 = vld [vmem:[#allocation31_spill] sm:$0xff]  ;;  %v12138_v57 = vld [vmem:[#allocation16 + $0x98] ss:$12 sps:$4 sm:$0xff]  }
 0xc29   :  { %v11033_v31 = vpop.f32.mrf.mxu0  ;;  %v12131_v12 = vld [vmem:[#allocation16 + $0x80] ss:$12 sps:$4 sm:$0xff]  }
 0xc2a   :  { %v8805_v50 = vpack.c.bf16 %v8747_v21, %v8744_v59  ;;  %v14760_v0 = vpop.f32.mrf.mxu1  ;;  %v8598_v59 = vadd.f32 %v8597_v7, %v14728_v5  ;;  %v15090_v21 = vld [vmem:[#allocation38_spill] sm:$0xff]  ;;  %v15096_v17 = vld [vmem:[#allocation28_spill] sm:$0xff] }
 0xc2b   :  { %v14762_v15 = vpop.f32.mrf.mxu0  ;;  %v15092_v11 = vpack.c.bf16 %v15090_v21, %v15091_v22  ;;  %v12142_v21 = vld [vmem:[#allocation16 + $0xac] ss:$12 sps:$4 sm:$0xff]   ;;  %v12139_v22 = vld [vmem:[#allocation16 + $0xb0] ss:$12 sps:$4 sm:$0xff]  }
 0xc2c   :  { %10781 = vmatprep.subr.bf16.mxu1 %v8805_v50  ;;  %v14764_v38 = vpop.f32.mrf.mxu1  ;;  %v8803_v50 = vpack.c.bf16 %v8610_v3, %v8606_v42  ;;  %v8795_v5 = vpack.c.bf16 %v8598_v59, %v8594_v13 }
 0xc2d   :  { %v11036_v36 = vpop.f32.mrf.mxu0  ;;  %10782 = vmatpush3.bf16.msra.mxu1 %v15082_v45  ;;  %v12116_v45 = vld [vmem:[#allocation16 + $0x1c] ss:$12 sps:$4 sm:$0xff]   ;;  %v10750_v32 = vadd.f32 %v14764_v38, %v14760_v0  ;;  %v15098_v0 = vld [vmem:[#allocation30_spill] sm:$0xff]  ;;  %v15099_v38 = vld [vmem:[#allocation32_spill] sm:$0xff] }
 0xc2e   :  { %10783 = vmatprep.subr.bf16.mxu1 %v8804_v62  ;;  %v14769_v31 = vpop.f32.mrf.mxu1  ;;  %v12111_v62 = vld [vmem:[#allocation16] ss:$12 sps:$4 sm:$0xff]   ;;  %v15095_v36 = vpack.c.bf16 %v15093_v61, %v15094_v2  ;;  %v12150_v2 = vld [vmem:[#allocation16 + $0xdc] ss:$12 sps:$4 sm:$0xff]  }
 0xc2f   :  { %v14772_v20 = vpop.f32.mrf.mxu0  ;;  %v12143_v61 = vld [vmem:[#allocation16 + $0xc0] ss:$12 sps:$4 sm:$0xff]  }
 0xc30   :  { %v14775_v27 = vpop.f32.mrf.mxu1 }
 0xc31   :  { %v11037_v43 = vpop.f32.mrf.mxu0  ;;  %10784 = vmatpush3.bf16.msra.mxu1 %v8796_v44  ;;  %v10753_v52 = vadd.f32 %v14775_v27, %v14769_v31 }
 0xc32   :  { %10785 = vmatprep.subr.bf16.mxu1 %v8803_v50  ;;  %v10754_v46 = vpop.f32.mrf.mxu1 }
 0xc33   :  { %v14781_v30 = vpop.f32.mrf.mxu0 }
 0xc34   :  { %v10755_v7 = vpop.f32.mrf.mxu1 }
 0xc35   :  { %v11040_v16 = vpop.f32.mrf.mxu0  ;;  %10786 = vmatpush3.bf16.msra.mxu1 %v8795_v5  ;;  %v10756_v10 = vadd.f32 %v10755_v7, %v10754_v46  ;;  %v10747_v46 = vadd.f32 %v14758_v63, %v14756_v8 }
 0xc36   :  { %10787 = vmatprep.subr.bf16.mxu1 %v8802_v33  ;;  %v10757_v60 = vpop.f32.mrf.mxu1  ;;  %v12114_v33 = vld [vmem:[#allocation16 + $0x18] ss:$12 sps:$4 sm:$0xff]   ;;  %v12121_v16 = vld [vmem:[#allocation16 + $0x34] ss:$12 sps:$4 sm:$0xff]  }
 0xc37   :  { %v8762_v35 = vpop.f32.mrf.mxu0 }
 0xc38   :  { %v10758_v51 = vpop.f32.mrf.mxu1  ;;  %v8763_v31 = vadd.f32 %v10747_v46, %v8762_v35 }
 0xc39   :  { %v11041_v26 = vpop.f32.mrf.mxu0  ;;  %10788 = vmatpush3.bf16.msra.mxu1 %v8794_v55  ;;  %v10759_v54 = vadd.f32 %v10758_v51, %v10757_v60  ;;  %v12126_v51 = vld [vmem:[#allocation16 + $0x4c] ss:$12 sps:$4 sm:$0xff]  }
 0xc3a   :  { %10789 = vmatprep.subr.bf16.mxu1 %v8801_v29  ;;  %v10760_v39 = vpop.f32.mrf.mxu1  ;;  %v15097_v26 = vld [vmem:[#allocation29_spill] sm:$0xff] }
 0xc3b   :  { %v8767_v34 = vpop.f32.mrf.mxu0  ;;  %v10744_v18 = vadd.f32 %v15097_v26, %v15096_v17 }
 0xc3c   :  { %v10761_v40 = vpop.f32.mrf.mxu1  ;;  %v8768_v7 = vadd.f32 %v10750_v32, %v8767_v34 }
 0xc3d   :  { %v11044_v28 = vpop.f32.mrf.mxu0  ;;  %10790 = vmatpush3.bf16.msra.mxu1 %v8793_v9  ;;  %v10762_v50 = vadd.f32 %v10761_v40, %v10760_v39  ;;  %v12119_v9 = vld [vmem:[#allocation16 + $0x30] ss:$12 sps:$4 sm:$0xff]  }
 0xc3e   :  { %10791 = vmatprep.subr.bf16.mxu1 %v8800_v25  ;;  %v10763_v24 = vpop.f32.mrf.mxu1  ;;  %v10741_v25 = vadd.f32 %v15099_v38, %v15098_v0  ;;  %v8760_v28 = vadd.f32 %v10744_v18, %v14781_v30  ;;  %v15100_v39 = vld [vmem:[#allocation33_spill] sm:$0xff] }
 0xc3f   :  { %v8770_v19 = vpop.f32.mrf.mxu0  ;;  %v12122_v30 = vld [vmem:[#allocation16 + $0x38] ss:$12 sps:$4 sm:$0xff]   ;;  %v12123_v40 = vld [vmem:[#allocation16 + $0x50] ss:$12 sps:$4 sm:$0xff]  }
 0xc40   :  { %v10764_v42 = vpop.f32.mrf.mxu1  ;;  %v8771_v29 = vadd.f32 %v10753_v52, %v8770_v19  ;;  %v15101_v19 = vld [vmem:[#allocation34_spill] sm:$0xff]  ;;  %v8755_v63 = vadd.f32 %v10741_v25, %v14772_v20  ;;  %v8807_v8 = vpack.c.bf16 %v8763_v31, %v8760_v28 }
 0xc41   :  { %v11045_v49 = vpop.f32.mrf.mxu0  ;;  %10792 = vmatpush3.bf16.msra.mxu1 %v15083_v48  ;;  %v10765_v13 = vadd.f32 %v10764_v42, %v10763_v24  ;;  %v12124_v48 = vld [vmem:[#allocation16 + $0x48] ss:$12 sps:$4 sm:$0xff]   ;;  %v12127_v20 = vld [vmem:[#allocation16 + $0x60] ss:$12 sps:$4 sm:$0xff]   ;;  %v12148_v42 = vld [vmem:[#allocation16 + $0xd8] ss:$12 sps:$4 sm:$0xff]  }
 0xc42   :  { %10793 = vmatprep.subr.bf16.mxu1 %v15086_v1  ;;  %v8808_v27 = vpack.c.bf16 %v8771_v29, %v8768_v7  ;;  %v10738_v49 = vadd.f32 %v15101_v19, %v15100_v39  ;;  %v12134_v1 = vld [vmem:[#allocation16 + $0x7c] ss:$12 sps:$4 sm:$0xff]   ;;  %v14843_v31 = vld [vmem:[%s14986_s17] ss:$0 sm:$0xff] }
 0xc43   :  { %v8775_v56 = vpop.f32.mrf.mxu0  ;;  %v12140_v24 = vld [vmem:[#allocation16 + $0xa8] ss:$12 sps:$4 sm:$0xff]  }
 0xc44   :  { %v8776_v53 = vadd.f32 %v10756_v10, %v8775_v56  ;;  %v8752_v35 = vadd.f32 %v10738_v49, %v14762_v15  ;;  %v12130_v15 = vld [vmem:[#allocation16 + $0x68] ss:$12 sps:$4 sm:$0xff]   ;;  %v12132_v56 = vld [vmem:[#allocation16 + $0x78] ss:$12 sps:$4 sm:$0xff]   ;;  %v12159_v10 = vld [vmem:[#allocation16 + $0x120] ss:$12 sps:$4 sm:$0xff]  }
 0xc45   :  { %v11048_v41 = vpop.f32.mrf.mxu0  ;;  %10794 = vmatpush3.bf16.msra.mxu1 %v15089_v6  ;;  %v12135_v6 = vld [vmem:[#allocation16 + $0x90] ss:$12 sps:$4 sm:$0xff]  }
 0xc46   :  { %10795 = vmatprep.subr.bf16.mxu1 %v15092_v11  ;;  %v8806_v34 = vpack.c.bf16 %v8755_v63, %v8752_v35  ;;  %v12137_v41 = vld [vmem:[#allocation16 + $0x94] ss:$12 sps:$4 sm:$0xff]  }
 0xc47   :  { %v8778_v3 = vpop.f32.mrf.mxu0  ;;  %v12146_v11 = vld [vmem:[#allocation16 + $0xc8] ss:$12 sps:$4 sm:$0xff]  }
 0xc48   :  { %v8779_v47 = vadd.f32 %v10759_v54, %v8778_v3  ;;  %v12145_v3 = vld [vmem:[#allocation16 + $0xc4] ss:$12 sps:$4 sm:$0xff]  }
 0xc49   :  { %v11049_v4 = vpop.f32.mrf.mxu0  ;;  %10796 = vmatpush3.bf16.msra.mxu1 %v15095_v36  ;;  %v12155_v36 = vld [vmem:[#allocation16 + $0x110] ss:$12 sps:$4 sm:$0xff]  }
 0xc4a   :  { %v8809_v60 = vpack.c.bf16 %v8779_v47, %v8776_v53  ;;  %v12154_v4 = vld [vmem:[#allocation16 + $0xf8] ss:$12 sps:$4 sm:$0xff]   ;;  %v12151_v54 = vld [vmem:[#allocation16 + $0xf0] ss:$12 sps:$4 sm:$0xff]  }
 0xc4b   :  { %v8783_v59 = vpop.f32.mrf.mxu0  ;;  %v12166_v47 = vld [vmem:[#allocation16 + $0x13c] ss:$12 sps:$4 sm:$0xff]  }
 0xc4c   :  { %9104 = vmatmul.mubr.bf16.vlgmr.msra.gmra.mxu1 %v12111_v62  ;;  %v8784_v5 = vadd.f32 %v10762_v50, %v8783_v59  ;;  %v12147_v62 = vld [vmem:[#allocation16 + $0xe0] ss:$12 sps:$4 sm:$0xff]  }
 0xc4d   :  { %v11052_v44 = vpop.f32.mrf.mxu0  ;;  %9111 = vmatprep.mubr.bf16.mxu1 %v12116_v45  ;;  %v12162_v45 = vld [vmem:[#allocation16 + $0x128] ss:$12 sps:$4 sm:$0xff]   ;;  %v12158_v50 = vld [vmem:[#allocation16 + $0x10c] ss:$12 sps:$4 sm:$0xff]  }
 0xc4e   :  { %v12153_v59 = vld [vmem:[#allocation16 + $0xf4] ss:$12 sps:$4 sm:$0xff]  }
 0xc4f   :  { %v8786_v43 = vpop.f32.mrf.mxu0  ;;  %v12163_v44 = vld [vmem:[#allocation16 + $0x140] ss:$12 sps:$4 sm:$0xff]  }
 0xc50   :  { %v8787_v14 = vadd.f32 %v10765_v13, %v8786_v43  ;;  %v12156_v13 = vld [vmem:[#allocation16 + $0x108] ss:$12 sps:$4 sm:$0xff]   ;;  %v12161_v43 = vld [vmem:[#allocation16 + $0x124] ss:$12 sps:$4 sm:$0xff]  }
 0xc51   :  { %v11053_v58 = vpop.f32.mrf.mxu0 }
 0xc52   :  { %v8810_v55 = vpack.c.bf16 %v8787_v14, %v8784_v5  ;;  %v12164_v5 = vld [vmem:[#allocation16 + $0x138] ss:$12 sps:$4 sm:$0xff]  }
 0xc54   :  { %11054 = vmatprep.subr.bf16.mxu0 %v8810_v55  ;;  %9112 = vmatmul.mubr.bf16.gmra.mxu1 %v12114_v33 }
 0xc55   :  { %11055 = vmatpush3.bf16.msra.mxu0 %v8810_v55  ;;  %9119 = vmatprep.mubr.bf16.mxu1 %v12121_v16 }
 0xc56   :  { %11056 = vmatprep.subr.bf16.mxu0 %v8809_v60 }
 0xc59   :  { %11057 = vmatpush3.bf16.msra.mxu0 %v8809_v60 }
 0xc5a   :  { %11058 = vmatprep.subr.bf16.mxu0 %v8808_v27 }
 0xc5c   :  { %9120 = vmatmul.mubr.bf16.gmra.mxu1 %v12119_v9 }
 0xc5d   :  { %11059 = vmatpush3.bf16.msra.mxu0 %v8808_v27  ;;  %9127 = vmatprep.mubr.bf16.mxu1 %v12126_v51 }
 0xc5e   :  { %11060 = vmatprep.subr.bf16.mxu0 %v8807_v8 }
 0xc61   :  { %11061 = vmatpush3.bf16.msra.mxu0 %v8807_v8 }
 0xc62   :  { %11062 = vmatprep.subr.bf16.mxu0 %v8806_v34 }
 0xc64   :  { %9128 = vmatmul.mubr.bf16.gmra.mxu1 %v12124_v48 }
 0xc65   :  { %11063 = vmatpush3.bf16.msra.mxu0 %v8806_v34  ;;  %9135 = vmatprep.mubr.bf16.mxu1 %v12129_v23 }
 0xc68   :  { %11065 = vmatmul.mubr.msk.bf16.vlgmr.msra.gmra.mxu0 %vm9028_vm6, %v12118_v37 }
 0xc69   :  { %11068 = vmatprep.mubr.msk.bf16.mxu0 %vm9028_vm6, %v12122_v30 }
 0xc6c   :  { %9136 = vmatmul.mubr.bf16.gmra.mxu1 %v12127_v20 }
 0xc6d   :  { %9143 = vmatprep.mubr.bf16.mxu1 %v12134_v1 }
 0xc70   :  { %11069 = vmatmul.mubr.msk.bf16.gmra.mxu0 %vm9028_vm6, %v12123_v40 }
 0xc71   :  { %11072 = vmatprep.mubr.msk.bf16.mxu0 %vm9028_vm6, %v12130_v15 }
 0xc74   :  { %9144 = vmatmul.mubr.bf16.gmra.mxu1 %v12132_v56 }
 0xc75   :  { %9151 = vmatprep.mubr.bf16.mxu1 %v12137_v41 }
 0xc78   :  { %11073 = vmatmul.mubr.msk.bf16.gmra.mxu0 %vm9028_vm6, %v12131_v12 }
 0xc79   :  { %11076 = vmatprep.mubr.msk.bf16.mxu0 %vm9028_vm6, %v12138_v57 }
 0xc7c   :  { %9152 = vmatmul.mubr.bf16.gmra.mxu1 %v12135_v6 }
 0xc7d   :  { %9159 = vmatprep.mubr.bf16.mxu1 %v12142_v21 }
 0xc80   :  { %11077 = vmatmul.mubr.msk.bf16.gmra.mxu0 %vm9028_vm6, %v12139_v22 }
 0xc81   :  { %11080 = vmatprep.mubr.msk.bf16.mxu0 %vm9028_vm6, %v12146_v11 }
 0xc84   :  { %9160 = vmatmul.mubr.bf16.gmra.mxu1 %v12140_v24 }
 0xc85   :  { %9167 = vmatprep.mubr.bf16.mxu1 %v12145_v3 }
 0xc88   :  { %11081 = vmatmul.mubr.msk.bf16.gmra.mxu0 %vm9028_vm6, %v12147_v62 }
 0xc89   :  { %11084 = vmatprep.mubr.msk.bf16.mxu0 %vm9028_vm6, %v12154_v4 }
 0xc8c   :  { %9168 = vmatmul.mubr.bf16.gmra.mxu1 %v12143_v61 }
 0xc8d   :  { %9175 = vmatprep.mubr.bf16.mxu1 %v12150_v2 }
 0xc90   :  { %11085 = vmatmul.mubr.msk.bf16.gmra.mxu0 %vm9028_vm6, %v12155_v36 }
 0xc91   :  { %11088 = vmatprep.mubr.msk.bf16.mxu0 %vm9028_vm6, %v12162_v45 }
 0xc94   :  { %9176 = vmatmul.mubr.bf16.gmra.mxu1 %v12148_v42 }
 0xc95   :  { %9183 = vmatprep.mubr.bf16.mxu1 %v12153_v59 }
 0xc98   :  { %11089 = vmatmul.mubr.msk.bf16.gmra.mxu0 %vm9028_vm6, %v12163_v44 }
 0xc9c   :  { %9184 = vmatmul.mubr.bf16.gmra.mxu1 %v12151_v54 }
 0xc9d   :  { %9191 = vmatprep.mubr.bf16.mxu1 %v12158_v50 }
 0xca4   :  { %9192 = vmatmul.mubr.bf16.gmra.mxu1 %v12156_v13 }
 0xca5   :  { %9199 = vmatprep.mubr.bf16.mxu1 %v12161_v43 }
 0xcac   :  { %9200 = vmatmul.mubr.bf16.gmra.mxu1 %v12159_v10 }
 0xcad   :  { %9207 = vmatprep.mubr.bf16.mxu1 %v12166_v47 }
 0xcb4   :  { %9208 = vmatmul.mubr.bf16.gmra.mxu1 %v12164_v5 }
 0xd0c   :  { %v10797_v14 = vpop.f32.mrf.mxu1 }
 0xd0e   :  { %v10798_v33 = vpop.f32.mrf.mxu1 }
 0xd0f   :  { %v10799_v18 = vadd.f32 %v10798_v33, %v10797_v14 }
 0xd10   :  { %v10800_v58 = vpop.f32.mrf.mxu1 }
 0xd11   :  { %v9106_v39 = vadd.f32 %v10799_v18, %v14843_v31 }
 0xd12   :  { %v10801_v16 = vpop.f32.mrf.mxu1 }
 0xd13   :  { %v10802_v25 = vadd.f32 %v10801_v16, %v10800_v58 }
 0xd14   :  { %v10803_v52 = vpop.f32.mrf.mxu1 }
 0xd15   :  { %v9109_v40 = vadd.f32 %v10802_v25, %v14843_v31 }
 0xd16   :  { %v10804_v53 = vpop.f32.mrf.mxu1 }
 0xd17   :  { %v10805_v17 = vadd.f32 %v10804_v53, %v10803_v52 }
 0xd18   :  { %v10806_v55 = vpop.f32.mrf.mxu1 }
 0xd19   :  { %v9114_v9 = vadd.f32 %v10805_v17, %v14843_v31 }
 0xd1a   :  { %v10807_v32 = vpop.f32.mrf.mxu1 }
 0xd1b   :  { %v10808_v51 = vadd.f32 %v10807_v32, %v10806_v55 }
 0xd1c   :  { %v10809_v29 = vpop.f32.mrf.mxu1 }
 0xd1d   :  { %v9117_v34 = vadd.f32 %v10808_v51, %v14843_v31 }
 0xd1e   :  { %v10810_v60 = vpop.f32.mrf.mxu1 }
 0xd1f   :  { %v10811_v23 = vadd.f32 %v10810_v60, %v10809_v29 }
 0xd20   :  { %v10812_v46 = vpop.f32.mrf.mxu1 }
 0xd21   :  { %v9122_v24 = vadd.f32 %v10811_v23, %v14843_v31 }
 0xd22   :  { %v10813_v7 = vpop.f32.mrf.mxu1 }
 0xd23   :  { %v10814_v11 = vadd.f32 %v10813_v7, %v10812_v46 }
 0xd24   :  { %v10815_v26 = vpop.f32.mrf.mxu1 }
 0xd25   :  { %v9125_v50 = vadd.f32 %v10814_v11, %v14843_v31 }
 0xd26   :  { %v10816_v27 = vpop.f32.mrf.mxu1 }
 0xd27   :  { %v10817_v49 = vadd.f32 %v10816_v27, %v10815_v26 }
 0xd28   :  { %v11066_v0 = vpop.f32.mrf.mxu0  ;;  %v10818_v38 = vpop.f32.mrf.mxu1 }
 0xd29   :  { %v9259_v28 = vadd.f32 %v11066_v0, %v9114_v9  ;;  %v9130_v56 = vadd.f32 %v10817_v49, %v14843_v31 }
 0xd2a   :  { %v9250_v19 = vpop.f32.mrf.mxu0  ;;  %v10819_v63 = vpop.f32.mrf.mxu1 }
 0xd2b   :  { %v9363_v8 = vsub.f32 0.0, %v9259_v28  ;;  %v9251_v35 = vadd.f32 %v9250_v19, %v9106_v39  ;;  %v10820_v41 = vadd.f32 %v10819_v63, %v10818_v38 }
 0xd2c   :  { %v11067_v48 = vpop.f32.mrf.mxu0  ;;  %v10821_v37 = vpop.f32.mrf.mxu1 }
 0xd2d   :  { %v9393_v30 = vmul.f32 1.442695, %v9363_v8  ;;  %v9361_v20 = vsub.f32 0.0, %v9251_v35  ;;  %v9262_v1 = vadd.f32 %v11067_v48, %v9117_v34  ;;  %v9133_v36 = vadd.f32 %v10820_v41, %v14843_v31 }
 0xd2e   :  { %v9253_v15 = vpop.f32.mrf.mxu0  ;;  %v10822_v12 = vpop.f32.mrf.mxu1 }
 0xd2f   :  { %12167 = vpow2.f32 %v9393_v30  ;;  %v9389_v57 = vmul.f32 1.442695, %v9361_v20  ;;  %v9364_v6 = vsub.f32 0.0, %v9262_v1  ;;  %v9254_v21 = vadd.f32 %v9253_v15, %v9109_v40 }
 0xd30   :  { %v11070_v22 = vpop.f32.mrf.mxu0  ;;  %v10824_v3 = vpop.f32.mrf.mxu1  ;;  %v10823_v13 = vadd.f32 %v10822_v12, %v10821_v37 }
 0xd31   :  { %12169 = vpow2.f32 %v9389_v57  ;;  %v9395_v62 = vmul.f32 1.442695, %v9364_v6  ;;  %v9362_v4 = vsub.f32 0.0, %v9254_v21  ;;  %v9275_v61 = vadd.f32 %v11070_v22, %v9130_v56 }
 0xd32   :  { %v9266_v2 = vpop.f32.mrf.mxu0  ;;  %v10825_v45 = vpop.f32.mrf.mxu1  ;;  %v9138_v7 = vadd.f32 %v10823_v13, %v14843_v31 }
 0xd33   :  { %12171 = vpow2.f32 %v9395_v62  ;;  %v9391_v42 = vmul.f32 1.442695, %v9362_v4  ;;  %v9267_v59 = vadd.f32 %v9266_v2, %v9122_v24  ;;  %v9367_v44 = vsub.f32 0.0, %v9275_v61 }
 0xd34   :  { %v11071_v54 = vpop.f32.mrf.mxu0  ;;  %v10827_v43 = vpop.f32.mrf.mxu1  ;;  %v10826_v55 = vadd.f32 %v10825_v45, %v10824_v3 }
 0xd35   :  { %12173 = vpow2.f32 %v9391_v42  ;;  %v9365_v10 = vsub.f32 0.0, %v9267_v59  ;;  %v9401_v47 = vmul.f32 1.442695, %v9367_v44  ;;  %v9278_v5 = vadd.f32 %v11071_v54, %v9133_v36 }
 0xd36   :  { %v9269_v14 = vpop.f32.mrf.mxu0  ;;  %v10828_v33 = vpop.f32.mrf.mxu1  ;;  %v9141_v28 = vadd.f32 %v10826_v55, %v14843_v31 }
 0xd37   :  { %v9397_v58 = vmul.f32 1.442695, %v9365_v10  ;;  %12175 = vpow2.f32 %v9401_v47  ;;  %v9270_v16 = vadd.f32 %v9269_v14, %v9125_v50  ;;  %v9368_v52 = vsub.f32 0.0, %v9278_v5 }
 0xd38   :  { %v11074_v53 = vpop.f32.mrf.mxu0  ;;  %v10829_v32 = vadd.f32 %v10828_v33, %v10827_v43  ;;  %v10830_v29 = vpop.f32.mrf.mxu1 }
 0xd39   :  { %12177 = vpow2.f32 %v9397_v58  ;;  %v9366_v60 = vsub.f32 0.0, %v9270_v16  ;;  %v9403_v46 = vmul.f32 1.442695, %v9368_v52 }
 0xd3a   :  { %v9282_v17 = vpop.f32.mrf.mxu0  ;;  %v9146_v26 = vadd.f32 %v10829_v32, %v14843_v31  ;;  %v10831_v18 = vpop.f32.mrf.mxu1 }
 0xd3b   :  { %v9399_v27 = vmul.f32 1.442695, %v9366_v60  ;;  %12179 = vpow2.f32 %v9403_v46  ;;  %v9283_v9 = vadd.f32 %v9282_v17, %v9138_v7  ;;  %v10832_v51 = vadd.f32 %v10831_v18, %v10830_v29 }
 0xd3c   :  { %v12168_v0 = vpop.eup %12167  ;;  %v11075_v38 = vpop.f32.mrf.mxu0  ;;  %v9291_v25 = vadd.f32 %v11074_v53, %v9146_v26 }
 0xd3d   :  { %v10833_v39 = vpop.f32.mrf.mxu1  ;;  %v9447_v19 = vadd.f32 1.0, %v12168_v0  ;;  %12181 = vpow2.f32 %v9399_v27  ;;  %v9369_v49 = vsub.f32 0.0, %v9283_v9  ;;  %v9149_v63 = vadd.f32 %v10832_v51, %v14843_v31 }
 0xd3e   :  { %v12170_v8 = vpop.eup %12169  ;;  %v9371_v35 = vsub.f32 0.0, %v9291_v25  ;;  %v9285_v34 = vpop.f32.mrf.mxu0 }
 0xd3f   :  { %v10834_v48 = vpop.f32.mrf.mxu1  ;;  %12183 = vrcp.f32 %v9447_v19  ;;  %v9445_v23 = vadd.f32 1.0, %v12170_v8  ;;  %v9405_v37 = vmul.f32 1.442695, %v9369_v49  ;;  %v9286_v30 = vadd.f32 %v9285_v34, %v9141_v28 }
 0xd40   :  { %v12172_v20 = vpop.eup %12171  ;;  %v9409_v1 = vmul.f32 1.442695, %v9371_v35  ;;  %v9294_v40 = vadd.f32 %v11075_v38, %v9149_v63  ;;  %v10835_v15 = vadd.f32 %v10834_v48, %v10833_v39  ;;  %v11078_v41 = vpop.f32.mrf.mxu0 }
 0xd41   :  { %v10836_v56 = vpop.f32.mrf.mxu1  ;;  %12185 = vrcp.f32 %v9445_v23  ;;  %v9448_v12 = vadd.f32 1.0, %v12172_v20  ;;  %v9370_v57 = vsub.f32 0.0, %v9286_v30 }
 0xd42   :  { %v12174_v6 = vpop.eup %12173  ;;  %12187 = vpow2.f32 %v9405_v37  ;;  %v9372_v21 = vsub.f32 0.0, %v9294_v40  ;;  %v9154_v11 = vadd.f32 %v10835_v15, %v14843_v31  ;;  %v9298_v24 = vpop.f32.mrf.mxu0 }
 0xd43   :  { %v10837_v22 = vpop.f32.mrf.mxu1  ;;  %12189 = vrcp.f32 %v9448_v12  ;;  %v9446_v3 = vadd.f32 1.0, %v12174_v6  ;;  %v9407_v62 = vmul.f32 1.442695, %v9370_v57 }
 0xd44   :  { %v10838_v4 = vadd.f32 %v10837_v22, %v10836_v56  ;;  %v12176_v61 = vpop.eup %12175  ;;  %12191 = vpow2.f32 %v9409_v1  ;;  %v9411_v2 = vmul.f32 1.442695, %v9372_v21  ;;  %v9299_v36 = vadd.f32 %v9298_v24, %v9154_v11  ;;  %v11079_v42 = vpop.f32.mrf.mxu0 }
 0xd45   :  { %v10839_v45 = vpop.f32.mrf.mxu1  ;;  %12193 = vrcp.f32 %v9446_v3  ;;  %v9451_v59 = vadd.f32 1.0, %v12176_v61 }
 0xd46   :  { %v9157_v44 = vadd.f32 %v10838_v4, %v14843_v31  ;;  %v12178_v54 = vpop.eup %12177  ;;  %12195 = vpow2.f32 %v9407_v62  ;;  %v9373_v50 = vsub.f32 0.0, %v9299_v36  ;;  %v9301_v43 = vpop.f32.mrf.mxu0 }
 0xd47   :  { %v10840_v13 = vpop.f32.mrf.mxu1  ;;  %v9449_v10 = vadd.f32 1.0, %v12178_v54  ;;  %12197 = vrcp.f32 %v9451_v59 }
 0xd48   :  { %v10841_v47 = vadd.f32 %v10840_v13, %v10839_v45  ;;  %v9302_v5 = vadd.f32 %v9301_v43, %v9157_v44  ;;  %v12180_v14 = vpop.eup %12179  ;;  %12199 = vpow2.f32 %v9411_v2  ;;  %v9413_v33 = vmul.f32 1.442695, %v9373_v50  ;;  %v14859_v16 = vpop.f32.mrf.mxu0 }
 0xd49   :  { %v10842_v58 = vpop.f32.mrf.mxu1  ;;  %12201 = vrcp.f32 %v9449_v10  ;;  %v9452_v52 = vadd.f32 1.0, %v12180_v14 }
 0xd4a   :  { %v9162_v53 = vadd.f32 %v10841_v47, %v14843_v31  ;;  %v9374_v55 = vsub.f32 0.0, %v9302_v5  ;;  %v12182_v32 = vpop.eup %12181  ;;  %12203 = vpow2.f32 %v9413_v33  ;;  %v9314_v27 = vpop.f32.mrf.mxu0 }
 0xd4b   :  { %v10843_v29 = vpop.f32.mrf.mxu1  ;;  %v9450_v60 = vadd.f32 1.0, %v12182_v32  ;;  %12205 = vrcp.f32 %v9452_v52 }
 0xd4c   :  { %v9307_v46 = vadd.f32 %v11078_v41, %v9162_v53  ;;  %v9415_v7 = vmul.f32 1.442695, %v9374_v55  ;;  %v12184_v17 = vpop.eup %12183  ;;  %v10844_v26 = vadd.f32 %v10843_v29, %v10842_v58  ;;  %v14869_v35 = vpop.f32.mrf.mxu0 }
 0xd4d   :  { %v10845_v18 = vpop.f32.mrf.mxu1  ;;  %9503 = vst [vmem:[%s14989_s20 + $0x10] sm:$0xff] %v12184_v17  ;;  %12207 = vrcp.f32 %v9450_v60 }
 0xd4e   :  { %v9375_v9 = vsub.f32 0.0, %v9307_v46  ;;  %v12186_v51 = vpop.eup %12185  ;;  %12209 = vpow2.f32 %v9415_v7  ;;  %v9165_v0 = vadd.f32 %v10844_v26, %v14843_v31  ;;  %v9317_v6 = vpop.f32.mrf.mxu0 }
 0xd4f   :  { %v10846_v38 = vpop.f32.mrf.mxu1  ;;  %v12188_v25 = vpop.eup %12187  ;;  %9501 = vst [vmem:[%s14989_s20] sm:$0xff] %v12186_v51 }
 0xd50   :  { %v9417_v28 = vmul.f32 1.442695, %v9375_v9  ;;  %v10847_v39 = vadd.f32 %v10846_v38, %v10845_v18  ;;  %v12190_v19 = vpop.eup %12189  ;;  %v9453_v49 = vadd.f32 1.0, %v12188_v25  ;;  %v9310_v63 = vadd.f32 %v11079_v42, %v9165_v0  ;;  %v14889_v50 = vpop.f32.mrf.mxu0 }
 0xd51   :  { %v10848_v8 = vpop.f32.mrf.mxu1  ;;  %v12192_v34 = vpop.eup %12191  ;;  %9504 = vst [vmem:[%s14989_s20 + $0x18] sm:$0xff] %v12190_v19 }
 0xd52   :  { %12211 = vpow2.f32 %v9417_v28  ;;  %v9170_v48 = vadd.f32 %v10847_v39, %v14843_v31  ;;  %v12194_v23 = vpop.eup %12193  ;;  %v9455_v37 = vadd.f32 1.0, %v12192_v34  ;;  %v9376_v30 = vsub.f32 0.0, %v9310_v63  ;;  %v9330_v55 = vpop.f32.mrf.mxu0 }
 0xd53   :  { %12213 = vrcp.f32 %v9453_v49  ;;  %v10849_v20 = vpop.f32.mrf.mxu1  ;;  %v12196_v1 = vpop.eup %12195  ;;  %9502 = vst [vmem:[%s14989_s20 + $0x8] sm:$0xff] %v12194_v23 }
 0xd54   :  { %v10850_v40 = vadd.f32 %v10849_v20, %v10848_v8  ;;  %v9315_v15 = vadd.f32 %v9314_v27, %v9170_v48  ;;  %v12198_v56 = vpop.eup %12197  ;;  %12215 = vrcp.f32 %v9455_v37  ;;  %v9454_v41 = vadd.f32 1.0, %v12196_v1  ;;  %v11087_v51 = vpop.f32.mrf.mxu0 }
 0xd55   :  { %v9419_v12 = vmul.f32 1.442695, %v9376_v30  ;;  %v10851_v57 = vpop.f32.mrf.mxu1  ;;  %v12200_v21 = vpop.eup %12199  ;;  %9507 = vst [vmem:[%s14989_s20 + $0x30] sm:$0xff] %v12198_v56 }
 0xd56   :  { %v9377_v22 = vsub.f32 0.0, %v9315_v15  ;;  %v9173_v11 = vadd.f32 %v10850_v40, %v14843_v31  ;;  %v12202_v24 = vpop.eup %12201  ;;  %12217 = vrcp.f32 %v9454_v41  ;;  %v9456_v3 = vadd.f32 1.0, %v12200_v21  ;;  %v9333_v48 = vpop.f32.mrf.mxu0 }
 0xd57   :  { %v10852_v62 = vpop.f32.mrf.mxu1  ;;  %v12204_v4 = vpop.eup %12203  ;;  %9505 = vst [vmem:[%s14989_s20 + $0x20] sm:$0xff] %v12202_v24  ;;  %12219 = vpow2.f32 %v9419_v12 }
 0xd58   :  { %v9421_v61 = vmul.f32 1.442695, %v9377_v22  ;;  %v10853_v2 = vadd.f32 %v10852_v62, %v10851_v57  ;;  %v9318_v36 = vadd.f32 %v9317_v6, %v9173_v11  ;;  %v12206_v45 = vpop.eup %12205  ;;  %12221 = vrcp.f32 %v9456_v3  ;;  %v14914_v41 = vpop.f32.mrf.mxu0 }
 0xd59   :  { %v9457_v42 = vadd.f32 1.0, %v12204_v4  ;;  %v10854_v59 = vpop.f32.mrf.mxu1  ;;  %9508 = vst [vmem:[%s14989_s20 + $0x38] sm:$0xff] %v12206_v45 }
 0xd5a   :  { %12223 = vpow2.f32 %v9421_v61  ;;  %v9178_v44 = vadd.f32 %v10853_v2, %v14843_v31  ;;  %v9378_v54 = vsub.f32 0.0, %v9318_v36  ;;  %v12208_v13 = vpop.eup %12207  ;;  %v9346_v61 = vpop.f32.mrf.mxu0 }
 0xd5b   :  { %12225 = vrcp.f32 %v9457_v42  ;;  %v10855_v43 = vpop.f32.mrf.mxu1  ;;  %v12210_v10 = vpop.eup %12209  ;;  %9506 = vst [vmem:[%s14989_s20 + $0x28] sm:$0xff] %v12208_v13 }
 0xd5c   :  { %v9323_v47 = vadd.f32 %v14859_v16, %v9178_v44  ;;  %v9423_v5 = vmul.f32 1.442695, %v9378_v54  ;;  %v10856_v14 = vadd.f32 %v10855_v43, %v10854_v59  ;;  %v9458_v33 = vadd.f32 1.0, %v12210_v10  ;;  %v11091_v10 = vpop.f32.mrf.mxu0 }
 0xd5d   :  { %v10857_v58 = vpop.f32.mrf.mxu1 }
 0xd5e   :  { %v9379_v52 = vsub.f32 0.0, %v9323_v47  ;;  %12227 = vpow2.f32 %v9423_v5  ;;  %v9181_v53 = vadd.f32 %v10856_v14, %v14843_v31 }
 0xd5f   :  { %v12212_v32 = vpop.eup %12211  ;;  %12229 = vrcp.f32 %v9458_v33  ;;  %v10858_v29 = vpop.f32.mrf.mxu1 }
 0xd60   :  { %v12214_v60 = vpop.eup %12213  ;;  %v9459_v46 = vadd.f32 1.0, %v12212_v32  ;;  %v9425_v7 = vmul.f32 1.442695, %v9379_v52  ;;  %v9326_v17 = vadd.f32 %v14869_v35, %v9181_v53  ;;  %v10859_v26 = vadd.f32 %v10858_v29, %v10857_v58 }
 0xd61   :  { %9509 = vst [vmem:[%s14989_s20 + $0x40] sm:$0xff] %v12214_v60  ;;  %v10860_v16 = vpop.f32.mrf.mxu1  ;;  %v12216_v18 = vpop.eup %12215 }
 0xd62   :  { %12231 = vrcp.f32 %v9459_v46  ;;  %v9380_v27 = vsub.f32 0.0, %v9326_v17  ;;  %v9186_v9 = vadd.f32 %v10859_v26, %v14843_v31  ;;  %9511 = vst [vmem:[%s14989_s20 + $0x50] sm:$0xff] %v12216_v18  ;;  %v9349_v60 = vpop.f32.mrf.mxu0 }
 0xd63   :  { %12233 = vpow2.f32 %v9425_v7  ;;  %v10861_v0 = vpop.f32.mrf.mxu1  ;;  %v12218_v38 = vpop.eup %12217 }
 0xd64   :  { %v9427_v25 = vmul.f32 1.442695, %v9380_v27  ;;  %v10862_v28 = vadd.f32 %v10861_v0, %v10860_v16  ;;  %v9331_v39 = vadd.f32 %v9330_v55, %v9186_v9  ;;  %v12220_v19 = vpop.eup %12219  ;;  %9510 = vst [vmem:[%s14989_s20 + $0x48] sm:$0xff] %v12218_v38 }
 0xd65   :  { %v10863_v49 = vpop.f32.mrf.mxu1  ;;  %v12222_v63 = vpop.eup %12221  ;;  %v9460_v8 = vadd.f32 1.0, %v12220_v19 }
 0xd66   :  { %12235 = vpow2.f32 %v9427_v25  ;;  %v9381_v35 = vsub.f32 0.0, %v9331_v39  ;;  %v9189_v34 = vadd.f32 %v10862_v28, %v14843_v31  ;;  %9512 = vst [vmem:[%s14989_s20 + $0x58] sm:$0xff] %v12222_v63 }
 0xd67   :  { %v12224_v23 = vpop.eup %12223  ;;  %v10864_v37 = vpop.f32.mrf.mxu1  ;;  %12237 = vrcp.f32 %v9460_v8 }
 0xd68   :  { %v12226_v30 = vpop.eup %12225  ;;  %v9461_v20 = vadd.f32 1.0, %v12224_v23  ;;  %v9429_v1 = vmul.f32 1.442695, %v9381_v35  ;;  %v10865_v40 = vadd.f32 %v10864_v37, %v10863_v49  ;;  %v9334_v15 = vadd.f32 %v9333_v48, %v9189_v34 }
 0xd69   :  { %9513 = vst [vmem:[%s14989_s20 + $0x60] sm:$0xff] %v12226_v30  ;;  %v10866_v56 = vpop.f32.mrf.mxu1 }
 0xd6a   :  { %12239 = vrcp.f32 %v9461_v20  ;;  %v9194_v12 = vadd.f32 %v10865_v40, %v14843_v31  ;;  %v9382_v6 = vsub.f32 0.0, %v9334_v15 }
 0xd6b   :  { %v12228_v57 = vpop.eup %12227  ;;  %12241 = vpow2.f32 %v9429_v1  ;;  %v10867_v21 = vpop.f32.mrf.mxu1 }
 0xd6c   :  { %v12230_v22 = vpop.eup %12229  ;;  %v9462_v11 = vadd.f32 1.0, %v12228_v57  ;;  %v9339_v24 = vadd.f32 %v14889_v50, %v9194_v12  ;;  %v10868_v3 = vadd.f32 %v10867_v21, %v10866_v56  ;;  %v9431_v62 = vmul.f32 1.442695, %v9382_v6 }
 0xd6d   :  { %9514 = vst [vmem:[%s14989_s20 + $0x68] sm:$0xff] %v12230_v22  ;;  %v10869_v4 = vpop.f32.mrf.mxu1 }
 0xd6e   :  { %12243 = vrcp.f32 %v9462_v11  ;;  %v9383_v2 = vsub.f32 0.0, %v9339_v24  ;;  %v9197_v36 = vadd.f32 %v10868_v3, %v14843_v31 }
 0xd6f   :  { %v12232_v45 = vpop.eup %12231  ;;  %12245 = vpow2.f32 %v9431_v62  ;;  %v10870_v42 = vpop.f32.mrf.mxu1 }
 0xd70   :  { %v12234_v59 = vpop.eup %12233  ;;  %9515 = vst [vmem:[%s14989_s20 + $0x70] sm:$0xff] %v12232_v45  ;;  %v9433_v44 = vmul.f32 1.442695, %v9383_v2  ;;  %v9342_v54 = vadd.f32 %v11087_v51, %v9197_v36  ;;  %v10871_v50 = vadd.f32 %v10870_v42, %v10869_v4 }
 0xd71   :  { %v9463_v13 = vadd.f32 1.0, %v12234_v59  ;;  %v10872_v43 = vpop.f32.mrf.mxu1 }
 0xd72   :  { %12247 = vpow2.f32 %v9433_v44  ;;  %v9384_v47 = vsub.f32 0.0, %v9342_v54  ;;  %v9202_v5 = vadd.f32 %v10871_v50, %v14843_v31 }
 0xd73   :  { %v12236_v14 = vpop.eup %12235  ;;  %12249 = vrcp.f32 %v9463_v13  ;;  %v10873_v33 = vpop.f32.mrf.mxu1 }
 0xd74   :  { %v9464_v58 = vadd.f32 1.0, %v12236_v14  ;;  %v9435_v52 = vmul.f32 1.442695, %v9384_v47  ;;  %v10874_v53 = vadd.f32 %v10873_v33, %v10872_v43  ;;  %v9347_v55 = vadd.f32 %v9346_v61, %v9202_v5  ;;  %v12238_v32 = vpop.eup %12237 }
 0xd75   :  { %v10875_v29 = vpop.f32.mrf.mxu1  ;;  %9516 = vst [vmem:[%s14989_s20 + $0x78] sm:$0xff] %v12238_v32 }
 0xd76   :  { %12251 = vrcp.f32 %v9464_v58  ;;  %v9385_v46 = vsub.f32 0.0, %v9347_v55  ;;  %v9205_v7 = vadd.f32 %v10874_v53, %v14843_v31 }
 0xd77   :  { %v12240_v17 = vpop.eup %12239  ;;  %12253 = vpow2.f32 %v9435_v52  ;;  %v10876_v26 = vpop.f32.mrf.mxu1 }
 0xd78   :  { %v12242_v16 = vpop.eup %12241  ;;  %9517 = vst [vmem:[%s14989_s20 + $0x80] sm:$0xff] %v12240_v17  ;;  %v9437_v18 = vmul.f32 1.442695, %v9385_v46  ;;  %v10877_v27 = vadd.f32 %v10876_v26, %v10875_v29  ;;  %v9350_v9 = vadd.f32 %v9349_v60, %v9205_v7 }
 0xd79   :  { %v9465_v51 = vadd.f32 1.0, %v12242_v16  ;;  %v10878_v0 = vpop.f32.mrf.mxu1 }
 0xd7a   :  { %12255 = vpow2.f32 %v9437_v18  ;;  %v9210_v38 = vadd.f32 %v10877_v27, %v14843_v31  ;;  %v9386_v25 = vsub.f32 0.0, %v9350_v9 }
 0xd7b   :  { %v12244_v28 = vpop.eup %12243  ;;  %12257 = vrcp.f32 %v9465_v51  ;;  %v10879_v39 = vpop.f32.mrf.mxu1 }
 0xd7c   :  { %v12246_v19 = vpop.eup %12245  ;;  %9518 = vst [vmem:[%s14989_s20 + $0x88] sm:$0xff] %v12244_v28  ;;  %v9355_v49 = vadd.f32 %v14914_v41, %v9210_v38  ;;  %v9439_v63 = vmul.f32 1.442695, %v9386_v25  ;;  %v10880_v8 = vadd.f32 %v10879_v39, %v10878_v0 }
 0xd7d   :  { %v9466_v35 = vadd.f32 1.0, %v12246_v19 }
 0xd7e   :  { %v9387_v34 = vsub.f32 0.0, %v9355_v49  ;;  %12259 = vpow2.f32 %v9439_v63  ;;  %v9213_v48 = vadd.f32 %v10880_v8, %v14843_v31 }
 0xd7f   :  { %v12248_v23 = vpop.eup %12247  ;;  %12261 = vrcp.f32 %v9466_v35 }
 0xd80   :  { %v12250_v37 = vpop.eup %12249  ;;  %v9467_v30 = vadd.f32 1.0, %v12248_v23  ;;  %v9441_v20 = vmul.f32 1.442695, %v9387_v34  ;;  %v9358_v1 = vadd.f32 %v11091_v10, %v9213_v48 }
 0xd81   :  { %9519 = vst [vmem:[%s14989_s20 + $0x90] sm:$0xff] %v12250_v37 }
 0xd82   :  { %12263 = vrcp.f32 %v9467_v30  ;;  %v9388_v40 = vsub.f32 0.0, %v9358_v1 }
 0xd83   :  { %v12252_v15 = vpop.eup %12251  ;;  %12265 = vpow2.f32 %v9441_v20 }
 0xd84   :  { %v12254_v56 = vpop.eup %12253  ;;  %9520 = vst [vmem:[%s14989_s20 + $0x98] sm:$0xff] %v12252_v15  ;;  %v9443_v31 = vmul.f32 1.442695, %v9388_v40 }
 0xd85   :  { %v9468_v41 = vadd.f32 1.0, %v12254_v56 }
 0xd86   :  { %12267 = vpow2.f32 %v9443_v31 }
 0xd87   :  { %v12256_v12 = vpop.eup %12255  ;;  %12269 = vrcp.f32 %v9468_v41 }
 0xd88   :  { %v12258_v57 = vpop.eup %12257  ;;  %v9469_v6 = vadd.f32 1.0, %v12256_v12 }
 0xd89   :  { %9521 = vst [vmem:[%s14989_s20 + $0xa0] sm:$0xff] %v12258_v57 }
 0xd8a   :  { %12271 = vrcp.f32 %v9469_v6 }
 0xd8b   :  { %v12260_v21 = vpop.eup %12259 }
 0xd8c   :  { %v12262_v22 = vpop.eup %12261  ;;  %v9470_v11 = vadd.f32 1.0, %v12260_v21 }
 0xd8d   :  { %9522 = vst [vmem:[%s14989_s20 + $0xa8] sm:$0xff] %v12262_v22 }
 0xd8e   :  { %12273 = vrcp.f32 %v9470_v11 }
 0xd8f   :  { %v12264_v24 = vpop.eup %12263 }
 0xd90   :  { %v12266_v3 = vpop.eup %12265  ;;  %9523 = vst [vmem:[%s14989_s20 + $0xb0] sm:$0xff] %v12264_v24 }
 0xd91   :  { %v9471_v62 = vadd.f32 1.0, %v12266_v3 }
 0xd93   :  { %v12268_v4 = vpop.eup %12267  ;;  %12275 = vrcp.f32 %v9471_v62 }
 0xd94   :  { %v12270_v61 = vpop.eup %12269  ;;  %v9472_v2 = vadd.f32 1.0, %v12268_v4 }
 0xd95   :  { %9524 = vst [vmem:[%s14989_s20 + $0xb8] sm:$0xff] %v12270_v61 }
 0xd96   :  { %12277 = vrcp.f32 %v9472_v2 }
 0xd97   :  { %v12272_v36 = vpop.eup %12271 }
 0xd98   :  { %9525 = vst [vmem:[%s14989_s20 + $0xc0] sm:$0xff] %v12272_v36 }
 0xd9b   :  { %v12274_v45 = vpop.eup %12273 }
 0xd9c   :  { %9526 = vst [vmem:[%s14989_s20 + $0xc8] sm:$0xff] %v12274_v45 }
 0xda0   :  { %v12276_v42 = vpop.eup %12275 }
 0xda1   :  { %9527 = vst [vmem:[%s14989_s20 + $0xd0] sm:$0xff] %v12276_v42 }
 0xda3   :  { %v12278_v59 = vpop.eup %12277 }
 0xda4   :  { %9528 = vst [vmem:[%s14989_s20 + $0xd8] sm:$0xff] %v12278_v59 }
 0xda5   :  { %9537 = vsyncpa [#allocation3], 1 }
 0xda6   :  { %9538 = vsyncpa [#allocation5], 1 }
 0xda7   :  { %9539 = vsyncpa [#allocation8], 1 }
 0xda8   :  { %9540 = vsyncpa [#allocation11], 1 }
 0xda9   :  { %9541 = vsyncpa [#allocation14], 1 }
 0xdaa   :  { %9542 = vsyncpa [#allocation17], 1 }

</bundles_post_ra>
